<compile_context>
chip_gen: v6e
topology: v6e:2x2x1
jax: 0.10.0
libtpu: 0.0.40
codegen_flags: <defaults>
</compile_context>

<pallas_src>
import math
import numpy as np
import jax
import jax.numpy as jnp
from jax.experimental import pallas as pl
from jax.experimental.pallas import tpu as pltpu

# ----------------------------- model config (small) -------------------------
BATCH         = 2
IMG_C         = 3
IMG_SIZE      = 16
PATCH         = 8
N_PATCHES     = (IMG_SIZE // PATCH) ** 2          # 4
VIS_SEQ       = 1 + N_PATCHES                     # 5 (cls + patches)
VISION_WIDTH  = 32
VISION_HEADS  = 4
VISION_LAYERS = 2

N_CLS        = 3
N_CTX        = 4
CTX_DIM      = 32                                 # text transformer width
TEXT_HEADS   = 4
TEXT_LAYERS  = 2
CONTEXT_LEN  = 16
EMBED_DIM    = 32                                 # shared CLIP embedding dim
NAME_LENS    = [1, 2, 1]

NEG_INF = -1e30                                   # additive mask value


# ----------------------------- in-kernel helpers (traced) -------------------
def _ln(x, g, b):
    mu = jnp.mean(x, axis=-1, keepdims=True)
    xc = x - mu
    var = jnp.mean(xc * xc, axis=-1, keepdims=True)
    return xc * jax.lax.rsqrt(var + 1e-5) * g + b


def _head_masks(rows, d, n_heads):
    """Per-head column masks (rows, d): 1.0 inside head h's channel slice."""
    hd = d // n_heads
    col = jax.lax.broadcasted_iota(jnp.int32, (rows, d), 1)
    return [jnp.where((col >= h * hd) & (col < (h + 1) * hd),
                      jnp.float32(1.0), jnp.float32(0.0))
            for h in range(n_heads)]


def _mha(x, wq, bq, wk, bk, wv, bv, wo, bo, head_masks, attn_bias, hd):
    """Multi-head attention over a flattened (batch*seq, d) slab.

    Head selection is done with channel masks (zeroed q / v columns) so every
    matmul is a full-width MXU contraction; `attn_bias` is an additive mask
    that is block-diagonal per batch element (and causal for the text stack).
    """
    scale = 1.0 / math.sqrt(hd)
    q = jnp.dot(x, wq, preferred_element_type=jnp.float32) + bq
    k = jnp.dot(x, wk, preferred_element_type=jnp.float32) + bk
    v = jnp.dot(x, wv, preferred_element_type=jnp.float32) + bv
    out = jnp.zeros(x.shape, jnp.float32)
    for mask_h in head_masks:
        qh = (q * mask_h) * scale                      # zero non-head channels
        # scores over the full flattened sequence (contraction only sees head h)
        s = jax.lax.dot_general(qh, k, (((1,), (1,)), ((), ())),
                                preferred_element_type=jnp.float32)
        s = s + attn_bias
        m = jnp.max(s, axis=-1, keepdims=True)
        p = jnp.exp(s - m)
        denom = jnp.sum(p, axis=-1, keepdims=True)
        probs = p * pl.reciprocal(denom, approx=True)  # EUP
        # head-h output lands in head-h columns because v is column-masked
        out = out + jnp.dot(probs, v * mask_h, preferred_element_type=jnp.float32)
    return jnp.dot(out, wo, preferred_element_type=jnp.float32) + bo


def _block(x, p, head_masks, attn_bias, hd):
    (ln1_g, ln1_b, wq, bq, wk, bk, wv, bv, wo, bo,
     ln2_g, ln2_b, w1, b1, w2, b2) = p
    x = x + _mha(_ln(x, ln1_g, ln1_b), wq, bq, wk, bk, wv, bv, wo, bo,
                 head_masks, attn_bias, hd)
    h = _ln(x, ln2_g, ln2_b)
    h = jnp.dot(h, w1, preferred_element_type=jnp.float32) + b1
    h = h * (1.0 / (1.0 + jnp.exp(-1.702 * h)))        # QuickGELU (EUP exp)
    return x + jnp.dot(h, w2, preferred_element_type=jnp.float32) + b2


# ----------------------------- fused Pallas kernels -------------------------
def _vision_encoder_kernel(*refs):
    out_ref = refs[-1]
    vals = [r[...] for r in refs[:-1]]
    it = iter(vals)
    patches  = next(it)          # (B*NP, C*P*P)
    conv_w   = next(it)          # (C*P*P, width)
    place    = next(it)          # (B*S, B*NP) 0/1 placement of patch tokens
    base     = next(it)          # (B*S, width) pos emb (+ cls emb on cls rows)
    ln_pre_g = next(it); ln_pre_b = next(it)
    blocks = [tuple(next(it) for _ in range(16)) for _ in range(VISION_LAYERS)]
    ln_post_g = next(it); ln_post_b = next(it)
    proj      = next(it)
    attn_bias = next(it)         # (B*S, B*S) block-diagonal additive mask

    patch_emb = jnp.dot(patches, conv_w, preferred_element_type=jnp.float32)
    x = jnp.dot(place, patch_emb, preferred_element_type=jnp.float32) + base
    rows, d = x.shape
    hd = d // VISION_HEADS
    masks = _head_masks(rows, d, VISION_HEADS)

    x = _ln(x, ln_pre_g, ln_pre_b)
    for bp in blocks:
        x = _block(x, bp, masks, attn_bias, hd)
    x = _ln(x, ln_post_g, ln_post_b)
    out_ref[...] = jnp.dot(x, proj, preferred_element_type=jnp.float32)


def _text_encoder_kernel(*refs):
    out_ref = refs[-1]
    vals = [r[...] for r in refs[:-1]]
    it = iter(vals)
    x = next(it)                 # (n_cls*L, d) prompts + positional emb
    blocks = [tuple(next(it) for _ in range(16)) for _ in range(TEXT_LAYERS)]
    ln_f_g = next(it); ln_f_b = next(it)
    text_proj  = next(it)        # (d, embed)
    eot_select = next(it)        # (n_cls, n_cls*L) one-hot EOT row selector
    attn_bias  = next(it)        # (n_cls*L, n_cls*L) causal + per-prompt mask

    rows, d = x.shape
    hd = d // TEXT_HEADS
    masks = _head_masks(rows, d, TEXT_HEADS)
    for bp in blocks:
        x = _block(x, bp, masks, attn_bias, hd)
    x = _ln(x, ln_f_g, ln_f_b)
    x = jnp.dot(eot_select, x, preferred_element_type=jnp.float32)   # EOT gather
    out_ref[...] = jnp.dot(x, text_proj, preferred_element_type=jnp.float32)


def _cosine_head_kernel(img_ref, txt_ref, scale_ref, out_ref):
    """Fused L2-normalize (image + text) and scaled cosine logits."""
    img = img_ref[...]
    txt = txt_ref[...]
    img = img * jax.lax.rsqrt(jnp.sum(img * img, axis=-1, keepdims=True) + 1e-12)
    txt = txt * jax.lax.rsqrt(jnp.sum(txt * txt, axis=-1, keepdims=True) + 1e-12)
    logits = jax.lax.dot_general(img, txt, (((1,), (1,)), ((), ())),
                                 preferred_element_type=jnp.float32)
    out_ref[...] = scale_ref[0, 0] * logits


# ----------------------------- wrappers --------------------------------------
def _vmem_spec():
    return pl.BlockSpec(memory_space=pltpu.MemorySpace.VMEM)


def _block_args(blk):
    """Flatten one transformer block's params to the 16-array kernel layout."""
    r1 = lambda a: a.reshape(1, -1)
    wq, wk, wv = jnp.split(blk["w_qkv"], 3, axis=1)
    bq, bk, bv = jnp.split(blk["b_qkv"], 3)
    return [r1(blk["ln1_g"]), r1(blk["ln1_b"]),
            wq, r1(bq), wk, r1(bk), wv, r1(bv),
            blk["w_out"], r1(blk["b_out"]),
            r1(blk["ln2_g"]), r1(blk["ln2_b"]),
            blk["w_fc1"], r1(blk["b_fc1"]),
            blk["w_fc2"], r1(blk["b_fc2"])]


def image_encoder(p, image):
    B, C, H, W = image.shape
    gh, gw = H // PATCH, W // PATCH
    n_patch = gh * gw
    S = 1 + n_patch
    rows = B * S

    # NCHW patch extraction == Conv2d(stride=patch) expressed as a matmul.
    patches = image.reshape(B, C, gh, PATCH, gw, PATCH)
    patches = patches.transpose(0, 2, 4, 1, 3, 5).reshape(B * n_patch, C * PATCH * PATCH)
    conv_w = p["conv_w"].reshape(VISION_WIDTH, C * PATCH * PATCH).T

    # Placement matrix: puts patch token i of batch b into row b*S + 1 + i.
    place = np.zeros((rows, B * n_patch), np.float32)
    for b in range(B):
        for i in range(n_patch):
            place[b * S + 1 + i, b * n_patch + i] = 1.0
    place = jnp.asarray(place)

    # base = tiled positional embedding, with class embedding added on cls rows.
    cls_pad = jnp.pad(p["class_emb"].reshape(1, -1), ((0, S - 1), (0, 0)))
    base = jnp.tile(p["pos_emb"] + cls_pad, (B, 1))

    # Block-diagonal additive attention mask (no causal mask in the ViT).
    bias = np.full((rows, rows), NEG_INF, np.float32)
    for b in range(B):
        bias[b * S:(b + 1) * S, b * S:(b + 1) * S] = 0.0
    bias = jnp.asarray(bias)

    r1 = lambda a: a.reshape(1, -1)
    args = [patches, conv_w, place, base, r1(p["ln_pre_g"]), r1(p["ln_pre_b"])]
    for blk in p["blocks"]:
        args += _block_args(blk)
    args += [r1(p["ln_post_g"]), r1(p["ln_post_b"]), p["proj"], bias]

    feats = pl.pallas_call(
        _vision_encoder_kernel,
        out_shape=jax.ShapeDtypeStruct((rows, EMBED_DIM), jnp.float32),
        in_specs=[_vmem_spec() for _ in args],
        out_specs=_vmem_spec(),
    )(*args)
    return feats.reshape(B, S, EMBED_DIM)   # row 0 per batch = global, 1: = local


def prompt_learner_forward(p):
    # class_token_position == 'end': cat([prefix, ctx, suffix], dim=1)
    ctx = jnp.broadcast_to(p["ctx"][None], (N_CLS, N_CTX, CTX_DIM))
    return jnp.concatenate([p["token_prefix"], ctx, p["token_suffix"]], axis=1)


def text_encoder(p, prompts, tokenized_prompts):
    n_cls, L, d = prompts.shape
    rows = n_cls * L
    x0 = (prompts + p["pos_emb"][None]).reshape(rows, d)

    # Causal + per-prompt block-diagonal additive mask.
    bias = np.full((rows, rows), NEG_INF, np.float32)
    for c in range(n_cls):
        for i in range(L):
            bias[c * L + i, c * L:c * L + i + 1] = 0.0
    bias = jnp.asarray(bias)

    # EOT token (argmax over token ids) gather as a one-hot matmul.
    eot = jnp.argmax(tokenized_prompts, axis=-1)
    sel = jax.nn.one_hot(jnp.arange(n_cls) * L + eot, rows, dtype=jnp.float32)

    r1 = lambda a: a.reshape(1, -1)
    args = [x0]
    for blk in p["blocks"]:
        args += _block_args(blk)
    args += [r1(p["ln_final_g"]), r1(p["ln_final_b"]), p["text_proj"], sel, bias]

    return pl.pallas_call(
        _text_encoder_kernel,
        out_shape=jax.ShapeDtypeStruct((n_cls, EMBED_DIM), jnp.float32),
        in_specs=[_vmem_spec() for _ in args],
        out_specs=_vmem_spec(),
    )(*args)


def cosine_logits_all(feats2d, txt, scale):
    M, D = feats2d.shape
    C = txt.shape[0]
    scale_arr = jnp.reshape(scale, (1, 1)).astype(jnp.float32)
    return pl.pallas_call(
        _cosine_head_kernel,
        out_shape=jax.ShapeDtypeStruct((M, C), jnp.float32),
        in_specs=[_vmem_spec(), _vmem_spec(),
                  pl.BlockSpec(memory_space=pltpu.MemorySpace.SMEM)],
        out_specs=_vmem_spec(),
    )(feats2d, txt, scale_arr)


def custom_clip_forward(params, image):
    feats = image_encoder(params["visual"], image)              # (B, 1+P, E)
    B, S, E = feats.shape
    prompts = prompt_learner_forward(params["prompt"])
    text_features = text_encoder(params["text"], prompts, params["tokenized_prompts"])
    scale = jnp.exp(params["logit_scale"])
    # One fused head call for global + local features (text normalized once).
    logits_all = cosine_logits_all(feats.reshape(B * S, E), text_features, scale)
    logits_all = logits_all.reshape(B, S, N_CLS)
    logits = logits_all[:, 0, :]                                # (B, n_cls)
    logits_local = logits_all[:, 1:, :]                         # (B, P, n_cls)
    return logits, logits_local


# ----------------------------- parameter init -------------------------------
def _init_block(key, d):
    k1, k2, k3, k4 = jax.random.split(key, 4)
    s = 0.02
    return dict(
        ln1_g=jnp.ones((d,), jnp.float32), ln1_b=jnp.zeros((d,), jnp.float32),
        w_qkv=s * jax.random.normal(k1, (d, 3 * d), jnp.float32),
        b_qkv=jnp.zeros((3 * d,), jnp.float32),
        w_out=s * jax.random.normal(k2, (d, d), jnp.float32),
        b_out=jnp.zeros((d,), jnp.float32),
        ln2_g=jnp.ones((d,), jnp.float32), ln2_b=jnp.zeros((d,), jnp.float32),
        w_fc1=s * jax.random.normal(k3, (d, 4 * d), jnp.float32),
        b_fc1=jnp.zeros((4 * d,), jnp.float32),
        w_fc2=s * jax.random.normal(k4, (4 * d, d), jnp.float32),
        b_fc2=jnp.zeros((d,), jnp.float32),
    )


def init_params(key):
    keys = list(jax.random.split(key, 32))
    ki = iter(keys)
    s = 0.02

    visual = dict(
        conv_w=s * jax.random.normal(next(ki), (VISION_WIDTH, IMG_C, PATCH, PATCH), jnp.float32),
        class_emb=s * jax.random.normal(next(ki), (VISION_WIDTH,), jnp.float32),
        pos_emb=s * jax.random.normal(next(ki), (VIS_SEQ, VISION_WIDTH), jnp.float32),
        ln_pre_g=jnp.ones((VISION_WIDTH,), jnp.float32), ln_pre_b=jnp.zeros((VISION_WIDTH,), jnp.float32),
        ln_post_g=jnp.ones((VISION_WIDTH,), jnp.float32), ln_post_b=jnp.zeros((VISION_WIDTH,), jnp.float32),
        proj=s * jax.random.normal(next(ki), (VISION_WIDTH, EMBED_DIM), jnp.float32),
        blocks=[_init_block(next(ki), VISION_WIDTH) for _ in range(VISION_LAYERS)],
    )

    text = dict(
        pos_emb=s * jax.random.normal(next(ki), (CONTEXT_LEN, CTX_DIM), jnp.float32),
        ln_final_g=jnp.ones((CTX_DIM,), jnp.float32), ln_final_b=jnp.zeros((CTX_DIM,), jnp.float32),
        text_proj=s * jax.random.normal(next(ki), (CTX_DIM, EMBED_DIM), jnp.float32),
        blocks=[_init_block(next(ki), CTX_DIM) for _ in range(TEXT_LAYERS)],
    )

    suffix_len = CONTEXT_LEN - 1 - N_CTX
    prompt = dict(
        ctx=s * jax.random.normal(next(ki), (N_CTX, CTX_DIM), jnp.float32),          # generic context (CSC=False)
        token_prefix=s * jax.random.normal(next(ki), (N_CLS, 1, CTX_DIM), jnp.float32),
        token_suffix=s * jax.random.normal(next(ki), (N_CLS, suffix_len, CTX_DIM), jnp.float32),
    )

    # synthetic "tokenized_prompts": SOT, ctx tokens, class-name tokens, EOT (max id), pad 0
    tok = np.zeros((N_CLS, CONTEXT_LEN), np.int32)
    for i, nl in enumerate(NAME_LENS):
        tok[i, 0] = 49406
        tok[i, 1:1 + N_CTX] = 343
        tok[i, 1 + N_CTX:1 + N_CTX + nl] = 1000 + i
        tok[i, 1 + N_CTX + nl] = 49407
    # TODO(synk): real CLIP tokenizer / token_embedding replaced by deterministic synthetic embeddings.

    return dict(
        visual=visual,
        text=text,
        prompt=prompt,
        tokenized_prompts=jnp.asarray(tok),
        logit_scale=jnp.asarray(np.log(1.0 / 0.07), jnp.float32),
    )


# ----------------------------- main ------------------------------------------
if __name__ == "__main__":
    key = jax.random.PRNGKey(0)
    k_param, k_img = jax.random.split(key)
    params = init_params(k_param)
    image = jax.random.normal(k_img, (BATCH, IMG_C, IMG_SIZE, IMG_SIZE), jnp.float32)

    logits, logits_local = jax.jit(custom_clip_forward)(params, image)
    jax.block_until_ready((logits, logits_local))

    assert logits.shape == (BATCH, N_CLS)
    assert logits_local.shape == (BATCH, N_PATCHES, N_CLS)
    assert bool(jnp.all(jnp.isfinite(logits))) and bool(jnp.all(jnp.isfinite(logits_local)))
    print("KERNEL_OK")
</pallas_src>

<mosaic_0001>
module attributes {stable_mosaic.version = 11 : i64} {
  func.func @_vision_encoder_kernel(%arg0: memref<8x192xf32, #tpu.memory_space<vmem>>, %arg1: memref<192x32xf32, #tpu.memory_space<vmem>>, %arg2: memref<10x8xf32, #tpu.memory_space<vmem>>, %arg3: memref<10x32xf32, #tpu.memory_space<vmem>>, %arg4: memref<1x32xf32, #tpu.memory_space<vmem>>, %arg5: memref<1x32xf32, #tpu.memory_space<vmem>>, %arg6: memref<1x32xf32, #tpu.memory_space<vmem>>, %arg7: memref<1x32xf32, #tpu.memory_space<vmem>>, %arg8: memref<32x32xf32, #tpu.memory_space<vmem>>, %arg9: memref<1x32xf32, #tpu.memory_space<vmem>>, %arg10: memref<32x32xf32, #tpu.memory_space<vmem>>, %arg11: memref<1x32xf32, #tpu.memory_space<vmem>>, %arg12: memref<32x32xf32, #tpu.memory_space<vmem>>, %arg13: memref<1x32xf32, #tpu.memory_space<vmem>>, %arg14: memref<32x32xf32, #tpu.memory_space<vmem>>, %arg15: memref<1x32xf32, #tpu.memory_space<vmem>>, %arg16: memref<1x32xf32, #tpu.memory_space<vmem>>, %arg17: memref<1x32xf32, #tpu.memory_space<vmem>>, %arg18: memref<32x128xf32, #tpu.memory_space<vmem>>, %arg19: memref<1x128xf32, #tpu.memory_space<vmem>>, %arg20: memref<128x32xf32, #tpu.memory_space<vmem>>, %arg21: memref<1x32xf32, #tpu.memory_space<vmem>>, %arg22: memref<1x32xf32, #tpu.memory_space<vmem>>, %arg23: memref<1x32xf32, #tpu.memory_space<vmem>>, %arg24: memref<32x32xf32, #tpu.memory_space<vmem>>, %arg25: memref<1x32xf32, #tpu.memory_space<vmem>>, %arg26: memref<32x32xf32, #tpu.memory_space<vmem>>, %arg27: memref<1x32xf32, #tpu.memory_space<vmem>>, %arg28: memref<32x32xf32, #tpu.memory_space<vmem>>, %arg29: memref<1x32xf32, #tpu.memory_space<vmem>>, %arg30: memref<32x32xf32, #tpu.memory_space<vmem>>, %arg31: memref<1x32xf32, #tpu.memory_space<vmem>>, %arg32: memref<1x32xf32, #tpu.memory_space<vmem>>, %arg33: memref<1x32xf32, #tpu.memory_space<vmem>>, %arg34: memref<32x128xf32, #tpu.memory_space<vmem>>, %arg35: memref<1x128xf32, #tpu.memory_space<vmem>>, %arg36: memref<128x32xf32, #tpu.memory_space<vmem>>, %arg37: memref<1x32xf32, #tpu.memory_space<vmem>>, %arg38: memref<1x32xf32, #tpu.memory_space<vmem>>, %arg39: memref<1x32xf32, #tpu.memory_space<vmem>>, %arg40: memref<32x32xf32, #tpu.memory_space<vmem>>, %arg41: memref<10x10xf32, #tpu.memory_space<vmem>>, %arg42: memref<10x32xf32, #tpu.memory_space<vmem>>) attributes {dimension_semantics = [], scalar_prefetch = 0 : i64, scratch_operands = 0 : i64, tpu.core_type = #tpu.core_type<tc>} {
    %c0 = arith.constant 0 : index
    %c0_0 = arith.constant 0 : index
    %0 = vector.load %arg0[%c0, %c0_0] : memref<8x192xf32, #tpu.memory_space<vmem>>, vector<8x192xf32>
    %c0_1 = arith.constant 0 : index
    %c0_2 = arith.constant 0 : index
    %1 = vector.load %arg1[%c0_1, %c0_2] : memref<192x32xf32, #tpu.memory_space<vmem>>, vector<192x32xf32>
    %c0_3 = arith.constant 0 : index
    %c0_4 = arith.constant 0 : index
    %2 = vector.load %arg2[%c0_3, %c0_4] : memref<10x8xf32, #tpu.memory_space<vmem>>, vector<10x8xf32>
    %c0_5 = arith.constant 0 : index
    %c0_6 = arith.constant 0 : index
    %3 = vector.load %arg3[%c0_5, %c0_6] : memref<10x32xf32, #tpu.memory_space<vmem>>, vector<10x32xf32>
    %c0_7 = arith.constant 0 : index
    %c0_8 = arith.constant 0 : index
    %4 = vector.load %arg4[%c0_7, %c0_8] : memref<1x32xf32, #tpu.memory_space<vmem>>, vector<1x32xf32>
    %c0_9 = arith.constant 0 : index
    %c0_10 = arith.constant 0 : index
    %5 = vector.load %arg5[%c0_9, %c0_10] : memref<1x32xf32, #tpu.memory_space<vmem>>, vector<1x32xf32>
    %c0_11 = arith.constant 0 : index
    %c0_12 = arith.constant 0 : index
    %6 = vector.load %arg6[%c0_11, %c0_12] : memref<1x32xf32, #tpu.memory_space<vmem>>, vector<1x32xf32>
    %c0_13 = arith.constant 0 : index
    %c0_14 = arith.constant 0 : index
    %7 = vector.load %arg7[%c0_13, %c0_14] : memref<1x32xf32, #tpu.memory_space<vmem>>, vector<1x32xf32>
    %c0_15 = arith.constant 0 : index
    %c0_16 = arith.constant 0 : index
    %8 = vector.load %arg8[%c0_15, %c0_16] : memref<32x32xf32, #tpu.memory_space<vmem>>, vector<32x32xf32>
    %c0_17 = arith.constant 0 : index
    %c0_18 = arith.constant 0 : index
    %9 = vector.load %arg9[%c0_17, %c0_18] : memref<1x32xf32, #tpu.memory_space<vmem>>, vector<1x32xf32>
    %c0_19 = arith.constant 0 : index
    %c0_20 = arith.constant 0 : index
    %10 = vector.load %arg10[%c0_19, %c0_20] : memref<32x32xf32, #tpu.memory_space<vmem>>, vector<32x32xf32>
    %c0_21 = arith.constant 0 : index
    %c0_22 = arith.constant 0 : index
    %11 = vector.load %arg11[%c0_21, %c0_22] : memref<1x32xf32, #tpu.memory_space<vmem>>, vector<1x32xf32>
    %c0_23 = arith.constant 0 : index
    %c0_24 = arith.constant 0 : index
    %12 = vector.load %arg12[%c0_23, %c0_24] : memref<32x32xf32, #tpu.memory_space<vmem>>, vector<32x32xf32>
    %c0_25 = arith.constant 0 : index
    %c0_26 = arith.constant 0 : index
    %13 = vector.load %arg13[%c0_25, %c0_26] : memref<1x32xf32, #tpu.memory_space<vmem>>, vector<1x32xf32>
    %c0_27 = arith.constant 0 : index
    %c0_28 = arith.constant 0 : index
    %14 = vector.load %arg14[%c0_27, %c0_28] : memref<32x32xf32, #tpu.memory_space<vmem>>, vector<32x32xf32>
    %c0_29 = arith.constant 0 : index
    %c0_30 = arith.constant 0 : index
    %15 = vector.load %arg15[%c0_29, %c0_30] : memref<1x32xf32, #tpu.memory_space<vmem>>, vector<1x32xf32>
    %c0_31 = arith.constant 0 : index
    %c0_32 = arith.constant 0 : index
    %16 = vector.load %arg16[%c0_31, %c0_32] : memref<1x32xf32, #tpu.memory_space<vmem>>, vector<1x32xf32>
    %c0_33 = arith.constant 0 : index
    %c0_34 = arith.constant 0 : index
    %17 = vector.load %arg17[%c0_33, %c0_34] : memref<1x32xf32, #tpu.memory_space<vmem>>, vector<1x32xf32>
    %c0_35 = arith.constant 0 : index
    %c0_36 = arith.constant 0 : index
    %18 = vector.load %arg18[%c0_35, %c0_36] : memref<32x128xf32, #tpu.memory_space<vmem>>, vector<32x128xf32>
    %c0_37 = arith.constant 0 : index
    %c0_38 = arith.constant 0 : index
    %19 = vector.load %arg19[%c0_37, %c0_38] : memref<1x128xf32, #tpu.memory_space<vmem>>, vector<1x128xf32>
    %c0_39 = arith.constant 0 : index
    %c0_40 = arith.constant 0 : index
    %20 = vector.load %arg20[%c0_39, %c0_40] : memref<128x32xf32, #tpu.memory_space<vmem>>, vector<128x32xf32>
    %c0_41 = arith.constant 0 : index
    %c0_42 = arith.constant 0 : index
    %21 = vector.load %arg21[%c0_41, %c0_42] : memref<1x32xf32, #tpu.memory_space<vmem>>, vector<1x32xf32>
    %c0_43 = arith.constant 0 : index
    %c0_44 = arith.constant 0 : index
    %22 = vector.load %arg22[%c0_43, %c0_44] : memref<1x32xf32, #tpu.memory_space<vmem>>, vector<1x32xf32>
    %c0_45 = arith.constant 0 : index
    %c0_46 = arith.constant 0 : index
    %23 = vector.load %arg23[%c0_45, %c0_46] : memref<1x32xf32, #tpu.memory_space<vmem>>, vector<1x32xf32>
    %c0_47 = arith.constant 0 : index
    %c0_48 = arith.constant 0 : index
    %24 = vector.load %arg24[%c0_47, %c0_48] : memref<32x32xf32, #tpu.memory_space<vmem>>, vector<32x32xf32>
    %c0_49 = arith.constant 0 : index
    %c0_50 = arith.constant 0 : index
    %25 = vector.load %arg25[%c0_49, %c0_50] : memref<1x32xf32, #tpu.memory_space<vmem>>, vector<1x32xf32>
    %c0_51 = arith.constant 0 : index
    %c0_52 = arith.constant 0 : index
    %26 = vector.load %arg26[%c0_51, %c0_52] : memref<32x32xf32, #tpu.memory_space<vmem>>, vector<32x32xf32>
    %c0_53 = arith.constant 0 : index
    %c0_54 = arith.constant 0 : index
    %27 = vector.load %arg27[%c0_53, %c0_54] : memref<1x32xf32, #tpu.memory_space<vmem>>, vector<1x32xf32>
    %c0_55 = arith.constant 0 : index
    %c0_56 = arith.constant 0 : index
    %28 = vector.load %arg28[%c0_55, %c0_56] : memref<32x32xf32, #tpu.memory_space<vmem>>, vector<32x32xf32>
    %c0_57 = arith.constant 0 : index
    %c0_58 = arith.constant 0 : index
    %29 = vector.load %arg29[%c0_57, %c0_58] : memref<1x32xf32, #tpu.memory_space<vmem>>, vector<1x32xf32>
    %c0_59 = arith.constant 0 : index
    %c0_60 = arith.constant 0 : index
    %30 = vector.load %arg30[%c0_59, %c0_60] : memref<32x32xf32, #tpu.memory_space<vmem>>, vector<32x32xf32>
    %c0_61 = arith.constant 0 : index
    %c0_62 = arith.constant 0 : index
    %31 = vector.load %arg31[%c0_61, %c0_62] : memref<1x32xf32, #tpu.memory_space<vmem>>, vector<1x32xf32>
    %c0_63 = arith.constant 0 : index
    %c0_64 = arith.constant 0 : index
    %32 = vector.load %arg32[%c0_63, %c0_64] : memref<1x32xf32, #tpu.memory_space<vmem>>, vector<1x32xf32>
    %c0_65 = arith.constant 0 : index
    %c0_66 = arith.constant 0 : index
    %33 = vector.load %arg33[%c0_65, %c0_66] : memref<1x32xf32, #tpu.memory_space<vmem>>, vector<1x32xf32>
    %c0_67 = arith.constant 0 : index
    %c0_68 = arith.constant 0 : index
    %34 = vector.load %arg34[%c0_67, %c0_68] : memref<32x128xf32, #tpu.memory_space<vmem>>, vector<32x128xf32>
    %c0_69 = arith.constant 0 : index
    %c0_70 = arith.constant 0 : index
    %35 = vector.load %arg35[%c0_69, %c0_70] : memref<1x128xf32, #tpu.memory_space<vmem>>, vector<1x128xf32>
    %c0_71 = arith.constant 0 : index
    %c0_72 = arith.constant 0 : index
    %36 = vector.load %arg36[%c0_71, %c0_72] : memref<128x32xf32, #tpu.memory_space<vmem>>, vector<128x32xf32>
    %c0_73 = arith.constant 0 : index
    %c0_74 = arith.constant 0 : index
    %37 = vector.load %arg37[%c0_73, %c0_74] : memref<1x32xf32, #tpu.memory_space<vmem>>, vector<1x32xf32>
    %c0_75 = arith.constant 0 : index
    %c0_76 = arith.constant 0 : index
    %38 = vector.load %arg38[%c0_75, %c0_76] : memref<1x32xf32, #tpu.memory_space<vmem>>, vector<1x32xf32>
    %c0_77 = arith.constant 0 : index
    %c0_78 = arith.constant 0 : index
    %39 = vector.load %arg39[%c0_77, %c0_78] : memref<1x32xf32, #tpu.memory_space<vmem>>, vector<1x32xf32>
    %c0_79 = arith.constant 0 : index
    %c0_80 = arith.constant 0 : index
    %40 = vector.load %arg40[%c0_79, %c0_80] : memref<32x32xf32, #tpu.memory_space<vmem>>, vector<32x32xf32>
    %c0_81 = arith.constant 0 : index
    %c0_82 = arith.constant 0 : index
    %41 = vector.load %arg41[%c0_81, %c0_82] : memref<10x10xf32, #tpu.memory_space<vmem>>, vector<10x10xf32>
    %cst = arith.constant dense<0.000000e+00> : vector<8x32xf32>
    %42 = tpu.matmul %0, %1, %cst {dimension_numbers = #tpu.dot_dimension_numbers<[1], [0], [0], [1], [0, 0, 1, 1], [], []>} : vector<8x192xf32>, vector<192x32xf32>, vector<8x32xf32> -> vector<8x32xf32>
    %cst_83 = arith.constant dense<0.000000e+00> : vector<10x32xf32>
    %43 = tpu.matmul %2, %42, %cst_83 {dimension_numbers = #tpu.dot_dimension_numbers<[1], [0], [0], [1], [0, 0, 1, 1], [], []>} : vector<10x8xf32>, vector<8x32xf32>, vector<10x32xf32> -> vector<10x32xf32>
    %44 = arith.addf %43, %3 : vector<10x32xf32>
    %45 = tpu.iota {dimensions = array<i32: 1>} : vector<10x32xi32>
    %c0_i32 = arith.constant 0 : i32
    %46 = vector.broadcast %c0_i32 : i32 to vector<10x32xi32>
    %47 = arith.cmpi sge, %45, %46 : vector<10x32xi32>
    %c8_i32 = arith.constant 8 : i32
    %48 = vector.broadcast %c8_i32 : i32 to vector<10x32xi32>
    %49 = arith.cmpi slt, %45, %48 : vector<10x32xi32>
    %50 = arith.andi %47, %49 : vector<10x32xi1>
    %cst_84 = arith.constant 1.000000e+00 : f32
    %cst_85 = arith.constant 0.000000e+00 : f32
    %51 = vector.broadcast %cst_84 : f32 to vector<10x32xf32>
    %52 = vector.broadcast %cst_85 : f32 to vector<10x32xf32>
    %53 = arith.select %50, %51, %52 : vector<10x32xi1>, vector<10x32xf32>
    %c8_i32_86 = arith.constant 8 : i32
    %54 = vector.broadcast %c8_i32_86 : i32 to vector<10x32xi32>
    %55 = arith.cmpi sge, %45, %54 : vector<10x32xi32>
    %c16_i32 = arith.constant 16 : i32
    %56 = vector.broadcast %c16_i32 : i32 to vector<10x32xi32>
    %57 = arith.cmpi slt, %45, %56 : vector<10x32xi32>
    %58 = arith.andi %55, %57 : vector<10x32xi1>
    %cst_87 = arith.constant 1.000000e+00 : f32
    %cst_88 = arith.constant 0.000000e+00 : f32
    %59 = vector.broadcast %cst_87 : f32 to vector<10x32xf32>
    %60 = vector.broadcast %cst_88 : f32 to vector<10x32xf32>
    %61 = arith.select %58, %59, %60 : vector<10x32xi1>, vector<10x32xf32>
    %c16_i32_89 = arith.constant 16 : i32
    %62 = vector.broadcast %c16_i32_89 : i32 to vector<10x32xi32>
    %63 = arith.cmpi sge, %45, %62 : vector<10x32xi32>
    %c24_i32 = arith.constant 24 : i32
    %64 = vector.broadcast %c24_i32 : i32 to vector<10x32xi32>
    %65 = arith.cmpi slt, %45, %64 : vector<10x32xi32>
    %66 = arith.andi %63, %65 : vector<10x32xi1>
    %cst_90 = arith.constant 1.000000e+00 : f32
    %cst_91 = arith.constant 0.000000e+00 : f32
    %67 = vector.broadcast %cst_90 : f32 to vector<10x32xf32>
    %68 = vector.broadcast %cst_91 : f32 to vector<10x32xf32>
    %69 = arith.select %66, %67, %68 : vector<10x32xi1>, vector<10x32xf32>
    %c24_i32_92 = arith.constant 24 : i32
    %70 = vector.broadcast %c24_i32_92 : i32 to vector<10x32xi32>
    %71 = arith.cmpi sge, %45, %70 : vector<10x32xi32>
    %c32_i32 = arith.constant 32 : i32
    %72 = vector.broadcast %c32_i32 : i32 to vector<10x32xi32>
    %73 = arith.cmpi slt, %45, %72 : vector<10x32xi32>
    %74 = arith.andi %71, %73 : vector<10x32xi1>
    %cst_93 = arith.constant 1.000000e+00 : f32
    %cst_94 = arith.constant 0.000000e+00 : f32
    %75 = vector.broadcast %cst_93 : f32 to vector<10x32xf32>
    %76 = vector.broadcast %cst_94 : f32 to vector<10x32xf32>
    %77 = arith.select %74, %75, %76 : vector<10x32xi1>, vector<10x32xf32>
    %cst_95 = arith.constant dense<0.000000e+00> : vector<10xf32>
    %78 = vector.multi_reduction <add>, %44, %cst_95 [1] : vector<10x32xf32> to vector<10xf32>
    %79 = vector.shape_cast %78 : vector<10xf32> to vector<10x1xf32>
    %cst_96 = arith.constant 3.200000e+01 : f32
    %80 = vector.broadcast %cst_96 : f32 to vector<10x1xf32>
    %81 = arith.divf %79, %80 : vector<10x1xf32>
    %82 = vector.broadcast %81 : vector<10x1xf32> to vector<10x32xf32>
    %83 = arith.subf %44, %82 : vector<10x32xf32>
    %84 = arith.mulf %83, %83 : vector<10x32xf32>
    %cst_97 = arith.constant dense<0.000000e+00> : vector<10xf32>
    %85 = vector.multi_reduction <add>, %84, %cst_97 [1] : vector<10x32xf32> to vector<10xf32>
    %86 = vector.shape_cast %85 : vector<10xf32> to vector<10x1xf32>
    %cst_98 = arith.constant 3.200000e+01 : f32
    %87 = vector.broadcast %cst_98 : f32 to vector<10x1xf32>
    %88 = arith.divf %86, %87 : vector<10x1xf32>
    %cst_99 = arith.constant 9.99999974E-6 : f32
    %89 = vector.broadcast %cst_99 : f32 to vector<10x1xf32>
    %90 = arith.addf %88, %89 : vector<10x1xf32>
    %91 = math.rsqrt %90 : vector<10x1xf32>
    %92 = vector.broadcast %91 : vector<10x1xf32> to vector<10x32xf32>
    %93 = arith.mulf %83, %92 : vector<10x32xf32>
    %94 = vector.broadcast %4 : vector<1x32xf32> to vector<10x32xf32>
    %95 = arith.mulf %93, %94 : vector<10x32xf32>
    %96 = vector.broadcast %5 : vector<1x32xf32> to vector<10x32xf32>
    %97 = arith.addf %95, %96 : vector<10x32xf32>
    %cst_100 = arith.constant dense<0.000000e+00> : vector<10xf32>
    %98 = vector.multi_reduction <add>, %97, %cst_100 [1] : vector<10x32xf32> to vector<10xf32>
    %99 = vector.shape_cast %98 : vector<10xf32> to vector<10x1xf32>
    %cst_101 = arith.constant 3.200000e+01 : f32
    %100 = vector.broadcast %cst_101 : f32 to vector<10x1xf32>
    %101 = arith.divf %99, %100 : vector<10x1xf32>
    %102 = vector.broadcast %101 : vector<10x1xf32> to vector<10x32xf32>
    %103 = arith.subf %97, %102 : vector<10x32xf32>
    %104 = arith.mulf %103, %103 : vector<10x32xf32>
    %cst_102 = arith.constant dense<0.000000e+00> : vector<10xf32>
    %105 = vector.multi_reduction <add>, %104, %cst_102 [1] : vector<10x32xf32> to vector<10xf32>
    %106 = vector.shape_cast %105 : vector<10xf32> to vector<10x1xf32>
    %cst_103 = arith.constant 3.200000e+01 : f32
    %107 = vector.broadcast %cst_103 : f32 to vector<10x1xf32>
    %108 = arith.divf %106, %107 : vector<10x1xf32>
    %cst_104 = arith.constant 9.99999974E-6 : f32
    %109 = vector.broadcast %cst_104 : f32 to vector<10x1xf32>
    %110 = arith.addf %108, %109 : vector<10x1xf32>
    %111 = math.rsqrt %110 : vector<10x1xf32>
    %112 = vector.broadcast %111 : vector<10x1xf32> to vector<10x32xf32>
    %113 = arith.mulf %103, %112 : vector<10x32xf32>
    %114 = vector.broadcast %6 : vector<1x32xf32> to vector<10x32xf32>
    %115 = arith.mulf %113, %114 : vector<10x32xf32>
    %116 = vector.broadcast %7 : vector<1x32xf32> to vector<10x32xf32>
    %117 = arith.addf %115, %116 : vector<10x32xf32>
    %cst_105 = arith.constant dense<0.000000e+00> : vector<10x32xf32>
    %118 = tpu.matmul %117, %8, %cst_105 {dimension_numbers = #tpu.dot_dimension_numbers<[1], [0], [0], [1], [0, 0, 1, 1], [], []>} : vector<10x32xf32>, vector<32x32xf32>, vector<10x32xf32> -> vector<10x32xf32>
    %119 = vector.broadcast %9 : vector<1x32xf32> to vector<10x32xf32>
    %120 = arith.addf %118, %119 : vector<10x32xf32>
    %cst_106 = arith.constant dense<0.000000e+00> : vector<10x32xf32>
    %121 = tpu.matmul %117, %10, %cst_106 {dimension_numbers = #tpu.dot_dimension_numbers<[1], [0], [0], [1], [0, 0, 1, 1], [], []>} : vector<10x32xf32>, vector<32x32xf32>, vector<10x32xf32> -> vector<10x32xf32>
    %122 = vector.broadcast %11 : vector<1x32xf32> to vector<10x32xf32>
    %123 = arith.addf %121, %122 : vector<10x32xf32>
    %cst_107 = arith.constant dense<0.000000e+00> : vector<10x32xf32>
    %124 = tpu.matmul %117, %12, %cst_107 {dimension_numbers = #tpu.dot_dimension_numbers<[1], [0], [0], [1], [0, 0, 1, 1], [], []>} : vector<10x32xf32>, vector<32x32xf32>, vector<10x32xf32> -> vector<10x32xf32>
    %125 = vector.broadcast %13 : vector<1x32xf32> to vector<10x32xf32>
    %126 = arith.addf %124, %125 : vector<10x32xf32>
    %cst_108 = arith.constant 0.000000e+00 : f32
    %127 = vector.broadcast %cst_108 : f32 to vector<10x32xf32>
    %128 = arith.mulf %120, %53 : vector<10x32xf32>
    %cst_109 = arith.constant 0.353553385 : f32
    %129 = vector.broadcast %cst_109 : f32 to vector<10x32xf32>
    %130 = arith.mulf %128, %129 : vector<10x32xf32>
    %cst_110 = arith.constant dense<0.000000e+00> : vector<10x10xf32>
    %131 = tpu.matmul %130, %123, %cst_110 {dimension_numbers = #tpu.dot_dimension_numbers<[1], [1], [0], [0], [0, 0, 1, 0], [], []>} : vector<10x32xf32>, vector<10x32xf32>, vector<10x10xf32> -> vector<10x10xf32>
    %132 = arith.addf %131, %41 : vector<10x10xf32>
    %cst_111 = arith.constant dense<0xFF800000> : vector<10xf32>
    %133 = vector.multi_reduction <maximumf>, %132, %cst_111 [1] : vector<10x10xf32> to vector<10xf32>
    %134 = vector.shape_cast %133 : vector<10xf32> to vector<10x1xf32>
    %135 = vector.broadcast %134 : vector<10x1xf32> to vector<10x10xf32>
    %136 = arith.subf %132, %135 : vector<10x10xf32>
    %137 = math.exp %136 : vector<10x10xf32>
    %cst_112 = arith.constant dense<0.000000e+00> : vector<10xf32>
    %138 = vector.multi_reduction <add>, %137, %cst_112 [1] : vector<10x10xf32> to vector<10xf32>
    %139 = vector.shape_cast %138 : vector<10xf32> to vector<10x1xf32>
    %140 = tpu.reciprocal %139 {approx = true} : vector<10x1xf32> -> vector<10x1xf32>
    %141 = vector.broadcast %140 : vector<10x1xf32> to vector<10x10xf32>
    %142 = arith.mulf %137, %141 : vector<10x10xf32>
    %143 = arith.mulf %126, %53 : vector<10x32xf32>
    %cst_113 = arith.constant dense<0.000000e+00> : vector<10x32xf32>
    %144 = tpu.matmul %142, %143, %cst_113 {dimension_numbers = #tpu.dot_dimension_numbers<[1], [0], [0], [1], [0, 0, 1, 1], [], []>} : vector<10x10xf32>, vector<10x32xf32>, vector<10x32xf32> -> vector<10x32xf32>
    %145 = arith.addf %127, %144 : vector<10x32xf32>
    %146 = arith.mulf %120, %61 : vector<10x32xf32>
    %cst_114 = arith.constant 0.353553385 : f32
    %147 = vector.broadcast %cst_114 : f32 to vector<10x32xf32>
    %148 = arith.mulf %146, %147 : vector<10x32xf32>
    %cst_115 = arith.constant dense<0.000000e+00> : vector<10x10xf32>
    %149 = tpu.matmul %148, %123, %cst_115 {dimension_numbers = #tpu.dot_dimension_numbers<[1], [1], [0], [0], [0, 0, 1, 0], [], []>} : vector<10x32xf32>, vector<10x32xf32>, vector<10x10xf32> -> vector<10x10xf32>
    %150 = arith.addf %149, %41 : vector<10x10xf32>
    %cst_116 = arith.constant dense<0xFF800000> : vector<10xf32>
    %151 = vector.multi_reduction <maximumf>, %150, %cst_116 [1] : vector<10x10xf32> to vector<10xf32>
    %152 = vector.shape_cast %151 : vector<10xf32> to vector<10x1xf32>
    %153 = vector.broadcast %152 : vector<10x1xf32> to vector<10x10xf32>
    %154 = arith.subf %150, %153 : vector<10x10xf32>
    %155 = math.exp %154 : vector<10x10xf32>
    %cst_117 = arith.constant dense<0.000000e+00> : vector<10xf32>
    %156 = vector.multi_reduction <add>, %155, %cst_117 [1] : vector<10x10xf32> to vector<10xf32>
    %157 = vector.shape_cast %156 : vector<10xf32> to vector<10x1xf32>
    %158 = tpu.reciprocal %157 {approx = true} : vector<10x1xf32> -> vector<10x1xf32>
    %159 = vector.broadcast %158 : vector<10x1xf32> to vector<10x10xf32>
    %160 = arith.mulf %155, %159 : vector<10x10xf32>
    %161 = arith.mulf %126, %61 : vector<10x32xf32>
    %cst_118 = arith.constant dense<0.000000e+00> : vector<10x32xf32>
    %162 = tpu.matmul %160, %161, %cst_118 {dimension_numbers = #tpu.dot_dimension_numbers<[1], [0], [0], [1], [0, 0, 1, 1], [], []>} : vector<10x10xf32>, vector<10x32xf32>, vector<10x32xf32> -> vector<10x32xf32>
    %163 = arith.addf %145, %162 : vector<10x32xf32>
    %164 = arith.mulf %120, %69 : vector<10x32xf32>
    %cst_119 = arith.constant 0.353553385 : f32
    %165 = vector.broadcast %cst_119 : f32 to vector<10x32xf32>
    %166 = arith.mulf %164, %165 : vector<10x32xf32>
    %cst_120 = arith.constant dense<0.000000e+00> : vector<10x10xf32>
    %167 = tpu.matmul %166, %123, %cst_120 {dimension_numbers = #tpu.dot_dimension_numbers<[1], [1], [0], [0], [0, 0, 1, 0], [], []>} : vector<10x32xf32>, vector<10x32xf32>, vector<10x10xf32> -> vector<10x10xf32>
    %168 = arith.addf %167, %41 : vector<10x10xf32>
    %cst_121 = arith.constant dense<0xFF800000> : vector<10xf32>
    %169 = vector.multi_reduction <maximumf>, %168, %cst_121 [1] : vector<10x10xf32> to vector<10xf32>
    %170 = vector.shape_cast %169 : vector<10xf32> to vector<10x1xf32>
    %171 = vector.broadcast %170 : vector<10x1xf32> to vector<10x10xf32>
    %172 = arith.subf %168, %171 : vector<10x10xf32>
    %173 = math.exp %172 : vector<10x10xf32>
    %cst_122 = arith.constant dense<0.000000e+00> : vector<10xf32>
    %174 = vector.multi_reduction <add>, %173, %cst_122 [1] : vector<10x10xf32> to vector<10xf32>
    %175 = vector.shape_cast %174 : vector<10xf32> to vector<10x1xf32>
    %176 = tpu.reciprocal %175 {approx = true} : vector<10x1xf32> -> vector<10x1xf32>
    %177 = vector.broadcast %176 : vector<10x1xf32> to vector<10x10xf32>
    %178 = arith.mulf %173, %177 : vector<10x10xf32>
    %179 = arith.mulf %126, %69 : vector<10x32xf32>
    %cst_123 = arith.constant dense<0.000000e+00> : vector<10x32xf32>
    %180 = tpu.matmul %178, %179, %cst_123 {dimension_numbers = #tpu.dot_dimension_numbers<[1], [0], [0], [1], [0, 0, 1, 1], [], []>} : vector<10x10xf32>, vector<10x32xf32>, vector<10x32xf32> -> vector<10x32xf32>
    %181 = arith.addf %163, %180 : vector<10x32xf32>
    %182 = arith.mulf %120, %77 : vector<10x32xf32>
    %cst_124 = arith.constant 0.353553385 : f32
    %183 = vector.broadcast %cst_124 : f32 to vector<10x32xf32>
    %184 = arith.mulf %182, %183 : vector<10x32xf32>
    %cst_125 = arith.constant dense<0.000000e+00> : vector<10x10xf32>
    %185 = tpu.matmul %184, %123, %cst_125 {dimension_numbers = #tpu.dot_dimension_numbers<[1], [1], [0], [0], [0, 0, 1, 0], [], []>} : vector<10x32xf32>, vector<10x32xf32>, vector<10x10xf32> -> vector<10x10xf32>
    %186 = arith.addf %185, %41 : vector<10x10xf32>
    %cst_126 = arith.constant dense<0xFF800000> : vector<10xf32>
    %187 = vector.multi_reduction <maximumf>, %186, %cst_126 [1] : vector<10x10xf32> to vector<10xf32>
    %188 = vector.shape_cast %187 : vector<10xf32> to vector<10x1xf32>
    %189 = vector.broadcast %188 : vector<10x1xf32> to vector<10x10xf32>
    %190 = arith.subf %186, %189 : vector<10x10xf32>
    %191 = math.exp %190 : vector<10x10xf32>
    %cst_127 = arith.constant dense<0.000000e+00> : vector<10xf32>
    %192 = vector.multi_reduction <add>, %191, %cst_127 [1] : vector<10x10xf32> to vector<10xf32>
    %193 = vector.shape_cast %192 : vector<10xf32> to vector<10x1xf32>
    %194 = tpu.reciprocal %193 {approx = true} : vector<10x1xf32> -> vector<10x1xf32>
    %195 = vector.broadcast %194 : vector<10x1xf32> to vector<10x10xf32>
    %196 = arith.mulf %191, %195 : vector<10x10xf32>
    %197 = arith.mulf %126, %77 : vector<10x32xf32>
    %cst_128 = arith.constant dense<0.000000e+00> : vector<10x32xf32>
    %198 = tpu.matmul %196, %197, %cst_128 {dimension_numbers = #tpu.dot_dimension_numbers<[1], [0], [0], [1], [0, 0, 1, 1], [], []>} : vector<10x10xf32>, vector<10x32xf32>, vector<10x32xf32> -> vector<10x32xf32>
    %199 = arith.addf %181, %198 : vector<10x32xf32>
    %cst_129 = arith.constant dense<0.000000e+00> : vector<10x32xf32>
    %200 = tpu.matmul %199, %14, %cst_129 {dimension_numbers = #tpu.dot_dimension_numbers<[1], [0], [0], [1], [0, 0, 1, 1], [], []>} : vector<10x32xf32>, vector<32x32xf32>, vector<10x32xf32> -> vector<10x32xf32>
    %201 = vector.broadcast %15 : vector<1x32xf32> to vector<10x32xf32>
    %202 = arith.addf %200, %201 : vector<10x32xf32>
    %203 = arith.addf %97, %202 : vector<10x32xf32>
    %cst_130 = arith.constant dense<0.000000e+00> : vector<10xf32>
    %204 = vector.multi_reduction <add>, %203, %cst_130 [1] : vector<10x32xf32> to vector<10xf32>
    %205 = vector.shape_cast %204 : vector<10xf32> to vector<10x1xf32>
    %cst_131 = arith.constant 3.200000e+01 : f32
    %206 = vector.broadcast %cst_131 : f32 to vector<10x1xf32>
    %207 = arith.divf %205, %206 : vector<10x1xf32>
    %208 = vector.broadcast %207 : vector<10x1xf32> to vector<10x32xf32>
    %209 = arith.subf %203, %208 : vector<10x32xf32>
    %210 = arith.mulf %209, %209 : vector<10x32xf32>
    %cst_132 = arith.constant dense<0.000000e+00> : vector<10xf32>
    %211 = vector.multi_reduction <add>, %210, %cst_132 [1] : vector<10x32xf32> to vector<10xf32>
    %212 = vector.shape_cast %211 : vector<10xf32> to vector<10x1xf32>
    %cst_133 = arith.constant 3.200000e+01 : f32
    %213 = vector.broadcast %cst_133 : f32 to vector<10x1xf32>
    %214 = arith.divf %212, %213 : vector<10x1xf32>
    %cst_134 = arith.constant 9.99999974E-6 : f32
    %215 = vector.broadcast %cst_134 : f32 to vector<10x1xf32>
    %216 = arith.addf %214, %215 : vector<10x1xf32>
    %217 = math.rsqrt %216 : vector<10x1xf32>
    %218 = vector.broadcast %217 : vector<10x1xf32> to vector<10x32xf32>
    %219 = arith.mulf %209, %218 : vector<10x32xf32>
    %220 = vector.broadcast %16 : vector<1x32xf32> to vector<10x32xf32>
    %221 = arith.mulf %219, %220 : vector<10x32xf32>
    %222 = vector.broadcast %17 : vector<1x32xf32> to vector<10x32xf32>
    %223 = arith.addf %221, %222 : vector<10x32xf32>
    %cst_135 = arith.constant dense<0.000000e+00> : vector<10x128xf32>
    %224 = tpu.matmul %223, %18, %cst_135 {dimension_numbers = #tpu.dot_dimension_numbers<[1], [0], [0], [1], [0, 0, 1, 1], [], []>} : vector<10x32xf32>, vector<32x128xf32>, vector<10x128xf32> -> vector<10x128xf32>
    %225 = vector.broadcast %19 : vector<1x128xf32> to vector<10x128xf32>
    %226 = arith.addf %224, %225 : vector<10x128xf32>
    %cst_136 = arith.constant -1.702000e+00 : f32
    %227 = vector.broadcast %cst_136 : f32 to vector<10x128xf32>
    %228 = arith.mulf %227, %226 : vector<10x128xf32>
    %229 = math.exp %228 : vector<10x128xf32>
    %cst_137 = arith.constant 1.000000e+00 : f32
    %230 = vector.broadcast %cst_137 : f32 to vector<10x128xf32>
    %231 = arith.addf %230, %229 : vector<10x128xf32>
    %cst_138 = arith.constant 1.000000e+00 : f32
    %232 = vector.broadcast %cst_138 : f32 to vector<10x128xf32>
    %233 = arith.divf %232, %231 : vector<10x128xf32>
    %234 = arith.mulf %226, %233 : vector<10x128xf32>
    %cst_139 = arith.constant dense<0.000000e+00> : vector<10x32xf32>
    %235 = tpu.matmul %234, %20, %cst_139 {dimension_numbers = #tpu.dot_dimension_numbers<[1], [0], [0], [1], [0, 0, 1, 1], [], []>} : vector<10x128xf32>, vector<128x32xf32>, vector<10x32xf32> -> vector<10x32xf32>
    %236 = arith.addf %203, %235 : vector<10x32xf32>
    %237 = vector.broadcast %21 : vector<1x32xf32> to vector<10x32xf32>
    %238 = arith.addf %236, %237 : vector<10x32xf32>
    %cst_140 = arith.constant dense<0.000000e+00> : vector<10xf32>
    %239 = vector.multi_reduction <add>, %238, %cst_140 [1] : vector<10x32xf32> to vector<10xf32>
    %240 = vector.shape_cast %239 : vector<10xf32> to vector<10x1xf32>
    %cst_141 = arith.constant 3.200000e+01 : f32
    %241 = vector.broadcast %cst_141 : f32 to vector<10x1xf32>
    %242 = arith.divf %240, %241 : vector<10x1xf32>
    %243 = vector.broadcast %242 : vector<10x1xf32> to vector<10x32xf32>
    %244 = arith.subf %238, %243 : vector<10x32xf32>
    %245 = arith.mulf %244, %244 : vector<10x32xf32>
    %cst_142 = arith.constant dense<0.000000e+00> : vector<10xf32>
    %246 = vector.multi_reduction <add>, %245, %cst_142 [1] : vector<10x32xf32> to vector<10xf32>
    %247 = vector.shape_cast %246 : vector<10xf32> to vector<10x1xf32>
    %cst_143 = arith.constant 3.200000e+01 : f32
    %248 = vector.broadcast %cst_143 : f32 to vector<10x1xf32>
    %249 = arith.divf %247, %248 : vector<10x1xf32>
    %cst_144 = arith.constant 9.99999974E-6 : f32
    %250 = vector.broadcast %cst_144 : f32 to vector<10x1xf32>
    %251 = arith.addf %249, %250 : vector<10x1xf32>
    %252 = math.rsqrt %251 : vector<10x1xf32>
    %253 = vector.broadcast %252 : vector<10x1xf32> to vector<10x32xf32>
    %254 = arith.mulf %244, %253 : vector<10x32xf32>
    %255 = vector.broadcast %22 : vector<1x32xf32> to vector<10x32xf32>
    %256 = arith.mulf %254, %255 : vector<10x32xf32>
    %257 = vector.broadcast %23 : vector<1x32xf32> to vector<10x32xf32>
    %258 = arith.addf %256, %257 : vector<10x32xf32>
    %cst_145 = arith.constant dense<0.000000e+00> : vector<10x32xf32>
    %259 = tpu.matmul %258, %24, %cst_145 {dimension_numbers = #tpu.dot_dimension_numbers<[1], [0], [0], [1], [0, 0, 1, 1], [], []>} : vector<10x32xf32>, vector<32x32xf32>, vector<10x32xf32> -> vector<10x32xf32>
    %260 = vector.broadcast %25 : vector<1x32xf32> to vector<10x32xf32>
    %261 = arith.addf %259, %260 : vector<10x32xf32>
    %cst_146 = arith.constant dense<0.000000e+00> : vector<10x32xf32>
    %262 = tpu.matmul %258, %26, %cst_146 {dimension_numbers = #tpu.dot_dimension_numbers<[1], [0], [0], [1], [0, 0, 1, 1], [], []>} : vector<10x32xf32>, vector<32x32xf32>, vector<10x32xf32> -> vector<10x32xf32>
    %263 = vector.broadcast %27 : vector<1x32xf32> to vector<10x32xf32>
    %264 = arith.addf %262, %263 : vector<10x32xf32>
    %cst_147 = arith.constant dense<0.000000e+00> : vector<10x32xf32>
    %265 = tpu.matmul %258, %28, %cst_147 {dimension_numbers = #tpu.dot_dimension_numbers<[1], [0], [0], [1], [0, 0, 1, 1], [], []>} : vector<10x32xf32>, vector<32x32xf32>, vector<10x32xf32> -> vector<10x32xf32>
    %266 = vector.broadcast %29 : vector<1x32xf32> to vector<10x32xf32>
    %267 = arith.addf %265, %266 : vector<10x32xf32>
    %cst_148 = arith.constant 0.000000e+00 : f32
    %268 = vector.broadcast %cst_148 : f32 to vector<10x32xf32>
    %269 = arith.mulf %261, %53 : vector<10x32xf32>
    %cst_149 = arith.constant 0.353553385 : f32
    %270 = vector.broadcast %cst_149 : f32 to vector<10x32xf32>
    %271 = arith.mulf %269, %270 : vector<10x32xf32>
    %cst_150 = arith.constant dense<0.000000e+00> : vector<10x10xf32>
    %272 = tpu.matmul %271, %264, %cst_150 {dimension_numbers = #tpu.dot_dimension_numbers<[1], [1], [0], [0], [0, 0, 1, 0], [], []>} : vector<10x32xf32>, vector<10x32xf32>, vector<10x10xf32> -> vector<10x10xf32>
    %273 = arith.addf %272, %41 : vector<10x10xf32>
    %cst_151 = arith.constant dense<0xFF800000> : vector<10xf32>
    %274 = vector.multi_reduction <maximumf>, %273, %cst_151 [1] : vector<10x10xf32> to vector<10xf32>
    %275 = vector.shape_cast %274 : vector<10xf32> to vector<10x1xf32>
    %276 = vector.broadcast %275 : vector<10x1xf32> to vector<10x10xf32>
    %277 = arith.subf %273, %276 : vector<10x10xf32>
    %278 = math.exp %277 : vector<10x10xf32>
    %cst_152 = arith.constant dense<0.000000e+00> : vector<10xf32>
    %279 = vector.multi_reduction <add>, %278, %cst_152 [1] : vector<10x10xf32> to vector<10xf32>
    %280 = vector.shape_cast %279 : vector<10xf32> to vector<10x1xf32>
    %281 = tpu.reciprocal %280 {approx = true} : vector<10x1xf32> -> vector<10x1xf32>
    %282 = vector.broadcast %281 : vector<10x1xf32> to vector<10x10xf32>
    %283 = arith.mulf %278, %282 : vector<10x10xf32>
    %284 = arith.mulf %267, %53 : vector<10x32xf32>
    %cst_153 = arith.constant dense<0.000000e+00> : vector<10x32xf32>
    %285 = tpu.matmul %283, %284, %cst_153 {dimension_numbers = #tpu.dot_dimension_numbers<[1], [0], [0], [1], [0, 0, 1, 1], [], []>} : vector<10x10xf32>, vector<10x32xf32>, vector<10x32xf32> -> vector<10x32xf32>
    %286 = arith.addf %268, %285 : vector<10x32xf32>
    %287 = arith.mulf %261, %61 : vector<10x32xf32>
    %cst_154 = arith.constant 0.353553385 : f32
    %288 = vector.broadcast %cst_154 : f32 to vector<10x32xf32>
    %289 = arith.mulf %287, %288 : vector<10x32xf32>
    %cst_155 = arith.constant dense<0.000000e+00> : vector<10x10xf32>
    %290 = tpu.matmul %289, %264, %cst_155 {dimension_numbers = #tpu.dot_dimension_numbers<[1], [1], [0], [0], [0, 0, 1, 0], [], []>} : vector<10x32xf32>, vector<10x32xf32>, vector<10x10xf32> -> vector<10x10xf32>
    %291 = arith.addf %290, %41 : vector<10x10xf32>
    %cst_156 = arith.constant dense<0xFF800000> : vector<10xf32>
    %292 = vector.multi_reduction <maximumf>, %291, %cst_156 [1] : vector<10x10xf32> to vector<10xf32>
    %293 = vector.shape_cast %292 : vector<10xf32> to vector<10x1xf32>
    %294 = vector.broadcast %293 : vector<10x1xf32> to vector<10x10xf32>
    %295 = arith.subf %291, %294 : vector<10x10xf32>
    %296 = math.exp %295 : vector<10x10xf32>
    %cst_157 = arith.constant dense<0.000000e+00> : vector<10xf32>
    %297 = vector.multi_reduction <add>, %296, %cst_157 [1] : vector<10x10xf32> to vector<10xf32>
    %298 = vector.shape_cast %297 : vector<10xf32> to vector<10x1xf32>
    %299 = tpu.reciprocal %298 {approx = true} : vector<10x1xf32> -> vector<10x1xf32>
    %300 = vector.broadcast %299 : vector<10x1xf32> to vector<10x10xf32>
    %301 = arith.mulf %296, %300 : vector<10x10xf32>
    %302 = arith.mulf %267, %61 : vector<10x32xf32>
    %cst_158 = arith.constant dense<0.000000e+00> : vector<10x32xf32>
    %303 = tpu.matmul %301, %302, %cst_158 {dimension_numbers = #tpu.dot_dimension_numbers<[1], [0], [0], [1], [0, 0, 1, 1], [], []>} : vector<10x10xf32>, vector<10x32xf32>, vector<10x32xf32> -> vector<10x32xf32>
    %304 = arith.addf %286, %303 : vector<10x32xf32>
    %305 = arith.mulf %261, %69 : vector<10x32xf32>
    %cst_159 = arith.constant 0.353553385 : f32
    %306 = vector.broadcast %cst_159 : f32 to vector<10x32xf32>
    %307 = arith.mulf %305, %306 : vector<10x32xf32>
    %cst_160 = arith.constant dense<0.000000e+00> : vector<10x10xf32>
    %308 = tpu.matmul %307, %264, %cst_160 {dimension_numbers = #tpu.dot_dimension_numbers<[1], [1], [0], [0], [0, 0, 1, 0], [], []>} : vector<10x32xf32>, vector<10x32xf32>, vector<10x10xf32> -> vector<10x10xf32>
    %309 = arith.addf %308, %41 : vector<10x10xf32>
    %cst_161 = arith.constant dense<0xFF800000> : vector<10xf32>
    %310 = vector.multi_reduction <maximumf>, %309, %cst_161 [1] : vector<10x10xf32> to vector<10xf32>
    %311 = vector.shape_cast %310 : vector<10xf32> to vector<10x1xf32>
    %312 = vector.broadcast %311 : vector<10x1xf32> to vector<10x10xf32>
    %313 = arith.subf %309, %312 : vector<10x10xf32>
    %314 = math.exp %313 : vector<10x10xf32>
    %cst_162 = arith.constant dense<0.000000e+00> : vector<10xf32>
    %315 = vector.multi_reduction <add>, %314, %cst_162 [1] : vector<10x10xf32> to vector<10xf32>
    %316 = vector.shape_cast %315 : vector<10xf32> to vector<10x1xf32>
    %317 = tpu.reciprocal %316 {approx = true} : vector<10x1xf32> -> vector<10x1xf32>
    %318 = vector.broadcast %317 : vector<10x1xf32> to vector<10x10xf32>
    %319 = arith.mulf %314, %318 : vector<10x10xf32>
    %320 = arith.mulf %267, %69 : vector<10x32xf32>
    %cst_163 = arith.constant dense<0.000000e+00> : vector<10x32xf32>
    %321 = tpu.matmul %319, %320, %cst_163 {dimension_numbers = #tpu.dot_dimension_numbers<[1], [0], [0], [1], [0, 0, 1, 1], [], []>} : vector<10x10xf32>, vector<10x32xf32>, vector<10x32xf32> -> vector<10x32xf32>
    %322 = arith.addf %304, %321 : vector<10x32xf32>
    %323 = arith.mulf %261, %77 : vector<10x32xf32>
    %cst_164 = arith.constant 0.353553385 : f32
    %324 = vector.broadcast %cst_164 : f32 to vector<10x32xf32>
    %325 = arith.mulf %323, %324 : vector<10x32xf32>
    %cst_165 = arith.constant dense<0.000000e+00> : vector<10x10xf32>
    %326 = tpu.matmul %325, %264, %cst_165 {dimension_numbers = #tpu.dot_dimension_numbers<[1], [1], [0], [0], [0, 0, 1, 0], [], []>} : vector<10x32xf32>, vector<10x32xf32>, vector<10x10xf32> -> vector<10x10xf32>
    %327 = arith.addf %326, %41 : vector<10x10xf32>
    %cst_166 = arith.constant dense<0xFF800000> : vector<10xf32>
    %328 = vector.multi_reduction <maximumf>, %327, %cst_166 [1] : vector<10x10xf32> to vector<10xf32>
    %329 = vector.shape_cast %328 : vector<10xf32> to vector<10x1xf32>
    %330 = vector.broadcast %329 : vector<10x1xf32> to vector<10x10xf32>
    %331 = arith.subf %327, %330 : vector<10x10xf32>
    %332 = math.exp %331 : vector<10x10xf32>
    %cst_167 = arith.constant dense<0.000000e+00> : vector<10xf32>
    %333 = vector.multi_reduction <add>, %332, %cst_167 [1] : vector<10x10xf32> to vector<10xf32>
    %334 = vector.shape_cast %333 : vector<10xf32> to vector<10x1xf32>
    %335 = tpu.reciprocal %334 {approx = true} : vector<10x1xf32> -> vector<10x1xf32>
    %336 = vector.broadcast %335 : vector<10x1xf32> to vector<10x10xf32>
    %337 = arith.mulf %332, %336 : vector<10x10xf32>
    %338 = arith.mulf %267, %77 : vector<10x32xf32>
    %cst_168 = arith.constant dense<0.000000e+00> : vector<10x32xf32>
    %339 = tpu.matmul %337, %338, %cst_168 {dimension_numbers = #tpu.dot_dimension_numbers<[1], [0], [0], [1], [0, 0, 1, 1], [], []>} : vector<10x10xf32>, vector<10x32xf32>, vector<10x32xf32> -> vector<10x32xf32>
    %340 = arith.addf %322, %339 : vector<10x32xf32>
    %cst_169 = arith.constant dense<0.000000e+00> : vector<10x32xf32>
    %341 = tpu.matmul %340, %30, %cst_169 {dimension_numbers = #tpu.dot_dimension_numbers<[1], [0], [0], [1], [0, 0, 1, 1], [], []>} : vector<10x32xf32>, vector<32x32xf32>, vector<10x32xf32> -> vector<10x32xf32>
    %342 = vector.broadcast %31 : vector<1x32xf32> to vector<10x32xf32>
    %343 = arith.addf %341, %342 : vector<10x32xf32>
    %344 = arith.addf %238, %343 : vector<10x32xf32>
    %cst_170 = arith.constant dense<0.000000e+00> : vector<10xf32>
    %345 = vector.multi_reduction <add>, %344, %cst_170 [1] : vector<10x32xf32> to vector<10xf32>
    %346 = vector.shape_cast %345 : vector<10xf32> to vector<10x1xf32>
    %cst_171 = arith.constant 3.200000e+01 : f32
    %347 = vector.broadcast %cst_171 : f32 to vector<10x1xf32>
    %348 = arith.divf %346, %347 : vector<10x1xf32>
    %349 = vector.broadcast %348 : vector<10x1xf32> to vector<10x32xf32>
    %350 = arith.subf %344, %349 : vector<10x32xf32>
    %351 = arith.mulf %350, %350 : vector<10x32xf32>
    %cst_172 = arith.constant dense<0.000000e+00> : vector<10xf32>
    %352 = vector.multi_reduction <add>, %351, %cst_172 [1] : vector<10x32xf32> to vector<10xf32>
    %353 = vector.shape_cast %352 : vector<10xf32> to vector<10x1xf32>
    %cst_173 = arith.constant 3.200000e+01 : f32
    %354 = vector.broadcast %cst_173 : f32 to vector<10x1xf32>
    %355 = arith.divf %353, %354 : vector<10x1xf32>
    %cst_174 = arith.constant 9.99999974E-6 : f32
    %356 = vector.broadcast %cst_174 : f32 to vector<10x1xf32>
    %357 = arith.addf %355, %356 : vector<10x1xf32>
    %358 = math.rsqrt %357 : vector<10x1xf32>
    %359 = vector.broadcast %358 : vector<10x1xf32> to vector<10x32xf32>
    %360 = arith.mulf %350, %359 : vector<10x32xf32>
    %361 = vector.broadcast %32 : vector<1x32xf32> to vector<10x32xf32>
    %362 = arith.mulf %360, %361 : vector<10x32xf32>
    %363 = vector.broadcast %33 : vector<1x32xf32> to vector<10x32xf32>
    %364 = arith.addf %362, %363 : vector<10x32xf32>
    %cst_175 = arith.constant dense<0.000000e+00> : vector<10x128xf32>
    %365 = tpu.matmul %364, %34, %cst_175 {dimension_numbers = #tpu.dot_dimension_numbers<[1], [0], [0], [1], [0, 0, 1, 1], [], []>} : vector<10x32xf32>, vector<32x128xf32>, vector<10x128xf32> -> vector<10x128xf32>
    %366 = vector.broadcast %35 : vector<1x128xf32> to vector<10x128xf32>
    %367 = arith.addf %365, %366 : vector<10x128xf32>
    %cst_176 = arith.constant -1.702000e+00 : f32
    %368 = vector.broadcast %cst_176 : f32 to vector<10x128xf32>
    %369 = arith.mulf %368, %367 : vector<10x128xf32>
    %370 = math.exp %369 : vector<10x128xf32>
    %cst_177 = arith.constant 1.000000e+00 : f32
    %371 = vector.broadcast %cst_177 : f32 to vector<10x128xf32>
    %372 = arith.addf %371, %370 : vector<10x128xf32>
    %cst_178 = arith.constant 1.000000e+00 : f32
    %373 = vector.broadcast %cst_178 : f32 to vector<10x128xf32>
    %374 = arith.divf %373, %372 : vector<10x128xf32>
    %375 = arith.mulf %367, %374 : vector<10x128xf32>
    %cst_179 = arith.constant dense<0.000000e+00> : vector<10x32xf32>
    %376 = tpu.matmul %375, %36, %cst_179 {dimension_numbers = #tpu.dot_dimension_numbers<[1], [0], [0], [1], [0, 0, 1, 1], [], []>} : vector<10x128xf32>, vector<128x32xf32>, vector<10x32xf32> -> vector<10x32xf32>
    %377 = arith.addf %344, %376 : vector<10x32xf32>
    %378 = vector.broadcast %37 : vector<1x32xf32> to vector<10x32xf32>
    %379 = arith.addf %377, %378 : vector<10x32xf32>
    %cst_180 = arith.constant dense<0.000000e+00> : vector<10xf32>
    %380 = vector.multi_reduction <add>, %379, %cst_180 [1] : vector<10x32xf32> to vector<10xf32>
    %381 = vector.shape_cast %380 : vector<10xf32> to vector<10x1xf32>
    %cst_181 = arith.constant 3.200000e+01 : f32
    %382 = vector.broadcast %cst_181 : f32 to vector<10x1xf32>
    %383 = arith.divf %381, %382 : vector<10x1xf32>
    %384 = vector.broadcast %383 : vector<10x1xf32> to vector<10x32xf32>
    %385 = arith.subf %379, %384 : vector<10x32xf32>
    %386 = arith.mulf %385, %385 : vector<10x32xf32>
    %cst_182 = arith.constant dense<0.000000e+00> : vector<10xf32>
    %387 = vector.multi_reduction <add>, %386, %cst_182 [1] : vector<10x32xf32> to vector<10xf32>
    %388 = vector.shape_cast %387 : vector<10xf32> to vector<10x1xf32>
    %cst_183 = arith.constant 3.200000e+01 : f32
    %389 = vector.broadcast %cst_183 : f32 to vector<10x1xf32>
    %390 = arith.divf %388, %389 : vector<10x1xf32>
    %cst_184 = arith.constant 9.99999974E-6 : f32
    %391 = vector.broadcast %cst_184 : f32 to vector<10x1xf32>
    %392 = arith.addf %390, %391 : vector<10x1xf32>
    %393 = math.rsqrt %392 : vector<10x1xf32>
    %394 = vector.broadcast %393 : vector<10x1xf32> to vector<10x32xf32>
    %395 = arith.mulf %385, %394 : vector<10x32xf32>
    %396 = vector.broadcast %38 : vector<1x32xf32> to vector<10x32xf32>
    %397 = arith.mulf %395, %396 : vector<10x32xf32>
    %398 = vector.broadcast %39 : vector<1x32xf32> to vector<10x32xf32>
    %399 = arith.addf %397, %398 : vector<10x32xf32>
    %cst_185 = arith.constant dense<0.000000e+00> : vector<10x32xf32>
    %400 = tpu.matmul %399, %40, %cst_185 {dimension_numbers = #tpu.dot_dimension_numbers<[1], [0], [0], [1], [0, 0, 1, 1], [], []>} : vector<10x32xf32>, vector<32x32xf32>, vector<10x32xf32> -> vector<10x32xf32>
    %c0_186 = arith.constant 0 : index
    %c0_187 = arith.constant 0 : index
    %401 = vector.load %arg42[%c0_186, %c0_187] : memref<10x32xf32, #tpu.memory_space<vmem>>, vector<10x32xf32>
    tpu.vector_store %arg42[%c0_186, %c0_187], %400 {strides = array<i32>} : memref<10x32xf32, #tpu.memory_space<vmem>>, vector<10x32xf32>,
    return
  }
}

module attributes {stable_mosaic.version = 11 : i64} {
  func.func @_cosine_head_kernel(%arg0: memref<10x32xf32, #tpu.memory_space<vmem>>, %arg1: memref<3x32xf32, #tpu.memory_space<vmem>>, %arg2: memref<1x1xf32, #tpu.memory_space<smem>>, %arg3: memref<10x3xf32, #tpu.memory_space<vmem>>) attributes {dimension_semantics = [], scalar_prefetch = 0 : i64, scratch_operands = 0 : i64, tpu.core_type = #tpu.core_type<tc>} {
    %c0 = arith.constant 0 : index
    %c0_0 = arith.constant 0 : index
    %0 = vector.load %arg0[%c0, %c0_0] : memref<10x32xf32, #tpu.memory_space<vmem>>, vector<10x32xf32>
    %c0_1 = arith.constant 0 : index
    %c0_2 = arith.constant 0 : index
    %1 = vector.load %arg1[%c0_1, %c0_2] : memref<3x32xf32, #tpu.memory_space<vmem>>, vector<3x32xf32>
    %2 = arith.mulf %0, %0 : vector<10x32xf32>
    %cst = arith.constant dense<0.000000e+00> : vector<10xf32>
    %3 = vector.multi_reduction <add>, %2, %cst [1] : vector<10x32xf32> to vector<10xf32>
    %4 = vector.shape_cast %3 : vector<10xf32> to vector<10x1xf32>
    %cst_3 = arith.constant 9.99999996E-13 : f32
    %5 = vector.broadcast %cst_3 : f32 to vector<10x1xf32>
    %6 = arith.addf %4, %5 : vector<10x1xf32>
    %7 = math.rsqrt %6 : vector<10x1xf32>
    %8 = vector.broadcast %7 : vector<10x1xf32> to vector<10x32xf32>
    %9 = arith.mulf %0, %8 : vector<10x32xf32>
    %10 = arith.mulf %1, %1 : vector<3x32xf32>
    %cst_4 = arith.constant dense<0.000000e+00> : vector<3xf32>
    %11 = vector.multi_reduction <add>, %10, %cst_4 [1] : vector<3x32xf32> to vector<3xf32>
    %12 = vector.shape_cast %11 : vector<3xf32> to vector<3x1xf32>
    %cst_5 = arith.constant 9.99999996E-13 : f32
    %13 = vector.broadcast %cst_5 : f32 to vector<3x1xf32>
    %14 = arith.addf %12, %13 : vector<3x1xf32>
    %15 = math.rsqrt %14 : vector<3x1xf32>
    %16 = vector.broadcast %15 : vector<3x1xf32> to vector<3x32xf32>
    %17 = arith.mulf %1, %16 : vector<3x32xf32>
    %cst_6 = arith.constant dense<0.000000e+00> : vector<10x3xf32>
    %18 = tpu.matmul %9, %17, %cst_6 {dimension_numbers = #tpu.dot_dimension_numbers<[1], [1], [0], [0], [0, 0, 1, 0], [], []>} : vector<10x32xf32>, vector<3x32xf32>, vector<10x3xf32> -> vector<10x3xf32>
    %c0_7 = arith.constant 0 : index
    %c0_8 = arith.constant 0 : index
    %19 = memref.load %arg2[%c0_7, %c0_8] : memref<1x1xf32, #tpu.memory_space<smem>>
    %20 = vector.broadcast %19 : f32 to vector<10x3xf32>
    %21 = arith.mulf %20, %18 : vector<10x3xf32>
    %c0_9 = arith.constant 0 : index
    %c0_10 = arith.constant 0 : index
    %22 = vector.load %arg3[%c0_9, %c0_10] : memref<10x3xf32, #tpu.memory_space<vmem>>, vector<10x3xf32>
    tpu.vector_store %arg3[%c0_9, %c0_10], %21 {strides = array<i32>} : memref<10x3xf32, #tpu.memory_space<vmem>>, vector<10x3xf32>,
    return
  }
}

module attributes {stable_mosaic.version = 11 : i64} {
  func.func @_text_encoder_kernel(%arg0: memref<48x32xf32, #tpu.memory_space<vmem>>, %arg1: memref<1x32xf32, #tpu.memory_space<vmem>>, %arg2: memref<1x32xf32, #tpu.memory_space<vmem>>, %arg3: memref<32x32xf32, #tpu.memory_space<vmem>>, %arg4: memref<1x32xf32, #tpu.memory_space<vmem>>, %arg5: memref<32x32xf32, #tpu.memory_space<vmem>>, %arg6: memref<1x32xf32, #tpu.memory_space<vmem>>, %arg7: memref<32x32xf32, #tpu.memory_space<vmem>>, %arg8: memref<1x32xf32, #tpu.memory_space<vmem>>, %arg9: memref<32x32xf32, #tpu.memory_space<vmem>>, %arg10: memref<1x32xf32, #tpu.memory_space<vmem>>, %arg11: memref<1x32xf32, #tpu.memory_space<vmem>>, %arg12: memref<1x32xf32, #tpu.memory_space<vmem>>, %arg13: memref<32x128xf32, #tpu.memory_space<vmem>>, %arg14: memref<1x128xf32, #tpu.memory_space<vmem>>, %arg15: memref<128x32xf32, #tpu.memory_space<vmem>>, %arg16: memref<1x32xf32, #tpu.memory_space<vmem>>, %arg17: memref<1x32xf32, #tpu.memory_space<vmem>>, %arg18: memref<1x32xf32, #tpu.memory_space<vmem>>, %arg19: memref<32x32xf32, #tpu.memory_space<vmem>>, %arg20: memref<1x32xf32, #tpu.memory_space<vmem>>, %arg21: memref<32x32xf32, #tpu.memory_space<vmem>>, %arg22: memref<1x32xf32, #tpu.memory_space<vmem>>, %arg23: memref<32x32xf32, #tpu.memory_space<vmem>>, %arg24: memref<1x32xf32, #tpu.memory_space<vmem>>, %arg25: memref<32x32xf32, #tpu.memory_space<vmem>>, %arg26: memref<1x32xf32, #tpu.memory_space<vmem>>, %arg27: memref<1x32xf32, #tpu.memory_space<vmem>>, %arg28: memref<1x32xf32, #tpu.memory_space<vmem>>, %arg29: memref<32x128xf32, #tpu.memory_space<vmem>>, %arg30: memref<1x128xf32, #tpu.memory_space<vmem>>, %arg31: memref<128x32xf32, #tpu.memory_space<vmem>>, %arg32: memref<1x32xf32, #tpu.memory_space<vmem>>, %arg33: memref<1x32xf32, #tpu.memory_space<vmem>>, %arg34: memref<1x32xf32, #tpu.memory_space<vmem>>, %arg35: memref<32x32xf32, #tpu.memory_space<vmem>>, %arg36: memref<3x48xf32, #tpu.memory_space<vmem>>, %arg37: memref<48x48xf32, #tpu.memory_space<vmem>>, %arg38: memref<3x32xf32, #tpu.memory_space<vmem>>) attributes {dimension_semantics = [], scalar_prefetch = 0 : i64, scratch_operands = 0 : i64, tpu.core_type = #tpu.core_type<tc>} {
    %c0 = arith.constant 0 : index
    %c0_0 = arith.constant 0 : index
    %0 = vector.load %arg0[%c0, %c0_0] : memref<48x32xf32, #tpu.memory_space<vmem>>, vector<48x32xf32>
    %c0_1 = arith.constant 0 : index
    %c0_2 = arith.constant 0 : index
    %1 = vector.load %arg1[%c0_1, %c0_2] : memref<1x32xf32, #tpu.memory_space<vmem>>, vector<1x32xf32>
    %c0_3 = arith.constant 0 : index
    %c0_4 = arith.constant 0 : index
    %2 = vector.load %arg2[%c0_3, %c0_4] : memref<1x32xf32, #tpu.memory_space<vmem>>, vector<1x32xf32>
    %c0_5 = arith.constant 0 : index
    %c0_6 = arith.constant 0 : index
    %3 = vector.load %arg3[%c0_5, %c0_6] : memref<32x32xf32, #tpu.memory_space<vmem>>, vector<32x32xf32>
    %c0_7 = arith.constant 0 : index
    %c0_8 = arith.constant 0 : index
    %4 = vector.load %arg4[%c0_7, %c0_8] : memref<1x32xf32, #tpu.memory_space<vmem>>, vector<1x32xf32>
    %c0_9 = arith.constant 0 : index
    %c0_10 = arith.constant 0 : index
    %5 = vector.load %arg5[%c0_9, %c0_10] : memref<32x32xf32, #tpu.memory_space<vmem>>, vector<32x32xf32>
    %c0_11 = arith.constant 0 : index
    %c0_12 = arith.constant 0 : index
    %6 = vector.load %arg6[%c0_11, %c0_12] : memref<1x32xf32, #tpu.memory_space<vmem>>, vector<1x32xf32>
    %c0_13 = arith.constant 0 : index
    %c0_14 = arith.constant 0 : index
    %7 = vector.load %arg7[%c0_13, %c0_14] : memref<32x32xf32, #tpu.memory_space<vmem>>, vector<32x32xf32>
    %c0_15 = arith.constant 0 : index
    %c0_16 = arith.constant 0 : index
    %8 = vector.load %arg8[%c0_15, %c0_16] : memref<1x32xf32, #tpu.memory_space<vmem>>, vector<1x32xf32>
    %c0_17 = arith.constant 0 : index
    %c0_18 = arith.constant 0 : index
    %9 = vector.load %arg9[%c0_17, %c0_18] : memref<32x32xf32, #tpu.memory_space<vmem>>, vector<32x32xf32>
    %c0_19 = arith.constant 0 : index
    %c0_20 = arith.constant 0 : index
    %10 = vector.load %arg10[%c0_19, %c0_20] : memref<1x32xf32, #tpu.memory_space<vmem>>, vector<1x32xf32>
    %c0_21 = arith.constant 0 : index
    %c0_22 = arith.constant 0 : index
    %11 = vector.load %arg11[%c0_21, %c0_22] : memref<1x32xf32, #tpu.memory_space<vmem>>, vector<1x32xf32>
    %c0_23 = arith.constant 0 : index
    %c0_24 = arith.constant 0 : index
    %12 = vector.load %arg12[%c0_23, %c0_24] : memref<1x32xf32, #tpu.memory_space<vmem>>, vector<1x32xf32>
    %c0_25 = arith.constant 0 : index
    %c0_26 = arith.constant 0 : index
    %13 = vector.load %arg13[%c0_25, %c0_26] : memref<32x128xf32, #tpu.memory_space<vmem>>, vector<32x128xf32>
    %c0_27 = arith.constant 0 : index
    %c0_28 = arith.constant 0 : index
    %14 = vector.load %arg14[%c0_27, %c0_28] : memref<1x128xf32, #tpu.memory_space<vmem>>, vector<1x128xf32>
    %c0_29 = arith.constant 0 : index
    %c0_30 = arith.constant 0 : index
    %15 = vector.load %arg15[%c0_29, %c0_30] : memref<128x32xf32, #tpu.memory_space<vmem>>, vector<128x32xf32>
    %c0_31 = arith.constant 0 : index
    %c0_32 = arith.constant 0 : index
    %16 = vector.load %arg16[%c0_31, %c0_32] : memref<1x32xf32, #tpu.memory_space<vmem>>, vector<1x32xf32>
    %c0_33 = arith.constant 0 : index
    %c0_34 = arith.constant 0 : index
    %17 = vector.load %arg17[%c0_33, %c0_34] : memref<1x32xf32, #tpu.memory_space<vmem>>, vector<1x32xf32>
    %c0_35 = arith.constant 0 : index
    %c0_36 = arith.constant 0 : index
    %18 = vector.load %arg18[%c0_35, %c0_36] : memref<1x32xf32, #tpu.memory_space<vmem>>, vector<1x32xf32>
    %c0_37 = arith.constant 0 : index
    %c0_38 = arith.constant 0 : index
    %19 = vector.load %arg19[%c0_37, %c0_38] : memref<32x32xf32, #tpu.memory_space<vmem>>, vector<32x32xf32>
    %c0_39 = arith.constant 0 : index
    %c0_40 = arith.constant 0 : index
    %20 = vector.load %arg20[%c0_39, %c0_40] : memref<1x32xf32, #tpu.memory_space<vmem>>, vector<1x32xf32>
    %c0_41 = arith.constant 0 : index
    %c0_42 = arith.constant 0 : index
    %21 = vector.load %arg21[%c0_41, %c0_42] : memref<32x32xf32, #tpu.memory_space<vmem>>, vector<32x32xf32>
    %c0_43 = arith.constant 0 : index
    %c0_44 = arith.constant 0 : index
    %22 = vector.load %arg22[%c0_43, %c0_44] : memref<1x32xf32, #tpu.memory_space<vmem>>, vector<1x32xf32>
    %c0_45 = arith.constant 0 : index
    %c0_46 = arith.constant 0 : index
    %23 = vector.load %arg23[%c0_45, %c0_46] : memref<32x32xf32, #tpu.memory_space<vmem>>, vector<32x32xf32>
    %c0_47 = arith.constant 0 : index
    %c0_48 = arith.constant 0 : index
    %24 = vector.load %arg24[%c0_47, %c0_48] : memref<1x32xf32, #tpu.memory_space<vmem>>, vector<1x32xf32>
    %c0_49 = arith.constant 0 : index
    %c0_50 = arith.constant 0 : index
    %25 = vector.load %arg25[%c0_49, %c0_50] : memref<32x32xf32, #tpu.memory_space<vmem>>, vector<32x32xf32>
    %c0_51 = arith.constant 0 : index
    %c0_52 = arith.constant 0 : index
    %26 = vector.load %arg26[%c0_51, %c0_52] : memref<1x32xf32, #tpu.memory_space<vmem>>, vector<1x32xf32>
    %c0_53 = arith.constant 0 : index
    %c0_54 = arith.constant 0 : index
    %27 = vector.load %arg27[%c0_53, %c0_54] : memref<1x32xf32, #tpu.memory_space<vmem>>, vector<1x32xf32>
    %c0_55 = arith.constant 0 : index
    %c0_56 = arith.constant 0 : index
    %28 = vector.load %arg28[%c0_55, %c0_56] : memref<1x32xf32, #tpu.memory_space<vmem>>, vector<1x32xf32>
    %c0_57 = arith.constant 0 : index
    %c0_58 = arith.constant 0 : index
    %29 = vector.load %arg29[%c0_57, %c0_58] : memref<32x128xf32, #tpu.memory_space<vmem>>, vector<32x128xf32>
    %c0_59 = arith.constant 0 : index
    %c0_60 = arith.constant 0 : index
    %30 = vector.load %arg30[%c0_59, %c0_60] : memref<1x128xf32, #tpu.memory_space<vmem>>, vector<1x128xf32>
    %c0_61 = arith.constant 0 : index
    %c0_62 = arith.constant 0 : index
    %31 = vector.load %arg31[%c0_61, %c0_62] : memref<128x32xf32, #tpu.memory_space<vmem>>, vector<128x32xf32>
    %c0_63 = arith.constant 0 : index
    %c0_64 = arith.constant 0 : index
    %32 = vector.load %arg32[%c0_63, %c0_64] : memref<1x32xf32, #tpu.memory_space<vmem>>, vector<1x32xf32>
    %c0_65 = arith.constant 0 : index
    %c0_66 = arith.constant 0 : index
    %33 = vector.load %arg33[%c0_65, %c0_66] : memref<1x32xf32, #tpu.memory_space<vmem>>, vector<1x32xf32>
    %c0_67 = arith.constant 0 : index
    %c0_68 = arith.constant 0 : index
    %34 = vector.load %arg34[%c0_67, %c0_68] : memref<1x32xf32, #tpu.memory_space<vmem>>, vector<1x32xf32>
    %c0_69 = arith.constant 0 : index
    %c0_70 = arith.constant 0 : index
    %35 = vector.load %arg35[%c0_69, %c0_70] : memref<32x32xf32, #tpu.memory_space<vmem>>, vector<32x32xf32>
    %c0_71 = arith.constant 0 : index
    %c0_72 = arith.constant 0 : index
    %36 = vector.load %arg36[%c0_71, %c0_72] : memref<3x48xf32, #tpu.memory_space<vmem>>, vector<3x48xf32>
    %c0_73 = arith.constant 0 : index
    %c0_74 = arith.constant 0 : index
    %37 = vector.load %arg37[%c0_73, %c0_74] : memref<48x48xf32, #tpu.memory_space<vmem>>, vector<48x48xf32>
    %38 = tpu.iota {dimensions = array<i32: 1>} : vector<48x32xi32>
    %c0_i32 = arith.constant 0 : i32
    %39 = vector.broadcast %c0_i32 : i32 to vector<48x32xi32>
    %40 = arith.cmpi sge, %38, %39 : vector<48x32xi32>
    %c8_i32 = arith.constant 8 : i32
    %41 = vector.broadcast %c8_i32 : i32 to vector<48x32xi32>
    %42 = arith.cmpi slt, %38, %41 : vector<48x32xi32>
    %43 = arith.andi %40, %42 : vector<48x32xi1>
    %cst = arith.constant 1.000000e+00 : f32
    %cst_75 = arith.constant 0.000000e+00 : f32
    %44 = vector.broadcast %cst : f32 to vector<48x32xf32>
    %45 = vector.broadcast %cst_75 : f32 to vector<48x32xf32>
    %46 = arith.select %43, %44, %45 : vector<48x32xi1>, vector<48x32xf32>
    %c8_i32_76 = arith.constant 8 : i32
    %47 = vector.broadcast %c8_i32_76 : i32 to vector<48x32xi32>
    %48 = arith.cmpi sge, %38, %47 : vector<48x32xi32>
    %c16_i32 = arith.constant 16 : i32
    %49 = vector.broadcast %c16_i32 : i32 to vector<48x32xi32>
    %50 = arith.cmpi slt, %38, %49 : vector<48x32xi32>
    %51 = arith.andi %48, %50 : vector<48x32xi1>
    %cst_77 = arith.constant 1.000000e+00 : f32
    %cst_78 = arith.constant 0.000000e+00 : f32
    %52 = vector.broadcast %cst_77 : f32 to vector<48x32xf32>
    %53 = vector.broadcast %cst_78 : f32 to vector<48x32xf32>
    %54 = arith.select %51, %52, %53 : vector<48x32xi1>, vector<48x32xf32>
    %c16_i32_79 = arith.constant 16 : i32
    %55 = vector.broadcast %c16_i32_79 : i32 to vector<48x32xi32>
    %56 = arith.cmpi sge, %38, %55 : vector<48x32xi32>
    %c24_i32 = arith.constant 24 : i32
    %57 = vector.broadcast %c24_i32 : i32 to vector<48x32xi32>
    %58 = arith.cmpi slt, %38, %57 : vector<48x32xi32>
    %59 = arith.andi %56, %58 : vector<48x32xi1>
    %cst_80 = arith.constant 1.000000e+00 : f32
    %cst_81 = arith.constant 0.000000e+00 : f32
    %60 = vector.broadcast %cst_80 : f32 to vector<48x32xf32>
    %61 = vector.broadcast %cst_81 : f32 to vector<48x32xf32>
    %62 = arith.select %59, %60, %61 : vector<48x32xi1>, vector<48x32xf32>
    %c24_i32_82 = arith.constant 24 : i32
    %63 = vector.broadcast %c24_i32_82 : i32 to vector<48x32xi32>
    %64 = arith.cmpi sge, %38, %63 : vector<48x32xi32>
    %c32_i32 = arith.constant 32 : i32
    %65 = vector.broadcast %c32_i32 : i32 to vector<48x32xi32>
    %66 = arith.cmpi slt, %38, %65 : vector<48x32xi32>
    %67 = arith.andi %64, %66 : vector<48x32xi1>
    %cst_83 = arith.constant 1.000000e+00 : f32
    %cst_84 = arith.constant 0.000000e+00 : f32
    %68 = vector.broadcast %cst_83 : f32 to vector<48x32xf32>
    %69 = vector.broadcast %cst_84 : f32 to vector<48x32xf32>
    %70 = arith.select %67, %68, %69 : vector<48x32xi1>, vector<48x32xf32>
    %cst_85 = arith.constant dense<0.000000e+00> : vector<48xf32>
    %71 = vector.multi_reduction <add>, %0, %cst_85 [1] : vector<48x32xf32> to vector<48xf32>
    %72 = vector.shape_cast %71 : vector<48xf32> to vector<48x1xf32>
    %cst_86 = arith.constant 3.200000e+01 : f32
    %73 = vector.broadcast %cst_86 : f32 to vector<48x1xf32>
    %74 = arith.divf %72, %73 : vector<48x1xf32>
    %75 = vector.broadcast %74 : vector<48x1xf32> to vector<48x32xf32>
    %76 = arith.subf %0, %75 : vector<48x32xf32>
    %77 = arith.mulf %76, %76 : vector<48x32xf32>
    %cst_87 = arith.constant dense<0.000000e+00> : vector<48xf32>
    %78 = vector.multi_reduction <add>, %77, %cst_87 [1] : vector<48x32xf32> to vector<48xf32>
    %79 = vector.shape_cast %78 : vector<48xf32> to vector<48x1xf32>
    %cst_88 = arith.constant 3.200000e+01 : f32
    %80 = vector.broadcast %cst_88 : f32 to vector<48x1xf32>
    %81 = arith.divf %79, %80 : vector<48x1xf32>
    %cst_89 = arith.constant 9.99999974E-6 : f32
    %82 = vector.broadcast %cst_89 : f32 to vector<48x1xf32>
    %83 = arith.addf %81, %82 : vector<48x1xf32>
    %84 = math.rsqrt %83 : vector<48x1xf32>
    %85 = vector.broadcast %84 : vector<48x1xf32> to vector<48x32xf32>
    %86 = arith.mulf %76, %85 : vector<48x32xf32>
    %87 = vector.broadcast %1 : vector<1x32xf32> to vector<48x32xf32>
    %88 = arith.mulf %86, %87 : vector<48x32xf32>
    %89 = vector.broadcast %2 : vector<1x32xf32> to vector<48x32xf32>
    %90 = arith.addf %88, %89 : vector<48x32xf32>
    %cst_90 = arith.constant dense<0.000000e+00> : vector<48x32xf32>
    %91 = tpu.matmul %90, %3, %cst_90 {dimension_numbers = #tpu.dot_dimension_numbers<[1], [0], [0], [1], [0, 0, 1, 1], [], []>} : vector<48x32xf32>, vector<32x32xf32>, vector<48x32xf32> -> vector<48x32xf32>
    %92 = vector.broadcast %4 : vector<1x32xf32> to vector<48x32xf32>
    %93 = arith.addf %91, %92 : vector<48x32xf32>
    %cst_91 = arith.constant dense<0.000000e+00> : vector<48x32xf32>
    %94 = tpu.matmul %90, %5, %cst_91 {dimension_numbers = #tpu.dot_dimension_numbers<[1], [0], [0], [1], [0, 0, 1, 1], [], []>} : vector<48x32xf32>, vector<32x32xf32>, vector<48x32xf32> -> vector<48x32xf32>
    %95 = vector.broadcast %6 : vector<1x32xf32> to vector<48x32xf32>
    %96 = arith.addf %94, %95 : vector<48x32xf32>
    %cst_92 = arith.constant dense<0.000000e+00> : vector<48x32xf32>
    %97 = tpu.matmul %90, %7, %cst_92 {dimension_numbers = #tpu.dot_dimension_numbers<[1], [0], [0], [1], [0, 0, 1, 1], [], []>} : vector<48x32xf32>, vector<32x32xf32>, vector<48x32xf32> -> vector<48x32xf32>
    %98 = vector.broadcast %8 : vector<1x32xf32> to vector<48x32xf32>
    %99 = arith.addf %97, %98 : vector<48x32xf32>
    %cst_93 = arith.constant 0.000000e+00 : f32
    %100 = vector.broadcast %cst_93 : f32 to vector<48x32xf32>
    %101 = arith.mulf %93, %46 : vector<48x32xf32>
    %cst_94 = arith.constant 0.353553385 : f32
    %102 = vector.broadcast %cst_94 : f32 to vector<48x32xf32>
    %103 = arith.mulf %101, %102 : vector<48x32xf32>
    %cst_95 = arith.constant dense<0.000000e+00> : vector<48x48xf32>
    %104 = tpu.matmul %103, %96, %cst_95 {dimension_numbers = #tpu.dot_dimension_numbers<[1], [1], [0], [0], [0, 0, 1, 0], [], []>} : vector<48x32xf32>, vector<48x32xf32>, vector<48x48xf32> -> vector<48x48xf32>
    %105 = arith.addf %104, %37 : vector<48x48xf32>
    %cst_96 = arith.constant dense<0xFF800000> : vector<48xf32>
    %106 = vector.multi_reduction <maximumf>, %105, %cst_96 [1] : vector<48x48xf32> to vector<48xf32>
    %107 = vector.shape_cast %106 : vector<48xf32> to vector<48x1xf32>
    %108 = vector.broadcast %107 : vector<48x1xf32> to vector<48x48xf32>
    %109 = arith.subf %105, %108 : vector<48x48xf32>
    %110 = math.exp %109 : vector<48x48xf32>
    %cst_97 = arith.constant dense<0.000000e+00> : vector<48xf32>
    %111 = vector.multi_reduction <add>, %110, %cst_97 [1] : vector<48x48xf32> to vector<48xf32>
    %112 = vector.shape_cast %111 : vector<48xf32> to vector<48x1xf32>
    %113 = tpu.reciprocal %112 {approx = true} : vector<48x1xf32> -> vector<48x1xf32>
    %114 = vector.broadcast %113 : vector<48x1xf32> to vector<48x48xf32>
    %115 = arith.mulf %110, %114 : vector<48x48xf32>
    %116 = arith.mulf %99, %46 : vector<48x32xf32>
    %cst_98 = arith.constant dense<0.000000e+00> : vector<48x32xf32>
    %117 = tpu.matmul %115, %116, %cst_98 {dimension_numbers = #tpu.dot_dimension_numbers<[1], [0], [0], [1], [0, 0, 1, 1], [], []>} : vector<48x48xf32>, vector<48x32xf32>, vector<48x32xf32> -> vector<48x32xf32>
    %118 = arith.addf %100, %117 : vector<48x32xf32>
    %119 = arith.mulf %93, %54 : vector<48x32xf32>
    %cst_99 = arith.constant 0.353553385 : f32
    %120 = vector.broadcast %cst_99 : f32 to vector<48x32xf32>
    %121 = arith.mulf %119, %120 : vector<48x32xf32>
    %cst_100 = arith.constant dense<0.000000e+00> : vector<48x48xf32>
    %122 = tpu.matmul %121, %96, %cst_100 {dimension_numbers = #tpu.dot_dimension_numbers<[1], [1], [0], [0], [0, 0, 1, 0], [], []>} : vector<48x32xf32>, vector<48x32xf32>, vector<48x48xf32> -> vector<48x48xf32>
    %123 = arith.addf %122, %37 : vector<48x48xf32>
    %cst_101 = arith.constant dense<0xFF800000> : vector<48xf32>
    %124 = vector.multi_reduction <maximumf>, %123, %cst_101 [1] : vector<48x48xf32> to vector<48xf32>
    %125 = vector.shape_cast %124 : vector<48xf32> to vector<48x1xf32>
    %126 = vector.broadcast %125 : vector<48x1xf32> to vector<48x48xf32>
    %127 = arith.subf %123, %126 : vector<48x48xf32>
    %128 = math.exp %127 : vector<48x48xf32>
    %cst_102 = arith.constant dense<0.000000e+00> : vector<48xf32>
    %129 = vector.multi_reduction <add>, %128, %cst_102 [1] : vector<48x48xf32> to vector<48xf32>
    %130 = vector.shape_cast %129 : vector<48xf32> to vector<48x1xf32>
    %131 = tpu.reciprocal %130 {approx = true} : vector<48x1xf32> -> vector<48x1xf32>
    %132 = vector.broadcast %131 : vector<48x1xf32> to vector<48x48xf32>
    %133 = arith.mulf %128, %132 : vector<48x48xf32>
    %134 = arith.mulf %99, %54 : vector<48x32xf32>
    %cst_103 = arith.constant dense<0.000000e+00> : vector<48x32xf32>
    %135 = tpu.matmul %133, %134, %cst_103 {dimension_numbers = #tpu.dot_dimension_numbers<[1], [0], [0], [1], [0, 0, 1, 1], [], []>} : vector<48x48xf32>, vector<48x32xf32>, vector<48x32xf32> -> vector<48x32xf32>
    %136 = arith.addf %118, %135 : vector<48x32xf32>
    %137 = arith.mulf %93, %62 : vector<48x32xf32>
    %cst_104 = arith.constant 0.353553385 : f32
    %138 = vector.broadcast %cst_104 : f32 to vector<48x32xf32>
    %139 = arith.mulf %137, %138 : vector<48x32xf32>
    %cst_105 = arith.constant dense<0.000000e+00> : vector<48x48xf32>
    %140 = tpu.matmul %139, %96, %cst_105 {dimension_numbers = #tpu.dot_dimension_numbers<[1], [1], [0], [0], [0, 0, 1, 0], [], []>} : vector<48x32xf32>, vector<48x32xf32>, vector<48x48xf32> -> vector<48x48xf32>
    %141 = arith.addf %140, %37 : vector<48x48xf32>
    %cst_106 = arith.constant dense<0xFF800000> : vector<48xf32>
    %142 = vector.multi_reduction <maximumf>, %141, %cst_106 [1] : vector<48x48xf32> to vector<48xf32>
    %143 = vector.shape_cast %142 : vector<48xf32> to vector<48x1xf32>
    %144 = vector.broadcast %143 : vector<48x1xf32> to vector<48x48xf32>
    %145 = arith.subf %141, %144 : vector<48x48xf32>
    %146 = math.exp %145 : vector<48x48xf32>
    %cst_107 = arith.constant dense<0.000000e+00> : vector<48xf32>
    %147 = vector.multi_reduction <add>, %146, %cst_107 [1] : vector<48x48xf32> to vector<48xf32>
    %148 = vector.shape_cast %147 : vector<48xf32> to vector<48x1xf32>
    %149 = tpu.reciprocal %148 {approx = true} : vector<48x1xf32> -> vector<48x1xf32>
    %150 = vector.broadcast %149 : vector<48x1xf32> to vector<48x48xf32>
    %151 = arith.mulf %146, %150 : vector<48x48xf32>
    %152 = arith.mulf %99, %62 : vector<48x32xf32>
    %cst_108 = arith.constant dense<0.000000e+00> : vector<48x32xf32>
    %153 = tpu.matmul %151, %152, %cst_108 {dimension_numbers = #tpu.dot_dimension_numbers<[1], [0], [0], [1], [0, 0, 1, 1], [], []>} : vector<48x48xf32>, vector<48x32xf32>, vector<48x32xf32> -> vector<48x32xf32>
    %154 = arith.addf %136, %153 : vector<48x32xf32>
    %155 = arith.mulf %93, %70 : vector<48x32xf32>
    %cst_109 = arith.constant 0.353553385 : f32
    %156 = vector.broadcast %cst_109 : f32 to vector<48x32xf32>
    %157 = arith.mulf %155, %156 : vector<48x32xf32>
    %cst_110 = arith.constant dense<0.000000e+00> : vector<48x48xf32>
    %158 = tpu.matmul %157, %96, %cst_110 {dimension_numbers = #tpu.dot_dimension_numbers<[1], [1], [0], [0], [0, 0, 1, 0], [], []>} : vector<48x32xf32>, vector<48x32xf32>, vector<48x48xf32> -> vector<48x48xf32>
    %159 = arith.addf %158, %37 : vector<48x48xf32>
    %cst_111 = arith.constant dense<0xFF800000> : vector<48xf32>
    %160 = vector.multi_reduction <maximumf>, %159, %cst_111 [1] : vector<48x48xf32> to vector<48xf32>
    %161 = vector.shape_cast %160 : vector<48xf32> to vector<48x1xf32>
    %162 = vector.broadcast %161 : vector<48x1xf32> to vector<48x48xf32>
    %163 = arith.subf %159, %162 : vector<48x48xf32>
    %164 = math.exp %163 : vector<48x48xf32>
    %cst_112 = arith.constant dense<0.000000e+00> : vector<48xf32>
    %165 = vector.multi_reduction <add>, %164, %cst_112 [1] : vector<48x48xf32> to vector<48xf32>
    %166 = vector.shape_cast %165 : vector<48xf32> to vector<48x1xf32>
    %167 = tpu.reciprocal %166 {approx = true} : vector<48x1xf32> -> vector<48x1xf32>
    %168 = vector.broadcast %167 : vector<48x1xf32> to vector<48x48xf32>
    %169 = arith.mulf %164, %168 : vector<48x48xf32>
    %170 = arith.mulf %99, %70 : vector<48x32xf32>
    %cst_113 = arith.constant dense<0.000000e+00> : vector<48x32xf32>
    %171 = tpu.matmul %169, %170, %cst_113 {dimension_numbers = #tpu.dot_dimension_numbers<[1], [0], [0], [1], [0, 0, 1, 1], [], []>} : vector<48x48xf32>, vector<48x32xf32>, vector<48x32xf32> -> vector<48x32xf32>
    %172 = arith.addf %154, %171 : vector<48x32xf32>
    %cst_114 = arith.constant dense<0.000000e+00> : vector<48x32xf32>
    %173 = tpu.matmul %172, %9, %cst_114 {dimension_numbers = #tpu.dot_dimension_numbers<[1], [0], [0], [1], [0, 0, 1, 1], [], []>} : vector<48x32xf32>, vector<32x32xf32>, vector<48x32xf32> -> vector<48x32xf32>
    %174 = vector.broadcast %10 : vector<1x32xf32> to vector<48x32xf32>
    %175 = arith.addf %173, %174 : vector<48x32xf32>
    %176 = arith.addf %0, %175 : vector<48x32xf32>
    %cst_115 = arith.constant dense<0.000000e+00> : vector<48xf32>
    %177 = vector.multi_reduction <add>, %176, %cst_115 [1] : vector<48x32xf32> to vector<48xf32>
    %178 = vector.shape_cast %177 : vector<48xf32> to vector<48x1xf32>
    %cst_116 = arith.constant 3.200000e+01 : f32
    %179 = vector.broadcast %cst_116 : f32 to vector<48x1xf32>
    %180 = arith.divf %178, %179 : vector<48x1xf32>
    %181 = vector.broadcast %180 : vector<48x1xf32> to vector<48x32xf32>
    %182 = arith.subf %176, %181 : vector<48x32xf32>
    %183 = arith.mulf %182, %182 : vector<48x32xf32>
    %cst_117 = arith.constant dense<0.000000e+00> : vector<48xf32>
    %184 = vector.multi_reduction <add>, %183, %cst_117 [1] : vector<48x32xf32> to vector<48xf32>
    %185 = vector.shape_cast %184 : vector<48xf32> to vector<48x1xf32>
    %cst_118 = arith.constant 3.200000e+01 : f32
    %186 = vector.broadcast %cst_118 : f32 to vector<48x1xf32>
    %187 = arith.divf %185, %186 : vector<48x1xf32>
    %cst_119 = arith.constant 9.99999974E-6 : f32
    %188 = vector.broadcast %cst_119 : f32 to vector<48x1xf32>
    %189 = arith.addf %187, %188 : vector<48x1xf32>
    %190 = math.rsqrt %189 : vector<48x1xf32>
    %191 = vector.broadcast %190 : vector<48x1xf32> to vector<48x32xf32>
    %192 = arith.mulf %182, %191 : vector<48x32xf32>
    %193 = vector.broadcast %11 : vector<1x32xf32> to vector<48x32xf32>
    %194 = arith.mulf %192, %193 : vector<48x32xf32>
    %195 = vector.broadcast %12 : vector<1x32xf32> to vector<48x32xf32>
    %196 = arith.addf %194, %195 : vector<48x32xf32>
    %cst_120 = arith.constant dense<0.000000e+00> : vector<48x128xf32>
    %197 = tpu.matmul %196, %13, %cst_120 {dimension_numbers = #tpu.dot_dimension_numbers<[1], [0], [0], [1], [0, 0, 1, 1], [], []>} : vector<48x32xf32>, vector<32x128xf32>, vector<48x128xf32> -> vector<48x128xf32>
    %198 = vector.broadcast %14 : vector<1x128xf32> to vector<48x128xf32>
    %199 = arith.addf %197, %198 : vector<48x128xf32>
    %cst_121 = arith.constant -1.702000e+00 : f32
    %200 = vector.broadcast %cst_121 : f32 to vector<48x128xf32>
    %201 = arith.mulf %200, %199 : vector<48x128xf32>
    %202 = math.exp %201 : vector<48x128xf32>
    %cst_122 = arith.constant 1.000000e+00 : f32
    %203 = vector.broadcast %cst_122 : f32 to vector<48x128xf32>
    %204 = arith.addf %203, %202 : vector<48x128xf32>
    %cst_123 = arith.constant 1.000000e+00 : f32
    %205 = vector.broadcast %cst_123 : f32 to vector<48x128xf32>
    %206 = arith.divf %205, %204 : vector<48x128xf32>
    %207 = arith.mulf %199, %206 : vector<48x128xf32>
    %cst_124 = arith.constant dense<0.000000e+00> : vector<48x32xf32>
    %208 = tpu.matmul %207, %15, %cst_124 {dimension_numbers = #tpu.dot_dimension_numbers<[1], [0], [0], [1], [0, 0, 1, 1], [], []>} : vector<48x128xf32>, vector<128x32xf32>, vector<48x32xf32> -> vector<48x32xf32>
    %209 = arith.addf %176, %208 : vector<48x32xf32>
    %210 = vector.broadcast %16 : vector<1x32xf32> to vector<48x32xf32>
    %211 = arith.addf %209, %210 : vector<48x32xf32>
    %cst_125 = arith.constant dense<0.000000e+00> : vector<48xf32>
    %212 = vector.multi_reduction <add>, %211, %cst_125 [1] : vector<48x32xf32> to vector<48xf32>
    %213 = vector.shape_cast %212 : vector<48xf32> to vector<48x1xf32>
    %cst_126 = arith.constant 3.200000e+01 : f32
    %214 = vector.broadcast %cst_126 : f32 to vector<48x1xf32>
    %215 = arith.divf %213, %214 : vector<48x1xf32>
    %216 = vector.broadcast %215 : vector<48x1xf32> to vector<48x32xf32>
    %217 = arith.subf %211, %216 : vector<48x32xf32>
    %218 = arith.mulf %217, %217 : vector<48x32xf32>
    %cst_127 = arith.constant dense<0.000000e+00> : vector<48xf32>
    %219 = vector.multi_reduction <add>, %218, %cst_127 [1] : vector<48x32xf32> to vector<48xf32>
    %220 = vector.shape_cast %219 : vector<48xf32> to vector<48x1xf32>
    %cst_128 = arith.constant 3.200000e+01 : f32
    %221 = vector.broadcast %cst_128 : f32 to vector<48x1xf32>
    %222 = arith.divf %220, %221 : vector<48x1xf32>
    %cst_129 = arith.constant 9.99999974E-6 : f32
    %223 = vector.broadcast %cst_129 : f32 to vector<48x1xf32>
    %224 = arith.addf %222, %223 : vector<48x1xf32>
    %225 = math.rsqrt %224 : vector<48x1xf32>
    %226 = vector.broadcast %225 : vector<48x1xf32> to vector<48x32xf32>
    %227 = arith.mulf %217, %226 : vector<48x32xf32>
    %228 = vector.broadcast %17 : vector<1x32xf32> to vector<48x32xf32>
    %229 = arith.mulf %227, %228 : vector<48x32xf32>
    %230 = vector.broadcast %18 : vector<1x32xf32> to vector<48x32xf32>
    %231 = arith.addf %229, %230 : vector<48x32xf32>
    %cst_130 = arith.constant dense<0.000000e+00> : vector<48x32xf32>
    %232 = tpu.matmul %231, %19, %cst_130 {dimension_numbers = #tpu.dot_dimension_numbers<[1], [0], [0], [1], [0, 0, 1, 1], [], []>} : vector<48x32xf32>, vector<32x32xf32>, vector<48x32xf32> -> vector<48x32xf32>
    %233 = vector.broadcast %20 : vector<1x32xf32> to vector<48x32xf32>
    %234 = arith.addf %232, %233 : vector<48x32xf32>
    %cst_131 = arith.constant dense<0.000000e+00> : vector<48x32xf32>
    %235 = tpu.matmul %231, %21, %cst_131 {dimension_numbers = #tpu.dot_dimension_numbers<[1], [0], [0], [1], [0, 0, 1, 1], [], []>} : vector<48x32xf32>, vector<32x32xf32>, vector<48x32xf32> -> vector<48x32xf32>
    %236 = vector.broadcast %22 : vector<1x32xf32> to vector<48x32xf32>
    %237 = arith.addf %235, %236 : vector<48x32xf32>
    %cst_132 = arith.constant dense<0.000000e+00> : vector<48x32xf32>
    %238 = tpu.matmul %231, %23, %cst_132 {dimension_numbers = #tpu.dot_dimension_numbers<[1], [0], [0], [1], [0, 0, 1, 1], [], []>} : vector<48x32xf32>, vector<32x32xf32>, vector<48x32xf32> -> vector<48x32xf32>
    %239 = vector.broadcast %24 : vector<1x32xf32> to vector<48x32xf32>
    %240 = arith.addf %238, %239 : vector<48x32xf32>
    %cst_133 = arith.constant 0.000000e+00 : f32
    %241 = vector.broadcast %cst_133 : f32 to vector<48x32xf32>
    %242 = arith.mulf %234, %46 : vector<48x32xf32>
    %cst_134 = arith.constant 0.353553385 : f32
    %243 = vector.broadcast %cst_134 : f32 to vector<48x32xf32>
    %244 = arith.mulf %242, %243 : vector<48x32xf32>
    %cst_135 = arith.constant dense<0.000000e+00> : vector<48x48xf32>
    %245 = tpu.matmul %244, %237, %cst_135 {dimension_numbers = #tpu.dot_dimension_numbers<[1], [1], [0], [0], [0, 0, 1, 0], [], []>} : vector<48x32xf32>, vector<48x32xf32>, vector<48x48xf32> -> vector<48x48xf32>
    %246 = arith.addf %245, %37 : vector<48x48xf32>
    %cst_136 = arith.constant dense<0xFF800000> : vector<48xf32>
    %247 = vector.multi_reduction <maximumf>, %246, %cst_136 [1] : vector<48x48xf32> to vector<48xf32>
    %248 = vector.shape_cast %247 : vector<48xf32> to vector<48x1xf32>
    %249 = vector.broadcast %248 : vector<48x1xf32> to vector<48x48xf32>
    %250 = arith.subf %246, %249 : vector<48x48xf32>
    %251 = math.exp %250 : vector<48x48xf32>
    %cst_137 = arith.constant dense<0.000000e+00> : vector<48xf32>
    %252 = vector.multi_reduction <add>, %251, %cst_137 [1] : vector<48x48xf32> to vector<48xf32>
    %253 = vector.shape_cast %252 : vector<48xf32> to vector<48x1xf32>
    %254 = tpu.reciprocal %253 {approx = true} : vector<48x1xf32> -> vector<48x1xf32>
    %255 = vector.broadcast %254 : vector<48x1xf32> to vector<48x48xf32>
    %256 = arith.mulf %251, %255 : vector<48x48xf32>
    %257 = arith.mulf %240, %46 : vector<48x32xf32>
    %cst_138 = arith.constant dense<0.000000e+00> : vector<48x32xf32>
    %258 = tpu.matmul %256, %257, %cst_138 {dimension_numbers = #tpu.dot_dimension_numbers<[1], [0], [0], [1], [0, 0, 1, 1], [], []>} : vector<48x48xf32>, vector<48x32xf32>, vector<48x32xf32> -> vector<48x32xf32>
    %259 = arith.addf %241, %258 : vector<48x32xf32>
    %260 = arith.mulf %234, %54 : vector<48x32xf32>
    %cst_139 = arith.constant 0.353553385 : f32
    %261 = vector.broadcast %cst_139 : f32 to vector<48x32xf32>
    %262 = arith.mulf %260, %261 : vector<48x32xf32>
    %cst_140 = arith.constant dense<0.000000e+00> : vector<48x48xf32>
    %263 = tpu.matmul %262, %237, %cst_140 {dimension_numbers = #tpu.dot_dimension_numbers<[1], [1], [0], [0], [0, 0, 1, 0], [], []>} : vector<48x32xf32>, vector<48x32xf32>, vector<48x48xf32> -> vector<48x48xf32>
    %264 = arith.addf %263, %37 : vector<48x48xf32>
    %cst_141 = arith.constant dense<0xFF800000> : vector<48xf32>
    %265 = vector.multi_reduction <maximumf>, %264, %cst_141 [1] : vector<48x48xf32> to vector<48xf32>
    %266 = vector.shape_cast %265 : vector<48xf32> to vector<48x1xf32>
    %267 = vector.broadcast %266 : vector<48x1xf32> to vector<48x48xf32>
    %268 = arith.subf %264, %267 : vector<48x48xf32>
    %269 = math.exp %268 : vector<48x48xf32>
    %cst_142 = arith.constant dense<0.000000e+00> : vector<48xf32>
    %270 = vector.multi_reduction <add>, %269, %cst_142 [1] : vector<48x48xf32> to vector<48xf32>
    %271 = vector.shape_cast %270 : vector<48xf32> to vector<48x1xf32>
    %272 = tpu.reciprocal %271 {approx = true} : vector<48x1xf32> -> vector<48x1xf32>
    %273 = vector.broadcast %272 : vector<48x1xf32> to vector<48x48xf32>
    %274 = arith.mulf %269, %273 : vector<48x48xf32>
    %275 = arith.mulf %240, %54 : vector<48x32xf32>
    %cst_143 = arith.constant dense<0.000000e+00> : vector<48x32xf32>
    %276 = tpu.matmul %274, %275, %cst_143 {dimension_numbers = #tpu.dot_dimension_numbers<[1], [0], [0], [1], [0, 0, 1, 1], [], []>} : vector<48x48xf32>, vector<48x32xf32>, vector<48x32xf32> -> vector<48x32xf32>
    %277 = arith.addf %259, %276 : vector<48x32xf32>
    %278 = arith.mulf %234, %62 : vector<48x32xf32>
    %cst_144 = arith.constant 0.353553385 : f32
    %279 = vector.broadcast %cst_144 : f32 to vector<48x32xf32>
    %280 = arith.mulf %278, %279 : vector<48x32xf32>
    %cst_145 = arith.constant dense<0.000000e+00> : vector<48x48xf32>
    %281 = tpu.matmul %280, %237, %cst_145 {dimension_numbers = #tpu.dot_dimension_numbers<[1], [1], [0], [0], [0, 0, 1, 0], [], []>} : vector<48x32xf32>, vector<48x32xf32>, vector<48x48xf32> -> vector<48x48xf32>
    %282 = arith.addf %281, %37 : vector<48x48xf32>
    %cst_146 = arith.constant dense<0xFF800000> : vector<48xf32>
    %283 = vector.multi_reduction <maximumf>, %282, %cst_146 [1] : vector<48x48xf32> to vector<48xf32>
    %284 = vector.shape_cast %283 : vector<48xf32> to vector<48x1xf32>
    %285 = vector.broadcast %284 : vector<48x1xf32> to vector<48x48xf32>
    %286 = arith.subf %282, %285 : vector<48x48xf32>
    %287 = math.exp %286 : vector<48x48xf32>
    %cst_147 = arith.constant dense<0.000000e+00> : vector<48xf32>
    %288 = vector.multi_reduction <add>, %287, %cst_147 [1] : vector<48x48xf32> to vector<48xf32>
    %289 = vector.shape_cast %288 : vector<48xf32> to vector<48x1xf32>
    %290 = tpu.reciprocal %289 {approx = true} : vector<48x1xf32> -> vector<48x1xf32>
    %291 = vector.broadcast %290 : vector<48x1xf32> to vector<48x48xf32>
    %292 = arith.mulf %287, %291 : vector<48x48xf32>
    %293 = arith.mulf %240, %62 : vector<48x32xf32>
    %cst_148 = arith.constant dense<0.000000e+00> : vector<48x32xf32>
    %294 = tpu.matmul %292, %293, %cst_148 {dimension_numbers = #tpu.dot_dimension_numbers<[1], [0], [0], [1], [0, 0, 1, 1], [], []>} : vector<48x48xf32>, vector<48x32xf32>, vector<48x32xf32> -> vector<48x32xf32>
    %295 = arith.addf %277, %294 : vector<48x32xf32>
    %296 = arith.mulf %234, %70 : vector<48x32xf32>
    %cst_149 = arith.constant 0.353553385 : f32
    %297 = vector.broadcast %cst_149 : f32 to vector<48x32xf32>
    %298 = arith.mulf %296, %297 : vector<48x32xf32>
    %cst_150 = arith.constant dense<0.000000e+00> : vector<48x48xf32>
    %299 = tpu.matmul %298, %237, %cst_150 {dimension_numbers = #tpu.dot_dimension_numbers<[1], [1], [0], [0], [0, 0, 1, 0], [], []>} : vector<48x32xf32>, vector<48x32xf32>, vector<48x48xf32> -> vector<48x48xf32>
    %300 = arith.addf %299, %37 : vector<48x48xf32>
    %cst_151 = arith.constant dense<0xFF800000> : vector<48xf32>
    %301 = vector.multi_reduction <maximumf>, %300, %cst_151 [1] : vector<48x48xf32> to vector<48xf32>
    %302 = vector.shape_cast %301 : vector<48xf32> to vector<48x1xf32>
    %303 = vector.broadcast %302 : vector<48x1xf32> to vector<48x48xf32>
    %304 = arith.subf %300, %303 : vector<48x48xf32>
    %305 = math.exp %304 : vector<48x48xf32>
    %cst_152 = arith.constant dense<0.000000e+00> : vector<48xf32>
    %306 = vector.multi_reduction <add>, %305, %cst_152 [1] : vector<48x48xf32> to vector<48xf32>
    %307 = vector.shape_cast %306 : vector<48xf32> to vector<48x1xf32>
    %308 = tpu.reciprocal %307 {approx = true} : vector<48x1xf32> -> vector<48x1xf32>
    %309 = vector.broadcast %308 : vector<48x1xf32> to vector<48x48xf32>
    %310 = arith.mulf %305, %309 : vector<48x48xf32>
    %311 = arith.mulf %240, %70 : vector<48x32xf32>
    %cst_153 = arith.constant dense<0.000000e+00> : vector<48x32xf32>
    %312 = tpu.matmul %310, %311, %cst_153 {dimension_numbers = #tpu.dot_dimension_numbers<[1], [0], [0], [1], [0, 0, 1, 1], [], []>} : vector<48x48xf32>, vector<48x32xf32>, vector<48x32xf32> -> vector<48x32xf32>
    %313 = arith.addf %295, %312 : vector<48x32xf32>
    %cst_154 = arith.constant dense<0.000000e+00> : vector<48x32xf32>
    %314 = tpu.matmul %313, %25, %cst_154 {dimension_numbers = #tpu.dot_dimension_numbers<[1], [0], [0], [1], [0, 0, 1, 1], [], []>} : vector<48x32xf32>, vector<32x32xf32>, vector<48x32xf32> -> vector<48x32xf32>
    %315 = vector.broadcast %26 : vector<1x32xf32> to vector<48x32xf32>
    %316 = arith.addf %314, %315 : vector<48x32xf32>
    %317 = arith.addf %211, %316 : vector<48x32xf32>
    %cst_155 = arith.constant dense<0.000000e+00> : vector<48xf32>
    %318 = vector.multi_reduction <add>, %317, %cst_155 [1] : vector<48x32xf32> to vector<48xf32>
    %319 = vector.shape_cast %318 : vector<48xf32> to vector<48x1xf32>
    %cst_156 = arith.constant 3.200000e+01 : f32
    %320 = vector.broadcast %cst_156 : f32 to vector<48x1xf32>
    %321 = arith.divf %319, %320 : vector<48x1xf32>
    %322 = vector.broadcast %321 : vector<48x1xf32> to vector<48x32xf32>
    %323 = arith.subf %317, %322 : vector<48x32xf32>
    %324 = arith.mulf %323, %323 : vector<48x32xf32>
    %cst_157 = arith.constant dense<0.000000e+00> : vector<48xf32>
    %325 = vector.multi_reduction <add>, %324, %cst_157 [1] : vector<48x32xf32> to vector<48xf32>
    %326 = vector.shape_cast %325 : vector<48xf32> to vector<48x1xf32>
    %cst_158 = arith.constant 3.200000e+01 : f32
    %327 = vector.broadcast %cst_158 : f32 to vector<48x1xf32>
    %328 = arith.divf %326, %327 : vector<48x1xf32>
    %cst_159 = arith.constant 9.99999974E-6 : f32
    %329 = vector.broadcast %cst_159 : f32 to vector<48x1xf32>
    %330 = arith.addf %328, %329 : vector<48x1xf32>
    %331 = math.rsqrt %330 : vector<48x1xf32>
    %332 = vector.broadcast %331 : vector<48x1xf32> to vector<48x32xf32>
    %333 = arith.mulf %323, %332 : vector<48x32xf32>
    %334 = vector.broadcast %27 : vector<1x32xf32> to vector<48x32xf32>
    %335 = arith.mulf %333, %334 : vector<48x32xf32>
    %336 = vector.broadcast %28 : vector<1x32xf32> to vector<48x32xf32>
    %337 = arith.addf %335, %336 : vector<48x32xf32>
    %cst_160 = arith.constant dense<0.000000e+00> : vector<48x128xf32>
    %338 = tpu.matmul %337, %29, %cst_160 {dimension_numbers = #tpu.dot_dimension_numbers<[1], [0], [0], [1], [0, 0, 1, 1], [], []>} : vector<48x32xf32>, vector<32x128xf32>, vector<48x128xf32> -> vector<48x128xf32>
    %339 = vector.broadcast %30 : vector<1x128xf32> to vector<48x128xf32>
    %340 = arith.addf %338, %339 : vector<48x128xf32>
    %cst_161 = arith.constant -1.702000e+00 : f32
    %341 = vector.broadcast %cst_161 : f32 to vector<48x128xf32>
    %342 = arith.mulf %341, %340 : vector<48x128xf32>
    %343 = math.exp %342 : vector<48x128xf32>
    %cst_162 = arith.constant 1.000000e+00 : f32
    %344 = vector.broadcast %cst_162 : f32 to vector<48x128xf32>
    %345 = arith.addf %344, %343 : vector<48x128xf32>
    %cst_163 = arith.constant 1.000000e+00 : f32
    %346 = vector.broadcast %cst_163 : f32 to vector<48x128xf32>
    %347 = arith.divf %346, %345 : vector<48x128xf32>
    %348 = arith.mulf %340, %347 : vector<48x128xf32>
    %cst_164 = arith.constant dense<0.000000e+00> : vector<48x32xf32>
    %349 = tpu.matmul %348, %31, %cst_164 {dimension_numbers = #tpu.dot_dimension_numbers<[1], [0], [0], [1], [0, 0, 1, 1], [], []>} : vector<48x128xf32>, vector<128x32xf32>, vector<48x32xf32> -> vector<48x32xf32>
    %350 = arith.addf %317, %349 : vector<48x32xf32>
    %351 = vector.broadcast %32 : vector<1x32xf32> to vector<48x32xf32>
    %352 = arith.addf %350, %351 : vector<48x32xf32>
    %cst_165 = arith.constant dense<0.000000e+00> : vector<48xf32>
    %353 = vector.multi_reduction <add>, %352, %cst_165 [1] : vector<48x32xf32> to vector<48xf32>
    %354 = vector.shape_cast %353 : vector<48xf32> to vector<48x1xf32>
    %cst_166 = arith.constant 3.200000e+01 : f32
    %355 = vector.broadcast %cst_166 : f32 to vector<48x1xf32>
    %356 = arith.divf %354, %355 : vector<48x1xf32>
    %357 = vector.broadcast %356 : vector<48x1xf32> to vector<48x32xf32>
    %358 = arith.subf %352, %357 : vector<48x32xf32>
    %359 = arith.mulf %358, %358 : vector<48x32xf32>
    %cst_167 = arith.constant dense<0.000000e+00> : vector<48xf32>
    %360 = vector.multi_reduction <add>, %359, %cst_167 [1] : vector<48x32xf32> to vector<48xf32>
    %361 = vector.shape_cast %360 : vector<48xf32> to vector<48x1xf32>
    %cst_168 = arith.constant 3.200000e+01 : f32
    %362 = vector.broadcast %cst_168 : f32 to vector<48x1xf32>
    %363 = arith.divf %361, %362 : vector<48x1xf32>
    %cst_169 = arith.constant 9.99999974E-6 : f32
    %364 = vector.broadcast %cst_169 : f32 to vector<48x1xf32>
    %365 = arith.addf %363, %364 : vector<48x1xf32>
    %366 = math.rsqrt %365 : vector<48x1xf32>
    %367 = vector.broadcast %366 : vector<48x1xf32> to vector<48x32xf32>
    %368 = arith.mulf %358, %367 : vector<48x32xf32>
    %369 = vector.broadcast %33 : vector<1x32xf32> to vector<48x32xf32>
    %370 = arith.mulf %368, %369 : vector<48x32xf32>
    %371 = vector.broadcast %34 : vector<1x32xf32> to vector<48x32xf32>
    %372 = arith.addf %370, %371 : vector<48x32xf32>
    %cst_170 = arith.constant dense<0.000000e+00> : vector<3x32xf32>
    %373 = tpu.matmul %36, %372, %cst_170 {dimension_numbers = #tpu.dot_dimension_numbers<[1], [0], [0], [1], [0, 0, 1, 1], [], []>} : vector<3x48xf32>, vector<48x32xf32>, vector<3x32xf32> -> vector<3x32xf32>
    %cst_171 = arith.constant dense<0.000000e+00> : vector<3x32xf32>
    %374 = tpu.matmul %373, %35, %cst_171 {dimension_numbers = #tpu.dot_dimension_numbers<[1], [0], [0], [1], [0, 0, 1, 1], [], []>} : vector<3x32xf32>, vector<32x32xf32>, vector<3x32xf32> -> vector<3x32xf32>
    %c0_172 = arith.constant 0 : index
    %c0_173 = arith.constant 0 : index
    %375 = vector.load %arg38[%c0_172, %c0_173] : memref<3x32xf32, #tpu.memory_space<vmem>>, vector<3x32xf32>
    tpu.vector_store %arg38[%c0_172, %c0_173], %374 {strides = array<i32>} : memref<3x32xf32, #tpu.memory_space<vmem>>, vector<3x32xf32>,
    return
  }
}

</mosaic_0001>

<bundles_post_ra>
// kernel: tile.9
= control target key start
LH: loop header
LB: loop body
LE: loop exit
PB: predicated region body
PF: predicated region fallthrough
CT: control target
= control target key end

     0   :  { %vm3_vm0 = vcmask 261120   ;;  %s34_s0 = inlined_call_operand.vmem [shape: f32[2,5,32], index: 0, kind: input, shape index: {}]   ;;  %s35_s1 = inlined_call_operand.vmem [shape: f32[10,32], index: 1, kind: output, shape index: {}]  }
   0x1   :  { %v2_v0 = vld [vmem:[%s34_s0] sm:$0x1f]   ;;  %v10_v1 = vld [vmem:[%s34_s0 + $0x8] sm:$0x1f]  }
   0x2   :  { %4 = vst.msk [vmem:[%s35_s1] sm:$0x1f] %vm3_vm0, %v2_v0   ;;  %11 = vst.msk [vmem:[%s35_s1 + $0x5] sm:$0x1f] %vm3_vm0, %v10_v1  }

// kernel: custom_clip_forward.5
= control target key start
LH: loop header
LB: loop body
LE: loop exit
PB: predicated region body
PF: predicated region fallthrough
CT: control target
= control target key end

     0   :  { %vm35_vm0 = vcmask 256000   ;;  %vm24_vm1 = vcmask 254976   ;;  %vm20_vm2 = vcmask 261120   ;;  %vm132_vm3 = vcmask 17408   ;;  %s198_s1 = inlined_call_operand.vmem [shape: f32[3,32], index: 1, kind: input, shape index: {}]   ;;  %s199_s0 = inlined_call_operand.vmem [shape: f32[10,32], index: 0, kind: input, shape index: {}]   ;;  %s200_s2 = inlined_call_operand.<no memory space> [shape: f32[1,1], index: 2, kind: input, shape index: {}]   ;;  %s201_s3 = inlined_call_operand.vmem [shape: f32[10,3], index: 3, kind: output, shape index: {}]  }
   0x1   :  { %v17_v0 = vld [vmem:[%s198_s1] sm:$0x7]  ;;  %v16_v2 = vld [vmem:[%s199_s0 + $0x8] sm:$0x3]  ;;  %v127_v21 = vstv %s200_s2  ;;  %vm130_vm4 = vcmask 23552  }
   0x2   :  { %v15_v1 = vld [vmem:[%s199_s0] sm:$0xff]  ;;  %v34_v3 = vmul.f32 %v17_v0, %v17_v0  ;;  %v19_v5 = vmul.f32 %v16_v2, %v16_v2 }
   0x3   :  { %v18_v4 = vmul.f32 %v15_v1, %v15_v1 }
   0x4   :  { %v36_v6 = vsel %vm35_vm0, %v34_v3, 0.0  ;;  %v25_v7 = vsel %vm24_vm1, %v19_v5, 0.0 }
   0x5   :  { %37 = vadd.xlane.f32.xlu0 %v36_v6  ;;  %26 = vadd.xlane.f32.xlu1 %v25_v7  ;;  %v21_v8 = vsel %vm20_vm2, %v18_v4, 0.0 }
   0x9   :  { %22 = vadd.xlane.f32.xlu0 %v21_v8 }
  0x8e   :  { %v38_v9 = vpop.xlane.xlu0 %37  ;;  %v27_v10 = vpop.xlane.xlu1 %26 }
  0x8f   :  { %v39_v11 = vadd.f32 1e-12, %v38_v9  ;;  %v29_v12 = vadd.f32 1e-12, %v27_v10 }
  0x91   :  { %149 = vrsqrt.f32 %v39_v11 }
  0x92   :  { %v23_v13 = vpop.xlane.xlu0 %22  ;;  %151 = vrsqrt.f32 %v29_v12 }
  0x93   :  { %v28_v14 = vadd.f32 1e-12, %v23_v13 }
  0x95   :  { %153 = vrsqrt.f32 %v28_v14 }
  0x9e   :  { %v150_v15 = vpop.eup %149 }
  0x9f   :  { %v152_v16 = vpop.eup %151  ;;  %v41_v17 = vmul.f32 %v150_v15, %v17_v0 }
  0xa0   :  { %v33_v19 = vmul.f32 %v152_v16, %v16_v2 }
  0xa1   :  { %144 = vmatprep.subr.msk.mxu0 %vm20_vm2, %v41_v17 }
  0xa2   :  { %v154_v18 = vpop.eup %153  ;;  %145 = vmatpush3.xpose.msk.msra.mxu0 %vm20_vm2, %v41_v17 }
  0xa3   :  { %v32_v20 = vmul.f32 %v154_v18, %v15_v1 }
  0xa5   :  { %146 = vmatprep.mubr.msk.f32.mxu0 %vm20_vm2, %v32_v20 }
  0xa6   :  { %147 = vmatmul.mubr.msk.f32.vlgmr.msra.gmra.mxu0 %vm20_vm2, %v33_v19 }
 0x166   :  { %v148_v22 = vpop.f32.mrf.mxu0 }
 0x167   :  { %v129_v23 = vmul.f32 %v148_v22, %v127_v21 }
 0x168   :  { %v117_v24 = vpop.f32.mrf.mxu0 }
 0x169   :  { %133 = vst.msk [vmem:[%s201_s3 + $0x8] sm:$0x3] %vm132_vm3, %v129_v23  ;;  %v128_v25 = vmul.f32 %v127_v21, %v117_v24 }
 0x16b   :  { %131 = vst.msk [vmem:[%s201_s3] sm:$0xff] %vm130_vm4, %v128_v25 }

// kernel: custom_clip_forward.3
= control target key start
LH: loop header
LB: loop body
LE: loop exit
PB: predicated region body
PF: predicated region fallthrough
CT: control target
= control target key end

     0   :  { %v4210_v0 = vmov 0.0   ;;  %s4211_s3 = smov 1   ;;  %vm306_vm0 = vcmask 523264   ;;  %s4212_s10 = smov 2   ;;  %vm380_vm1 = vcmask 64512   ;;  %vm480_vm2 = vcmask 261120   ;;  %s4868_s0 = inlined_call_operand.smem [shape: u32[43], index: -1, kind: input, shape index: {}] }
   0x1   :  { %310 = vmatprep.subr.mxu0 %v4210_v0  ;;  %s4262_s6 = sld [smem:[%s4868_s0 + %s4211_s3]]   ;;  %s4213_s14 = smov 3   ;;  %vm484_vm3 = vcmask 254976   ;;  %vm1048_vm8 = vcmask 1041408   ;;  %vm911_vm9 = vcmask 74752   ;;  %vm907_vm10 = vcmask 80896  }
   0x2   :  { %s4269_s9 = sld [smem:[%s4868_s0]]   ;;  %s4214_s18 = smov 4  }
   0x3   :  { %s3438_s13 = sld [smem:[%s4868_s0 + %s4212_s10]]   ;;  %s4215_s22 = smov 5  }
   0x4   :  { %s3439_s17 = sld [smem:[%s4868_s0 + %s4213_s14]]   ;;  %s4216_s26 = smov 8  }
   0x5   :  { %s3440_s21 = sld [smem:[%s4868_s0 + %s4214_s18]]   ;;  %s4217_s30 = smov 10  }
   0x6   :  { %s3441_s25 = sld [smem:[%s4868_s0 + %s4215_s22]]   ;;  %s4218_s4 = smov 6  }
   0x7   :  { %v191_v1 = vld [vmem:[%s4262_s6 + $0x78] sm:$0xff]  ;;  %v190_v2 = vld [vmem:[%s4262_s6 + $0x70] sm:$0xff]  ;;  %v189_v3 = vld [vmem:[%s4262_s6 + $0x68] sm:$0xff]  ;;  %s3444_s29 = sld [smem:[%s4868_s0 + %s4216_s26]]   ;;  %s4219_s8 = smov 7  }
   0x8   :  { %311 = vmatpush1.msra.mxu0 %v191_v1  ;;  %v188_v4 = vld [vmem:[%s4262_s6 + $0x60] sm:$0xff]  ;;  %v187_v5 = vld [vmem:[%s4262_s6 + $0x58] sm:$0xff]  ;;  %v186_v6 = vld [vmem:[%s4262_s6 + $0x50] sm:$0xff]  ;;  %s4352_s3 = sld [smem:[%s4868_s0 + %s4217_s30]]   ;;  %s4220_s12 = smov 12  }
   0x9   :  { %312 = vmatprep.subr.mxu0 %v4210_v0  ;;  %v175_v7 = vld [vmem:[%s4269_s9 + $0x8] sm:$0xff]  ;;  %v184_v9 = vld [vmem:[%s4262_s6 + $0x40] sm:$0xff]  ;;  %v183_v10 = vld [vmem:[%s4262_s6 + $0x38] sm:$0xff]  ;;  %s3442_s7 = sld [smem:[%s4868_s0 + %s4218_s4]]   ;;  %s4221_s16 = smov 9  }
   0xa   :  { %313 = vmatpush1.msra.mxu0 %v190_v2  ;;  %3479 = vmatprep.mubr.msk.f32.mxu0 %vm306_vm0, %v175_v7  ;;  %v185_v8 = vld [vmem:[%s4262_s6 + $0x48] sm:$0xff]  ;;  %v182_v11 = vld [vmem:[%s4262_s6 + $0x30] sm:$0xff]  ;;  %v180_v13 = vld [vmem:[%s4262_s6 + $0x20] sm:$0xff]  ;;  %s3443_s11 = sld [smem:[%s4868_s0 + %s4219_s8]]   ;;  %s4222_s20 = smov 11  }
   0xb   :  { %314 = vmatprep.subr.mxu0 %v4210_v0  ;;  %v181_v12 = vld [vmem:[%s4262_s6 + $0x28] sm:$0xff]  ;;  %v179_v14 = vld [vmem:[%s4262_s6 + $0x18] sm:$0xff]  ;;  %v178_v15 = vld [vmem:[%s4262_s6 + $0x10] sm:$0xff]  ;;  %s3448_s15 = sld [smem:[%s4868_s0 + %s4220_s12]]   ;;  %s4223_s24 = smov 13  }
   0xc   :  { %315 = vmatpush1.msra.mxu0 %v189_v3  ;;  %v177_v16 = vld [vmem:[%s4262_s6 + $0x8] sm:$0xff]  ;;  %v176_v17 = vld [vmem:[%s4262_s6] sm:$0xff]  ;;  %v199_v18 = vld [vmem:[%s4262_s6 + $0xb8] sm:$0xff]  ;;  %s3445_s19 = sld [smem:[%s4868_s0 + %s4221_s16]]   ;;  %s4224_s28 = smov 41  }
   0xd   :  { %316 = vmatprep.subr.mxu0 %v4210_v0  ;;  %v198_v19 = vld [vmem:[%s4262_s6 + $0xb0] sm:$0xff]  ;;  %v197_v20 = vld [vmem:[%s4262_s6 + $0xa8] sm:$0xff]  ;;  %v196_v21 = vld [vmem:[%s4262_s6 + $0xa0] sm:$0xff]  ;;  %s3447_s23 = sld [smem:[%s4868_s0 + %s4222_s20]]   ;;  %s4225_s2 = smov 14  }
   0xe   :  { %317 = vmatpush1.msra.mxu0 %v188_v4  ;;  %v195_v22 = vld [vmem:[%s4262_s6 + $0x98] sm:$0xff]  ;;  %v194_v23 = vld [vmem:[%s4262_s6 + $0x90] sm:$0xff]  ;;  %v193_v24 = vld [vmem:[%s4262_s6 + $0x88] sm:$0xff]  ;;  %s3449_s27 = sld [smem:[%s4868_s0 + %s4223_s24]]   ;;  %s4227_s10 = smov 18  }
   0xf   :  { %318 = vmatprep.subr.mxu0 %v4210_v0  ;;  %v192_v25 = vld [vmem:[%s4262_s6 + $0x80] sm:$0xff]  ;;  %v201_v29 = vld [vmem:[%s3438_s13 + $0x8] sm:$0x3]  ;;  %s4448_s1 = sld [smem:[%s4868_s0 + %s4224_s28]]   ;;  %s4226_s6 = smov 15  }
  0x10   :  { %319 = vmatpush1.msra.mxu0 %v187_v5  ;;  %v174_v26 = vld [vmem:[%s4269_s9] sm:$0xff]  ;;  %v203_v33 = vld [vmem:[%s3439_s17 + $0x8] sm:$0x3]  ;;  %s3450_s5 = sld [smem:[%s4868_s0 + %s4225_s2]]   ;;  %s4228_s14 = smov 16  }
  0x11   :  { %320 = vmatprep.subr.mxu0 %v4210_v0  ;;  %v200_v27 = vld [vmem:[%s3438_s13] sm:$0xff]  ;;  %s3451_s9 = sld [smem:[%s4868_s0 + %s4226_s6]]   ;;  %s4229_s18 = smov 17  }
  0x12   :  { %321 = vmatpush1.msra.mxu0 %v186_v6  ;;  %3755 = vmatprep.mubr.msk.f32.mxu1 %vm380_vm1, %v200_v27  ;;  %v202_v32 = vld [vmem:[%s3439_s17] sm:$0xff]  ;;  %s3454_s13 = sld [smem:[%s4868_s0 + %s4227_s10]]   ;;  %s4230_s22 = smov 20  }
  0x13   :  { %322 = vmatprep.subr.mxu0 %v4210_v0  ;;  %v3482_v56 = vld [vmem:[%s3440_s21] ss:$0 sm:$0xff]  ;;  %s3452_s17 = sld [smem:[%s4868_s0 + %s4228_s14]]   ;;  %s4231_s26 = smov 19  }
  0x14   :  { %323 = vmatpush1.msra.mxu0 %v185_v8  ;;  %v3483_v58 = vld [vmem:[%s3441_s25] ss:$0 sm:$0xff]  ;;  %s3453_s21 = sld [smem:[%s4868_s0 + %s4229_s18]]   ;;  %s4232_s30 = smov 21  }
  0x15   :  { %324 = vmatprep.subr.mxu0 %v4210_v0  ;;  %s4578_s25 = sld [smem:[%s4868_s0 + %s4230_s22]]   ;;  %s4247_s2 = smov 35  }
  0x16   :  { %325 = vmatpush1.msra.mxu0 %v184_v9  ;;  %s3457_s4 = sld [smem:[%s4868_s0 + %s4232_s30]]   ;;  %s4248_s6 = smov 37  }
  0x17   :  { %326 = vmatprep.subr.mxu0 %v4210_v0 }
  0x18   :  { %327 = vmatpush1.msra.mxu0 %v183_v10 }
  0x19   :  { %328 = vmatprep.subr.mxu0 %v4210_v0 }
  0x1a   :  { %329 = vmatpush1.msra.mxu0 %v182_v11 }
  0x1b   :  { %330 = vmatprep.subr.mxu0 %v4210_v0 }
  0x1c   :  { %331 = vmatpush1.msra.mxu0 %v181_v12 }
  0x1d   :  { %332 = vmatprep.subr.mxu0 %v4210_v0 }
  0x1e   :  { %333 = vmatpush1.msra.mxu0 %v180_v13 }
  0x1f   :  { %334 = vmatprep.subr.mxu0 %v4210_v0 }
  0x20   :  { %335 = vmatpush1.msra.mxu0 %v179_v14  ;;  %v211_v14 = vld [vmem:[%s3444_s29 + $0x18] sm:$0xff] }
  0x21   :  { %336 = vmatprep.subr.mxu0 %v4210_v0 }
  0x22   :  { %337 = vmatpush1.msra.mxu0 %v178_v15  ;;  %v210_v15 = vld [vmem:[%s3444_s29 + $0x10] sm:$0xff] }
  0x23   :  { %338 = vmatprep.subr.mxu0 %v4210_v0 }
  0x24   :  { %339 = vmatpush1.msra.mxu0 %v177_v16  ;;  %v209_v16 = vld [vmem:[%s3444_s29 + $0x8] sm:$0xff] }
  0x25   :  { %340 = vmatprep.subr.mxu0 %v4210_v0 }
  0x26   :  { %341 = vmatpush1.msra.mxu0 %v176_v17  ;;  %v208_v17 = vld [vmem:[%s3444_s29] sm:$0xff]  ;;  %s3455_s29 = sld [smem:[%s4868_s0 + %s4231_s26]]  }
  0x27   :  { %358 = vmatprep.subr.mxu0 %v4210_v0 }
  0x28   :  { %359 = vmatpush2.msra.mxu0 %v199_v18  ;;  %v216_v18 = vld [vmem:[%s4352_s3 + $0x18] sm:$0xff] }
  0x29   :  { %360 = vmatprep.subr.mxu0 %v4210_v0 }
  0x2a   :  { %361 = vmatpush2.msra.mxu0 %v198_v19 }
  0x2b   :  { %362 = vmatprep.subr.mxu0 %v4210_v0 }
  0x2c   :  { %363 = vmatpush2.msra.mxu0 %v197_v20 }
  0x2d   :  { %364 = vmatprep.subr.mxu0 %v4210_v0 }
  0x2e   :  { %365 = vmatpush2.msra.mxu0 %v196_v21 }
  0x2f   :  { %366 = vmatprep.subr.mxu0 %v4210_v0 }
  0x30   :  { %367 = vmatpush2.msra.mxu0 %v195_v22 }
  0x31   :  { %368 = vmatprep.subr.mxu0 %v4210_v0 }
  0x32   :  { %369 = vmatpush2.msra.mxu0 %v194_v23 }
  0x33   :  { %370 = vmatprep.subr.mxu0 %v4210_v0 }
  0x34   :  { %371 = vmatpush2.msra.mxu0 %v193_v24 }
  0x35   :  { %372 = vmatprep.subr.mxu0 %v4210_v0 }
  0x36   :  { %373 = vmatpush2.msra.mxu0 %v192_v25 }
  0x37   :  { %375 = vmatmul.mubr.f32.vlgmr.msra.gmra.mxu0 %v174_v26  ;;  %v3484_v26 = vld [vmem:[%s3442_s7] ss:$0 sm:$0xff] }
  0xf7   :  { %v376_v28 = vpop.f32.mrf.mxu0 }
  0xf8   :  { %3753 = vmatprep.subr.mxu1 %v376_v28 }
  0xf9   :  { %v378_v30 = vpop.f32.mrf.mxu0  ;;  %3754 = vmatpush3.msra.mxu1 %v376_v28  ;;  %v3485_v28 = vld [vmem:[%s3443_s11] ss:$0 sm:$0xff]  ;;  %s4242_s11 = smov 31  }
  0xfa   :  { %3756 = vmatmul.mubr.msk.f32.vlgmr.msra.gmra.mxu1 %vm380_vm1, %v201_v29  ;;  %3758 = vmatprep.subr.mxu1 %v211_v14  ;;  %s3467_s14 = sld [smem:[%s4868_s0 + %s4242_s11]]  }
  0xfb   :  { %3759 = vmatpush3.msra.mxu1 %v211_v14 }
  0xfc   :  { %3760 = vmatprep.subr.mxu1 %v210_v15 }
  0xfd   :  { %3761 = vmatpush3.msra.mxu1 %v210_v15 }
  0xfe   :  { %3762 = vmatprep.subr.mxu1 %v209_v16 }
  0xff   :  { %3763 = vmatpush3.msra.mxu1 %v209_v16  ;;  %v4455_v16 = vld [vmem:[%s4448_s1] sm:$0xff] }
 0x100   :  { %3764 = vmatprep.subr.mxu1 %v208_v17 }
 0x101   :  { %3765 = vmatpush3.msra.mxu1 %v208_v17 }
 0x102   :  { %3769 = vmatprep.subr.mxu1 %v216_v18 }
 0x1ba   :  { %v3757_v31 = vpop.f32.mrf.mxu1 }
 0x1bb   :  { %v459_v36 = vadd.f32 %v3757_v31, %v203_v33 }
 0x1bc   :  { %v453_v34 = vpop.f32.mrf.mxu1 }
 0x1bd   :  { %v454_v35 = vadd.f32 %v453_v34, %v202_v32  ;;  %v485_v38 = vsel %vm484_vm3, %v459_v36, 0.0 }
 0x1bf   :  { %v481_v37 = vsel %vm480_vm2, %v454_v35, 0.0 }
 0x1c0   :  { %482 = vadd.xlane.f32.xlu0 %v481_v37  ;;  %v213_v37 = vld [vmem:[%s4352_s3] sm:$0xff] }
 0x1c4   :  { %486 = vadd.xlane.f32.xlu0 %v485_v38  ;;  %v221_v38 = vld [vmem:[%s3448_s15 + $0x18] sm:$0xff] }
 0x249   :  { %v483_v39 = vpop.xlane.xlu0 %482 }
 0x24a   :  { %v489_v40 = vmul.f32 0.03125, %v483_v39  ;;  %v220_v39 = vld [vmem:[%s3448_s15 + $0x10] sm:$0xff] }
 0x24c   :  { %v491_v41 = vsub.f32 %v454_v35, %v489_v40  ;;  %v215_v35 = vld [vmem:[%s4352_s3 + $0x10] sm:$0xff]  ;;  %v219_v40 = vld [vmem:[%s3448_s15 + $0x8] sm:$0xff] }
 0x24d   :  { %v487_v42 = vpop.xlane.xlu0 %486 }
 0x24e   :  { %v490_v43 = vmul.f32 0.03125, %v487_v42  ;;  %v493_v44 = vmul.f32 %v491_v41, %v491_v41  ;;  %v462_v42 = vlaneseq }
 0x250   :  { %v492_v45 = vsub.f32 %v459_v36, %v490_v43  ;;  %v495_v46 = vsel %vm480_vm2, %v493_v44, 0.0  ;;  %v214_v36 = vld [vmem:[%s4352_s3 + $0x8] sm:$0xff]  ;;  %v4376_v43 = vand.u32 127, %v462_v42 }
 0x251   :  { %496 = vadd.xlane.f32.xlu1 %v495_v46  ;;  %v3486_v46 = vld [vmem:[%s3445_s19] ss:$0 sm:$0xff]  ;;  %s4244_s19 = smov 32  }
 0x252   :  { %v494_v47 = vmul.f32 %v492_v45, %v492_v45  ;;  %vm465_vm4 = vcmp.lt.s32.totalorder %v4376_v43, 8  ;;  %vm468_vm5 = vcmp.ge.s32.totalorder %v4376_v43, 8  ;;  %vm469_vm6 = vcmp.lt.s32.totalorder %v4376_v43, 16  ;;  %s3468_s22 = sld [smem:[%s4868_s0 + %s4244_s19]]  }
 0x253   :  { %vm470_vm7 = vmand %vm468_vm5, %vm469_vm6  ;;  %vm472_vm11 = vcmp.ge.s32.totalorder %v4376_v43, 16  ;;  %vm473_vm12 = vcmp.lt.s32.totalorder %v4376_v43, 24  ;;  %vm476_vm14 = vcmp.ge.s32.totalorder %v4376_v43, 24  ;;  %vm477_vm15 = vcmp.lt.s32.totalorder %v4376_v43, 32 }
 0x254   :  { %v498_v48 = vsel %vm484_vm3, %v494_v47, 0.0  ;;  %vm474_vm13 = vmand %vm472_vm11, %vm473_vm12 }
 0x255   :  { %499 = vadd.xlane.f32.xlu1 %v498_v48  ;;  %v4385_v48 = vsel %vm465_vm4, 1.0, %v4210_v0  ;;  %vm478_vm0 = vmand %vm476_vm14, %vm477_vm15 }
 0x2da   :  { %v497_v49 = vpop.xlane.xlu1 %496 }
 0x2db   :  { %v501_v50 = vmul.f32 0.03125, %v497_v49  ;;  %v3489_v49 = vld [vmem:[%s3447_s23] ss:$0 sm:$0xff]  ;;  %s4245_s23 = smov 33  }
 0x2dc   :  { %s3469_s26 = sld [smem:[%s4868_s0 + %s4245_s23]]  }
 0x2dd   :  { %v503_v51 = vadd.f32 1e-05, %v501_v50 }
 0x2de   :  { %v500_v52 = vpop.xlane.xlu1 %499 }
 0x2df   :  { %4104 = vrsqrt.f32 %v503_v51  ;;  %v502_v53 = vmul.f32 0.03125, %v500_v52 }
 0x2e1   :  { %v504_v54 = vadd.f32 1e-05, %v502_v53 }
 0x2e3   :  { %4106 = vrsqrt.f32 %v504_v54 }
 0x2ec   :  { %v4105_v55 = vpop.eup %4104 }
 0x2ed   :  { %v507_v57 = vmul.f32 %v4105_v55, %v491_v41  ;;  %v218_v41 = vld [vmem:[%s3448_s15] sm:$0xff]  ;;  %s4243_s15 = smov 34  }
 0x2ee   :  { %s3470_s18 = sld [smem:[%s4868_s0 + %s4243_s15]]  }
 0x2ef   :  { %v515_v59 = vmul.f32 %v3482_v56, %v507_v57  ;;  %v4406_v57 = vsel %vm470_vm7, 1.0, %v4210_v0 }
 0x2f0   :  { %v4107_v60 = vpop.eup %4106 }
 0x2f1   :  { %v4334_v61 = vadd.f32 %v3483_v58, %v515_v59  ;;  %v508_v62 = vmul.f32 %v4107_v60, %v492_v45 }
 0x2f3   :  { %v525_v63 = vsel %vm480_vm2, %v4334_v61, 0.0  ;;  %v516_v1 = vmul.f32 %v3482_v56, %v508_v62  ;;  %v3492_v62 = vld [vmem:[%s3449_s27] ss:$0 sm:$0xff]  ;;  %s4246_s27 = smov 36  }
 0x2f4   :  { %526 = vadd.xlane.f32.xlu0 %v525_v63  ;;  %s4822_s30 = sld [smem:[%s4868_s0 + %s4246_s27]]  }
 0x2f5   :  { %v4338_v2 = vadd.f32 %v3483_v58, %v516_v1 }
 0x2f7   :  { %v528_v3 = vsel %vm484_vm3, %v4338_v2, 0.0 }
 0x2f8   :  { %529 = vadd.xlane.f32.xlu1 %v528_v3 }
 0x37d   :  { %v527_v4 = vpop.xlane.xlu0 %526 }
 0x37e   :  { %v531_v5 = vmul.f32 0.03125, %v527_v4 }
 0x380   :  { %v533_v6 = vsub.f32 %v4334_v61, %v531_v5 }
 0x381   :  { %v530_v7 = vpop.xlane.xlu1 %529 }
 0x382   :  { %v532_v8 = vmul.f32 0.03125, %v530_v7  ;;  %v535_v9 = vmul.f32 %v533_v6, %v533_v6 }
 0x384   :  { %v534_v10 = vsub.f32 %v4338_v2, %v532_v8  ;;  %v537_v11 = vsel %vm480_vm2, %v535_v9, 0.0 }
 0x385   :  { %538 = vadd.xlane.f32.xlu0 %v537_v11 }
 0x386   :  { %v536_v12 = vmul.f32 %v534_v10, %v534_v10 }
 0x388   :  { %v540_v13 = vsel %vm484_vm3, %v536_v12, 0.0 }
 0x389   :  { %541 = vadd.xlane.f32.xlu1 %v540_v13  ;;  %v4451_v13 = vld [vmem:[%s4448_s1 + $0x8] sm:$0x3] }
 0x40e   :  { %v539_v19 = vpop.xlane.xlu0 %538 }
 0x40f   :  { %v543_v20 = vmul.f32 0.03125, %v539_v19 }
 0x411   :  { %v545_v21 = vadd.f32 1e-05, %v543_v20 }
 0x412   :  { %v542_v22 = vpop.xlane.xlu1 %541 }
 0x413   :  { %4108 = vrsqrt.f32 %v545_v21  ;;  %v544_v23 = vmul.f32 0.03125, %v542_v22 }
 0x415   :  { %v546_v24 = vadd.f32 1e-05, %v544_v23 }
 0x417   :  { %4110 = vrsqrt.f32 %v546_v24 }
 0x420   :  { %v4109_v25 = vpop.eup %4108 }
 0x421   :  { %v549_v27 = vmul.f32 %v4109_v25, %v533_v6 }
 0x423   :  { %v557_v29 = vmul.f32 %v3484_v26, %v549_v27 }
 0x424   :  { %v4111_v30 = vpop.eup %4110 }
 0x425   :  { %v550_v31 = vmul.f32 %v4111_v30, %v534_v10  ;;  %v565_v32 = vadd.f32 %v3485_v28, %v557_v29 }
 0x427   :  { %v558_v33 = vmul.f32 %v3484_v26, %v550_v31  ;;  %3766 = vmatprep.mubr.msk.f32.mxu1 %vm480_vm2, %v565_v32 }
 0x429   :  { %v566_v34 = vadd.f32 %v3485_v28, %v558_v33 }
 0x42b   :  { %3767 = vmatmul.mubr.msk.f32.vlgmr.msra.gmra.mxu1 %vm480_vm2, %v566_v34 }
 0x42c   :  { %3770 = vmatpush3.msra.mxu1 %v216_v18  ;;  %3777 = vmatprep.mubr.msk.f32.mxu1 %vm480_vm2, %v565_v32 }
 0x42d   :  { %3771 = vmatprep.subr.mxu1 %v215_v35 }
 0x42e   :  { %3772 = vmatpush3.msra.mxu1 %v215_v35 }
 0x42f   :  { %3773 = vmatprep.subr.mxu1 %v214_v36 }
 0x430   :  { %3774 = vmatpush3.msra.mxu1 %v214_v36 }
 0x431   :  { %3775 = vmatprep.subr.mxu1 %v213_v37 }
 0x432   :  { %3776 = vmatpush3.msra.mxu1 %v213_v37 }
 0x433   :  { %3778 = vmatmul.mubr.msk.f32.vlgmr.msra.gmra.mxu1 %vm480_vm2, %v566_v34  ;;  %3780 = vmatprep.subr.mxu1 %v221_v38 }
 0x434   :  { %3781 = vmatpush3.msra.mxu1 %v221_v38  ;;  %3788 = vmatprep.mubr.msk.f32.mxu1 %vm480_vm2, %v565_v32 }
 0x435   :  { %3782 = vmatprep.subr.mxu1 %v220_v39 }
 0x436   :  { %3783 = vmatpush3.msra.mxu1 %v220_v39 }
 0x437   :  { %3784 = vmatprep.subr.mxu1 %v219_v40 }
 0x438   :  { %3785 = vmatpush3.msra.mxu1 %v219_v40 }
 0x439   :  { %3786 = vmatprep.subr.mxu1 %v218_v41 }
 0x43a   :  { %3787 = vmatpush3.msra.mxu1 %v218_v41 }
 0x43b   :  { %3789 = vmatmul.mubr.msk.f32.vlgmr.msra.gmra.mxu1 %vm480_vm2, %v566_v34 }
 0x4eb   :  { %v3768_v44 = vpop.f32.mrf.mxu1 }
 0x4ec   :  { %v4394_v53 = vadd.f32 %v3768_v44, %v3486_v46 }
 0x4ed   :  { %v645_v45 = vpop.f32.mrf.mxu1 }
 0x4ee   :  { %v4382_v47 = vadd.f32 %v3486_v46, %v645_v45  ;;  %v817_v58 = vmul.f32 %v4394_v53, %v4385_v48  ;;  %v934_v5 = vmul.f32 %v4394_v53, %v4406_v57 }
 0x4f0   :  { %v816_v50 = vmul.f32 %v4382_v47, %v4385_v48  ;;  %v933_v59 = vmul.f32 %v4382_v47, %v4406_v57  ;;  %v819_v63 = vmul.f32 0.35355338, %v817_v58  ;;  %v936_v8 = vmul.f32 0.35355338, %v934_v5 }
 0x4f2   :  { %v818_v52 = vmul.f32 0.35355338, %v816_v50  ;;  %v935_v1 = vmul.f32 0.35355338, %v933_v59  ;;  %v4471_v59 = vsel %vm474_vm13, 1.0, %v4210_v0 }
 0x4f3   :  { %v3779_v51 = vpop.f32.mrf.mxu1 }
 0x4f4   :  { %v4396_v54 = vadd.f32 %v3779_v51, %v3489_v49  ;;  %3795 = vmatprep.mubr.msk.f32.mxu1 %vm480_vm2, %v818_v52 }
 0x4f5   :  { %v726_v55 = vpop.f32.mrf.mxu1 }
 0x4f6   :  { %v4399_v56 = vadd.f32 %v3489_v49, %v726_v55  ;;  %3791 = vmatprep.subr.msk.mxu1 %vm480_vm2, %v4396_v54 }
 0x4f7   :  { %3792 = vmatpush3.xpose.msk.msra.mxu1 %vm480_vm2, %v4396_v54 }
 0x4f8   :  { %3793 = vmatprep.subr.msk.mxu1 %vm480_vm2, %v4399_v56 }
 0x4fb   :  { %v3790_v60 = vpop.f32.mrf.mxu1  ;;  %3794 = vmatpush3.xpose.msk.msra.mxu1 %vm480_vm2, %v4399_v56 }
 0x4fc   :  { %3798 = vmatprep.subr.msk.mxu1 %vm480_vm2, %v4396_v54  ;;  %v4418_v3 = vadd.f32 %v3790_v60, %v3492_v62 }
 0x4fd   :  { %v807_v4 = vpop.f32.mrf.mxu1 }
 0x4fe   :  { %3796 = vmatmul.mubr.msk.f32.vlgmr.msra.gmra.mxu1 %vm480_vm2, %v819_v63  ;;  %v4428_v6 = vadd.f32 %v3492_v62, %v807_v4  ;;  %v1041_v7 = vmul.f32 %v4418_v3, %v4406_v57  ;;  %v4441_v10 = vmul.f32 %v4418_v3, %v4385_v48  ;;  %v1211_v63 = vmul.f32 %v4382_v47, %v4471_v59 }
 0x4ff   :  { %3799 = vmatpush3.xpose.msk.msra.mxu1 %vm480_vm2, %v4396_v54  ;;  %3802 = vmatprep.mubr.msk.f32.mxu1 %vm480_vm2, %v935_v1 }
 0x500   :  { %3800 = vmatprep.subr.msk.mxu1 %vm480_vm2, %v4399_v56  ;;  %v1040_v9 = vmul.f32 %v4428_v6, %v4406_v57  ;;  %v931_v4 = vmul.f32 %v4428_v6, %v4385_v48 }
 0x503   :  { %3801 = vmatpush3.xpose.msk.msra.mxu1 %vm480_vm2, %v4399_v56 }
 0x504   :  { %3805 = vmatprep.subr.msk.mxu1 %vm1048_vm8, %v1041_v7 }
 0x506   :  { %3803 = vmatmul.mubr.msk.f32.vlgmr.msra.gmra.mxu1 %vm480_vm2, %v936_v8  ;;  %v1213_v8 = vmul.f32 0.35355338, %v1211_v63 }
 0x507   :  { %3806 = vmatpush3.msk.msra.mxu1 %vm1048_vm8, %v1041_v7 }
 0x508   :  { %3807 = vmatprep.subr.mxu1 %v1040_v9 }
 0x509   :  { %3808 = vmatpush3.msra.mxu1 %v1040_v9  ;;  %v1212_v9 = vmul.f32 %v4394_v53, %v4471_v59 }
 0x50a   :  { %3812 = vmatprep.subr.msk.mxu1 %vm1048_vm8, %v4441_v10 }
 0x5be   :  { %v3797_v11 = vpop.f32.mrf.mxu1 }
 0x5bf   :  { %v904_v18 = vadd.f32 %v3797_v11, %v4451_v13  ;;  %v1214_v11 = vmul.f32 0.35355338, %v1212_v9 }
 0x5c0   :  { %v898_v12 = vpop.f32.mrf.mxu1 }
 0x5c1   :  { %v899_v21 = vadd.f32 %v898_v12, %v4455_v16  ;;  %v912_v23 = vsel %vm911_vm9, %v904_v18, -inf  ;;  %v1318_v12 = vmul.f32 %v4428_v6, %v4471_v59 }
 0x5c3   :  { %v908_v24 = vsel %vm907_vm10, %v899_v21, -inf }
 0x5c6   :  { %v3804_v14 = vpop.f32.mrf.mxu1 }
 0x5c7   :  { %v1015_v15 = vadd.f32 %v3804_v14, %v4451_v13 }
 0x5c8   :  { %v1009_v17 = vpop.f32.mrf.mxu1 }
 0x5c9   :  { %v1010_v19 = vadd.f32 %v1009_v17, %v4455_v16  ;;  %v1021_v20 = vsel %vm911_vm9, %v1015_v15, -inf }
 0x5ca   :  { %1022 = vmax.xlane.f32.xlu1 %v1021_v20 }
 0x5cb   :  { %v1018_v22 = vsel %vm907_vm10, %v1010_v19, -inf }
 0x5cc   :  { %1019 = vmax.xlane.f32.xlu0 %v1018_v22 }
 0x5ce   :  { %913 = vmax.xlane.f32.xlu1 %v912_v23 }
 0x5d0   :  { %909 = vmax.xlane.f32.xlu0 %v908_v24 }
 0x653   :  { %v1023_v25 = vpop.xlane.xlu1 %1022 }
 0x654   :  { %v1025_v26 = vsub.f32 %v1015_v15, %v1023_v25 }
 0x655   :  { %v1020_v27 = vpop.xlane.xlu0 %1019 }
 0x656   :  { %v1028_v28 = vmul.f32 1.442695, %v1025_v26  ;;  %v1024_v29 = vsub.f32 %v1010_v19, %v1020_v27 }
 0x657   :  { %v914_v30 = vpop.xlane.xlu1 %913 }
 0x658   :  { %4112 = vpow2.f32 %v1028_v28  ;;  %v1026_v31 = vmul.f32 1.442695, %v1024_v29  ;;  %v916_v32 = vsub.f32 %v904_v18, %v914_v30 }
 0x659   :  { %v910_v33 = vpop.xlane.xlu0 %909 }
 0x65a   :  { %4114 = vpow2.f32 %v1026_v31  ;;  %v919_v34 = vmul.f32 1.442695, %v916_v32  ;;  %v915_v35 = vsub.f32 %v899_v21, %v910_v33 }
 0x65c   :  { %4116 = vpow2.f32 %v919_v34  ;;  %v917_v36 = vmul.f32 1.442695, %v915_v35 }
 0x65e   :  { %4118 = vpow2.f32 %v917_v36 }
 0x665   :  { %v4113_v37 = vpop.eup %4112 }
 0x666   :  { %v1033_v38 = vsel %vm911_vm9, %v4113_v37, 0.0 }
 0x667   :  { %v4115_v39 = vpop.eup %4114  ;;  %1034 = vadd.xlane.f32.xlu1 %v1033_v38 }
 0x668   :  { %v1030_v40 = vsel %vm907_vm10, %v4115_v39, 0.0 }
 0x669   :  { %v4117_v41 = vpop.eup %4116  ;;  %1031 = vadd.xlane.f32.xlu0 %v1030_v40 }
 0x66a   :  { %v924_v42 = vsel %vm911_vm9, %v4117_v41, 0.0 }
 0x66b   :  { %v4119_v44 = vpop.eup %4118  ;;  %925 = vadd.xlane.f32.xlu1 %v924_v42 }
 0x66c   :  { %v921_v45 = vsel %vm907_vm10, %v4119_v44, 0.0 }
 0x66d   :  { %922 = vadd.xlane.f32.xlu0 %v921_v45 }
 0x6f0   :  { %v1035_v46 = vpop.xlane.xlu1 %1034 }
 0x6f1   :  { %4120 = vrcp.f32 %v1035_v46 }
 0x6f2   :  { %v1032_v49 = vpop.xlane.xlu0 %1031 }
 0x6f3   :  { %4122 = vrcp.f32 %v1032_v49 }
 0x6f4   :  { %v926_v50 = vpop.xlane.xlu1 %925 }
 0x6f5   :  { %4124 = vrcp.f32 %v926_v50 }
 0x6f6   :  { %v923_v51 = vpop.xlane.xlu0 %922 }
 0x6f7   :  { %4126 = vrcp.f32 %v923_v51 }
 0x6fe   :  { %v4121_v52 = vpop.eup %4120 }
 0x6ff   :  { %v1039_v60 = vmul.f32 %v4121_v52, %v4113_v37 }
 0x700   :  { %v4123_v55 = vpop.eup %4122 }
 0x701   :  { %v1038_v58 = vmul.f32 %v4123_v55, %v4115_v39  ;;  %v4512_v39 = vsel %vm478_vm0, 1.0, %v4210_v0 }
 0x702   :  { %v4125_v62 = vpop.eup %4124  ;;  %v1407_v0 = vmul.f32 %v4394_v53, %v4512_v39  ;;  %v1514_v43 = vmul.f32 %v4418_v3, %v4512_v39 }
 0x703   :  { %3809 = vmatprep.mubr.msk.f32.mxu1 %vm907_vm10, %v1038_v58  ;;  %v930_v7 = vmul.f32 %v4125_v62, %v4117_v41  ;;  %v1406_v41 = vmul.f32 %v4382_v47, %v4512_v39 }
 0x704   :  { %v4127_v1 = vpop.eup %4126  ;;  %3810 = vmatmul.mubr.msk.f32.vlgmr.msra.gmra.mxu1 %vm907_vm10, %v1039_v60  ;;  %v1409_v47 = vmul.f32 0.35355338, %v1407_v0  ;;  %v232_v0 = vld [vmem:[%s3454_s13 + $0x10] sm:$0xff] }
 0x705   :  { %3813 = vmatpush3.msk.msra.mxu1 %vm1048_vm8, %v4441_v10  ;;  %v929_v5 = vmul.f32 %v4127_v1, %v4119_v44  ;;  %v1319_v10 = vmul.f32 %v4418_v3, %v4471_v59  ;;  %v1408_v46 = vmul.f32 0.35355338, %v1406_v41 }
 0x706   :  { %3814 = vmatprep.subr.mxu1 %v931_v4 }
 0x707   :  { %3815 = vmatpush3.msra.mxu1 %v931_v4  ;;  %3816 = vmatprep.mubr.msk.f32.mxu1 %vm907_vm10, %v929_v5 }
 0x708   :  { %3819 = vmatprep.subr.msk.mxu1 %vm480_vm2, %v4396_v54  ;;  %3817 = vmatmul.mubr.msk.f32.vlgmr.msra.gmra.mxu1 %vm907_vm10, %v930_v7 }
 0x709   :  { %3820 = vmatpush3.xpose.msk.msra.mxu1 %vm480_vm2, %v4396_v54  ;;  %3823 = vmatprep.mubr.msk.f32.mxu1 %vm480_vm2, %v1213_v8 }
 0x70a   :  { %3821 = vmatprep.subr.msk.mxu1 %vm480_vm2, %v4399_v56 }
 0x70d   :  { %3822 = vmatpush3.xpose.msk.msra.mxu1 %vm480_vm2, %v4399_v56 }
 0x70e   :  { %3826 = vmatprep.subr.msk.mxu1 %vm1048_vm8, %v1319_v10 }
 0x710   :  { %3824 = vmatmul.mubr.msk.f32.vlgmr.msra.gmra.mxu1 %vm480_vm2, %v1214_v11  ;;  %v226_v11 = vld [vmem:[%s3450_s5 + $0x18] sm:$0xff] }
 0x711   :  { %3827 = vmatpush3.msk.msra.mxu1 %vm1048_vm8, %v1319_v10  ;;  %3847 = vmatprep.subr.mxu0 %v226_v11 }
 0x712   :  { %3828 = vmatprep.subr.mxu1 %v1318_v12  ;;  %3848 = vmatpush3.msra.mxu0 %v226_v11  ;;  %v245_v11 = vld [vmem:[%s4578_s25 + $0x50] sm:$0xff] }
 0x713   :  { %3829 = vmatpush3.msra.mxu1 %v1318_v12 }
 0x714   :  { %3833 = vmatprep.subr.msk.mxu1 %vm480_vm2, %v4396_v54 }
 0x7c4   :  { %v3811_v14 = vpop.f32.mrf.mxu1 }
 0x7c6   :  { %v1118_v15 = vpop.f32.mrf.mxu1 }
 0x7c8   :  { %v3818_v17 = vpop.f32.mrf.mxu1 }
 0x7c9   :  { %v1208_v18 = vadd.f32 %v3818_v17, %v3811_v14 }
 0x7ca   :  { %v1202_v19 = vpop.f32.mrf.mxu1 }
 0x7cb   :  { %v1203_v20 = vadd.f32 %v1202_v19, %v1118_v15 }
 0x7d0   :  { %v3825_v21 = vpop.f32.mrf.mxu1 }
 0x7d1   :  { %v1293_v22 = vadd.f32 %v3825_v21, %v4451_v13  ;;  %v224_v21 = vld [vmem:[%s3450_s5 + $0x8] sm:$0xff] }
 0x7d2   :  { %v1287_v23 = vpop.f32.mrf.mxu1 }
 0x7d3   :  { %v1288_v24 = vadd.f32 %v1287_v23, %v4455_v16  ;;  %v1299_v25 = vsel %vm911_vm9, %v1293_v22, -inf }
 0x7d4   :  { %1300 = vmax.xlane.f32.xlu1 %v1299_v25 }
 0x7d5   :  { %v1296_v26 = vsel %vm907_vm10, %v1288_v24, -inf }
 0x7d6   :  { %1297 = vmax.xlane.f32.xlu0 %v1296_v26 }
 0x85d   :  { %v1301_v27 = vpop.xlane.xlu1 %1300 }
 0x85e   :  { %v1303_v28 = vsub.f32 %v1293_v22, %v1301_v27  ;;  %v223_v22 = vld [vmem:[%s3450_s5] sm:$0xff] }
 0x85f   :  { %v1298_v29 = vpop.xlane.xlu0 %1297  ;;  %v3523_v27 = vld [vmem:[%s3451_s9] ss:$0 sm:$0xff]  ;;  %s4234_s9 = smov 26  }
 0x860   :  { %v1306_v30 = vmul.f32 1.442695, %v1303_v28  ;;  %v1302_v31 = vsub.f32 %v1288_v24, %v1298_v29  ;;  %s4622_s12 = sld [smem:[%s4868_s0 + %s4234_s9]]   ;;  %s4249_s9 = smov 40  }
 0x862   :  { %4128 = vpow2.f32 %v1306_v30  ;;  %v1304_v32 = vmul.f32 1.442695, %v1302_v31 }
 0x864   :  { %4130 = vpow2.f32 %v1304_v32 }
 0x86f   :  { %v4129_v33 = vpop.eup %4128 }
 0x870   :  { %v1311_v34 = vsel %vm911_vm9, %v4129_v33, 0.0 }
 0x871   :  { %v4131_v35 = vpop.eup %4130  ;;  %1312 = vadd.xlane.f32.xlu1 %v1311_v34 }
 0x872   :  { %v1308_v36 = vsel %vm907_vm10, %v4131_v35, 0.0 }
 0x873   :  { %1309 = vadd.xlane.f32.xlu0 %v1308_v36 }
 0x8fa   :  { %v1313_v37 = vpop.xlane.xlu1 %1312 }
 0x8fb   :  { %4132 = vrcp.f32 %v1313_v37 }
 0x8fc   :  { %v1310_v38 = vpop.xlane.xlu0 %1309 }
 0x8fd   :  { %4134 = vrcp.f32 %v1310_v38 }
 0x908   :  { %v4133_v40 = vpop.eup %4132 }
 0x909   :  { %v1317_v45 = vmul.f32 %v4133_v40, %v4129_v33 }
 0x90a   :  { %v4135_v42 = vpop.eup %4134 }
 0x90b   :  { %v1316_v44 = vmul.f32 %v4135_v42, %v4131_v35 }
 0x90d   :  { %3830 = vmatprep.mubr.msk.f32.mxu1 %vm907_vm10, %v1316_v44 }
 0x90e   :  { %3831 = vmatmul.mubr.msk.f32.vlgmr.msra.gmra.mxu1 %vm907_vm10, %v1317_v45 }
 0x90f   :  { %3834 = vmatpush3.xpose.msk.msra.mxu1 %vm480_vm2, %v4396_v54  ;;  %3837 = vmatprep.mubr.msk.f32.mxu1 %vm480_vm2, %v1408_v46  ;;  %v1513_v54 = vmul.f32 %v4428_v6, %v4512_v39  ;;  %v233_v46 = vld [vmem:[%s3454_s13 + $0x18] sm:$0xff] }
 0x910   :  { %3835 = vmatprep.subr.msk.mxu1 %vm480_vm2, %v4399_v56 }
 0x913   :  { %3836 = vmatpush3.xpose.msk.msra.mxu1 %vm480_vm2, %v4399_v56 }
 0x914   :  { %3840 = vmatprep.subr.msk.mxu1 %vm1048_vm8, %v1514_v43 }
 0x916   :  { %3838 = vmatmul.mubr.msk.f32.vlgmr.msra.gmra.mxu1 %vm480_vm2, %v1409_v47  ;;  %v230_v47 = vld [vmem:[%s3454_s13] sm:$0xff] }
 0x917   :  { %3841 = vmatpush3.msk.msra.mxu1 %vm1048_vm8, %v1514_v43  ;;  %v231_v43 = vld [vmem:[%s3454_s13 + $0x8] sm:$0xff]  ;;  %s4235_s13 = smov 22  }
 0x918   :  { %3842 = vmatprep.subr.mxu1 %v1513_v54  ;;  %s3458_s16 = sld [smem:[%s4868_s0 + %s4235_s13]]   ;;  %s4250_s13 = smov 38  }
 0x919   :  { %3843 = vmatpush3.msra.mxu1 %v1513_v54 }
 0x91a   :  { %3858 = vmatprep.subr.mxu1 %v233_v46 }
 0x9ce   :  { %v3832_v53 = vpop.f32.mrf.mxu1 }
 0x9cf   :  { %v1405_v49 = vadd.f32 %v3832_v53, %v1208_v18 }
 0x9d0   :  { %v1395_v50 = vpop.f32.mrf.mxu1 }
 0x9d1   :  { %v1404_v51 = vadd.f32 %v1395_v50, %v1203_v20  ;;  %v225_v20 = vld [vmem:[%s3450_s5 + $0x10] sm:$0xff]  ;;  %s4233_s5 = smov 24  }
 0x9d2   :  { %3849 = vmatprep.subr.mxu0 %v225_v20  ;;  %s3460_s8 = sld [smem:[%s4868_s0 + %s4233_s5]]  }
 0x9d3   :  { %3850 = vmatpush3.msra.mxu0 %v225_v20  ;;  %v238_v20 = vld [vmem:[%s4578_s25 + $0x18] sm:$0xff]  ;;  %s3471_s5 = sld [smem:[%s4868_s0 + %s4247_s2]]  }
 0x9d4   :  { %3851 = vmatprep.subr.mxu0 %v224_v21 }
 0x9d5   :  { %3852 = vmatpush3.msra.mxu0 %v224_v21  ;;  %v237_v21 = vld [vmem:[%s4578_s25 + $0x10] sm:$0xff] }
 0x9d6   :  { %v3839_v3 = vpop.f32.mrf.mxu1  ;;  %3853 = vmatprep.subr.mxu0 %v223_v22 }
 0x9d7   :  { %v1488_v52 = vadd.f32 %v3839_v3, %v4451_v13  ;;  %3854 = vmatpush3.msra.mxu0 %v223_v22  ;;  %v236_v22 = vld [vmem:[%s4578_s25 + $0x8] sm:$0xff] }
 0x9d8   :  { %v1482_v56 = vpop.f32.mrf.mxu1 }
 0x9d9   :  { %v1483_v55 = vadd.f32 %v1482_v56, %v4455_v16  ;;  %v1494_v58 = vsel %vm911_vm9, %v1488_v52, -inf  ;;  %v3526_v56 = vld [vmem:[%s3452_s17] ss:$0 sm:$0xff]  ;;  %s4236_s17 = smov 23  }
 0x9da   :  { %1495 = vmax.xlane.f32.xlu1 %v1494_v58  ;;  %s3459_s20 = sld [smem:[%s4868_s0 + %s4236_s17]]   ;;  %s4251_s17 = smov 39  }
 0x9db   :  { %v1491_v60 = vsel %vm907_vm10, %v1483_v55, -inf }
 0x9dc   :  { %1492 = vmax.xlane.f32.xlu0 %v1491_v60 }
 0xa63   :  { %v1496_v6 = vpop.xlane.xlu1 %1495 }
 0xa64   :  { %v1498_v62 = vsub.f32 %v1488_v52, %v1496_v6 }
 0xa65   :  { %v1493_v63 = vpop.xlane.xlu0 %1492 }
 0xa66   :  { %v1501_v1 = vmul.f32 1.442695, %v1498_v62  ;;  %v1497_v4 = vsub.f32 %v1483_v55, %v1493_v63  ;;  %v3527_v62 = vld [vmem:[%s3453_s21] ss:$0 sm:$0xff]  ;;  %s4237_s21 = smov 28  }
 0xa67   :  { %s3464_s24 = sld [smem:[%s4868_s0 + %s4237_s21]]   ;;  %s4252_s21 = smov 42  }
 0xa68   :  { %4136 = vpow2.f32 %v1501_v1  ;;  %v1499_v5 = vmul.f32 1.442695, %v1497_v4 }
 0xa6a   :  { %4138 = vpow2.f32 %v1499_v5  ;;  %v250_v5 = vld [vmem:[%s4578_s25 + $0x78] sm:$0xff] }
 0xa6b   :  { %3869 = vmatprep.subr.mxu0 %v250_v5 }
 0xa75   :  { %v4137_v7 = vpop.eup %4136 }
 0xa76   :  { %v1506_v8 = vsel %vm911_vm9, %v4137_v7, 0.0 }
 0xa77   :  { %v4139_v9 = vpop.eup %4138  ;;  %1507 = vadd.xlane.f32.xlu1 %v1506_v8  ;;  %v248_v8 = vld [vmem:[%s4578_s25 + $0x68] sm:$0xff] }
 0xa78   :  { %v1503_v10 = vsel %vm907_vm10, %v4139_v9, 0.0 }
 0xa79   :  { %1504 = vadd.xlane.f32.xlu0 %v1503_v10  ;;  %v246_v10 = vld [vmem:[%s4578_s25 + $0x58] sm:$0xff] }
 0xb00   :  { %v1508_v12 = vpop.xlane.xlu1 %1507 }
 0xb01   :  { %4140 = vrcp.f32 %v1508_v12  ;;  %v244_v12 = vld [vmem:[%s4578_s25 + $0x48] sm:$0xff] }
 0xb02   :  { %v1505_v14 = vpop.xlane.xlu0 %1504 }
 0xb03   :  { %4142 = vrcp.f32 %v1505_v14  ;;  %v243_v14 = vld [vmem:[%s4578_s25 + $0x40] sm:$0xff] }
 0xb0e   :  { %v4141_v15 = vpop.eup %4140 }
 0xb0f   :  { %v1512_v19 = vmul.f32 %v4141_v15, %v4137_v7  ;;  %v249_v7 = vld [vmem:[%s4578_s25 + $0x70] sm:$0xff]  ;;  %v242_v15 = vld [vmem:[%s4578_s25 + $0x38] sm:$0xff] }
 0xb10   :  { %v4143_v17 = vpop.eup %4142 }
 0xb11   :  { %v1511_v18 = vmul.f32 %v4143_v17, %v4139_v9  ;;  %v247_v9 = vld [vmem:[%s4578_s25 + $0x60] sm:$0xff]  ;;  %v241_v17 = vld [vmem:[%s4578_s25 + $0x30] sm:$0xff] }
 0xb13   :  { %3844 = vmatprep.mubr.msk.f32.mxu1 %vm907_vm10, %v1511_v18  ;;  %v240_v18 = vld [vmem:[%s4578_s25 + $0x28] sm:$0xff] }
 0xb14   :  { %3845 = vmatmul.mubr.msk.f32.vlgmr.msra.gmra.mxu1 %vm907_vm10, %v1512_v19  ;;  %v239_v19 = vld [vmem:[%s4578_s25 + $0x20] sm:$0xff] }
 0xb15   :  { %3859 = vmatpush3.msra.mxu1 %v233_v46 }
 0xb16   :  { %3860 = vmatprep.subr.mxu1 %v232_v0 }
 0xb17   :  { %3861 = vmatpush3.msra.mxu1 %v232_v0 }
 0xb18   :  { %3862 = vmatprep.subr.mxu1 %v231_v43 }
 0xb19   :  { %3863 = vmatpush3.msra.mxu1 %v231_v43 }
 0xb1a   :  { %3864 = vmatprep.subr.mxu1 %v230_v47 }
 0xb1b   :  { %3865 = vmatpush3.msra.mxu1 %v230_v47 }
 0xbd4   :  { %v3846_v23 = vpop.f32.mrf.mxu1 }
 0xbd5   :  { %v1600_v26 = vadd.f32 %v3846_v23, %v1405_v49  ;;  %v235_v23 = vld [vmem:[%s4578_s25] sm:$0xff]  ;;  %s4238_s25 = smov 25  }
 0xbd6   :  { %v1590_v24 = vpop.f32.mrf.mxu1  ;;  %s3461_s28 = sld [smem:[%s4868_s0 + %s4238_s25]]  }
 0xbd7   :  { %v1599_v25 = vadd.f32 %v1590_v24, %v1404_v51  ;;  %v3528_v24 = vld [vmem:[%s3455_s29] ss:$0 sm:$0xff]  ;;  %s4239_s29 = smov 27  }
 0xbd8   :  { %s3463_s3 = sld [smem:[%s4868_s0 + %s4239_s29]]  }
 0xbd9   :  { %3855 = vmatprep.mubr.msk.f32.mxu0 %vm480_vm2, %v1599_v25 }
 0xbda   :  { %3856 = vmatmul.mubr.msk.f32.vlgmr.msra.gmra.mxu0 %vm480_vm2, %v1600_v26 }
 0xbdb   :  { %3870 = vmatpush3.msra.mxu0 %v250_v5 }
 0xbdc   :  { %3871 = vmatprep.subr.mxu0 %v249_v7 }
 0xbdd   :  { %3872 = vmatpush3.msra.mxu0 %v249_v7 }
 0xbde   :  { %3873 = vmatprep.subr.mxu0 %v248_v8 }
 0xbdf   :  { %3874 = vmatpush3.msra.mxu0 %v248_v8 }
 0xbe0   :  { %3875 = vmatprep.subr.mxu0 %v247_v9 }
 0xbe1   :  { %3876 = vmatpush3.msra.mxu0 %v247_v9 }
 0xbe2   :  { %3877 = vmatprep.subr.mxu0 %v246_v10 }
 0xbe3   :  { %3878 = vmatpush3.msra.mxu0 %v246_v10 }
 0xbe4   :  { %3879 = vmatprep.subr.mxu0 %v245_v11 }
 0xbe5   :  { %3880 = vmatpush3.msra.mxu0 %v245_v11 }
 0xbe6   :  { %3881 = vmatprep.subr.mxu0 %v244_v12 }
 0xbe7   :  { %3882 = vmatpush3.msra.mxu0 %v244_v12  ;;  %v3532_v12 = vld [vmem:[%s3458_s16] ss:$0 sm:$0xff]  ;;  %s3474_s16 = sld [smem:[%s4868_s0 + %s4250_s13]]  }
 0xbe8   :  { %3883 = vmatprep.subr.mxu0 %v243_v14 }
 0xbe9   :  { %3884 = vmatpush3.msra.mxu0 %v243_v14 }
 0xbea   :  { %3885 = vmatprep.subr.mxu0 %v242_v15 }
 0xbeb   :  { %3886 = vmatpush3.msra.mxu0 %v242_v15 }
 0xbec   :  { %3887 = vmatprep.subr.mxu0 %v241_v17 }
 0xbed   :  { %3888 = vmatpush3.msra.mxu0 %v241_v17 }
 0xbee   :  { %3889 = vmatprep.subr.mxu0 %v240_v18 }
 0xbef   :  { %3890 = vmatpush3.msra.mxu0 %v240_v18 }
 0xbf0   :  { %3891 = vmatprep.subr.mxu0 %v239_v19 }
 0xbf1   :  { %3892 = vmatpush3.msra.mxu0 %v239_v19  ;;  %v3533_v19 = vld [vmem:[%s3459_s20] ss:$0 sm:$0xff]  ;;  %s3475_s20 = sld [smem:[%s4868_s0 + %s4251_s17]]  }
 0xbf2   :  { %3893 = vmatprep.subr.mxu0 %v238_v20 }
 0xbf3   :  { %3894 = vmatpush3.msra.mxu0 %v238_v20 }
 0xbf4   :  { %3895 = vmatprep.subr.mxu0 %v237_v21 }
 0xbf5   :  { %3896 = vmatpush3.msra.mxu0 %v237_v21 }
 0xbf6   :  { %3897 = vmatprep.subr.mxu0 %v236_v22 }
 0xbf7   :  { %3898 = vmatpush3.msra.mxu0 %v236_v22 }
 0xbf8   :  { %3899 = vmatprep.subr.mxu0 %v235_v23 }
 0xbf9   :  { %3900 = vmatpush3.msra.mxu0 %v235_v23  ;;  %v261_v23 = vld [vmem:[%s4622_s12 + $0x10] sm:$0xff] }
 0xc9a   :  { %v3857_v28 = vpop.f32.mrf.mxu0 }
 0xc9b   :  { %v1685_v29 = vadd.f32 %v3857_v28, %v3523_v27 }
 0xc9c   :  { %v1679_v30 = vpop.f32.mrf.mxu0 }
 0xc9d   :  { %v4551_v31 = vadd.f32 %v1685_v29, %v4338_v2  ;;  %v1680_v32 = vadd.f32 %v3523_v27, %v1679_v30 }
 0xc9f   :  { %v4554_v33 = vadd.f32 %v1680_v32, %v4334_v61  ;;  %v1693_v34 = vsel %vm484_vm3, %v4551_v31, 0.0 }
 0xca0   :  { %1694 = vadd.xlane.f32.xlu1 %v1693_v34 }
 0xca1   :  { %v1690_v35 = vsel %vm480_vm2, %v4554_v33, 0.0 }
 0xca2   :  { %1691 = vadd.xlane.f32.xlu0 %v1690_v35 }
 0xd29   :  { %v1695_v36 = vpop.xlane.xlu1 %1694 }
 0xd2a   :  { %v1697_v37 = vmul.f32 0.03125, %v1695_v36 }
 0xd2b   :  { %v1692_v38 = vpop.xlane.xlu0 %1691 }
 0xd2c   :  { %v1699_v40 = vsub.f32 %v4551_v31, %v1697_v37  ;;  %v1696_v41 = vmul.f32 0.03125, %v1692_v38 }
 0xd2e   :  { %v1698_v2 = vsub.f32 %v4554_v33, %v1696_v41  ;;  %v1701_v42 = vmul.f32 %v1699_v40, %v1699_v40 }
 0xd30   :  { %v1705_v61 = vsel %vm484_vm3, %v1701_v42, 0.0  ;;  %v1700_v44 = vmul.f32 %v1698_v2, %v1698_v2 }
 0xd31   :  { %1706 = vadd.xlane.f32.xlu1 %v1705_v61  ;;  %v3531_v61 = vld [vmem:[%s3457_s4] ss:$0 sm:$0xff]  ;;  %s4240_s4 = smov 29  }
 0xd32   :  { %v1702_v45 = vsel %vm480_vm2, %v1700_v44, 0.0  ;;  %s3465_s7 = sld [smem:[%s4868_s0 + %s4240_s4]]  }
 0xd33   :  { %1703 = vadd.xlane.f32.xlu0 %v1702_v45 }
 0xdba   :  { %v1707_v54 = vpop.xlane.xlu1 %1706 }
 0xdbb   :  { %v1709_v53 = vmul.f32 0.03125, %v1707_v54 }
 0xdbc   :  { %v1704_v49 = vpop.xlane.xlu0 %1703 }
 0xdbd   :  { %v1711_v50 = vadd.f32 1e-05, %v1709_v53  ;;  %v1708_v51 = vmul.f32 0.03125, %v1704_v49 }
 0xdbf   :  { %4144 = vrsqrt.f32 %v1711_v50  ;;  %v1710_v3 = vadd.f32 1e-05, %v1708_v51 }
 0xdc1   :  { %4146 = vrsqrt.f32 %v1710_v3 }
 0xdcc   :  { %v4145_v52 = vpop.eup %4144 }
 0xdcd   :  { %v1715_v55 = vmul.f32 %v4145_v52, %v1699_v40 }
 0xdce   :  { %v4147_v58 = vpop.eup %4146 }
 0xdcf   :  { %v1714_v60 = vmul.f32 %v4147_v58, %v1698_v2  ;;  %v1723_v6 = vmul.f32 %v3526_v56, %v1715_v55 }
 0xdd1   :  { %v1722_v63 = vmul.f32 %v3526_v56, %v1714_v60  ;;  %v1731_v4 = vadd.f32 %v3527_v62, %v1723_v6  ;;  %v257_v60 = vld [vmem:[%s3460_s8 + $0x18] sm:$0xff]  ;;  %v256_v6 = vld [vmem:[%s3460_s8 + $0x10] sm:$0xff] }
 0xdd2   :  { %3904 = vmatprep.subr.mxu1 %v257_v60 }
 0xdd3   :  { %v1730_v1 = vadd.f32 %v3527_v62, %v1722_v63  ;;  %v255_v62 = vld [vmem:[%s3460_s8 + $0x8] sm:$0xff]  ;;  %v254_v63 = vld [vmem:[%s3460_s8] sm:$0xff]  ;;  %s3473_s8 = sld [smem:[%s4868_s0 + %s4248_s6]]  }
 0xdd5   :  { %3866 = vmatprep.mubr.msk.f32.mxu1 %vm480_vm2, %v1730_v1  ;;  %v262_v1 = vld [vmem:[%s4622_s12 + $0x18] sm:$0xff] }
 0xdd6   :  { %3867 = vmatmul.mubr.msk.f32.vlgmr.msra.gmra.mxu1 %vm480_vm2, %v1731_v4 }
 0xdd7   :  { %3905 = vmatpush3.msra.mxu1 %v257_v60 }
 0xdd8   :  { %3906 = vmatprep.subr.mxu1 %v256_v6 }
 0xdd9   :  { %3907 = vmatpush3.msra.mxu1 %v256_v6 }
 0xdda   :  { %3908 = vmatprep.subr.mxu1 %v255_v62 }
 0xddb   :  { %3909 = vmatpush3.msra.mxu1 %v255_v62 }
 0xddc   :  { %3910 = vmatprep.subr.mxu1 %v254_v63 }
 0xddd   :  { %3911 = vmatpush3.msra.mxu1 %v254_v63 }
 0xdde   :  { %3915 = vmatprep.subr.mxu1 %v262_v1 }
 0xe96   :  { %v3868_v25 = vpop.f32.mrf.mxu1 }
 0xe97   :  { %v1816_v26 = vadd.f32 %v3868_v25, %v3528_v24  ;;  %v259_v25 = vld [vmem:[%s4622_s12] sm:$0xff] }
 0xe98   :  { %v1810_v27 = vpop.f32.mrf.mxu1 }
 0xe99   :  { %v1820_v28 = vmul.f32 -1.702, %v1816_v26  ;;  %v1811_v29 = vadd.f32 %v3528_v24, %v1810_v27  ;;  %v260_v24 = vld [vmem:[%s4622_s12 + $0x8] sm:$0xff]  ;;  %v266_v27 = vld [vmem:[%s3464_s24 + $0x10] sm:$0xff]  ;;  %s3476_s12 = sld [smem:[%s4868_s0 + %s4249_s9]]  }
 0xe9b   :  { %v1823_v30 = vmul.f32 1.442695, %v1820_v28  ;;  %v1819_v32 = vmul.f32 -1.702, %v1811_v29  ;;  %v265_v28 = vld [vmem:[%s3464_s24 + $0x8] sm:$0xff] }
 0xe9d   :  { %4148 = vpow2.f32 %v1823_v30  ;;  %v1821_v34 = vmul.f32 1.442695, %v1819_v32 }
 0xe9f   :  { %4150 = vpow2.f32 %v1821_v34  ;;  %v3534_v34 = vld [vmem:[%s3461_s28] ss:$0 sm:$0xff] }
 0xeaa   :  { %v4149_v35 = vpop.eup %4148 }
 0xeab   :  { %v1826_v36 = vadd.f32 1.0, %v4149_v35 }
 0xeac   :  { %v4151_v37 = vpop.eup %4150 }
 0xead   :  { %v1825_v38 = vadd.f32 1.0, %v4151_v37  ;;  %4152 = vrcp.f32 %v1826_v36  ;;  %v3537_v36 = vld [vmem:[%s3463_s3] ss:$0 sm:$0xff] }
 0xeaf   :  { %4154 = vrcp.f32 %v1825_v38 }
 0xeba   :  { %v4153_v40 = vpop.eup %4152 }
 0xebb   :  { %v1832_v42 = vmul.f32 %v4153_v40, %v1816_v26  ;;  %v267_v26 = vld [vmem:[%s3464_s24 + $0x18] sm:$0xff] }
 0xebc   :  { %v4155_v41 = vpop.eup %4154 }
 0xebd   :  { %v1831_v2 = vmul.f32 %v4155_v41, %v1811_v29  ;;  %v264_v29 = vld [vmem:[%s3464_s24] sm:$0xff]  ;;  %s3478_s24 = sld [smem:[%s4868_s0 + %s4252_s21]]  }
 0xebf   :  { %3901 = vmatprep.mubr.f32.mxu0 %v1831_v2 }
 0xec0   :  { %3902 = vmatmul.mubr.f32.vlgmr.msra.gmra.mxu0 %v1832_v42 }
 0xf80   :  { %v3903_v44 = vpop.f32.mrf.mxu0 }
 0xf81   :  { %v1909_v45 = vadd.f32 %v3903_v44, %v4551_v31 }
 0xf82   :  { %v1899_v46 = vpop.f32.mrf.mxu0 }
 0xf83   :  { %v4603_v0 = vadd.f32 %v3531_v61, %v1909_v45  ;;  %v1908_v43 = vadd.f32 %v1899_v46, %v4554_v33 }
 0xf85   :  { %v4606_v47 = vadd.f32 %v3531_v61, %v1908_v43  ;;  %v1921_v54 = vsel %vm484_vm3, %v4603_v0, 0.0 }
 0xf86   :  { %1922 = vadd.xlane.f32.xlu1 %v1921_v54  ;;  %v3540_v54 = vld [vmem:[%s3465_s7] ss:$0 sm:$0xff] }
 0xf87   :  { %v1918_v53 = vsel %vm480_vm2, %v4606_v47, 0.0 }
 0xf88   :  { %1919 = vadd.xlane.f32.xlu0 %v1918_v53 }
0x100f   :  { %v1923_v49 = vpop.xlane.xlu1 %1922 }
0x1010   :  { %v1925_v50 = vmul.f32 0.03125, %v1923_v49 }
0x1011   :  { %v1920_v51 = vpop.xlane.xlu0 %1919 }
0x1012   :  { %v1927_v31 = vsub.f32 %v4603_v0, %v1925_v50  ;;  %v1924_v3 = vmul.f32 0.03125, %v1920_v51 }
0x1014   :  { %v1926_v52 = vsub.f32 %v4606_v47, %v1924_v3  ;;  %v1929_v56 = vmul.f32 %v1927_v31, %v1927_v31 }
0x1016   :  { %v1933_v33 = vsel %vm484_vm3, %v1929_v56, 0.0  ;;  %v1928_v55 = vmul.f32 %v1926_v52, %v1926_v52 }
0x1017   :  { %1934 = vadd.xlane.f32.xlu1 %v1933_v33 }
0x1018   :  { %v1930_v58 = vsel %vm480_vm2, %v1928_v55, 0.0 }
0x1019   :  { %1931 = vadd.xlane.f32.xlu0 %v1930_v58 }
0x10a0   :  { %v1935_v4 = vpop.xlane.xlu1 %1934 }
0x10a1   :  { %v1937_v5 = vmul.f32 0.03125, %v1935_v4 }
0x10a2   :  { %v1932_v7 = vpop.xlane.xlu0 %1931 }
0x10a3   :  { %v1939_v8 = vadd.f32 1e-05, %v1937_v5  ;;  %v1936_v9 = vmul.f32 0.03125, %v1932_v7 }
0x10a5   :  { %4156 = vrsqrt.f32 %v1939_v8  ;;  %v1938_v10 = vadd.f32 1e-05, %v1936_v9 }
0x10a7   :  { %4158 = vrsqrt.f32 %v1938_v10 }
0x10b2   :  { %v4157_v11 = vpop.eup %4156 }
0x10b3   :  { %v1943_v14 = vmul.f32 %v4157_v11, %v1927_v31 }
0x10b4   :  { %v4159_v15 = vpop.eup %4158 }
0x10b5   :  { %v1942_v17 = vmul.f32 %v4159_v15, %v1926_v52  ;;  %v1951_v18 = vmul.f32 %v3532_v12, %v1943_v14 }
0x10b7   :  { %v1950_v20 = vmul.f32 %v3532_v12, %v1942_v17  ;;  %v1959_v22 = vadd.f32 %v3533_v19, %v1951_v18  ;;  %v4732_v17 = vld [vmem:[%s4448_s1 + $0x8] sm:$0x3] }
0x10b9   :  { %v1958_v21 = vadd.f32 %v3533_v19, %v1950_v20  ;;  %v4737_v20 = vld [vmem:[%s4448_s1] sm:$0xff]  ;;  %s4241_s1 = smov 30  }
0x10ba   :  { %s3466_s10 = sld [smem:[%s4868_s0 + %s4241_s1]]  }
0x10bb   :  { %3912 = vmatprep.mubr.msk.f32.mxu1 %vm480_vm2, %v1958_v21 }
0x10bc   :  { %3913 = vmatmul.mubr.msk.f32.vlgmr.msra.gmra.mxu1 %vm480_vm2, %v1959_v22 }
0x10bd   :  { %3916 = vmatpush3.msra.mxu1 %v262_v1  ;;  %3923 = vmatprep.mubr.msk.f32.mxu1 %vm480_vm2, %v1958_v21 }
0x10be   :  { %3917 = vmatprep.subr.mxu1 %v261_v23 }
0x10bf   :  { %3918 = vmatpush3.msra.mxu1 %v261_v23 }
0x10c0   :  { %3919 = vmatprep.subr.mxu1 %v260_v24 }
0x10c1   :  { %3920 = vmatpush3.msra.mxu1 %v260_v24 }
0x10c2   :  { %3921 = vmatprep.subr.mxu1 %v259_v25 }
0x10c3   :  { %3922 = vmatpush3.msra.mxu1 %v259_v25 }
0x10c4   :  { %3924 = vmatmul.mubr.msk.f32.vlgmr.msra.gmra.mxu1 %vm480_vm2, %v1959_v22  ;;  %3926 = vmatprep.subr.mxu1 %v267_v26 }
0x10c5   :  { %3927 = vmatpush3.msra.mxu1 %v267_v26  ;;  %3934 = vmatprep.mubr.msk.f32.mxu1 %vm480_vm2, %v1958_v21 }
0x10c6   :  { %3928 = vmatprep.subr.mxu1 %v266_v27 }
0x10c7   :  { %3929 = vmatpush3.msra.mxu1 %v266_v27 }
0x10c8   :  { %3930 = vmatprep.subr.mxu1 %v265_v28 }
0x10c9   :  { %3931 = vmatpush3.msra.mxu1 %v265_v28 }
0x10ca   :  { %3932 = vmatprep.subr.mxu1 %v264_v29 }
0x10cb   :  { %3933 = vmatpush3.msra.mxu1 %v264_v29 }
0x10cc   :  { %3935 = vmatmul.mubr.msk.f32.vlgmr.msra.gmra.mxu1 %vm480_vm2, %v1959_v22 }
0x117c   :  { %v3914_v30 = vpop.f32.mrf.mxu1 }
0x117d   :  { %v4658_v42 = vadd.f32 %v3914_v30, %v3534_v34 }
0x117e   :  { %v2038_v32 = vpop.f32.mrf.mxu1 }
0x117f   :  { %v4649_v35 = vadd.f32 %v3534_v34, %v2038_v32  ;;  %v2210_v46 = vmul.f32 %v4658_v42, %v4385_v48  ;;  %v2325_v43 = vmul.f32 %v4658_v42, %v4406_v57  ;;  %v2602_v55 = vmul.f32 %v4658_v42, %v4471_v59 }
0x1181   :  { %v2209_v37 = vmul.f32 %v4649_v35, %v4385_v48  ;;  %v2324_v38 = vmul.f32 %v4649_v35, %v4406_v57  ;;  %v2601_v53 = vmul.f32 %v4649_v35, %v4471_v59  ;;  %v2212_v50 = vmul.f32 0.35355338, %v2210_v46 }
0x1182   :  { %v2327_v51 = vmul.f32 0.35355338, %v2325_v43  ;;  %v2604_v62 = vmul.f32 0.35355338, %v2602_v55 }
0x1183   :  { %v2211_v41 = vmul.f32 0.35355338, %v2209_v37  ;;  %v2326_v2 = vmul.f32 0.35355338, %v2324_v38  ;;  %v2603_v52 = vmul.f32 0.35355338, %v2601_v53 }
0x1184   :  { %v3925_v40 = vpop.f32.mrf.mxu1 }
0x1185   :  { %v4660_v61 = vadd.f32 %v3925_v40, %v3537_v36  ;;  %3941 = vmatprep.mubr.msk.f32.mxu1 %vm480_vm2, %v2211_v41  ;;  %3948 = vmatprep.mubr.msk.f32.mxu0 %vm480_vm2, %v2326_v2 }
0x1186   :  { %v2119_v44 = vpop.f32.mrf.mxu1 }
0x1187   :  { %v4664_v45 = vadd.f32 %v3537_v36, %v2119_v44  ;;  %3937 = vmatprep.subr.msk.mxu1 %vm480_vm2, %v4660_v61  ;;  %3944 = vmatprep.subr.msk.mxu0 %vm480_vm2, %v4660_v61 }
0x1188   :  { %3938 = vmatpush3.xpose.msk.msra.mxu1 %vm480_vm2, %v4660_v61  ;;  %3945 = vmatpush3.xpose.msk.msra.mxu0 %vm480_vm2, %v4660_v61 }
0x1189   :  { %3939 = vmatprep.subr.msk.mxu1 %vm480_vm2, %v4664_v45  ;;  %3946 = vmatprep.subr.msk.mxu0 %vm480_vm2, %v4664_v45 }
0x118c   :  { %v3936_v49 = vpop.f32.mrf.mxu1  ;;  %3940 = vmatpush3.xpose.msk.msra.mxu1 %vm480_vm2, %v4664_v45  ;;  %3947 = vmatpush3.xpose.msk.msra.mxu0 %vm480_vm2, %v4664_v45 }
0x118d   :  { %v4688_v31 = vadd.f32 %v3936_v49, %v3540_v54  ;;  %3965 = vmatprep.subr.msk.mxu0 %vm480_vm2, %v4660_v61 }
0x118e   :  { %v2200_v3 = vpop.f32.mrf.mxu1 }
0x118f   :  { %v4692_v56 = vadd.f32 %v3540_v54, %v2200_v3  ;;  %3942 = vmatmul.mubr.msk.f32.vlgmr.msra.gmra.mxu1 %vm480_vm2, %v2212_v50  ;;  %3949 = vmatmul.mubr.msk.f32.vlgmr.msra.gmra.mxu0 %vm480_vm2, %v2327_v51  ;;  %v2432_v33 = vmul.f32 %v4688_v31, %v4406_v57  ;;  %v4711_v60 = vmul.f32 %v4688_v31, %v4385_v48 }
0x1190   :  { %3966 = vmatpush3.xpose.msk.msra.mxu0 %vm480_vm2, %v4660_v61  ;;  %3969 = vmatprep.mubr.msk.f32.mxu0 %vm480_vm2, %v2603_v52  ;;  %v2904_v6 = vmul.f32 %v4688_v31, %v4512_v39 }
0x1191   :  { %3951 = vmatprep.subr.msk.mxu1 %vm1048_vm8, %v2432_v33  ;;  %3967 = vmatprep.subr.msk.mxu0 %vm480_vm2, %v4664_v45  ;;  %v2431_v58 = vmul.f32 %v4692_v56, %v4406_v57  ;;  %v2903_v57 = vmul.f32 %v4692_v56, %v4512_v39 }
0x1192   :  { %3952 = vmatpush3.msk.msra.mxu1 %vm1048_vm8, %v2432_v33 }
0x1193   :  { %3953 = vmatprep.subr.mxu1 %v2431_v58 }
0x1194   :  { %3954 = vmatpush3.msra.mxu1 %v2431_v58  ;;  %3968 = vmatpush3.xpose.msk.msra.mxu0 %vm480_vm2, %v4664_v45 }
0x1195   :  { %3958 = vmatprep.subr.msk.mxu1 %vm1048_vm8, %v4711_v60  ;;  %3986 = vmatprep.subr.msk.mxu0 %vm1048_vm8, %v2904_v6 }
0x1197   :  { %3970 = vmatmul.mubr.msk.f32.vlgmr.msra.gmra.mxu0 %vm480_vm2, %v2604_v62 }
0x1198   :  { %3987 = vmatpush3.msk.msra.mxu0 %vm1048_vm8, %v2904_v6 }
0x1199   :  { %3988 = vmatprep.subr.mxu0 %v2903_v57 }
0x119a   :  { %3989 = vmatpush3.msra.mxu0 %v2903_v57 }
0x124f   :  { %v3943_v63 = vpop.f32.mrf.mxu1  ;;  %v3950_v1 = vpop.f32.mrf.mxu0 }
0x1250   :  { %v2406_v4 = vadd.f32 %v3950_v1, %v4451_v13  ;;  %v2297_v8 = vadd.f32 %v3943_v63, %v4451_v13 }
0x1251   :  { %v2291_v5 = vpop.f32.mrf.mxu1  ;;  %v2400_v7 = vpop.f32.mrf.mxu0 }
0x1252   :  { %v2401_v9 = vadd.f32 %v2400_v7, %v4455_v16  ;;  %v2412_v10 = vsel %vm911_vm9, %v2406_v4, -inf  ;;  %v2292_v11 = vadd.f32 %v2291_v5, %v4455_v16  ;;  %v2303_v14 = vsel %vm911_vm9, %v2297_v8, -inf }
0x1253   :  { %2413 = vmax.xlane.f32.xlu1 %v2412_v10 }
0x1254   :  { %v2409_v12 = vsel %vm907_vm10, %v2401_v9, -inf  ;;  %v2300_v13 = vsel %vm907_vm10, %v2292_v11, -inf }
0x1255   :  { %2410 = vmax.xlane.f32.xlu0 %v2409_v12 }
0x1257   :  { %v3971_v15 = vpop.f32.mrf.mxu0  ;;  %2304 = vmax.xlane.f32.xlu1 %v2303_v14  ;;  %v2322_v14 = vmul.f32 %v4692_v56, %v4385_v48  ;;  %v2708_v48 = vmul.f32 %v4692_v56, %v4471_v59 }
0x1258   :  { %v2683_v18 = vadd.f32 %v4732_v17, %v3971_v15 }
0x1259   :  { %v2677_v19 = vpop.f32.mrf.mxu0  ;;  %2301 = vmax.xlane.f32.xlu0 %v2300_v13 }
0x125a   :  { %v2678_v21 = vadd.f32 %v4737_v20, %v2677_v19  ;;  %v2689_v16 = vsel %vm911_vm9, %v2683_v18, -inf }
0x125b   :  { %2690 = vmax.xlane.f32.xlu1 %v2689_v16 }
0x125c   :  { %v2686_v22 = vsel %vm907_vm10, %v2678_v21, -inf }
0x125d   :  { %2687 = vmax.xlane.f32.xlu0 %v2686_v22 }
0x12dc   :  { %v2414_v23 = vpop.xlane.xlu1 %2413 }
0x12dd   :  { %v2416_v24 = vsub.f32 %v2406_v4, %v2414_v23 }
0x12de   :  { %v2411_v25 = vpop.xlane.xlu0 %2410 }
0x12df   :  { %v2419_v26 = vmul.f32 1.442695, %v2416_v24  ;;  %v2415_v27 = vsub.f32 %v2401_v9, %v2411_v25 }
0x12e0   :  { %v2305_v28 = vpop.xlane.xlu1 %2304 }
0x12e1   :  { %4160 = vpow2.f32 %v2419_v26  ;;  %v2417_v29 = vmul.f32 1.442695, %v2415_v27  ;;  %v2307_v30 = vsub.f32 %v2297_v8, %v2305_v28 }
0x12e2   :  { %v2302_v32 = vpop.xlane.xlu0 %2301 }
0x12e3   :  { %4162 = vpow2.f32 %v2417_v29  ;;  %v2310_v34 = vmul.f32 1.442695, %v2307_v30  ;;  %v2306_v36 = vsub.f32 %v2292_v11, %v2302_v32 }
0x12e4   :  { %v2691_v37 = vpop.xlane.xlu1 %2690 }
0x12e5   :  { %4164 = vpow2.f32 %v2310_v34  ;;  %v2308_v38 = vmul.f32 1.442695, %v2306_v36  ;;  %v2693_v40 = vsub.f32 %v2683_v18, %v2691_v37  ;;  %v2709_v18 = vmul.f32 %v4688_v31, %v4471_v59 }
0x12e6   :  { %v2688_v41 = vpop.xlane.xlu0 %2687  ;;  %v2797_v59 = vmul.f32 %v4658_v42, %v4512_v39 }
0x12e7   :  { %4166 = vpow2.f32 %v2308_v38  ;;  %v2696_v2 = vmul.f32 1.442695, %v2693_v40  ;;  %v2692_v44 = vsub.f32 %v2678_v21, %v2688_v41  ;;  %v2796_v21 = vmul.f32 %v4649_v35, %v4512_v39 }
0x12e8   :  { %v2799_v35 = vmul.f32 0.35355338, %v2797_v59  ;;  %v276_v59 = vld [vmem:[%s3470_s18] sm:$0xff] }
0x12e9   :  { %4168 = vpow2.f32 %v2696_v2  ;;  %v2694_v46 = vmul.f32 1.442695, %v2692_v44  ;;  %v2798_v22 = vmul.f32 0.35355338, %v2796_v21 }
0x12eb   :  { %4170 = vpow2.f32 %v2694_v46 }
0x12ee   :  { %v4161_v43 = vpop.eup %4160 }
0x12ef   :  { %v2424_v54 = vsel %vm911_vm9, %v4161_v43, 0.0 }
0x12f0   :  { %v4163_v53 = vpop.eup %4162  ;;  %2425 = vadd.xlane.f32.xlu1 %v2424_v54  ;;  %v272_v54 = vld [vmem:[%s3466_s10 + $0x18] sm:$0xff] }
0x12f1   :  { %v2421_v49 = vsel %vm907_vm10, %v4163_v53, 0.0  ;;  %3993 = vmatprep.subr.mxu0 %v272_v54 }
0x12f2   :  { %v4165_v50 = vpop.eup %4164  ;;  %2422 = vadd.xlane.f32.xlu0 %v2421_v49 }
0x12f3   :  { %v2315_v51 = vsel %vm911_vm9, %v4165_v50, 0.0 }
0x12f4   :  { %v4167_v3 = vpop.eup %4166  ;;  %2316 = vadd.xlane.f32.xlu1 %v2315_v51 }
0x12f5   :  { %v2312_v52 = vsel %vm907_vm10, %v4167_v3, 0.0 }
0x12f6   :  { %v4169_v33 = vpop.eup %4168  ;;  %2313 = vadd.xlane.f32.xlu0 %v2312_v52 }
0x12f7   :  { %v2701_v55 = vsel %vm911_vm9, %v4169_v33, 0.0 }
0x12f8   :  { %v4171_v58 = vpop.eup %4170  ;;  %2702 = vadd.xlane.f32.xlu1 %v2701_v55  ;;  %v270_v55 = vld [vmem:[%s3466_s10 + $0x8] sm:$0xff] }
0x12f9   :  { %v2698_v6 = vsel %vm907_vm10, %v4171_v58, 0.0 }
0x12fa   :  { %2699 = vadd.xlane.f32.xlu0 %v2698_v6 }
0x1379   :  { %v2426_v62 = vpop.xlane.xlu1 %2425 }
0x137a   :  { %4172 = vrcp.f32 %v2426_v62 }
0x137b   :  { %v2423_v57 = vpop.xlane.xlu0 %2422 }
0x137c   :  { %4174 = vrcp.f32 %v2423_v57 }
0x137d   :  { %v2317_v63 = vpop.xlane.xlu1 %2316 }
0x137e   :  { %4176 = vrcp.f32 %v2317_v63 }
0x137f   :  { %v2314_v1 = vpop.xlane.xlu0 %2313 }
0x1380   :  { %4178 = vrcp.f32 %v2314_v1  ;;  %v3571_v1 = vld [vmem:[%s3467_s14] ss:$0 sm:$0xff] }
0x1381   :  { %v2703_v4 = vpop.xlane.xlu1 %2702 }
0x1382   :  { %4180 = vrcp.f32 %v2703_v4 }
0x1383   :  { %v2700_v5 = vpop.xlane.xlu0 %2699 }
0x1384   :  { %4182 = vrcp.f32 %v2700_v5 }
0x1387   :  { %v4173_v7 = vpop.eup %4172 }
0x1388   :  { %v2430_v10 = vmul.f32 %v4173_v7, %v4161_v43 }
0x1389   :  { %v4175_v8 = vpop.eup %4174 }
0x138a   :  { %v2429_v9 = vmul.f32 %v4175_v8, %v4163_v53 }
0x138b   :  { %v4177_v11 = vpop.eup %4176 }
0x138c   :  { %3955 = vmatprep.mubr.msk.f32.mxu1 %vm907_vm10, %v2429_v9  ;;  %v2321_v13 = vmul.f32 %v4177_v11, %v4165_v50 }
0x138d   :  { %v4179_v12 = vpop.eup %4178  ;;  %3956 = vmatmul.mubr.msk.f32.vlgmr.msra.gmra.mxu1 %vm907_vm10, %v2430_v10 }
0x138e   :  { %3959 = vmatpush3.msk.msra.mxu1 %vm1048_vm8, %v4711_v60  ;;  %v2320_v15 = vmul.f32 %v4179_v12, %v4167_v3 }
0x138f   :  { %3960 = vmatprep.subr.mxu1 %v2322_v14  ;;  %v4181_v19 = vpop.eup %4180 }
0x1390   :  { %3961 = vmatpush3.msra.mxu1 %v2322_v14  ;;  %3962 = vmatprep.mubr.msk.f32.mxu1 %vm907_vm10, %v2320_v15  ;;  %v2707_v31 = vmul.f32 %v4181_v19, %v4169_v33  ;;  %v271_v33 = vld [vmem:[%s3466_s10 + $0x10] sm:$0xff] }
0x1391   :  { %v4183_v16 = vpop.eup %4182  ;;  %3972 = vmatprep.subr.msk.mxu1 %vm1048_vm8, %v2709_v18  ;;  %3963 = vmatmul.mubr.msk.f32.vlgmr.msra.gmra.mxu1 %vm907_vm10, %v2321_v13 }
0x1392   :  { %3973 = vmatpush3.msk.msra.mxu1 %vm1048_vm8, %v2709_v18  ;;  %v2706_v60 = vmul.f32 %v4183_v16, %v4171_v58  ;;  %v269_v58 = vld [vmem:[%s3466_s10] sm:$0xff] }
0x1393   :  { %3974 = vmatprep.subr.mxu1 %v2708_v48 }
0x1394   :  { %3975 = vmatpush3.msra.mxu1 %v2708_v48  ;;  %3976 = vmatprep.mubr.msk.f32.mxu1 %vm907_vm10, %v2706_v60  ;;  %v279_v60 = vld [vmem:[%s3470_s18 + $0x18] sm:$0xff] }
0x1395   :  { %3979 = vmatprep.subr.msk.mxu1 %vm480_vm2, %v4660_v61  ;;  %3977 = vmatmul.mubr.msk.f32.vlgmr.msra.gmra.mxu1 %vm907_vm10, %v2707_v31  ;;  %v278_v31 = vld [vmem:[%s3470_s18 + $0x10] sm:$0xff] }
0x1396   :  { %3980 = vmatpush3.xpose.msk.msra.mxu1 %vm480_vm2, %v4660_v61  ;;  %3983 = vmatprep.mubr.msk.f32.mxu1 %vm480_vm2, %v2798_v22  ;;  %v277_v22 = vld [vmem:[%s3470_s18 + $0x8] sm:$0xff] }
0x1397   :  { %3981 = vmatprep.subr.msk.mxu1 %vm480_vm2, %v4664_v45 }
0x139a   :  { %3982 = vmatpush3.xpose.msk.msra.mxu1 %vm480_vm2, %v4664_v45 }
0x139b   :  { %4004 = vmatprep.subr.mxu1 %v279_v60 }
0x139d   :  { %3984 = vmatmul.mubr.msk.f32.vlgmr.msra.gmra.mxu1 %vm480_vm2, %v2799_v35 }
0x139e   :  { %4005 = vmatpush3.msra.mxu1 %v279_v60 }
0x139f   :  { %4006 = vmatprep.subr.mxu1 %v278_v31 }
0x13a0   :  { %4007 = vmatpush3.msra.mxu1 %v278_v31 }
0x13a1   :  { %4008 = vmatprep.subr.mxu1 %v277_v22 }
0x13a2   :  { %4009 = vmatpush3.msra.mxu1 %v277_v22 }
0x13a3   :  { %4010 = vmatprep.subr.mxu1 %v276_v59 }
0x13a4   :  { %4011 = vmatpush3.msra.mxu1 %v276_v59 }
0x144d   :  { %v3957_v56 = vpop.f32.mrf.mxu1 }
0x144f   :  { %v2508_v23 = vpop.f32.mrf.mxu1 }
0x1451   :  { %v3964_v24 = vpop.f32.mrf.mxu1 }
0x1452   :  { %v2598_v25 = vadd.f32 %v3964_v24, %v3957_v56 }
0x1453   :  { %v2592_v26 = vpop.f32.mrf.mxu1 }
0x1454   :  { %v2593_v61 = vadd.f32 %v2592_v26, %v2508_v23 }
0x1455   :  { %v3978_v27 = vpop.f32.mrf.mxu1 }
0x1456   :  { %v2795_v28 = vadd.f32 %v3978_v27, %v2598_v25  ;;  %v3574_v27 = vld [vmem:[%s3468_s22] ss:$0 sm:$0xff] }
0x1457   :  { %v2785_v29 = vpop.f32.mrf.mxu1 }
0x1458   :  { %v2794_v30 = vadd.f32 %v2785_v29, %v2593_v61 }
0x145d   :  { %v3985_v39 = vpop.f32.mrf.mxu1 }
0x145e   :  { %v2878_v42 = vadd.f32 %v4732_v17, %v3985_v39 }
0x145f   :  { %v2872_v32 = vpop.f32.mrf.mxu1 }
0x1460   :  { %v2873_v34 = vadd.f32 %v4737_v20, %v2872_v32  ;;  %v2884_v45 = vsel %vm911_vm9, %v2878_v42, -inf }
0x1461   :  { %2885 = vmax.xlane.f32.xlu1 %v2884_v45 }
0x1462   :  { %v2881_v36 = vsel %vm907_vm10, %v2873_v34, -inf }
0x1463   :  { %2882 = vmax.xlane.f32.xlu0 %v2881_v36  ;;  %v296_v36 = vld [vmem:[%s4822_s30 + $0x78] sm:$0xff] }
0x14ea   :  { %v2886_v37 = vpop.xlane.xlu1 %2885 }
0x14eb   :  { %v2888_v38 = vsub.f32 %v2878_v42, %v2886_v37  ;;  %v3575_v42 = vld [vmem:[%s3469_s26] ss:$0 sm:$0xff]  ;;  %v295_v37 = vld [vmem:[%s4822_s30 + $0x70] sm:$0xff] }
0x14ec   :  { %v2883_v40 = vpop.xlane.xlu0 %2882 }
0x14ed   :  { %v2891_v41 = vmul.f32 1.442695, %v2888_v38  ;;  %v2887_v2 = vsub.f32 %v2873_v34, %v2883_v40  ;;  %v294_v38 = vld [vmem:[%s4822_s30 + $0x68] sm:$0xff]  ;;  %v293_v40 = vld [vmem:[%s4822_s30 + $0x60] sm:$0xff] }
0x14ef   :  { %4184 = vpow2.f32 %v2891_v41  ;;  %v2889_v44 = vmul.f32 1.442695, %v2887_v2  ;;  %v292_v41 = vld [vmem:[%s4822_s30 + $0x58] sm:$0xff]  ;;  %v291_v2 = vld [vmem:[%s4822_s30 + $0x50] sm:$0xff] }
0x14f1   :  { %4186 = vpow2.f32 %v2889_v44  ;;  %v290_v44 = vld [vmem:[%s4822_s30 + $0x48] sm:$0xff] }
0x14fc   :  { %v4185_v46 = vpop.eup %4184 }
0x14fd   :  { %v2896_v17 = vsel %vm911_vm9, %v4185_v46, 0.0 }
0x14fe   :  { %v4187_v43 = vpop.eup %4186  ;;  %2897 = vadd.xlane.f32.xlu1 %v2896_v17  ;;  %v288_v17 = vld [vmem:[%s4822_s30 + $0x38] sm:$0xff] }
0x14ff   :  { %v2893_v20 = vsel %vm907_vm10, %v4187_v43, 0.0 }
0x1500   :  { %2894 = vadd.xlane.f32.xlu0 %v2893_v20  ;;  %v286_v20 = vld [vmem:[%s4822_s30 + $0x28] sm:$0xff] }
0x1587   :  { %v2898_v53 = vpop.xlane.xlu1 %2897 }
0x1588   :  { %4188 = vrcp.f32 %v2898_v53  ;;  %v284_v53 = vld [vmem:[%s4822_s30 + $0x18] sm:$0xff] }
0x1589   :  { %v2895_v49 = vpop.xlane.xlu0 %2894 }
0x158a   :  { %4190 = vrcp.f32 %v2895_v49  ;;  %v283_v49 = vld [vmem:[%s4822_s30 + $0x10] sm:$0xff] }
0x1595   :  { %v4189_v50 = vpop.eup %4188 }
0x1596   :  { %v2902_v52 = vmul.f32 %v4189_v50, %v4185_v46  ;;  %v289_v46 = vld [vmem:[%s4822_s30 + $0x40] sm:$0xff]  ;;  %v282_v50 = vld [vmem:[%s4822_s30 + $0x8] sm:$0xff] }
0x1597   :  { %v4191_v51 = vpop.eup %4190 }
0x1598   :  { %v2901_v3 = vmul.f32 %v4191_v51, %v4187_v43  ;;  %v287_v43 = vld [vmem:[%s4822_s30 + $0x30] sm:$0xff]  ;;  %v281_v51 = vld [vmem:[%s4822_s30] sm:$0xff] }
0x159a   :  { %3990 = vmatprep.mubr.msk.f32.mxu0 %vm907_vm10, %v2901_v3  ;;  %v3576_v3 = vld [vmem:[%s3471_s5] ss:$0 sm:$0xff] }
0x159b   :  { %3991 = vmatmul.mubr.msk.f32.vlgmr.msra.gmra.mxu0 %vm907_vm10, %v2902_v52 }
0x159c   :  { %3994 = vmatpush3.msra.mxu0 %v272_v54  ;;  %v285_v54 = vld [vmem:[%s4822_s30 + $0x20] sm:$0xff] }
0x159d   :  { %3995 = vmatprep.subr.mxu0 %v271_v33 }
0x159e   :  { %3996 = vmatpush3.msra.mxu0 %v271_v33 }
0x159f   :  { %3997 = vmatprep.subr.mxu0 %v270_v55 }
0x15a0   :  { %3998 = vmatpush3.msra.mxu0 %v270_v55 }
0x15a1   :  { %3999 = vmatprep.subr.mxu0 %v269_v58 }
0x15a2   :  { %4000 = vmatpush3.msra.mxu0 %v269_v58 }
0x15a3   :  { %4015 = vmatprep.subr.mxu0 %v296_v36 }
0x165b   :  { %v3992_v6 = vpop.f32.mrf.mxu0 }
0x165c   :  { %v2990_v63 = vadd.f32 %v3992_v6, %v2795_v28 }
0x165d   :  { %v2980_v62 = vpop.f32.mrf.mxu0 }
0x165e   :  { %v2989_v57 = vadd.f32 %v2980_v62, %v2794_v30 }
0x1660   :  { %4001 = vmatprep.mubr.msk.f32.mxu0 %vm480_vm2, %v2989_v57 }
0x1661   :  { %4002 = vmatmul.mubr.msk.f32.vlgmr.msra.gmra.mxu0 %vm480_vm2, %v2990_v63 }
0x1662   :  { %4016 = vmatpush3.msra.mxu0 %v296_v36 }
0x1663   :  { %4017 = vmatprep.subr.mxu0 %v295_v37 }
0x1664   :  { %4018 = vmatpush3.msra.mxu0 %v295_v37 }
0x1665   :  { %4019 = vmatprep.subr.mxu0 %v294_v38 }
0x1666   :  { %4020 = vmatpush3.msra.mxu0 %v294_v38 }
0x1667   :  { %4021 = vmatprep.subr.mxu0 %v293_v40 }
0x1668   :  { %4022 = vmatpush3.msra.mxu0 %v293_v40 }
0x1669   :  { %4023 = vmatprep.subr.mxu0 %v292_v41 }
0x166a   :  { %4024 = vmatpush3.msra.mxu0 %v292_v41  ;;  %v3581_v41 = vld [vmem:[%s3475_s20] ss:$0 sm:$0xff] }
0x166b   :  { %4025 = vmatprep.subr.mxu0 %v291_v2 }
0x166c   :  { %4026 = vmatpush3.msra.mxu0 %v291_v2 }
0x166d   :  { %4027 = vmatprep.subr.mxu0 %v290_v44 }
0x166e   :  { %4028 = vmatpush3.msra.mxu0 %v290_v44 }
0x166f   :  { %4029 = vmatprep.subr.mxu0 %v289_v46 }
0x1670   :  { %4030 = vmatpush3.msra.mxu0 %v289_v46 }
0x1671   :  { %4031 = vmatprep.subr.mxu0 %v288_v17 }
0x1672   :  { %4032 = vmatpush3.msra.mxu0 %v288_v17 }
0x1673   :  { %4033 = vmatprep.subr.mxu0 %v287_v43 }
0x1674   :  { %4034 = vmatpush3.msra.mxu0 %v287_v43 }
0x1675   :  { %4035 = vmatprep.subr.mxu0 %v286_v20 }
0x1676   :  { %4036 = vmatpush3.msra.mxu0 %v286_v20 }
0x1677   :  { %4037 = vmatprep.subr.mxu0 %v285_v54 }
0x1678   :  { %4038 = vmatpush3.msra.mxu0 %v285_v54 }
0x1679   :  { %4039 = vmatprep.subr.mxu0 %v284_v53 }
0x167a   :  { %4040 = vmatpush3.msra.mxu0 %v284_v53 }
0x167b   :  { %4041 = vmatprep.subr.mxu0 %v283_v49 }
0x167c   :  { %4042 = vmatpush3.msra.mxu0 %v283_v49 }
0x167d   :  { %4043 = vmatprep.subr.mxu0 %v282_v50 }
0x167e   :  { %4044 = vmatpush3.msra.mxu0 %v282_v50 }
0x167f   :  { %4045 = vmatprep.subr.mxu0 %v281_v51 }
0x1680   :  { %4046 = vmatpush3.msra.mxu0 %v281_v51 }
0x1721   :  { %v4003_v4 = vpop.f32.mrf.mxu0 }
0x1722   :  { %v3075_v5 = vadd.f32 %v4003_v4, %v3571_v1 }
0x1723   :  { %v3069_v7 = vpop.f32.mrf.mxu0 }
0x1724   :  { %v4795_v8 = vadd.f32 %v3075_v5, %v4603_v0  ;;  %v3070_v9 = vadd.f32 %v3571_v1, %v3069_v7 }
0x1726   :  { %v4798_v10 = vadd.f32 %v3070_v9, %v4606_v47  ;;  %v3083_v11 = vsel %vm484_vm3, %v4795_v8, 0.0 }
0x1727   :  { %3084 = vadd.xlane.f32.xlu1 %v3083_v11 }
0x1728   :  { %v3080_v12 = vsel %vm480_vm2, %v4798_v10, 0.0 }
0x1729   :  { %3081 = vadd.xlane.f32.xlu0 %v3080_v12 }
0x17b0   :  { %v3085_v14 = vpop.xlane.xlu1 %3084 }
0x17b1   :  { %v3087_v15 = vmul.f32 0.03125, %v3085_v14 }
0x17b2   :  { %v3082_v18 = vpop.xlane.xlu0 %3081 }
0x17b3   :  { %v3089_v13 = vsub.f32 %v4795_v8, %v3087_v15  ;;  %v3086_v19 = vmul.f32 0.03125, %v3082_v18  ;;  %v3579_v18 = vld [vmem:[%s3473_s8] ss:$0 sm:$0xff] }
0x17b5   :  { %v3088_v0 = vsub.f32 %v4798_v10, %v3086_v19  ;;  %v3091_v21 = vmul.f32 %v3089_v13, %v3089_v13 }
0x17b7   :  { %v3095_v47 = vsel %vm484_vm3, %v3091_v21, 0.0  ;;  %v3090_v16 = vmul.f32 %v3088_v0, %v3088_v0 }
0x17b8   :  { %3096 = vadd.xlane.f32.xlu1 %v3095_v47 }
0x17b9   :  { %v3092_v48 = vsel %vm480_vm2, %v3090_v16, 0.0 }
0x17ba   :  { %3093 = vadd.xlane.f32.xlu0 %v3092_v48 }
0x1841   :  { %v3097_v35 = vpop.xlane.xlu1 %3096 }
0x1842   :  { %v3099_v56 = vmul.f32 0.03125, %v3097_v35 }
0x1843   :  { %v3094_v23 = vpop.xlane.xlu0 %3093 }
0x1844   :  { %v3101_v24 = vadd.f32 1e-05, %v3099_v56  ;;  %v3098_v25 = vmul.f32 0.03125, %v3094_v23 }
0x1846   :  { %4192 = vrsqrt.f32 %v3101_v24  ;;  %v3100_v26 = vadd.f32 1e-05, %v3098_v25  ;;  %v303_v25 = vld [vmem:[%s3476_s12 + $0x18] sm:$0xff] }
0x1847   :  { %4050 = vmatprep.subr.mxu1 %v303_v25 }
0x1848   :  { %4194 = vrsqrt.f32 %v3100_v26  ;;  %v302_v26 = vld [vmem:[%s3476_s12 + $0x10] sm:$0xff] }
0x1853   :  { %v4193_v61 = vpop.eup %4192 }
0x1854   :  { %v3105_v28 = vmul.f32 %v4193_v61, %v3089_v13  ;;  %v301_v61 = vld [vmem:[%s3476_s12 + $0x8] sm:$0xff] }
0x1855   :  { %v4195_v29 = vpop.eup %4194 }
0x1856   :  { %v3104_v30 = vmul.f32 %v4195_v29, %v3088_v0  ;;  %v3113_v39 = vmul.f32 %v3574_v27, %v3105_v28 }
0x1858   :  { %v3112_v32 = vmul.f32 %v3574_v27, %v3104_v30  ;;  %v3121_v45 = vadd.f32 %v3575_v42, %v3113_v39  ;;  %v300_v27 = vld [vmem:[%s3476_s12] sm:$0xff] }
0x185a   :  { %v3120_v34 = vadd.f32 %v3575_v42, %v3112_v32 }
0x185c   :  { %4012 = vmatprep.mubr.msk.f32.mxu1 %vm480_vm2, %v3120_v34 }
0x185d   :  { %4013 = vmatmul.mubr.msk.f32.vlgmr.msra.gmra.mxu1 %vm480_vm2, %v3121_v45  ;;  %v3580_v45 = vld [vmem:[%s3474_s16] ss:$0 sm:$0xff] }
0x185e   :  { %4051 = vmatpush3.msra.mxu1 %v303_v25 }
0x185f   :  { %4052 = vmatprep.subr.mxu1 %v302_v26 }
0x1860   :  { %4053 = vmatpush3.msra.mxu1 %v302_v26 }
0x1861   :  { %4054 = vmatprep.subr.mxu1 %v301_v61 }
0x1862   :  { %4055 = vmatpush3.msra.mxu1 %v301_v61 }
0x1863   :  { %4056 = vmatprep.subr.mxu1 %v300_v27 }
0x1864   :  { %4057 = vmatpush3.msra.mxu1 %v300_v27 }
0x191d   :  { %v4014_v52 = vpop.f32.mrf.mxu1 }
0x191e   :  { %v3206_v33 = vadd.f32 %v4014_v52, %v3576_v3 }
0x191f   :  { %v3200_v55 = vpop.f32.mrf.mxu1 }
0x1920   :  { %v3210_v58 = vmul.f32 -1.702, %v3206_v33  ;;  %v3201_v6 = vadd.f32 %v3576_v3, %v3200_v55 }
0x1922   :  { %v3213_v62 = vmul.f32 1.442695, %v3210_v58  ;;  %v3209_v57 = vmul.f32 -1.702, %v3201_v6 }
0x1924   :  { %4196 = vpow2.f32 %v3213_v62  ;;  %v3211_v63 = vmul.f32 1.442695, %v3209_v57 }
0x1926   :  { %4198 = vpow2.f32 %v3211_v63 }
0x1931   :  { %v4197_v1 = vpop.eup %4196 }
0x1932   :  { %v3216_v4 = vadd.f32 1.0, %v4197_v1 }
0x1933   :  { %v4199_v5 = vpop.eup %4198 }
0x1934   :  { %v3215_v7 = vadd.f32 1.0, %v4199_v5  ;;  %4200 = vrcp.f32 %v3216_v4 }
0x1936   :  { %4202 = vrcp.f32 %v3215_v7 }
0x1941   :  { %v4201_v9 = vpop.eup %4200 }
0x1942   :  { %v3222_v14 = vmul.f32 %v4201_v9, %v3206_v33 }
0x1943   :  { %v4203_v11 = vpop.eup %4202 }
0x1944   :  { %v3221_v12 = vmul.f32 %v4203_v11, %v3201_v6 }
0x1946   :  { %4047 = vmatprep.mubr.f32.mxu0 %v3221_v12 }
0x1947   :  { %4048 = vmatmul.mubr.f32.vlgmr.msra.gmra.mxu0 %v3222_v14 }
0x1a07   :  { %v4049_v15 = vpop.f32.mrf.mxu0 }
0x1a08   :  { %v3299_v13 = vadd.f32 %v4049_v15, %v4795_v8 }
0x1a09   :  { %v3289_v19 = vpop.f32.mrf.mxu0 }
0x1a0a   :  { %v3298_v0 = vadd.f32 %v3289_v19, %v4798_v10  ;;  %v3307_v21 = vadd.f32 %v3579_v18, %v3299_v13 }
0x1a0c   :  { %v3311_v47 = vsel %vm484_vm3, %v3307_v21, 0.0  ;;  %v3306_v16 = vadd.f32 %v3579_v18, %v3298_v0 }
0x1a0d   :  { %3312 = vadd.xlane.f32.xlu1 %v3311_v47 }
0x1a0e   :  { %v3308_v48 = vsel %vm480_vm2, %v3306_v16, 0.0 }
0x1a0f   :  { %3309 = vadd.xlane.f32.xlu0 %v3308_v48 }
0x1a96   :  { %v3313_v60 = vpop.xlane.xlu1 %3312 }
0x1a97   :  { %v3315_v31 = vmul.f32 0.03125, %v3313_v60 }
0x1a98   :  { %v3310_v22 = vpop.xlane.xlu0 %3309 }
0x1a99   :  { %v3317_v59 = vsub.f32 %v3307_v21, %v3315_v31  ;;  %v3314_v35 = vmul.f32 0.03125, %v3310_v22 }
0x1a9b   :  { %v3316_v56 = vsub.f32 %v3306_v16, %v3314_v35  ;;  %v3319_v23 = vmul.f32 %v3317_v59, %v3317_v59 }
0x1a9d   :  { %v3323_v8 = vsel %vm484_vm3, %v3319_v23, 0.0  ;;  %v3318_v24 = vmul.f32 %v3316_v56, %v3316_v56 }
0x1a9e   :  { %3324 = vadd.xlane.f32.xlu1 %v3323_v8 }
0x1a9f   :  { %v3320_v10 = vsel %vm480_vm2, %v3318_v24, 0.0 }
0x1aa0   :  { %3321 = vadd.xlane.f32.xlu0 %v3320_v10 }
0x1b27   :  { %v3325_v28 = vpop.xlane.xlu1 %3324 }
0x1b28   :  { %v3327_v29 = vmul.f32 0.03125, %v3325_v28 }
0x1b29   :  { %v3322_v30 = vpop.xlane.xlu0 %3321 }
0x1b2a   :  { %v3329_v39 = vadd.f32 1e-05, %v3327_v29  ;;  %v3326_v42 = vmul.f32 0.03125, %v3322_v30 }
0x1b2c   :  { %4204 = vrsqrt.f32 %v3329_v39  ;;  %v3328_v32 = vadd.f32 1e-05, %v3326_v42 }
0x1b2e   :  { %4206 = vrsqrt.f32 %v3328_v32 }
0x1b39   :  { %v4205_v34 = vpop.eup %4204 }
0x1b3a   :  { %v3333_v36 = vmul.f32 %v4205_v34, %v3317_v59 }
0x1b3b   :  { %v4207_v37 = vpop.eup %4206 }
0x1b3c   :  { %v3332_v38 = vmul.f32 %v4207_v37, %v3316_v56  ;;  %v3341_v40 = vmul.f32 %v3580_v45, %v3333_v36 }
0x1b3e   :  { %v3340_v2 = vmul.f32 %v3580_v45, %v3332_v38  ;;  %v3349_v46 = vadd.f32 %v3581_v41, %v3341_v40 }
0x1b40   :  { %v3348_v44 = vadd.f32 %v3581_v41, %v3340_v2 }
0x1b42   :  { %4058 = vmatprep.mubr.msk.f32.mxu1 %vm480_vm2, %v3348_v44 }
0x1b43   :  { %4059 = vmatmul.mubr.msk.f32.vlgmr.msra.gmra.mxu1 %vm480_vm2, %v3349_v46 }
0x1c03   :  { %v4060_v17 = vpop.f32.mrf.mxu1 }
0x1c04   :  { %3432 = vst.msk [vmem:[%s3478_s24 + $0x8] sm:$0x3] %vm484_vm3, %v4060_v17 }
0x1c05   :  { %v3422_v43 = vpop.f32.mrf.mxu1 }
0x1c06   :  { %3431 = vst.msk [vmem:[%s3478_s24] sm:$0xff] %vm480_vm2, %v3422_v43 }

// kernel: custom_clip_forward.4
= control target key start
LH: loop header
LB: loop body
LE: loop exit
PB: predicated region body
PF: predicated region fallthrough
CT: control target
= control target key end

     0   :  { %vm287_vm0 = vcmask 261120   ;;  %s6520_s6 = smov 3   ;;  %s6521_s10 = smov 5   ;;  %vm855_vm8 = vcmask 392192   ;;  %vm6554_vm12 = vmmov 0   ;;  %vm4926_vm13 = vcmask 256000   ;;  %s8178_s0 = inlined_call_operand.smem [shape: u32[39], index: -1, kind: input, shape index: {}] }
   0x1   :  { %s6568_s5 = sld [smem:[%s8178_s0]]   ;;  %s6522_s14 = smov 7  }
   0x2   :  { %s4934_s9 = sld [smem:[%s8178_s0 + %s6520_s6]]   ;;  %s6523_s18 = smov 1  }
   0x3   :  { %s6618_s13 = sld [smem:[%s8178_s0 + %s6521_s10]]   ;;  %s6524_s22 = smov 2  }
   0x4   :  { %s6624_s17 = sld [smem:[%s8178_s0 + %s6522_s14]]   ;;  %s6525_s26 = smov 4  }
   0x5   :  { %s4932_s21 = sld [smem:[%s8178_s0 + %s6523_s18]]   ;;  %s6526_s30 = smov 6  }
   0x6   :  { %s4933_s25 = sld [smem:[%s8178_s0 + %s6524_s22]]   ;;  %s6528_s4 = smov 8  }
   0x7   :  { %v162_v0 = vld [vmem:[%s6568_s5 + $0x20] sm:$0xff]  ;;  %v163_v1 = vld [vmem:[%s6568_s5 + $0x28] sm:$0xff]  ;;  %v160_v8 = vld [vmem:[%s6568_s5 + $0x10] sm:$0xff]  ;;  %s4935_s29 = sld [smem:[%s8178_s0 + %s6525_s26]]   ;;  %s6533_s24 = smov 11  }
   0x8   :  { %v158_v2 = vld [vmem:[%s6568_s5] sm:$0xff]  ;;  %v300_v3 = vsel %vm287_vm0, %v162_v0, 0.0  ;;  %v159_v5 = vld [vmem:[%s6568_s5 + $0x8] sm:$0xff]  ;;  %v303_v6 = vsel %vm287_vm0, %v163_v1, 0.0  ;;  %v161_v9 = vld [vmem:[%s6568_s5 + $0x18] sm:$0xff]  ;;  %v294_v10 = vsel %vm287_vm0, %v160_v8, 0.0  ;;  %s4937_s3 = sld [smem:[%s8178_s0 + %s6526_s30]]  }
   0x9   :  { %v288_v4 = vsel %vm287_vm0, %v158_v2, 0.0  ;;  %301 = vadd.xlane.f32.xlu0 %v300_v3  ;;  %v291_v7 = vsel %vm287_vm0, %v159_v5, 0.0  ;;  %v297_v11 = vsel %vm287_vm0, %v161_v9, 0.0  ;;  %v169_v42 = vld [vmem:[%s4934_s9 + $0x18] sm:$0xff]  ;;  %v168_v43 = vld [vmem:[%s4934_s9 + $0x10] sm:$0xff]  ;;  %v167_v44 = vld [vmem:[%s4934_s9 + $0x8] sm:$0xff]  ;;  %s4939_s8 = sld [smem:[%s8178_s0 + %s6528_s4]]  }
   0xa   :  { %289 = vadd.xlane.f32.xlu1 %v288_v4  ;;  %6160 = vmatprep.subr.mxu1 %v169_v42  ;;  %v166_v45 = vld [vmem:[%s4934_s9] sm:$0xff]  ;;  %v174_v46 = vld [vmem:[%s6618_s13 + $0x18] sm:$0xff]  ;;  %s6529_s9 = smov 37   ;;  %s4942_s27 = sld [smem:[%s8178_s0 + %s6533_s24]]  }
   0xb   :  { %5546 = vmatprep.subr.mxu0 %v169_v42  ;;  %6164 = vmatpush3.msra.mxu1 %v169_v42  ;;  %v6627_v47 = vld [vmem:[%s6624_s17 + $0x18] sm:$0xff]  ;;  %v4970_v3 = vld [vmem:[%s4932_s21] ss:$0 sm:$0xff]  ;;  %s6874_s12 = sld [smem:[%s8178_s0 + %s6529_s9]]   ;;  %s6534_s28 = smov 12  }
   0xc   :  { %5547 = vmatpush3.msra.mxu0 %v169_v42  ;;  %6161 = vmatprep.subr.mxu1 %v168_v43  ;;  %s4943_s1 = sld [smem:[%s8178_s0 + %s6534_s28]]   ;;  %s6535_s2 = smov 15  }
   0xd   :  { %304 = vadd.xlane.f32.xlu0 %v303_v6  ;;  %5548 = vmatprep.subr.mxu0 %v168_v43  ;;  %s7319_s6 = sld [smem:[%s8178_s0 + %s6535_s2]]   ;;  %s6536_s7 = smov 14  }
   0xe   :  { %292 = vadd.xlane.f32.xlu1 %v291_v7  ;;  %6165 = vmatpush3.msra.mxu1 %v168_v43  ;;  %s4945_s10 = sld [smem:[%s8178_s0 + %s6536_s7]]   ;;  %s6537_s11 = smov 16  }
   0xf   :  { %5549 = vmatpush3.msra.mxu0 %v168_v43  ;;  %6162 = vmatprep.subr.mxu1 %v167_v44  ;;  %v8179_v43 = vmov 0.0   ;;  %s4947_s15 = sld [smem:[%s8178_s0 + %s6537_s11]]   ;;  %s6547_s21 = smov 26  }
  0x10   :  { %5550 = vmatprep.subr.mxu0 %v167_v44  ;;  %6166 = vmatpush3.msra.mxu1 %v167_v44  ;;  %s4957_s24 = sld [smem:[%s8178_s0 + %s6547_s21]]  }
  0x11   :  { %295 = vadd.xlane.f32.xlu0 %v294_v10  ;;  %5551 = vmatpush3.msra.mxu0 %v167_v44 }
  0x12   :  { %298 = vadd.xlane.f32.xlu1 %v297_v11  ;;  %6163 = vmatprep.subr.mxu1 %v166_v45 }
  0x13   :  { %5552 = vmatprep.subr.mxu0 %v166_v45  ;;  %6167 = vmatpush3.msra.mxu1 %v166_v45 }
  0x14   :  { %5553 = vmatpush3.msra.mxu0 %v166_v45  ;;  %5563 = vmatprep.subr.mxu1 %v174_v46 }
  0x15   :  { %5580 = vmatprep.subr.mxu0 %v6627_v47 }
  0x92   :  { %v302_v12 = vpop.xlane.xlu0 %301 }
  0x93   :  { %v290_v13 = vpop.xlane.xlu1 %289  ;;  %v311_v14 = vmul.f32 0.03125, %v302_v12 }
  0x94   :  { %v307_v15 = vmul.f32 0.03125, %v290_v13 }
  0x95   :  { %v6582_v16 = vsub.f32 %v162_v0, %v311_v14 }
  0x96   :  { %v6584_v17 = vsub.f32 %v158_v2, %v307_v15  ;;  %v305_v18 = vpop.xlane.xlu0 %304 }
  0x97   :  { %v293_v19 = vpop.xlane.xlu1 %292  ;;  %v312_v20 = vmul.f32 0.03125, %v305_v18  ;;  %v323_v21 = vmul.f32 %v6582_v16, %v6582_v16 }
  0x98   :  { %v308_v22 = vmul.f32 0.03125, %v293_v19  ;;  %v319_v23 = vmul.f32 %v6584_v17, %v6584_v17 }
  0x99   :  { %v6590_v24 = vsub.f32 %v163_v1, %v312_v20  ;;  %v337_v25 = vsel %vm287_vm0, %v323_v21, 0.0  ;;  %v173_v21 = vld [vmem:[%s6618_s13 + $0x10] sm:$0xff] }
  0x9a   :  { %v6593_v26 = vsub.f32 %v159_v5, %v308_v22  ;;  %338 = vadd.xlane.f32.xlu0 %v337_v25  ;;  %v296_v27 = vpop.xlane.xlu0 %295  ;;  %v325_v28 = vsel %vm287_vm0, %v319_v23, 0.0  ;;  %v4971_v5 = vld [vmem:[%s4933_s25] ss:$0 sm:$0xff]  ;;  %s6548_s25 = smov 29  }
  0x9b   :  { %v299_v29 = vpop.xlane.xlu1 %298  ;;  %v309_v30 = vmul.f32 0.03125, %v296_v27  ;;  %v324_v31 = vmul.f32 %v6590_v24, %v6590_v24  ;;  %s4960_s28 = sld [smem:[%s8178_s0 + %s6548_s25]]  }
  0x9c   :  { %v310_v32 = vmul.f32 0.03125, %v299_v29  ;;  %v320_v33 = vmul.f32 %v6593_v26, %v6593_v26 }
  0x9d   :  { %v6600_v34 = vsub.f32 %v160_v8, %v309_v30  ;;  %v340_v35 = vsel %vm287_vm0, %v324_v31, 0.0  ;;  %v178_v30 = vld [vmem:[%s6624_s17 + $0x10] sm:$0xff] }
  0x9e   :  { %v6603_v36 = vsub.f32 %v161_v9, %v310_v32  ;;  %341 = vadd.xlane.f32.xlu1 %v340_v35  ;;  %326 = vadd.xlane.f32.xlu0 %v325_v28  ;;  %v328_v38 = vsel %vm287_vm0, %v320_v33, 0.0  ;;  %v177_v32 = vld [vmem:[%s6624_s17 + $0x8] sm:$0xff]  ;;  %v176_v33 = vld [vmem:[%s6624_s17] sm:$0xff]  ;;  %s6531_s17 = smov 10  }
  0x9f   :  { %v321_v37 = vmul.f32 %v6600_v34, %v6600_v34  ;;  %s4941_s20 = sld [smem:[%s8178_s0 + %s6531_s17]]   ;;  %s6553_s17 = smov 32  }
  0xa0   :  { %v322_v39 = vmul.f32 %v6603_v36, %v6603_v36 }
  0xa1   :  { %v331_v40 = vsel %vm287_vm0, %v321_v37, 0.0 }
  0xa2   :  { %332 = vadd.xlane.f32.xlu0 %v331_v40  ;;  %329 = vadd.xlane.f32.xlu1 %v328_v38  ;;  %v334_v41 = vsel %vm287_vm0, %v322_v39, 0.0  ;;  %v6679_v40 = vld [vmem:[%s4935_s29] ss:$0 sm:$0xff]  ;;  %s6549_s29 = smov 27  }
  0xa3   :  { %s4958_s2 = sld [smem:[%s8178_s0 + %s6549_s29]]  }
  0xa6   :  { %335 = vadd.xlane.f32.xlu1 %v334_v41 }
 0x123   :  { %v339_v48 = vpop.xlane.xlu0 %338 }
 0x124   :  { %v347_v49 = vmul.f32 0.03125, %v339_v48 }
 0x126   :  { %v353_v50 = vadd.f32 1e-05, %v347_v49 }
 0x127   :  { %v327_v51 = vpop.xlane.xlu0 %326  ;;  %v342_v52 = vpop.xlane.xlu1 %341 }
 0x128   :  { %6208 = vrsqrt.f32 %v353_v50  ;;  %v343_v53 = vmul.f32 0.03125, %v327_v51  ;;  %v348_v54 = vmul.f32 0.03125, %v342_v52 }
 0x12a   :  { %v349_v55 = vadd.f32 1e-05, %v343_v53  ;;  %v354_v56 = vadd.f32 1e-05, %v348_v54 }
 0x12b   :  { %v333_v57 = vpop.xlane.xlu0 %332  ;;  %v330_v58 = vpop.xlane.xlu1 %329 }
 0x12c   :  { %6210 = vrsqrt.f32 %v349_v55  ;;  %v345_v59 = vmul.f32 0.03125, %v333_v57  ;;  %v344_v60 = vmul.f32 0.03125, %v330_v58  ;;  %v4979_v55 = vld [vmem:[%s4937_s3] ss:$0 sm:$0xff]  ;;  %s6550_s3 = smov 28  }
 0x12d   :  { %6212 = vrsqrt.f32 %v354_v56  ;;  %s4959_s7 = sld [smem:[%s8178_s0 + %s6550_s3]]  }
 0x12e   :  { %v351_v61 = vadd.f32 1e-05, %v345_v59  ;;  %v350_v62 = vadd.f32 1e-05, %v344_v60 }
 0x12f   :  { %v336_v63 = vpop.xlane.xlu1 %335 }
 0x130   :  { %6214 = vrsqrt.f32 %v351_v61  ;;  %v346_v0 = vmul.f32 0.03125, %v336_v63 }
 0x131   :  { %6216 = vrsqrt.f32 %v350_v62 }
 0x132   :  { %v352_v1 = vadd.f32 1e-05, %v346_v0 }
 0x134   :  { %6218 = vrsqrt.f32 %v352_v1 }
 0x135   :  { %v6209_v2 = vpop.eup %6208 }
 0x136   :  { %v365_v4 = vmul.f32 %v6209_v2, %v6582_v16 }
 0x138   :  { %v377_v6 = vmul.f32 %v4970_v3, %v365_v4 }
 0x139   :  { %v6211_v7 = vpop.eup %6210 }
 0x13a   :  { %v6213_v8 = vpop.eup %6212  ;;  %v389_v9 = vadd.f32 %v4971_v5, %v377_v6  ;;  %v361_v10 = vmul.f32 %v6211_v7, %v6584_v17  ;;  %v6758_v6 = vld [vmem:[%s4939_s8] ss:$0 sm:$0xff]  ;;  %s6551_s8 = smov 31  }
 0x13b   :  { %v366_v11 = vmul.f32 %v6213_v8, %v6590_v24  ;;  %v172_v24 = vld [vmem:[%s6618_s13 + $0x8] sm:$0xff]  ;;  %s8070_s11 = sld [smem:[%s8178_s0 + %s6551_s8]]  }
 0x13c   :  { %5560 = vmatprep.mubr.msk.f32.mxu1 %vm287_vm0, %v389_v9  ;;  %v373_v12 = vmul.f32 %v4970_v3, %v361_v10 }
 0x13d   :  { %v6215_v13 = vpop.eup %6214  ;;  %v378_v14 = vmul.f32 %v4970_v3, %v366_v11 }
 0x13e   :  { %v6217_v15 = vpop.eup %6216  ;;  %v385_v18 = vadd.f32 %v4971_v5, %v373_v12  ;;  %v363_v16 = vmul.f32 %v6215_v13, %v6600_v34  ;;  %v269_v34 = vlaneseq }
 0x13f   :  { %v390_v19 = vadd.f32 %v4971_v5, %v378_v14  ;;  %v362_v20 = vmul.f32 %v6217_v15, %v6593_v26  ;;  %v171_v26 = vld [vmem:[%s6618_s13] sm:$0xff]  ;;  %s6530_s13 = smov 9  }
 0x140   :  { %5554 = vmatprep.mubr.msk.f32.mxu0 %vm287_vm0, %v385_v18  ;;  %v375_v17 = vmul.f32 %v4970_v3, %v363_v16  ;;  %v6670_v35 = vand.u32 127, %v269_v34  ;;  %s7200_s16 = sld [smem:[%s8178_s0 + %s6530_s13]]   ;;  %s6552_s13 = smov 30  }
 0x141   :  { %v6219_v22 = vpop.eup %6218  ;;  %5561 = vmatmul.mubr.msk.f32.vlgmr.msra.gmra.mxu1 %vm287_vm0, %v390_v19  ;;  %v374_v23 = vmul.f32 %v4970_v3, %v362_v20 }
 0x142   :  { %5564 = vmatpush3.msra.mxu1 %v174_v46  ;;  %5571 = vmatprep.mubr.msk.f32.mxu1 %vm287_vm0, %v385_v18  ;;  %v387_v25 = vadd.f32 %v4971_v5, %v375_v17  ;;  %v364_v27 = vmul.f32 %v6219_v22, %v6603_v36  ;;  %vm275_vm1 = vcmp.ge.s32.totalorder %v6670_v35, 8  ;;  %vm276_vm2 = vcmp.lt.s32.totalorder %v6670_v35, 16 }
 0x143   :  { %5565 = vmatprep.subr.mxu1 %v173_v21  ;;  %v386_v28 = vadd.f32 %v4971_v5, %v374_v23  ;;  %vm272_vm3 = vcmp.lt.s32.totalorder %v6670_v35, 8  ;;  %vm277_vm4 = vmand %vm275_vm1, %vm276_vm2  ;;  %vm279_vm5 = vcmp.ge.s32.totalorder %v6670_v35, 16  ;;  %vm280_vm6 = vcmp.lt.s32.totalorder %v6670_v35, 24 }
 0x144   :  { %5566 = vmatpush3.msra.mxu1 %v173_v21  ;;  %v376_v29 = vmul.f32 %v4970_v3, %v364_v27  ;;  %v6688_v44 = vsel %vm272_vm3, 1.0, %v8179_v43  ;;  %v6691_v45 = vsel %vm277_vm4, 1.0, %v8179_v43  ;;  %vm281_vm7 = vmand %vm279_vm5, %vm280_vm6  ;;  %vm283_vm9 = vcmp.ge.s32.totalorder %v6670_v35, 24 }
 0x145   :  { %5567 = vmatprep.subr.mxu1 %v172_v24  ;;  %5555 = vmatmul.mubr.msk.f32.vlgmr.msra.gmra.mxu0 %vm287_vm0, %v386_v28  ;;  %vm284_vm10 = vcmp.lt.s32.totalorder %v6670_v35, 32 }
 0x146   :  { %5568 = vmatpush3.msra.mxu1 %v172_v24  ;;  %5557 = vmatprep.mubr.msk.f32.mxu0 %vm287_vm0, %v387_v25  ;;  %v388_v31 = vadd.f32 %v4971_v5, %v376_v29  ;;  %vm285_vm11 = vmand %vm283_vm9, %vm284_vm10 }
 0x147   :  { %5569 = vmatprep.subr.mxu1 %v171_v26  ;;  %5581 = vmatpush3.msra.mxu0 %v6627_v47 }
 0x148   :  { %5570 = vmatpush3.msra.mxu1 %v171_v26  ;;  %5582 = vmatprep.subr.mxu0 %v178_v30 }
 0x149   :  { %5572 = vmatmul.mubr.msk.f32.vlgmr.msra.gmra.mxu1 %vm287_vm0, %v386_v28  ;;  %5583 = vmatpush3.msra.mxu0 %v178_v30 }
 0x14a   :  { %5558 = vmatmul.mubr.msk.f32.gmra.mxu0 %vm287_vm0, %v388_v31  ;;  %5574 = vmatprep.mubr.msk.f32.mxu1 %vm287_vm0, %v387_v25 }
 0x14b   :  { %5584 = vmatprep.subr.mxu0 %v177_v32  ;;  %5588 = vmatprep.mubr.msk.f32.mxu0 %vm287_vm0, %v385_v18 }
 0x14c   :  { %5585 = vmatpush3.msra.mxu0 %v177_v32 }
 0x14d   :  { %5586 = vmatprep.subr.mxu0 %v176_v33  ;;  %5575 = vmatmul.mubr.msk.f32.gmra.mxu1 %vm287_vm0, %v388_v31 }
 0x14e   :  { %5587 = vmatpush3.msra.mxu0 %v176_v33  ;;  %5577 = vmatprep.mubr.msk.f32.mxu1 %vm287_vm0, %v389_v9 }
 0x14f   :  { %5589 = vmatmul.mubr.msk.f32.vlgmr.msra.gmra.mxu0 %vm287_vm0, %v386_v28 }
 0x150   :  { %5591 = vmatprep.mubr.msk.f32.mxu0 %vm287_vm0, %v387_v25 }
 0x151   :  { %5578 = vmatmul.mubr.msk.f32.gmra.mxu1 %vm287_vm0, %v390_v19 }
 0x153   :  { %5592 = vmatmul.mubr.msk.f32.gmra.mxu0 %vm287_vm0, %v388_v31 }
 0x154   :  { %5594 = vmatprep.mubr.msk.f32.mxu0 %vm287_vm0, %v389_v9 }
 0x157   :  { %5595 = vmatmul.mubr.msk.f32.gmra.mxu0 %vm287_vm0, %v390_v19 }
 0x201   :  { %v6672_v36 = vpop.f32.mrf.mxu1 }
 0x202   :  { %v6805_v25 = vadd.f32 %v6672_v36, %v6679_v40 }
 0x203   :  { %v6676_v38 = vpop.f32.mrf.mxu1 }
 0x204   :  { %v6786_v15 = vadd.f32 %v6679_v40, %v6676_v38 }
 0x205   :  { %v5556_v37 = vpop.f32.mrf.mxu0 }
 0x206   :  { %v6749_v4 = vadd.f32 %v5556_v37, %v6679_v40  ;;  %v716_v28 = vmul.f32 %v6786_v15, %v6688_v44  ;;  %v932_v30 = vmul.f32 %v6786_v15, %v6691_v45 }
 0x207   :  { %v481_v39 = vpop.f32.mrf.mxu0 }
 0x208   :  { %v6682_v41 = vadd.f32 %v6679_v40, %v481_v39  ;;  %v713_v9 = vmul.f32 %v6749_v4, %v6688_v44  ;;  %v929_v10 = vmul.f32 %v6749_v4, %v6691_v45  ;;  %v722_v37 = vmul.f32 0.35355338, %v716_v28 }
 0x209   :  { %v5573_v42 = vpop.f32.mrf.mxu1  ;;  %v938_v38 = vmul.f32 0.35355338, %v932_v30  ;;  %v717_v39 = vmul.f32 %v6805_v25, %v6688_v44 }
 0x20a   :  { %v5559_v46 = vpop.f32.mrf.mxu0  ;;  %v712_v48 = vmul.f32 %v6682_v41, %v6688_v44  ;;  %v928_v49 = vmul.f32 %v6682_v41, %v6691_v45  ;;  %v6742_v2 = vadd.f32 %v5573_v42, %v4979_v55  ;;  %v719_v20 = vmul.f32 0.35355338, %v713_v9  ;;  %v6886_v9 = vld [vmem:[%s6874_s12 + $0x18] sm:$0xff] }
 0x20b   :  { %v582_v47 = vpop.f32.mrf.mxu1  ;;  %v6778_v12 = vadd.f32 %v5559_v46, %v6679_v40  ;;  %v935_v21 = vmul.f32 0.35355338, %v929_v10 }
 0x20c   :  { %v491_v50 = vpop.f32.mrf.mxu0  ;;  %v718_v52 = vmul.f32 0.35355338, %v712_v48  ;;  %v934_v53 = vmul.f32 0.35355338, %v928_v49  ;;  %v6760_v7 = vadd.f32 %v4979_v55, %v582_v47  ;;  %v723_v49 = vmul.f32 0.35355338, %v717_v39 }
 0x20d   :  { %v5576_v51 = vpop.f32.mrf.mxu1  ;;  %v6756_v5 = vadd.f32 %v6679_v40, %v491_v50  ;;  %v715_v23 = vmul.f32 %v6778_v12, %v6688_v44  ;;  %v931_v24 = vmul.f32 %v6778_v12, %v6691_v45  ;;  %v933_v40 = vmul.f32 %v6805_v25, %v6691_v45 }
 0x20e   :  { %5609 = vmatprep.mubr.msk.f32.mxu1 %vm287_vm0, %v718_v52  ;;  %5630 = vmatprep.mubr.msk.f32.mxu0 %vm287_vm0, %v934_v53  ;;  %v6719_v62 = vadd.f32 %v5576_v51, %v4979_v55 }
 0x20f   :  { %v592_v54 = vpop.f32.mrf.mxu1  ;;  %v6699_v56 = vpop.f32.mrf.mxu0  ;;  %v714_v13 = vmul.f32 %v6756_v5, %v6688_v44  ;;  %v930_v14 = vmul.f32 %v6756_v5, %v6691_v45  ;;  %v721_v32 = vmul.f32 0.35355338, %v715_v23  ;;  %v937_v33 = vmul.f32 0.35355338, %v931_v24  ;;  %v6900_v23 = vld [vmem:[%s6874_s12 + $0x20] sm:$0xff] }
 0x210   :  { %v6732_v0 = vadd.f32 %v4979_v55, %v592_v54  ;;  %v6837_v42 = vadd.f32 %v6699_v56, %v6758_v6  ;;  %v939_v50 = vmul.f32 0.35355338, %v933_v40 }
 0x211   :  { %v5579_v57 = vpop.f32.mrf.mxu1  ;;  %v6709_v61 = vpop.f32.mrf.mxu0  ;;  %v720_v17 = vmul.f32 0.35355338, %v714_v13  ;;  %v936_v22 = vmul.f32 0.35355338, %v930_v14  ;;  %v6890_v13 = vld [vmem:[%s6874_s12 + $0x10] sm:$0xff] }
 0x212   :  { %v6701_v58 = vadd.f32 %v5579_v57, %v4979_v55  ;;  %v6849_v48 = vadd.f32 %v6758_v6, %v6709_v61  ;;  %v1120_v51 = vmul.f32 %v6837_v42, %v6691_v45  ;;  %v923_v52 = vmul.f32 %v6837_v42, %v6688_v44  ;;  %v6877_v57 = vld [vmem:[%s6874_s12 + $0x8] sm:$0xff]  ;;  %v6880_v61 = vld [vmem:[%s6874_s12] sm:$0xff] }
 0x213   :  { %v602_v59 = vpop.f32.mrf.mxu1  ;;  %v5593_v63 = vpop.f32.mrf.mxu0 }
 0x214   :  { %v6703_v60 = vadd.f32 %v4979_v55, %v602_v59  ;;  %5597 = vmatprep.subr.msk.mxu1 %vm287_vm0, %v6701_v58  ;;  %5618 = vmatprep.subr.msk.mxu0 %vm287_vm0, %v6701_v58  ;;  %v6808_v27 = vadd.f32 %v5593_v63, %v6758_v6  ;;  %v1119_v53 = vmul.f32 %v6849_v48, %v6691_v45  ;;  %v6862_v55 = vsel %vm281_vm7, 1.0, %v8179_v43 }
 0x215   :  { %5598 = vmatpush3.xpose.msk.msra.mxu1 %vm287_vm0, %v6701_v58  ;;  %5619 = vmatpush3.xpose.msk.msra.mxu0 %vm287_vm0, %v6701_v58  ;;  %v693_v1 = vpop.f32.mrf.mxu0  ;;  %v922_v54 = vmul.f32 %v6849_v48, %v6688_v44  ;;  %v1353_v35 = vmul.f32 %v6756_v5, %v6862_v55 }
 0x216   :  { %5599 = vmatprep.subr.msk.mxu1 %vm287_vm0, %v6703_v60  ;;  %5620 = vmatprep.subr.msk.mxu0 %vm287_vm0, %v6703_v60  ;;  %v6823_v31 = vadd.f32 %v6758_v6, %v693_v1  ;;  %v1122_v34 = vmul.f32 %v6808_v27, %v6691_v45  ;;  %v925_v36 = vmul.f32 %v6808_v27, %v6688_v44 }
 0x217   :  { %v5596_v3 = vpop.f32.mrf.mxu0 }
 0x218   :  { %v6763_v8 = vadd.f32 %v5596_v3, %v6758_v6  ;;  %v1121_v46 = vmul.f32 %v6823_v31, %v6691_v45  ;;  %v924_v47 = vmul.f32 %v6823_v31, %v6688_v44 }
 0x219   :  { %5600 = vmatpush3.xpose.msk.msra.mxu1 %vm287_vm0, %v6703_v60  ;;  %5621 = vmatpush3.xpose.msk.msra.mxu0 %vm287_vm0, %v6703_v60  ;;  %v703_v11 = vpop.f32.mrf.mxu0 }
 0x21a   :  { %5601 = vmatprep.subr.msk.mxu1 %vm287_vm0, %v6719_v62  ;;  %5622 = vmatprep.subr.msk.mxu0 %vm287_vm0, %v6719_v62  ;;  %v1124_v18 = vmul.f32 %v6763_v8, %v6691_v45  ;;  %v927_v16 = vmul.f32 %v6763_v8, %v6688_v44  ;;  %v6793_v19 = vadd.f32 %v6758_v6, %v703_v11 }
 0x21b   :  { %v6866_v56 = vmul.f32 %v6763_v8, %v6862_v55 }
 0x21c   :  { %v1123_v26 = vmul.f32 %v6793_v19, %v6691_v45  ;;  %v926_v29 = vmul.f32 %v6793_v19, %v6688_v44 }
 0x21d   :  { %5602 = vmatpush3.xpose.msk.msra.mxu1 %vm287_vm0, %v6719_v62  ;;  %5623 = vmatpush3.xpose.msk.msra.mxu0 %vm287_vm0, %v6719_v62 }
 0x21e   :  { %5603 = vmatprep.subr.msk.mxu1 %vm287_vm0, %v6732_v0  ;;  %5624 = vmatprep.subr.msk.mxu0 %vm287_vm0, %v6732_v0 }
 0x221   :  { %5604 = vmatpush3.xpose.msk.msra.mxu1 %vm287_vm0, %v6732_v0  ;;  %5625 = vmatpush3.xpose.msk.msra.mxu0 %vm287_vm0, %v6732_v0 }
 0x222   :  { %5605 = vmatprep.subr.msk.mxu1 %vm287_vm0, %v6742_v2  ;;  %5626 = vmatprep.subr.msk.mxu0 %vm287_vm0, %v6742_v2 }
 0x225   :  { %5606 = vmatpush3.xpose.msk.msra.mxu1 %vm287_vm0, %v6742_v2  ;;  %5627 = vmatpush3.xpose.msk.msra.mxu0 %vm287_vm0, %v6742_v2 }
 0x226   :  { %5607 = vmatprep.subr.msk.mxu1 %vm287_vm0, %v6760_v7  ;;  %5628 = vmatprep.subr.msk.mxu0 %vm287_vm0, %v6760_v7 }
 0x229   :  { %5608 = vmatpush3.xpose.msk.msra.mxu1 %vm287_vm0, %v6760_v7  ;;  %5629 = vmatpush3.xpose.msk.msra.mxu0 %vm287_vm0, %v6760_v7 }
 0x22a   :  { %5639 = vmatprep.subr.mxu1 %v1124_v18  ;;  %5660 = vmatprep.subr.mxu0 %v927_v16 }
 0x22c   :  { %5610 = vmatmul.mubr.msk.f32.vlgmr.msra.gmra.mxu1 %vm287_vm0, %v719_v20  ;;  %5631 = vmatmul.mubr.msk.f32.vlgmr.msra.gmra.mxu0 %vm287_vm0, %v935_v21  ;;  %v6896_v21 = vld [vmem:[%s6874_s12 + $0x28] sm:$0xff] }
 0x22d   :  { %5612 = vmatprep.mubr.msk.f32.mxu1 %vm287_vm0, %v720_v17  ;;  %5633 = vmatprep.mubr.msk.f32.mxu0 %vm287_vm0, %v936_v22 }
 0x22e   :  { %5640 = vmatpush3.msra.mxu1 %v1124_v18  ;;  %5661 = vmatpush3.msra.mxu0 %v927_v16 }
 0x22f   :  { %5641 = vmatprep.subr.mxu1 %v1123_v26  ;;  %5662 = vmatprep.subr.mxu0 %v926_v29 }
 0x230   :  { %5642 = vmatpush3.msra.mxu1 %v1123_v26  ;;  %5663 = vmatpush3.msra.mxu0 %v926_v29 }
 0x231   :  { %5613 = vmatmul.mubr.msk.f32.gmra.mxu1 %vm287_vm0, %v721_v32  ;;  %5634 = vmatmul.mubr.msk.f32.gmra.mxu0 %vm287_vm0, %v937_v33 }
 0x232   :  { %5643 = vmatprep.subr.mxu1 %v1122_v34  ;;  %5664 = vmatprep.subr.mxu0 %v925_v36 }
 0x233   :  { %5615 = vmatprep.mubr.msk.f32.mxu1 %vm287_vm0, %v722_v37  ;;  %5636 = vmatprep.mubr.msk.f32.mxu0 %vm287_vm0, %v938_v38 }
 0x234   :  { %5644 = vmatpush3.msra.mxu1 %v1122_v34  ;;  %5665 = vmatpush3.msra.mxu0 %v925_v36 }
 0x235   :  { %5645 = vmatprep.subr.mxu1 %v1121_v46  ;;  %5666 = vmatprep.subr.mxu0 %v924_v47 }
 0x236   :  { %5646 = vmatpush3.msra.mxu1 %v1121_v46  ;;  %5667 = vmatpush3.msra.mxu0 %v924_v47 }
 0x237   :  { %5616 = vmatmul.mubr.msk.f32.gmra.mxu1 %vm287_vm0, %v723_v49  ;;  %5637 = vmatmul.mubr.msk.f32.gmra.mxu0 %vm287_vm0, %v939_v50 }
 0x238   :  { %5647 = vmatprep.subr.mxu1 %v1120_v51  ;;  %5668 = vmatprep.subr.mxu0 %v923_v52 }
 0x239   :  { %5648 = vmatpush3.msra.mxu1 %v1120_v51  ;;  %5669 = vmatpush3.msra.mxu0 %v923_v52 }
 0x23a   :  { %5649 = vmatprep.subr.mxu1 %v1119_v53  ;;  %5670 = vmatprep.subr.mxu0 %v922_v54 }
 0x23b   :  { %5650 = vmatpush3.msra.mxu1 %v1119_v53  ;;  %5671 = vmatpush3.msra.mxu0 %v922_v54 }
 0x23c   :  { %5681 = vmatprep.subr.msk.mxu1 %vm287_vm0, %v6701_v58  ;;  %5702 = vmatprep.subr.mxu0 %v6866_v56 }
 0x2ec   :  { %v5632_v59 = vpop.f32.mrf.mxu0 }
 0x2ed   :  { %v1030_v63 = vadd.f32 %v5632_v59, %v6877_v57 }
 0x2ee   :  { %v1024_v1 = vpop.f32.mrf.mxu0 }
 0x2ef   :  { %v1025_v3 = vadd.f32 %v1024_v1, %v6880_v61  ;;  %v1056_v6 = vsel %vm855_vm8, %v1030_v63, -inf  ;;  %v5611_v1 = vpop.f32.mrf.mxu1 }
 0x2f0   :  { %1057 = vmax.xlane.f32.xlu1 %v1056_v6 }
 0x2f1   :  { %v5635_v10 = vpop.f32.mrf.mxu0  ;;  %v1053_v11 = vsel %vm855_vm8, %v1025_v3, -inf }
 0x2f2   :  { %v1040_v14 = vadd.f32 %v5635_v10, %v6886_v9  ;;  %1054 = vmax.xlane.f32.xlu0 %v1053_v11  ;;  %v826_v11 = vpop.f32.mrf.mxu1 }
 0x2f3   :  { %v1034_v18 = vpop.f32.mrf.mxu0 }
 0x2f4   :  { %v1035_v16 = vadd.f32 %v1034_v18, %v6890_v13  ;;  %v1062_v20 = vsel %vm855_vm8, %v1040_v14, -inf }
 0x2f5   :  { %1063 = vmax.xlane.f32.xlu1 %v1062_v20 }
 0x2f6   :  { %v1059_v17 = vsel %vm855_vm8, %v1035_v16, -inf }
 0x2f7   :  { %v5638_v22 = vpop.f32.mrf.mxu0  ;;  %1060 = vmax.xlane.f32.xlu0 %v1059_v17  ;;  %v5614_v17 = vpop.f32.mrf.mxu1 }
 0x2f8   :  { %v1050_v24 = vadd.f32 %v5638_v22, %v6896_v21 }
 0x2f9   :  { %v1044_v28 = vpop.f32.mrf.mxu0 }
 0x2fa   :  { %v1045_v26 = vadd.f32 %v1044_v28, %v6900_v23  ;;  %v1068_v29 = vsel %vm855_vm8, %v1050_v24, -inf  ;;  %v836_v28 = vpop.f32.mrf.mxu1 }
 0x2fb   :  { %1069 = vmax.xlane.f32.xlu1 %v1068_v29 }
 0x2fc   :  { %v1065_v30 = vsel %vm855_vm8, %v1045_v26, -inf }
 0x2fd   :  { %1066 = vmax.xlane.f32.xlu0 %v1065_v30 }
 0x379   :  { %v1058_v32 = vpop.xlane.xlu1 %1057 }
 0x37a   :  { %v1072_v33 = vsub.f32 %v1030_v63, %v1058_v32  ;;  %v6915_v32 = vadd.f32 %v826_v11, %v6880_v61 }
 0x37b   :  { %v1055_v34 = vpop.xlane.xlu0 %1054 }
 0x37c   :  { %v1079_v36 = vmul.f32 1.442695, %v1072_v33  ;;  %v1071_v37 = vsub.f32 %v1025_v3, %v1055_v34  ;;  %v5617_v34 = vpop.f32.mrf.mxu1 }
 0x37e   :  { %6220 = vpow2.f32 %v1079_v36  ;;  %v1077_v38 = vmul.f32 1.442695, %v1071_v37  ;;  %v1064_v39 = vpop.xlane.xlu1 %1063  ;;  %v6919_v36 = vadd.f32 %v5614_v17, %v6886_v9 }
 0x37f   :  { %v1074_v40 = vsub.f32 %v1040_v14, %v1064_v39  ;;  %v856_v39 = vsel %vm855_vm8, %v6915_v32, -inf }
 0x380   :  { %6222 = vpow2.f32 %v1077_v38  ;;  %v1061_v46 = vpop.xlane.xlu0 %1060  ;;  %v6924_v38 = vadd.f32 %v836_v28, %v6890_v13 }
 0x381   :  { %v1083_v47 = vmul.f32 1.442695, %v1074_v40  ;;  %v1073_v49 = vsub.f32 %v1035_v16, %v1061_v46  ;;  %v846_v40 = vpop.f32.mrf.mxu1  ;;  %v6929_v46 = vadd.f32 %v5617_v34, %v6896_v21 }
 0x383   :  { %6224 = vpow2.f32 %v1083_v47  ;;  %v1081_v50 = vmul.f32 1.442695, %v1073_v49  ;;  %v865_v47 = vsel %vm855_vm8, %v6919_v36, -inf  ;;  %v6934_v49 = vadd.f32 %v846_v40, %v6900_v23 }
 0x384   :  { %v1070_v51 = vpop.xlane.xlu1 %1069 }
 0x385   :  { %6226 = vpow2.f32 %v1081_v50  ;;  %v1076_v52 = vsub.f32 %v1050_v24, %v1070_v51  ;;  %v862_v50 = vsel %vm855_vm8, %v6924_v38, -inf  ;;  %v871_v51 = vsel %vm855_vm8, %v6929_v46, -inf }
 0x386   :  { %v1067_v53 = vpop.xlane.xlu0 %1066 }
 0x387   :  { %v1087_v54 = vmul.f32 1.442695, %v1076_v52  ;;  %v1075_v59 = vsub.f32 %v1045_v26, %v1067_v53  ;;  %v6911_v26 = vadd.f32 %v5611_v1, %v6877_v57  ;;  %v868_v52 = vsel %vm855_vm8, %v6934_v49, -inf }
 0x389   :  { %6228 = vpow2.f32 %v1087_v54  ;;  %v1085_v63 = vmul.f32 1.442695, %v1075_v59  ;;  %v859_v37 = vsel %vm855_vm8, %v6911_v26, -inf }
 0x38b   :  { %v6221_v3 = vpop.eup %6220  ;;  %6230 = vpow2.f32 %v1085_v63 }
 0x38c   :  { %v1092_v6 = vsel %vm855_vm8, %v6221_v3, 0.0 }
 0x38d   :  { %v6223_v10 = vpop.eup %6222  ;;  %1093 = vadd.xlane.f32.xlu1 %v1092_v6 }
 0x38e   :  { %v1089_v14 = vsel %vm855_vm8, %v6223_v10, 0.0 }
 0x38f   :  { %1090 = vadd.xlane.f32.xlu0 %v1089_v14 }
 0x390   :  { %v6225_v18 = vpop.eup %6224 }
 0x391   :  { %v1098_v16 = vsel %vm855_vm8, %v6225_v18, 0.0 }
 0x392   :  { %v6227_v20 = vpop.eup %6226  ;;  %1099 = vadd.xlane.f32.xlu1 %v1098_v16 }
 0x393   :  { %v1095_v22 = vsel %vm855_vm8, %v6227_v20, 0.0 }
 0x394   :  { %1096 = vadd.xlane.f32.xlu0 %v1095_v22 }
 0x396   :  { %v6229_v24 = vpop.eup %6228 }
 0x397   :  { %v1104_v29 = vsel %vm855_vm8, %v6229_v24, 0.0 }
 0x398   :  { %v6231_v30 = vpop.eup %6230  ;;  %1105 = vadd.xlane.f32.xlu1 %v1104_v29 }
 0x399   :  { %v1101_v33 = vsel %vm855_vm8, %v6231_v30, 0.0 }
 0x39a   :  { %1102 = vadd.xlane.f32.xlu0 %v1101_v33 }
 0x39c   :  { %860 = vmax.xlane.f32.xlu1 %v859_v37 }
 0x39e   :  { %857 = vmax.xlane.f32.xlu0 %v856_v39 }
 0x3a0   :  { %866 = vmax.xlane.f32.xlu1 %v865_v47  ;;  %v1354_v47 = vmul.f32 %v6778_v12, %v6862_v55 }
 0x3a2   :  { %863 = vmax.xlane.f32.xlu0 %v862_v50  ;;  %v1359_v50 = vmul.f32 0.35355338, %v1353_v35 }
 0x3a4   :  { %872 = vmax.xlane.f32.xlu1 %v871_v51  ;;  %v1355_v51 = vmul.f32 %v6786_v15, %v6862_v55 }
 0x3a6   :  { %869 = vmax.xlane.f32.xlu0 %v868_v52 }
 0x416   :  { %v1094_v53 = vpop.xlane.xlu1 %1093 }
 0x417   :  { %6232 = vrcp.f32 %v1094_v53 }
 0x418   :  { %v1091_v54 = vpop.xlane.xlu0 %1090 }
 0x419   :  { %6234 = vrcp.f32 %v1091_v54  ;;  %v1356_v54 = vmul.f32 %v6805_v25, %v6862_v55 }
 0x41b   :  { %v1100_v59 = vpop.xlane.xlu1 %1099 }
 0x41c   :  { %6236 = vrcp.f32 %v1100_v59  ;;  %v1361_v59 = vmul.f32 0.35355338, %v1355_v51 }
 0x41d   :  { %v1097_v63 = vpop.xlane.xlu0 %1096 }
 0x41e   :  { %6238 = vrcp.f32 %v1097_v63 }
 0x421   :  { %v1106_v1 = vpop.xlane.xlu1 %1105 }
 0x422   :  { %6240 = vrcp.f32 %v1106_v1  ;;  %v1362_v1 = vmul.f32 0.35355338, %v1356_v54 }
 0x423   :  { %v1103_v6 = vpop.xlane.xlu0 %1102 }
 0x424   :  { %6242 = vrcp.f32 %v1103_v6  ;;  %v6233_v11 = vpop.eup %6232 }
 0x425   :  { %v1114_v17 = vmul.f32 %v6233_v11, %v6221_v3  ;;  %v1351_v3 = vmul.f32 %v6682_v41, %v6862_v55 }
 0x426   :  { %v6235_v14 = vpop.eup %6234 }
 0x427   :  { %v1113_v16 = vmul.f32 %v6235_v14, %v6223_v10 }
 0x429   :  { %5651 = vmatprep.mubr.msk.f32.mxu1 %vm855_vm8, %v1113_v16  ;;  %v6237_v22 = vpop.eup %6236 }
 0x42a   :  { %5652 = vmatmul.mubr.msk.f32.vlgmr.msra.gmra.mxu1 %vm855_vm8, %v1114_v17  ;;  %v1116_v33 = vmul.f32 %v6237_v22, %v6225_v18  ;;  %v1357_v18 = vmul.f32 0.35355338, %v1351_v3  ;;  %v861_v17 = vpop.xlane.xlu1 %860  ;;  %v858_v22 = vpop.xlane.xlu0 %857 }
 0x42b   :  { %v6239_v28 = vpop.eup %6238  ;;  %5682 = vmatpush3.xpose.msk.msra.mxu1 %vm287_vm0, %v6701_v58 }
 0x42c   :  { %5683 = vmatprep.subr.msk.mxu1 %vm287_vm0, %v6703_v60  ;;  %v1115_v29 = vmul.f32 %v6239_v28, %v6227_v20  ;;  %v1352_v20 = vmul.f32 %v6749_v4, %v6862_v55 }
 0x42e   :  { %5654 = vmatprep.mubr.msk.f32.mxu1 %vm855_vm8, %v1115_v29  ;;  %v1358_v40 = vmul.f32 0.35355338, %v1352_v20  ;;  %v867_v29 = vpop.xlane.xlu1 %866  ;;  %v864_v3 = vpop.xlane.xlu0 %863 }
 0x42f   :  { %5655 = vmatmul.mubr.msk.f32.gmra.mxu1 %vm855_vm8, %v1116_v33  ;;  %v6241_v10 = vpop.eup %6240 }
 0x430   :  { %5684 = vmatpush3.xpose.msk.msra.mxu1 %vm287_vm0, %v6703_v60  ;;  %v1118_v39 = vmul.f32 %v6241_v10, %v6229_v24  ;;  %v6976_v24 = vsel %vm285_vm11, 1.0, %v8179_v43  ;;  %v875_v10 = vsub.f32 %v6911_v26, %v861_v17 }
 0x431   :  { %v6243_v34 = vpop.eup %6242  ;;  %5685 = vmatprep.subr.msk.mxu1 %vm287_vm0, %v6719_v62  ;;  %v1862_v52 = vmul.f32 %v6793_v19, %v6976_v24  ;;  %v1861_v53 = vmul.f32 %v6808_v27, %v6976_v24  ;;  %v1860_v63 = vmul.f32 %v6823_v31, %v6976_v24  ;;  %v1859_v6 = vmul.f32 %v6837_v42, %v6976_v24 }
 0x432   :  { %v1117_v37 = vmul.f32 %v6243_v34, %v6231_v30  ;;  %v1863_v30 = vmul.f32 %v6763_v8, %v6976_v24  ;;  %v1360_v8 = vmul.f32 0.35355338, %v1354_v47  ;;  %v1858_v11 = vmul.f32 %v6849_v48, %v6976_v24  ;;  %v873_v20 = vpop.xlane.xlu1 %872 }
 0x433   :  { %v874_v34 = vsub.f32 %v6915_v32, %v858_v22  ;;  %v879_v51 = vsub.f32 %v6929_v46, %v873_v20 }
 0x434   :  { %5657 = vmatprep.mubr.msk.f32.mxu1 %vm855_vm8, %v1117_v37  ;;  %5686 = vmatpush3.xpose.msk.msra.mxu1 %vm287_vm0, %v6719_v62 }
 0x435   :  { %5658 = vmatmul.mubr.msk.f32.gmra.mxu1 %vm855_vm8, %v1118_v39  ;;  %5687 = vmatprep.subr.msk.mxu1 %vm287_vm0, %v6732_v0  ;;  %v882_v39 = vmul.f32 1.442695, %v875_v10  ;;  %v880_v35 = vmul.f32 1.442695, %v874_v34 }
 0x436   :  { %5693 = vmatprep.mubr.msk.f32.mxu1 %vm287_vm0, %v1357_v18  ;;  %v877_v18 = vsub.f32 %v6919_v36, %v867_v29  ;;  %v890_v36 = vmul.f32 1.442695, %v879_v51 }
 0x437   :  { %6244 = vpow2.f32 %v882_v39 }
 0x438   :  { %5688 = vmatpush3.xpose.msk.msra.mxu1 %vm287_vm0, %v6732_v0  ;;  %6246 = vpow2.f32 %v880_v35 }
 0x439   :  { %5689 = vmatprep.subr.msk.mxu1 %vm287_vm0, %v6742_v2 }
 0x43c   :  { %5690 = vmatpush3.xpose.msk.msra.mxu1 %vm287_vm0, %v6742_v2 }
 0x43d   :  { %5691 = vmatprep.subr.msk.mxu1 %vm287_vm0, %v6760_v7 }
 0x440   :  { %5692 = vmatpush3.xpose.msk.msra.mxu1 %vm287_vm0, %v6760_v7 }
 0x441   :  { %5744 = vmatprep.subr.mxu1 %v1863_v30 }
 0x443   :  { %5694 = vmatmul.mubr.msk.f32.vlgmr.msra.gmra.mxu1 %vm287_vm0, %v1358_v40  ;;  %v870_v40 = vpop.xlane.xlu0 %869 }
 0x444   :  { %5696 = vmatprep.mubr.msk.f32.mxu1 %vm287_vm0, %v1359_v50  ;;  %5745 = vmatpush3.msra.mxu1 %v1863_v30  ;;  %v876_v30 = vsub.f32 %v6924_v38, %v864_v3  ;;  %v886_v50 = vmul.f32 1.442695, %v877_v18  ;;  %v878_v32 = vsub.f32 %v6934_v49, %v870_v40  ;;  %v7034_v39 = vpop.eup %6244 }
 0x445   :  { %5746 = vmatprep.subr.mxu1 %v1862_v52  ;;  %v7037_v20 = vpop.eup %6246  ;;  %v895_v35 = vsel %vm855_vm8, %v7034_v39, 0.0 }
 0x446   :  { %5747 = vmatpush3.msra.mxu1 %v1862_v52  ;;  %v884_v52 = vmul.f32 1.442695, %v876_v30  ;;  %6248 = vpow2.f32 %v886_v50  ;;  %v892_v40 = vsel %vm855_vm8, %v7037_v20, 0.0 }
 0x447   :  { %5697 = vmatmul.mubr.msk.f32.gmra.mxu1 %vm287_vm0, %v1360_v8  ;;  %5748 = vmatprep.subr.mxu1 %v1861_v53 }
 0x448   :  { %5699 = vmatprep.mubr.msk.f32.mxu1 %vm287_vm0, %v1361_v59  ;;  %5749 = vmatpush3.msra.mxu1 %v1861_v53  ;;  %6250 = vpow2.f32 %v884_v52 }
 0x449   :  { %5750 = vmatprep.subr.mxu1 %v1860_v63  ;;  %6252 = vpow2.f32 %v890_v36 }
 0x44a   :  { %5751 = vmatpush3.msra.mxu1 %v1860_v63  ;;  %v888_v63 = vmul.f32 1.442695, %v878_v32 }
 0x44b   :  { %5700 = vmatmul.mubr.msk.f32.gmra.mxu1 %vm287_vm0, %v1362_v1  ;;  %5752 = vmatprep.subr.mxu1 %v1859_v6 }
 0x44c   :  { %5753 = vmatpush3.msra.mxu1 %v1859_v6  ;;  %6254 = vpow2.f32 %v888_v63 }
 0x44d   :  { %5754 = vmatprep.subr.mxu1 %v1858_v11 }
 0x44e   :  { %5755 = vmatpush3.msra.mxu1 %v1858_v11 }
 0x453   :  { %v7041_v30 = vpop.eup %6248 }
 0x454   :  { %v901_v51 = vsel %vm855_vm8, %v7041_v30, 0.0 }
 0x455   :  { %v7045_v50 = vpop.eup %6250 }
 0x456   :  { %v898_v52 = vsel %vm855_vm8, %v7045_v50, 0.0 }
 0x4ea   :  { %v7005_v14 = vpop.f32.mrf.mxu1 }
 0x4ec   :  { %v7007_v16 = vpop.f32.mrf.mxu1 }
 0x4ef   :  { %v7009_v28 = vpop.f32.mrf.mxu1 }
 0x4f1   :  { %v7011_v33 = vpop.f32.mrf.mxu1 }
 0x4f5   :  { %v7015_v37 = vpop.f32.mrf.mxu1 }
 0x4f7   :  { %v7019_v47 = vpop.f32.mrf.mxu1 }
 0x503   :  { %v5695_v26 = vpop.f32.mrf.mxu1 }
 0x504   :  { %v1453_v8 = vadd.f32 %v5695_v26, %v6877_v57  ;;  %v7049_v26 = vpop.eup %6252 }
 0x505   :  { %v1447_v53 = vpop.f32.mrf.mxu1  ;;  %v7053_v32 = vpop.eup %6254 }
 0x506   :  { %v1448_v54 = vadd.f32 %v1447_v53, %v6880_v61  ;;  %v1479_v38 = vsel %vm855_vm8, %v1453_v8, -inf  ;;  %v907_v53 = vsel %vm855_vm8, %v7049_v26, 0.0  ;;  %v904_v36 = vsel %vm855_vm8, %v7053_v32, 0.0 }
 0x507   :  { %1480 = vmax.xlane.f32.xlu1 %v1479_v38  ;;  %v5698_v59 = vpop.f32.mrf.mxu1 }
 0x508   :  { %v1463_v46 = vadd.f32 %v5698_v59, %v6886_v9  ;;  %v1476_v1 = vsel %vm855_vm8, %v1448_v54, -inf }
 0x509   :  { %v1457_v6 = vpop.f32.mrf.mxu1  ;;  %1477 = vmax.xlane.f32.xlu0 %v1476_v1 }
 0x50a   :  { %v1458_v49 = vadd.f32 %v1457_v6, %v6890_v13  ;;  %v1485_v11 = vsel %vm855_vm8, %v1463_v46, -inf }
 0x50b   :  { %1486 = vmax.xlane.f32.xlu1 %v1485_v11  ;;  %v5701_v17 = vpop.f32.mrf.mxu1 }
 0x50c   :  { %v1473_v22 = vadd.f32 %v5701_v17, %v6896_v21  ;;  %v1482_v29 = vsel %vm855_vm8, %v1458_v49, -inf }
 0x50d   :  { %v1467_v10 = vpop.f32.mrf.mxu1  ;;  %1483 = vmax.xlane.f32.xlu0 %v1482_v29 }
 0x50e   :  { %v1468_v3 = vadd.f32 %v1467_v10, %v6900_v23  ;;  %v1491_v34 = vsel %vm855_vm8, %v1473_v22, -inf }
 0x50f   :  { %1492 = vmax.xlane.f32.xlu1 %v1491_v34 }
 0x510   :  { %v1488_v18 = vsel %vm855_vm8, %v1468_v3, -inf }
 0x511   :  { %1489 = vmax.xlane.f32.xlu0 %v1488_v18 }
 0x513   :  { %896 = vadd.xlane.f32.xlu1 %v895_v35 }
 0x515   :  { %893 = vadd.xlane.f32.xlu0 %v892_v40 }
 0x517   :  { %902 = vadd.xlane.f32.xlu1 %v901_v51 }
 0x519   :  { %899 = vadd.xlane.f32.xlu0 %v898_v52 }
 0x51b   :  { %908 = vadd.xlane.f32.xlu1 %v907_v53 }
 0x51d   :  { %905 = vadd.xlane.f32.xlu0 %v904_v36 }
 0x590   :  { %v1481_v38 = vpop.xlane.xlu1 %1480 }
 0x591   :  { %v1495_v59 = vsub.f32 %v1453_v8, %v1481_v38 }
 0x592   :  { %v1478_v63 = vpop.xlane.xlu0 %1477 }
 0x593   :  { %v1502_v1 = vmul.f32 1.442695, %v1495_v59  ;;  %v1494_v6 = vsub.f32 %v1448_v54, %v1478_v63 }
 0x594   :  { %v1487_v11 = vpop.xlane.xlu1 %1486 }
 0x595   :  { %6256 = vpow2.f32 %v1502_v1  ;;  %v1500_v17 = vmul.f32 1.442695, %v1494_v6  ;;  %v1497_v29 = vsub.f32 %v1463_v46, %v1487_v11 }
 0x596   :  { %v1484_v10 = vpop.xlane.xlu0 %1483 }
 0x597   :  { %6258 = vpow2.f32 %v1500_v17  ;;  %v1506_v34 = vmul.f32 1.442695, %v1497_v29  ;;  %v1496_v18 = vsub.f32 %v1458_v49, %v1484_v10 }
 0x598   :  { %v1493_v35 = vpop.xlane.xlu1 %1492 }
 0x599   :  { %6260 = vpow2.f32 %v1506_v34  ;;  %v1504_v40 = vmul.f32 1.442695, %v1496_v18  ;;  %v1499_v51 = vsub.f32 %v1473_v22, %v1493_v35 }
 0x59a   :  { %v1490_v52 = vpop.xlane.xlu0 %1489 }
 0x59b   :  { %6262 = vpow2.f32 %v1504_v40  ;;  %v1510_v53 = vmul.f32 1.442695, %v1499_v51  ;;  %v1498_v36 = vsub.f32 %v1468_v3, %v1490_v52 }
 0x59c   :  { %v897_v8 = vpop.xlane.xlu1 %896 }
 0x59d   :  { %6264 = vpow2.f32 %v1510_v53  ;;  %v1508_v38 = vmul.f32 1.442695, %v1498_v36 }
 0x59e   :  { %6266 = vrcp.f32 %v897_v8  ;;  %v894_v54 = vpop.xlane.xlu0 %893 }
 0x59f   :  { %6268 = vpow2.f32 %v1508_v38 }
 0x5a0   :  { %6270 = vrcp.f32 %v894_v54  ;;  %v903_v46 = vpop.xlane.xlu1 %902  ;;  %v1546_v54 = vmul.f32 %v6793_v19, %v6862_v55  ;;  %v1544_v19 = vmul.f32 %v6823_v31, %v6862_v55 }
 0x5a1   :  { %6272 = vrcp.f32 %v903_v46 }
 0x5a2   :  { %v7059_v59 = vpop.eup %6256  ;;  %v900_v49 = vpop.xlane.xlu0 %899 }
 0x5a3   :  { %6274 = vrcp.f32 %v900_v49  ;;  %v1515_v22 = vsel %vm855_vm8, %v7059_v59, 0.0 }
 0x5a4   :  { %v7063_v63 = vpop.eup %6258  ;;  %1516 = vadd.xlane.f32.xlu1 %v1515_v22  ;;  %v909_v3 = vpop.xlane.xlu1 %908 }
 0x5a5   :  { %v1512_v1 = vsel %vm855_vm8, %v7063_v63, 0.0  ;;  %6276 = vrcp.f32 %v909_v3 }
 0x5a6   :  { %v7067_v6 = vpop.eup %6260  ;;  %1513 = vadd.xlane.f32.xlu0 %v1512_v1  ;;  %v906_v11 = vpop.xlane.xlu0 %905 }
 0x5a7   :  { %6278 = vrcp.f32 %v906_v11  ;;  %v1521_v17 = vsel %vm855_vm8, %v7067_v6, 0.0 }
 0x5a8   :  { %v7071_v29 = vpop.eup %6262  ;;  %1522 = vadd.xlane.f32.xlu1 %v1521_v17 }
 0x5a9   :  { %v1518_v10 = vsel %vm855_vm8, %v7071_v29, 0.0 }
 0x5aa   :  { %v7075_v34 = vpop.eup %6264  ;;  %1519 = vadd.xlane.f32.xlu0 %v1518_v10 }
 0x5ab   :  { %v6267_v18 = vpop.eup %6266  ;;  %v1527_v35 = vsel %vm855_vm8, %v7075_v34, 0.0 }
 0x5ac   :  { %v7079_v40 = vpop.eup %6268  ;;  %1528 = vadd.xlane.f32.xlu1 %v1527_v35  ;;  %v917_v8 = vmul.f32 %v6267_v18, %v7034_v39 }
 0x5ad   :  { %v6271_v51 = vpop.eup %6270  ;;  %v1524_v52 = vsel %vm855_vm8, %v7079_v40, 0.0 }
 0x5ae   :  { %1525 = vadd.xlane.f32.xlu0 %v1524_v52  ;;  %v916_v53 = vmul.f32 %v6271_v51, %v7037_v20  ;;  %v6273_v36 = vpop.eup %6272  ;;  %v1545_v20 = vmul.f32 %v6808_v27, %v6862_v55 }
 0x5af   :  { %v919_v39 = vmul.f32 %v6273_v36, %v7041_v30  ;;  %v1542_v30 = vmul.f32 %v6849_v48, %v6862_v55 }
 0x5b0   :  { %v6275_v38 = vpop.eup %6274  ;;  %5672 = vmatprep.mubr.msk.f32.mxu0 %vm855_vm8, %v916_v53 }
 0x5b1   :  { %5673 = vmatmul.mubr.msk.f32.vlgmr.msra.gmra.mxu0 %vm855_vm8, %v917_v8  ;;  %v918_v46 = vmul.f32 %v6275_v38, %v7045_v50 }
 0x5b2   :  { %5703 = vmatpush3.msra.mxu0 %v6866_v56  ;;  %v6277_v49 = vpop.eup %6276  ;;  %v1543_v56 = vmul.f32 %v6837_v42, %v6862_v55 }
 0x5b3   :  { %5704 = vmatprep.subr.mxu0 %v1546_v54  ;;  %5675 = vmatprep.mubr.msk.f32.mxu0 %vm855_vm8, %v918_v46  ;;  %v921_v27 = vmul.f32 %v6277_v49, %v7049_v26 }
 0x5b4   :  { %v6279_v22 = vpop.eup %6278  ;;  %5705 = vmatpush3.msra.mxu0 %v1546_v54 }
 0x5b5   :  { %5706 = vmatprep.subr.mxu0 %v1545_v20  ;;  %5676 = vmatmul.mubr.msk.f32.gmra.mxu0 %vm855_vm8, %v919_v39  ;;  %v920_v50 = vmul.f32 %v6279_v22, %v7053_v32 }
 0x5b6   :  { %5707 = vmatpush3.msra.mxu0 %v1545_v20 }
 0x5b7   :  { %5708 = vmatprep.subr.mxu0 %v1544_v19  ;;  %5678 = vmatprep.mubr.msk.f32.mxu0 %vm855_vm8, %v920_v50 }
 0x5b8   :  { %5709 = vmatpush3.msra.mxu0 %v1544_v19 }
 0x5b9   :  { %5710 = vmatprep.subr.mxu0 %v1543_v56  ;;  %5679 = vmatmul.mubr.msk.f32.gmra.mxu0 %vm855_vm8, %v921_v27 }
 0x5ba   :  { %5711 = vmatpush3.msra.mxu0 %v1543_v56 }
 0x5bb   :  { %5712 = vmatprep.subr.mxu0 %v1542_v30 }
 0x5bc   :  { %5713 = vmatpush3.msra.mxu0 %v1542_v30 }
 0x5bd   :  { %5723 = vmatprep.subr.msk.mxu0 %vm287_vm0, %v6701_v58 }
 0x62d   :  { %v1517_v31 = vpop.xlane.xlu1 %1516 }
 0x62e   :  { %6280 = vrcp.f32 %v1517_v31 }
 0x62f   :  { %v1514_v32 = vpop.xlane.xlu0 %1513 }
 0x630   :  { %6282 = vrcp.f32 %v1514_v32 }
 0x631   :  { %v1523_v42 = vpop.xlane.xlu1 %1522 }
 0x632   :  { %6284 = vrcp.f32 %v1523_v42 }
 0x633   :  { %v1520_v26 = vpop.xlane.xlu0 %1519 }
 0x634   :  { %6286 = vrcp.f32 %v1520_v26 }
 0x635   :  { %v1529_v3 = vpop.xlane.xlu1 %1528 }
 0x636   :  { %6288 = vrcp.f32 %v1529_v3 }
 0x637   :  { %v1526_v1 = vpop.xlane.xlu0 %1525 }
 0x638   :  { %6290 = vrcp.f32 %v1526_v1 }
 0x63b   :  { %v6281_v11 = vpop.eup %6280 }
 0x63c   :  { %v1537_v10 = vmul.f32 %v6281_v11, %v7059_v59  ;;  %v1667_v59 = vmul.f32 %v6682_v41, %v6976_v24  ;;  %v1668_v41 = vmul.f32 %v6749_v4, %v6976_v24 }
 0x63d   :  { %v6283_v48 = vpop.eup %6282 }
 0x63e   :  { %v1536_v17 = vmul.f32 %v6283_v48, %v7063_v63 }
 0x63f   :  { %v6285_v18 = vpop.eup %6284 }
 0x640   :  { %5714 = vmatprep.mubr.msk.f32.mxu0 %vm855_vm8, %v1536_v17  ;;  %v1539_v52 = vmul.f32 %v6285_v18, %v7067_v6  ;;  %v1673_v6 = vmul.f32 0.35355338, %v1667_v59 }
 0x641   :  { %v6287_v35 = vpop.eup %6286  ;;  %5715 = vmatmul.mubr.msk.f32.vlgmr.msra.gmra.mxu0 %vm855_vm8, %v1537_v10 }
 0x642   :  { %5724 = vmatpush3.xpose.msk.msra.mxu0 %vm287_vm0, %v6701_v58  ;;  %v1538_v51 = vmul.f32 %v6287_v35, %v7071_v29 }
 0x643   :  { %5725 = vmatprep.subr.msk.mxu0 %vm287_vm0, %v6703_v60  ;;  %v6289_v53 = vpop.eup %6288 }
 0x644   :  { %5717 = vmatprep.mubr.msk.f32.mxu0 %vm855_vm8, %v1538_v51  ;;  %v1541_v29 = vmul.f32 %v6289_v53, %v7075_v34 }
 0x645   :  { %v6291_v63 = vpop.eup %6290  ;;  %5718 = vmatmul.mubr.msk.f32.gmra.mxu0 %vm855_vm8, %v1539_v52 }
 0x646   :  { %5726 = vmatpush3.xpose.msk.msra.mxu0 %vm287_vm0, %v6703_v60  ;;  %v1540_v58 = vmul.f32 %v6291_v63, %v7079_v40  ;;  %v1669_v60 = vmul.f32 %v6756_v5, %v6976_v24  ;;  %v1672_v40 = vmul.f32 %v6805_v25, %v6976_v24 }
 0x647   :  { %5727 = vmatprep.subr.msk.mxu0 %vm287_vm0, %v6719_v62 }
 0x648   :  { %5720 = vmatprep.mubr.msk.f32.mxu0 %vm855_vm8, %v1540_v58  ;;  %v1675_v34 = vmul.f32 0.35355338, %v1669_v60 }
 0x649   :  { %5721 = vmatmul.mubr.msk.f32.gmra.mxu0 %vm855_vm8, %v1541_v29 }
 0x64a   :  { %5728 = vmatpush3.xpose.msk.msra.mxu0 %vm287_vm0, %v6719_v62  ;;  %5735 = vmatprep.mubr.msk.f32.mxu0 %vm287_vm0, %v1673_v6  ;;  %v1674_v62 = vmul.f32 0.35355338, %v1668_v41 }
 0x64b   :  { %5729 = vmatprep.subr.msk.mxu0 %vm287_vm0, %v6732_v0 }
 0x64e   :  { %5730 = vmatpush3.xpose.msk.msra.mxu0 %vm287_vm0, %v6732_v0  ;;  %v1670_v0 = vmul.f32 %v6778_v12, %v6976_v24 }
 0x64f   :  { %5731 = vmatprep.subr.msk.mxu0 %vm287_vm0, %v6742_v2 }
 0x650   :  { %v1676_v4 = vmul.f32 0.35355338, %v1670_v0 }
 0x652   :  { %5732 = vmatpush3.xpose.msk.msra.mxu0 %vm287_vm0, %v6742_v2  ;;  %v1671_v2 = vmul.f32 %v6786_v15, %v6976_v24 }
 0x653   :  { %5733 = vmatprep.subr.msk.mxu0 %vm287_vm0, %v6760_v7 }
 0x654   :  { %v1677_v5 = vmul.f32 0.35355338, %v1671_v2 }
 0x656   :  { %5734 = vmatpush3.xpose.msk.msra.mxu0 %vm287_vm0, %v6760_v7  ;;  %v1678_v7 = vmul.f32 0.35355338, %v1672_v40 }
 0x659   :  { %5736 = vmatmul.mubr.msk.f32.vlgmr.msra.gmra.mxu0 %vm287_vm0, %v1674_v62 }
 0x65a   :  { %5738 = vmatprep.mubr.msk.f32.mxu0 %vm287_vm0, %v1675_v34 }
 0x65d   :  { %5739 = vmatmul.mubr.msk.f32.gmra.mxu0 %vm287_vm0, %v1676_v4 }
 0x65e   :  { %5741 = vmatprep.mubr.msk.f32.mxu0 %vm287_vm0, %v1677_v5 }
 0x661   :  { %5742 = vmatmul.mubr.msk.f32.gmra.mxu0 %vm287_vm0, %v1678_v7 }
 0x671   :  { %v5674_v12 = vpop.f32.mrf.mxu0 }
 0x672   :  { %v1328_v46 = vadd.f32 %v5674_v12, %v7005_v14 }
 0x673   :  { %v1322_v36 = vpop.f32.mrf.mxu0 }
 0x674   :  { %v1323_v25 = vadd.f32 %v1322_v36, %v7007_v16 }
 0x675   :  { %v5677_v8 = vpop.f32.mrf.mxu0 }
 0x676   :  { %v1338_v22 = vadd.f32 %v5677_v8, %v7009_v28 }
 0x677   :  { %v1332_v15 = vpop.f32.mrf.mxu0 }
 0x678   :  { %v1333_v56 = vadd.f32 %v1332_v15, %v7011_v33 }
 0x679   :  { %v5680_v38 = vpop.f32.mrf.mxu0 }
 0x67a   :  { %v1348_v31 = vadd.f32 %v5680_v38, %v7015_v37 }
 0x67b   :  { %v7160_v54 = vpop.f32.mrf.mxu0 }
 0x701   :  { %v5716_v49 = vpop.f32.mrf.mxu0 }
 0x702   :  { %v7164_v20 = vadd.f32 %v5716_v49, %v1328_v46 }
 0x703   :  { %v1632_v39 = vpop.f32.mrf.mxu0 }
 0x704   :  { %v7167_v19 = vadd.f32 %v1632_v39, %v1323_v25 }
 0x705   :  { %v5719_v50 = vpop.f32.mrf.mxu0 }
 0x706   :  { %v7170_v27 = vadd.f32 %v5719_v50, %v1338_v22 }
 0x707   :  { %v1642_v30 = vpop.f32.mrf.mxu0 }
 0x708   :  { %v7173_v32 = vadd.f32 %v1642_v30, %v1333_v56  ;;  %v184_v30 = vld [vmem:[%s7200_s16 + $0x18] sm:$0xff] }
 0x709   :  { %v5722_v14 = vpop.f32.mrf.mxu0  ;;  %5765 = vmatprep.subr.mxu1 %v184_v30 }
 0x70a   :  { %v7175_v42 = vadd.f32 %v5722_v14, %v1348_v31 }
 0x70b   :  { %v7177_v16 = vpop.f32.mrf.mxu0 }
 0x719   :  { %v5737_v26 = vpop.f32.mrf.mxu0 }
 0x71a   :  { %v1769_v28 = vadd.f32 %v5737_v26, %v6877_v57 }
 0x71b   :  { %v1763_v3 = vpop.f32.mrf.mxu0 }
 0x71c   :  { %v1764_v1 = vadd.f32 %v1763_v3, %v6880_v61  ;;  %v1795_v33 = vsel %vm855_vm8, %v1769_v28, -inf }
 0x71d   :  { %1796 = vmax.xlane.f32.xlu1 %v1795_v33  ;;  %v5740_v11 = vpop.f32.mrf.mxu0 }
 0x71e   :  { %v1779_v48 = vadd.f32 %v5740_v11, %v6886_v9  ;;  %v1792_v37 = vsel %vm855_vm8, %v1764_v1, -inf }
 0x71f   :  { %v1773_v17 = vpop.f32.mrf.mxu0  ;;  %1793 = vmax.xlane.f32.xlu0 %v1792_v37 }
 0x720   :  { %v1774_v10 = vadd.f32 %v1773_v17, %v6890_v13  ;;  %v1801_v18 = vsel %vm855_vm8, %v1779_v48, -inf }
 0x721   :  { %1802 = vmax.xlane.f32.xlu1 %v1801_v18  ;;  %v5743_v35 = vpop.f32.mrf.mxu0 }
 0x722   :  { %v1789_v57 = vadd.f32 %v5743_v35, %v6896_v21  ;;  %v1798_v61 = vsel %vm855_vm8, %v1774_v10, -inf }
 0x723   :  { %v1783_v51 = vpop.f32.mrf.mxu0  ;;  %1799 = vmax.xlane.f32.xlu0 %v1798_v61 }
 0x724   :  { %v1784_v52 = vadd.f32 %v1783_v51, %v6900_v23  ;;  %v1807_v9 = vsel %vm855_vm8, %v1789_v57, -inf }
 0x725   :  { %1808 = vmax.xlane.f32.xlu1 %v1807_v9 }
 0x726   :  { %v1804_v53 = vsel %vm855_vm8, %v1784_v52, -inf }
 0x727   :  { %1805 = vmax.xlane.f32.xlu0 %v1804_v53  ;;  %v182_v53 = vld [vmem:[%s7200_s16 + $0x8] sm:$0xff] }
 0x7a6   :  { %v1797_v59 = vpop.xlane.xlu1 %1796 }
 0x7a7   :  { %v1811_v13 = vsub.f32 %v1769_v28, %v1797_v59  ;;  %v181_v59 = vld [vmem:[%s7200_s16] sm:$0xff] }
 0x7a8   :  { %v1794_v63 = vpop.xlane.xlu0 %1793 }
 0x7a9   :  { %v1818_v58 = vmul.f32 1.442695, %v1811_v13  ;;  %v1810_v29 = vsub.f32 %v1764_v1, %v1794_v63 }
 0x7aa   :  { %v1803_v6 = vpop.xlane.xlu1 %1802 }
 0x7ab   :  { %6292 = vpow2.f32 %v1818_v58  ;;  %v1816_v21 = vmul.f32 1.442695, %v1810_v29  ;;  %v1813_v41 = vsub.f32 %v1779_v48, %v1803_v6 }
 0x7ac   :  { %v1800_v60 = vpop.xlane.xlu0 %1799 }
 0x7ad   :  { %6294 = vpow2.f32 %v1816_v21  ;;  %v1822_v62 = vmul.f32 1.442695, %v1813_v41  ;;  %v1812_v0 = vsub.f32 %v1774_v10, %v1800_v60  ;;  %v183_v10 = vld [vmem:[%s7200_s16 + $0x10] sm:$0xff]  ;;  %v1343_v41 = vadd.f32 %v7160_v54, %v7019_v47  ;;  %v5065_v47 = vld [vmem:[%s4941_s20] ss:$0 sm:$0xff]  ;;  %s6538_s16 = smov 19  }
 0x7ae   :  { %v1809_v23 = vpop.xlane.xlu1 %1808  ;;  %s4950_s19 = sld [smem:[%s8178_s0 + %s6538_s16]]   ;;  %s6539_s20 = smov 23  }
 0x7af   :  { %6296 = vpow2.f32 %v1822_v62  ;;  %v1820_v34 = vmul.f32 1.442695, %v1812_v0  ;;  %v1815_v2 = vsub.f32 %v1789_v57, %v1809_v23  ;;  %v1665_v23 = vadd.f32 %v7177_v16, %v1343_v41  ;;  %v6508_v16 = vld [vmem:[%s6568_s5 + $0x8] sm:$0xff]  ;;  %s4954_s22 = sld [smem:[%s8178_s0 + %s6539_s20]]   ;;  %s6555_s20 = smov 33  }
 0x7b0   :  { %v1806_v4 = vpop.xlane.xlu0 %1805  ;;  %s4961_s16 = sld [smem:[%s8178_s0 + %s6552_s13]]  }
 0x7b1   :  { %6298 = vpow2.f32 %v1820_v34  ;;  %v1826_v40 = vmul.f32 1.442695, %v1815_v2  ;;  %v1814_v5 = vsub.f32 %v1784_v52, %v1806_v4 }
 0x7b3   :  { %6300 = vpow2.f32 %v1826_v40  ;;  %v1824_v7 = vmul.f32 1.442695, %v1814_v5  ;;  %v6509_v40 = vld [vmem:[%s6568_s5] sm:$0xff] }
 0x7b5   :  { %6302 = vpow2.f32 %v1824_v7 }
 0x7b8   :  { %v6293_v12 = vpop.eup %6292 }
 0x7b9   :  { %v1831_v36 = vsel %vm855_vm8, %v6293_v12, 0.0 }
 0x7ba   :  { %v6295_v8 = vpop.eup %6294  ;;  %1832 = vadd.xlane.f32.xlu1 %v1831_v36 }
 0x7bb   :  { %v1828_v15 = vsel %vm855_vm8, %v6295_v8, 0.0 }
 0x7bc   :  { %v6297_v38 = vpop.eup %6296  ;;  %1829 = vadd.xlane.f32.xlu0 %v1828_v15 }
 0x7bd   :  { %v1837_v46 = vsel %vm855_vm8, %v6297_v38, 0.0 }
 0x7be   :  { %v6299_v49 = vpop.eup %6298  ;;  %1838 = vadd.xlane.f32.xlu1 %v1837_v46 }
 0x7bf   :  { %v1834_v25 = vsel %vm855_vm8, %v6299_v49, 0.0 }
 0x7c0   :  { %v6301_v39 = vpop.eup %6300  ;;  %1835 = vadd.xlane.f32.xlu0 %v1834_v25  ;;  %v6511_v25 = vld [vmem:[%s6568_s5 + $0x10] sm:$0xff] }
 0x7c1   :  { %v1843_v22 = vsel %vm855_vm8, %v6301_v39, 0.0 }
 0x7c2   :  { %v6303_v50 = vpop.eup %6302  ;;  %1844 = vadd.xlane.f32.xlu1 %v1843_v22 }
 0x7c3   :  { %v1840_v56 = vsel %vm855_vm8, %v6303_v50, 0.0 }
 0x7c4   :  { %1841 = vadd.xlane.f32.xlu0 %v1840_v56 }
 0x843   :  { %v1833_v31 = vpop.xlane.xlu1 %1832 }
 0x844   :  { %6304 = vrcp.f32 %v1833_v31 }
 0x845   :  { %v1830_v14 = vpop.xlane.xlu0 %1829 }
 0x846   :  { %6306 = vrcp.f32 %v1830_v14 }
 0x847   :  { %v1839_v26 = vpop.xlane.xlu1 %1838 }
 0x848   :  { %6308 = vrcp.f32 %v1839_v26 }
 0x849   :  { %v1836_v28 = vpop.xlane.xlu0 %1835 }
 0x84a   :  { %6310 = vrcp.f32 %v1836_v28  ;;  %v6513_v28 = vld [vmem:[%s6568_s5 + $0x20] sm:$0xff] }
 0x84b   :  { %v1845_v3 = vpop.xlane.xlu1 %1844 }
 0x84c   :  { %6312 = vrcp.f32 %v1845_v3 }
 0x84d   :  { %v1842_v1 = vpop.xlane.xlu0 %1841 }
 0x84e   :  { %6314 = vrcp.f32 %v1842_v1 }
 0x851   :  { %v6305_v33 = vpop.eup %6304 }
 0x852   :  { %v1853_v37 = vmul.f32 %v6305_v33, %v6293_v12 }
 0x853   :  { %v6307_v11 = vpop.eup %6306 }
 0x854   :  { %v1852_v48 = vmul.f32 %v6307_v11, %v6295_v8  ;;  %v6510_v8 = vld [vmem:[%s6568_s5 + $0x18] sm:$0xff] }
 0x855   :  { %v6309_v17 = vpop.eup %6308 }
 0x856   :  { %5756 = vmatprep.mubr.msk.f32.mxu1 %vm855_vm8, %v1852_v48  ;;  %v1855_v57 = vmul.f32 %v6309_v17, %v6297_v38 }
 0x857   :  { %v6311_v18 = vpop.eup %6310  ;;  %5757 = vmatmul.mubr.msk.f32.vlgmr.msra.gmra.mxu1 %vm855_vm8, %v1853_v37 }
 0x858   :  { %v1854_v35 = vmul.f32 %v6311_v18, %v6299_v49  ;;  %5766 = vmatpush3.msra.mxu1 %v184_v30  ;;  %v6512_v30 = vld [vmem:[%s6568_s5 + $0x28] sm:$0xff]  ;;  %s6532_s5 = smov 13  }
 0x859   :  { %5767 = vmatprep.subr.mxu1 %v183_v10  ;;  %v6313_v61 = vpop.eup %6312  ;;  %s4944_s23 = sld [smem:[%s8178_s0 + %s6532_s5]]  }
 0x85a   :  { %5759 = vmatprep.mubr.msk.f32.mxu1 %vm855_vm8, %v1854_v35  ;;  %5768 = vmatpush3.msra.mxu1 %v183_v10  ;;  %v1857_v9 = vmul.f32 %v6313_v61, %v6301_v39 }
 0x85b   :  { %v6315_v51 = vpop.eup %6314  ;;  %5760 = vmatmul.mubr.msk.f32.gmra.mxu1 %vm855_vm8, %v1855_v57  ;;  %5769 = vmatprep.subr.mxu1 %v182_v53 }
 0x85c   :  { %v1856_v52 = vmul.f32 %v6315_v51, %v6303_v50  ;;  %5770 = vmatpush3.msra.mxu1 %v182_v53 }
 0x85d   :  { %5771 = vmatprep.subr.mxu1 %v181_v59 }
 0x85e   :  { %5762 = vmatprep.mubr.msk.f32.mxu1 %vm855_vm8, %v1856_v52  ;;  %5772 = vmatpush3.msra.mxu1 %v181_v59 }
 0x85f   :  { %5763 = vmatmul.mubr.msk.f32.gmra.mxu1 %vm855_vm8, %v1857_v9 }
 0x917   :  { %v5758_v13 = vpop.f32.mrf.mxu1 }
 0x918   :  { %v1978_v29 = vadd.f32 %v5758_v13, %v7164_v20 }
 0x919   :  { %v1948_v63 = vpop.f32.mrf.mxu1 }
 0x91a   :  { %v1977_v58 = vadd.f32 %v1948_v63, %v7167_v19 }
 0x91b   :  { %v5761_v6 = vpop.f32.mrf.mxu1 }
 0x91c   :  { %5773 = vmatprep.mubr.msk.f32.mxu1 %vm287_vm0, %v1977_v58  ;;  %v1980_v62 = vadd.f32 %v5761_v6, %v7170_v27 }
 0x91d   :  { %v1958_v21 = vpop.f32.mrf.mxu1  ;;  %5774 = vmatmul.mubr.msk.f32.vlgmr.msra.gmra.mxu1 %vm287_vm0, %v1978_v29 }
 0x91e   :  { %v1979_v60 = vadd.f32 %v1958_v21, %v7173_v32 }
 0x91f   :  { %v5764_v0 = vpop.f32.mrf.mxu1 }
 0x920   :  { %5776 = vmatprep.mubr.msk.f32.mxu1 %vm287_vm0, %v1979_v60  ;;  %v1982_v34 = vadd.f32 %v5764_v0, %v7175_v42 }
 0x921   :  { %v1968_v20 = vpop.f32.mrf.mxu1  ;;  %5777 = vmatmul.mubr.msk.f32.gmra.mxu1 %vm287_vm0, %v1980_v62 }
 0x922   :  { %v1981_v19 = vadd.f32 %v1968_v20, %v1665_v23 }
 0x924   :  { %5779 = vmatprep.mubr.msk.f32.mxu1 %vm287_vm0, %v1981_v19 }
 0x925   :  { %5780 = vmatmul.mubr.msk.f32.gmra.mxu1 %vm287_vm0, %v1982_v34 }
 0x9dd   :  { %v5775_v54 = vpop.f32.mrf.mxu1 }
 0x9de   :  { %v2079_v27 = vadd.f32 %v5775_v54, %v5065_v47 }
 0x9df   :  { %v2073_v32 = vpop.f32.mrf.mxu1 }
 0x9e0   :  { %v7230_v2 = vadd.f32 %v6508_v16, %v2079_v27  ;;  %v2074_v4 = vadd.f32 %v5065_v47, %v2073_v32  ;;  %v191_v27 = vld [vmem:[%s4944_s23 + $0x18] sm:$0xff]  ;;  %v190_v32 = vld [vmem:[%s4944_s23 + $0x10] sm:$0xff]  ;;  %v189_v16 = vld [vmem:[%s4944_s23 + $0x8] sm:$0xff] }
 0x9e1   :  { %v5778_v42 = vpop.f32.mrf.mxu1  ;;  %5782 = vmatprep.subr.mxu0 %v191_v27 }
 0x9e2   :  { %v7233_v5 = vadd.f32 %v6509_v40, %v2074_v4  ;;  %v2089_v7 = vadd.f32 %v5778_v42, %v5065_v47  ;;  %v2111_v12 = vsel %vm287_vm0, %v7230_v2, 0.0  ;;  %5783 = vmatpush3.msra.mxu0 %v191_v27  ;;  %v188_v4 = vld [vmem:[%s4944_s23] sm:$0xff]  ;;  %v203_v27 = vld [vmem:[%s7319_s6 + $0x50] sm:$0xff]  ;;  %s6540_s23 = smov 21  }
 0x9e3   :  { %2112 = vadd.xlane.f32.xlu1 %v2111_v12  ;;  %v2083_v36 = vpop.f32.mrf.mxu1  ;;  %5784 = vmatprep.subr.mxu0 %v190_v32  ;;  %s7418_s26 = sld [smem:[%s8178_s0 + %s6540_s23]]   ;;  %s6556_s23 = smov 34  }
 0x9e4   :  { %v7238_v15 = vadd.f32 %v6510_v8, %v2089_v7  ;;  %v2084_v38 = vadd.f32 %v5065_v47, %v2083_v36  ;;  %v2108_v46 = vsel %vm287_vm0, %v7233_v5, 0.0  ;;  %5785 = vmatpush3.msra.mxu0 %v190_v32  ;;  %v202_v32 = vld [vmem:[%s7319_s6 + $0x48] sm:$0xff] }
 0x9e5   :  { %2109 = vadd.xlane.f32.xlu0 %v2108_v46  ;;  %v5781_v49 = vpop.f32.mrf.mxu1  ;;  %5786 = vmatprep.subr.mxu0 %v189_v16 }
 0x9e6   :  { %v7243_v39 = vadd.f32 %v6511_v25, %v2084_v38  ;;  %v2099_v22 = vadd.f32 %v5781_v49, %v5065_v47  ;;  %v2117_v50 = vsel %vm287_vm0, %v7238_v15, 0.0  ;;  %5787 = vmatpush3.msra.mxu0 %v189_v16  ;;  %v201_v16 = vld [vmem:[%s7319_s6 + $0x40] sm:$0xff] }
 0x9e7   :  { %2118 = vadd.xlane.f32.xlu1 %v2117_v50  ;;  %v2093_v56 = vpop.f32.mrf.mxu1  ;;  %5788 = vmatprep.subr.mxu0 %v188_v4 }
 0x9e8   :  { %v7248_v31 = vadd.f32 %v6512_v30, %v2099_v22  ;;  %v2094_v14 = vadd.f32 %v5065_v47, %v2093_v56  ;;  %v2114_v26 = vsel %vm287_vm0, %v7243_v39, 0.0  ;;  %5789 = vmatpush3.msra.mxu0 %v188_v4  ;;  %v200_v4 = vld [vmem:[%s7319_s6 + $0x38] sm:$0xff] }
 0x9e9   :  { %2115 = vadd.xlane.f32.xlu0 %v2114_v26 }
 0x9ea   :  { %v7253_v3 = vadd.f32 %v6513_v28, %v2094_v14  ;;  %v2123_v1 = vsel %vm287_vm0, %v7248_v31, 0.0 }
 0x9eb   :  { %2124 = vadd.xlane.f32.xlu1 %v2123_v1 }
 0x9ec   :  { %v2120_v33 = vsel %vm287_vm0, %v7253_v3, 0.0 }
 0x9ed   :  { %2121 = vadd.xlane.f32.xlu0 %v2120_v33 }
 0xa6c   :  { %v2113_v11 = vpop.xlane.xlu1 %2112 }
 0xa6d   :  { %v2127_v48 = vmul.f32 0.03125, %v2113_v11  ;;  %v5072_v11 = vld [vmem:[%s4942_s27] ss:$0 sm:$0xff]  ;;  %s6541_s27 = smov 17  }
 0xa6e   :  { %v2110_v37 = vpop.xlane.xlu0 %2109  ;;  %s4948_s30 = sld [smem:[%s8178_s0 + %s6541_s27]]   ;;  %s6557_s27 = smov 36  }
 0xa6f   :  { %v7260_v17 = vsub.f32 %v7230_v2, %v2127_v48  ;;  %v2126_v10 = vmul.f32 0.03125, %v2110_v37 }
 0xa70   :  { %v2119_v18 = vpop.xlane.xlu1 %2118 }
 0xa71   :  { %v7263_v35 = vsub.f32 %v7233_v5, %v2126_v10  ;;  %v2129_v57 = vmul.f32 0.03125, %v2119_v18  ;;  %v2139_v61 = vmul.f32 %v7260_v17, %v7260_v17 }
 0xa72   :  { %v2116_v51 = vpop.xlane.xlu0 %2115 }
 0xa73   :  { %v7268_v52 = vsub.f32 %v7238_v15, %v2129_v57  ;;  %v2128_v9 = vmul.f32 0.03125, %v2116_v51  ;;  %v2147_v53 = vsel %vm287_vm0, %v2139_v61, 0.0  ;;  %v2138_v59 = vmul.f32 %v7263_v35, %v7263_v35  ;;  %v5073_v61 = vld [vmem:[%s4943_s1] ss:$0 sm:$0xff]  ;;  %s6542_s1 = smov 18  }
 0xa74   :  { %2148 = vadd.xlane.f32.xlu1 %v2147_v53  ;;  %v2125_v13 = vpop.xlane.xlu1 %2124  ;;  %s4949_s4 = sld [smem:[%s8178_s0 + %s6542_s1]]   ;;  %s6558_s1 = smov 35  }
 0xa75   :  { %v7274_v63 = vsub.f32 %v7243_v39, %v2128_v9  ;;  %v2131_v58 = vmul.f32 0.03125, %v2125_v13  ;;  %v2144_v29 = vsel %vm287_vm0, %v2138_v59, 0.0  ;;  %v2141_v6 = vmul.f32 %v7268_v52, %v7268_v52 }
 0xa76   :  { %2145 = vadd.xlane.f32.xlu0 %v2144_v29  ;;  %v2122_v21 = vpop.xlane.xlu0 %2121 }
 0xa77   :  { %v7280_v41 = vsub.f32 %v7248_v31, %v2131_v58  ;;  %v2130_v60 = vmul.f32 0.03125, %v2122_v21  ;;  %v2153_v62 = vsel %vm287_vm0, %v2141_v6, 0.0  ;;  %v2140_v0 = vmul.f32 %v7274_v63, %v7274_v63 }
 0xa78   :  { %2154 = vadd.xlane.f32.xlu1 %v2153_v62 }
 0xa79   :  { %v7286_v23 = vsub.f32 %v7253_v3, %v2130_v60  ;;  %v2150_v20 = vsel %vm287_vm0, %v2140_v0, 0.0  ;;  %v2143_v19 = vmul.f32 %v7280_v41, %v7280_v41 }
 0xa7a   :  { %2151 = vadd.xlane.f32.xlu0 %v2150_v20 }
 0xa7b   :  { %v2159_v34 = vsel %vm287_vm0, %v2143_v19, 0.0  ;;  %v2142_v47 = vmul.f32 %v7286_v23, %v7286_v23 }
 0xa7c   :  { %2160 = vadd.xlane.f32.xlu1 %v2159_v34  ;;  %v206_v34 = vld [vmem:[%s7319_s6 + $0x68] sm:$0xff] }
 0xa7d   :  { %v2156_v54 = vsel %vm287_vm0, %v2142_v47, 0.0  ;;  %v205_v47 = vld [vmem:[%s7319_s6 + $0x60] sm:$0xff] }
 0xa7e   :  { %2157 = vadd.xlane.f32.xlu0 %v2156_v54  ;;  %v204_v54 = vld [vmem:[%s7319_s6 + $0x58] sm:$0xff] }
 0xafd   :  { %v2149_v42 = vpop.xlane.xlu1 %2148 }
 0xafe   :  { %v2163_v40 = vmul.f32 0.03125, %v2149_v42  ;;  %v199_v42 = vld [vmem:[%s7319_s6 + $0x30] sm:$0xff] }
 0xaff   :  { %v2146_v7 = vpop.xlane.xlu0 %2145 }
 0xb00   :  { %v2169_v12 = vadd.f32 1e-05, %v2163_v40  ;;  %v2162_v36 = vmul.f32 0.03125, %v2146_v7  ;;  %v198_v40 = vld [vmem:[%s7319_s6 + $0x28] sm:$0xff]  ;;  %v197_v7 = vld [vmem:[%s7319_s6 + $0x20] sm:$0xff] }
 0xb01   :  { %v2155_v8 = vpop.xlane.xlu1 %2154 }
 0xb02   :  { %6316 = vrsqrt.f32 %v2169_v12  ;;  %v2168_v38 = vadd.f32 1e-05, %v2162_v36  ;;  %v2165_v46 = vmul.f32 0.03125, %v2155_v8  ;;  %v196_v12 = vld [vmem:[%s7319_s6 + $0x18] sm:$0xff]  ;;  %v195_v36 = vld [vmem:[%s7319_s6 + $0x10] sm:$0xff]  ;;  %v194_v8 = vld [vmem:[%s7319_s6 + $0x8] sm:$0xff] }
 0xb03   :  { %v2152_v49 = vpop.xlane.xlu0 %2151 }
 0xb04   :  { %6318 = vrsqrt.f32 %v2168_v38  ;;  %v2171_v25 = vadd.f32 1e-05, %v2165_v46  ;;  %v2164_v22 = vmul.f32 0.03125, %v2152_v49  ;;  %v193_v38 = vld [vmem:[%s7319_s6] sm:$0xff] }
 0xb05   :  { %v2161_v50 = vpop.xlane.xlu1 %2160  ;;  %v5074_v46 = vld [vmem:[%s4945_s10] ss:$0 sm:$0xff]  ;;  %s6544_s10 = smov 22  }
 0xb06   :  { %6320 = vrsqrt.f32 %v2171_v25  ;;  %v2170_v56 = vadd.f32 1e-05, %v2164_v22  ;;  %v2167_v30 = vmul.f32 0.03125, %v2161_v50  ;;  %s4953_s14 = sld [smem:[%s8178_s0 + %s6544_s10]]  }
 0xb07   :  { %v2158_v14 = vpop.xlane.xlu0 %2157 }
 0xb08   :  { %6322 = vrsqrt.f32 %v2170_v56  ;;  %v2173_v26 = vadd.f32 1e-05, %v2167_v30  ;;  %v2166_v28 = vmul.f32 0.03125, %v2158_v14 }
 0xb0a   :  { %6324 = vrsqrt.f32 %v2173_v26  ;;  %v2172_v1 = vadd.f32 1e-05, %v2166_v28 }
 0xb0c   :  { %6326 = vrsqrt.f32 %v2172_v1 }
 0xb0f   :  { %v6317_v33 = vpop.eup %6316 }
 0xb10   :  { %v2181_v48 = vmul.f32 %v6317_v33, %v7260_v17 }
 0xb11   :  { %v6319_v37 = vpop.eup %6318 }
 0xb12   :  { %v2180_v10 = vmul.f32 %v6319_v37, %v7263_v35  ;;  %v2193_v57 = vmul.f32 %v5072_v11, %v2181_v48 }
 0xb13   :  { %v6321_v18 = vpop.eup %6320 }
 0xb14   :  { %v2192_v51 = vmul.f32 %v5072_v11, %v2180_v10  ;;  %v2183_v9 = vmul.f32 %v6321_v18, %v7268_v52  ;;  %v2205_v29 = vadd.f32 %v5073_v61, %v2193_v57 }
 0xb15   :  { %v6323_v53 = vpop.eup %6322 }
 0xb16   :  { %v2204_v59 = vadd.f32 %v5073_v61, %v2192_v51  ;;  %v2182_v13 = vmul.f32 %v6323_v53, %v7274_v63  ;;  %v2195_v6 = vmul.f32 %v5072_v11, %v2183_v9 }
 0xb17   :  { %v6325_v58 = vpop.eup %6324 }
 0xb18   :  { %5790 = vmatprep.mubr.msk.f32.mxu0 %vm287_vm0, %v2204_v59  ;;  %v2194_v21 = vmul.f32 %v5072_v11, %v2182_v13  ;;  %v2185_v17 = vmul.f32 %v6325_v58, %v7280_v41  ;;  %v2207_v0 = vadd.f32 %v5073_v61, %v2195_v6  ;;  %v208_v41 = vld [vmem:[%s7319_s6 + $0x78] sm:$0xff] }
 0xb19   :  { %v6327_v60 = vpop.eup %6326  ;;  %5791 = vmatmul.mubr.msk.f32.vlgmr.msra.gmra.mxu0 %vm287_vm0, %v2205_v29  ;;  %5799 = vmatprep.subr.mxu1 %v208_v41 }
 0xb1a   :  { %v2206_v35 = vadd.f32 %v5073_v61, %v2194_v21  ;;  %v2184_v62 = vmul.f32 %v6327_v60, %v7286_v23  ;;  %v2197_v52 = vmul.f32 %v5072_v11, %v2185_v17  ;;  %5800 = vmatpush3.msra.mxu1 %v208_v41  ;;  %v207_v23 = vld [vmem:[%s7319_s6 + $0x70] sm:$0xff]  ;;  %s6543_s6 = smov 20  }
 0xb1b   :  { %5801 = vmatprep.subr.mxu1 %v207_v23  ;;  %s4951_s9 = sld [smem:[%s8178_s0 + %s6543_s6]]   ;;  %s6559_s6 = smov 38  }
 0xb1c   :  { %5793 = vmatprep.mubr.msk.f32.mxu0 %vm287_vm0, %v2206_v35  ;;  %v2196_v20 = vmul.f32 %v5072_v11, %v2184_v62  ;;  %v2209_v19 = vadd.f32 %v5073_v61, %v2197_v52  ;;  %5802 = vmatpush3.msra.mxu1 %v207_v23 }
 0xb1d   :  { %5794 = vmatmul.mubr.msk.f32.gmra.mxu0 %vm287_vm0, %v2207_v0  ;;  %5803 = vmatprep.subr.mxu1 %v206_v34 }
 0xb1e   :  { %v2208_v63 = vadd.f32 %v5073_v61, %v2196_v20  ;;  %5804 = vmatpush3.msra.mxu1 %v206_v34 }
 0xb1f   :  { %5805 = vmatprep.subr.mxu1 %v205_v47 }
 0xb20   :  { %5796 = vmatprep.mubr.msk.f32.mxu0 %vm287_vm0, %v2208_v63  ;;  %5806 = vmatpush3.msra.mxu1 %v205_v47 }
 0xb21   :  { %5797 = vmatmul.mubr.msk.f32.gmra.mxu0 %vm287_vm0, %v2209_v19  ;;  %5807 = vmatprep.subr.mxu1 %v204_v54 }
 0xb22   :  { %5808 = vmatpush3.msra.mxu1 %v204_v54 }
 0xb23   :  { %5809 = vmatprep.subr.mxu1 %v203_v27 }
 0xb24   :  { %5810 = vmatpush3.msra.mxu1 %v203_v27 }
 0xb25   :  { %5811 = vmatprep.subr.mxu1 %v202_v32 }
 0xb26   :  { %5812 = vmatpush3.msra.mxu1 %v202_v32 }
 0xb27   :  { %5813 = vmatprep.subr.mxu1 %v201_v16 }
 0xb28   :  { %5814 = vmatpush3.msra.mxu1 %v201_v16 }
 0xb29   :  { %5815 = vmatprep.subr.mxu1 %v200_v4 }
 0xb2a   :  { %5816 = vmatpush3.msra.mxu1 %v200_v4 }
 0xb2b   :  { %5817 = vmatprep.subr.mxu1 %v199_v42 }
 0xb2c   :  { %5818 = vmatpush3.msra.mxu1 %v199_v42 }
 0xb2d   :  { %5819 = vmatprep.subr.mxu1 %v198_v40 }
 0xb2e   :  { %5820 = vmatpush3.msra.mxu1 %v198_v40 }
 0xb2f   :  { %5821 = vmatprep.subr.mxu1 %v197_v7 }
 0xb30   :  { %5822 = vmatpush3.msra.mxu1 %v197_v7 }
 0xb31   :  { %5823 = vmatprep.subr.mxu1 %v196_v12 }
 0xb32   :  { %5824 = vmatpush3.msra.mxu1 %v196_v12  ;;  %v5081_v12 = vld [vmem:[%s4947_s15] ss:$0 sm:$0xff]  ;;  %s6545_s15 = smov 24  }
 0xb33   :  { %5825 = vmatprep.subr.mxu1 %v195_v36  ;;  %s4955_s18 = sld [smem:[%s8178_s0 + %s6545_s15]]  }
 0xb34   :  { %5826 = vmatpush3.msra.mxu1 %v195_v36 }
 0xb35   :  { %5827 = vmatprep.subr.mxu1 %v194_v8 }
 0xb36   :  { %5828 = vmatpush3.msra.mxu1 %v194_v8 }
 0xb37   :  { %5829 = vmatprep.subr.mxu1 %v193_v38 }
 0xb38   :  { %5830 = vmatpush3.msra.mxu1 %v193_v38 }
 0xbd9   :  { %v5792_v49 = vpop.f32.mrf.mxu0 }
 0xbda   :  { %v2306_v25 = vadd.f32 %v5792_v49, %v5074_v46 }
 0xbdb   :  { %v2300_v22 = vpop.f32.mrf.mxu0 }
 0xbdc   :  { %v2330_v50 = vmul.f32 -1.702, %v2306_v25  ;;  %v2301_v56 = vadd.f32 %v5074_v46, %v2300_v22 }
 0xbdd   :  { %v5795_v30 = vpop.f32.mrf.mxu0 }
 0xbde   :  { %v2337_v14 = vmul.f32 1.442695, %v2330_v50  ;;  %v2329_v26 = vmul.f32 -1.702, %v2301_v56  ;;  %v2316_v28 = vadd.f32 %v5795_v30, %v5074_v46 }
 0xbdf   :  { %v2310_v1 = vpop.f32.mrf.mxu0 }
 0xbe0   :  { %6328 = vpow2.f32 %v2337_v14  ;;  %v2335_v33 = vmul.f32 1.442695, %v2329_v26  ;;  %v2332_v11 = vmul.f32 -1.702, %v2316_v28  ;;  %v2311_v48 = vadd.f32 %v5074_v46, %v2310_v1 }
 0xbe1   :  { %v5798_v37 = vpop.f32.mrf.mxu0 }
 0xbe2   :  { %6330 = vpow2.f32 %v2335_v33  ;;  %v2341_v10 = vmul.f32 1.442695, %v2332_v11  ;;  %v2331_v18 = vmul.f32 -1.702, %v2311_v48  ;;  %v2326_v57 = vadd.f32 %v5798_v37, %v5074_v46 }
 0xbe3   :  { %v2320_v61 = vpop.f32.mrf.mxu0 }
 0xbe4   :  { %6332 = vpow2.f32 %v2341_v10  ;;  %v2339_v51 = vmul.f32 1.442695, %v2331_v18  ;;  %v2334_v9 = vmul.f32 -1.702, %v2326_v57  ;;  %v2321_v53 = vadd.f32 %v5074_v46, %v2320_v61 }
 0xbe6   :  { %6334 = vpow2.f32 %v2339_v51  ;;  %v2345_v59 = vmul.f32 1.442695, %v2334_v9  ;;  %v2333_v13 = vmul.f32 -1.702, %v2321_v53 }
 0xbe8   :  { %6336 = vpow2.f32 %v2345_v59  ;;  %v2343_v58 = vmul.f32 1.442695, %v2333_v13 }
 0xbea   :  { %6338 = vpow2.f32 %v2343_v58 }
 0xbed   :  { %v6329_v29 = vpop.eup %6328 }
 0xbee   :  { %v2348_v6 = vadd.f32 1.0, %v6329_v29 }
 0xbef   :  { %v6331_v21 = vpop.eup %6330 }
 0xbf0   :  { %v2347_v17 = vadd.f32 1.0, %v6331_v21  ;;  %6340 = vrcp.f32 %v2348_v6 }
 0xbf1   :  { %v6333_v60 = vpop.eup %6332 }
 0xbf2   :  { %6342 = vrcp.f32 %v2347_v17  ;;  %v2350_v35 = vadd.f32 1.0, %v6333_v60 }
 0xbf3   :  { %v6335_v62 = vpop.eup %6334 }
 0xbf4   :  { %v2349_v0 = vadd.f32 1.0, %v6335_v62  ;;  %6344 = vrcp.f32 %v2350_v35 }
 0xbf5   :  { %v6337_v52 = vpop.eup %6336 }
 0xbf6   :  { %6346 = vrcp.f32 %v2349_v0  ;;  %v2352_v20 = vadd.f32 1.0, %v6337_v52 }
 0xbf7   :  { %v6339_v63 = vpop.eup %6338 }
 0xbf8   :  { %v2351_v19 = vadd.f32 1.0, %v6339_v63  ;;  %6348 = vrcp.f32 %v2352_v20 }
 0xbfa   :  { %6350 = vrcp.f32 %v2351_v19 }
 0xbfd   :  { %v6341_v41 = vpop.eup %6340 }
 0xbfe   :  { %v2366_v47 = vmul.f32 %v6341_v41, %v2306_v25 }
 0xbff   :  { %v6343_v23 = vpop.eup %6342 }
 0xc00   :  { %v2365_v34 = vmul.f32 %v6343_v23, %v2301_v56 }
 0xc01   :  { %v6345_v54 = vpop.eup %6344 }
 0xc02   :  { %5831 = vmatprep.mubr.f32.mxu1 %v2365_v34  ;;  %v2368_v16 = vmul.f32 %v6345_v54, %v2316_v28 }
 0xc03   :  { %v6347_v27 = vpop.eup %6346  ;;  %5832 = vmatmul.mubr.f32.vlgmr.msra.gmra.mxu1 %v2366_v47 }
 0xc04   :  { %v2367_v32 = vmul.f32 %v6347_v27, %v2311_v48 }
 0xc05   :  { %v6349_v4 = vpop.eup %6348 }
 0xc06   :  { %5834 = vmatprep.mubr.f32.mxu1 %v2367_v32  ;;  %v2370_v7 = vmul.f32 %v6349_v4, %v2326_v57  ;;  %v215_v4 = vld [vmem:[%s4950_s19 + $0x18] sm:$0xff] }
 0xc07   :  { %v6351_v42 = vpop.eup %6350  ;;  %5835 = vmatmul.mubr.f32.gmra.mxu1 %v2368_v16  ;;  %5840 = vmatprep.subr.mxu0 %v215_v4 }
 0xc08   :  { %v2369_v40 = vmul.f32 %v6351_v42, %v2321_v53  ;;  %v214_v42 = vld [vmem:[%s4950_s19 + $0x10] sm:$0xff]  ;;  %5841 = vmatpush3.msra.mxu0 %v215_v4  ;;  %v218_v4 = vld [vmem:[%s7418_s26 + $0x8] sm:$0xff] }
 0xc09   :  { %5842 = vmatprep.subr.mxu0 %v214_v42 }
 0xc0a   :  { %5837 = vmatprep.mubr.f32.mxu1 %v2369_v40  ;;  %v225_v40 = vld [vmem:[%s4954_s22 + $0x18] sm:$0xff]  ;;  %5843 = vmatpush3.msra.mxu0 %v214_v42 }
 0xc0b   :  { %5838 = vmatmul.mubr.f32.gmra.mxu1 %v2370_v7  ;;  %v224_v7 = vld [vmem:[%s4954_s22 + $0x10] sm:$0xff]  ;;  %5874 = vmatprep.subr.mxu1 %v225_v40 }
 0xc0c   :  { %5875 = vmatpush3.msra.mxu1 %v225_v40 }
 0xc0d   :  { %5876 = vmatprep.subr.mxu1 %v224_v7 }
 0xc0e   :  { %5877 = vmatpush3.msra.mxu1 %v224_v7  ;;  %v217_v7 = vld [vmem:[%s7418_s26] sm:$0xff] }
 0xcc3   :  { %v5833_v36 = vpop.f32.mrf.mxu1 }
 0xcc4   :  { %v2467_v8 = vadd.f32 %v5833_v36, %v7230_v2  ;;  %v223_v36 = vld [vmem:[%s4954_s22 + $0x8] sm:$0xff] }
 0xcc5   :  { %v2437_v38 = vpop.f32.mrf.mxu1  ;;  %5878 = vmatprep.subr.mxu1 %v223_v36 }
 0xcc6   :  { %v7344_v46 = vadd.f32 %v5081_v12, %v2467_v8  ;;  %v2466_v49 = vadd.f32 %v2437_v38, %v7233_v5  ;;  %v212_v8 = vld [vmem:[%s4950_s19] sm:$0xff]  ;;  %5879 = vmatpush3.msra.mxu1 %v223_v36 }
 0xcc7   :  { %v5836_v25 = vpop.f32.mrf.mxu1  ;;  %v222_v38 = vld [vmem:[%s4954_s22] sm:$0xff]  ;;  %s4964_s22 = sld [smem:[%s8178_s0 + %s6555_s20]]  }
 0xcc8   :  { %v7347_v22 = vadd.f32 %v5081_v12, %v2466_v49  ;;  %v2469_v50 = vadd.f32 %v5836_v25, %v7238_v15  ;;  %v2487_v56 = vsel %vm287_vm0, %v7344_v46, 0.0  ;;  %v220_v49 = vld [vmem:[%s7418_s26 + $0x18] sm:$0xff]  ;;  %5880 = vmatprep.subr.mxu1 %v222_v38  ;;  %v7457_v36 = vld [vmem:[%s4951_s9] ss:$0 sm:$0xff]  ;;  %s4969_s9 = sld [smem:[%s8178_s0 + %s6559_s6]]  }
 0xcc9   :  { %2488 = vadd.xlane.f32.xlu1 %v2487_v56  ;;  %v2447_v30 = vpop.f32.mrf.mxu1  ;;  %5881 = vmatpush3.msra.mxu1 %v222_v38 }
 0xcca   :  { %v7352_v14 = vadd.f32 %v5081_v12, %v2469_v50  ;;  %v2468_v26 = vadd.f32 %v2447_v30, %v7243_v39  ;;  %v2484_v2 = vsel %vm287_vm0, %v7347_v22, 0.0 }
 0xccb   :  { %2485 = vadd.xlane.f32.xlu0 %v2484_v2  ;;  %v5839_v28 = vpop.f32.mrf.mxu1 }
 0xccc   :  { %v7357_v5 = vadd.f32 %v5081_v12, %v2468_v26  ;;  %v2471_v1 = vadd.f32 %v5839_v28, %v7248_v31  ;;  %v2493_v15 = vsel %vm287_vm0, %v7352_v14, 0.0 }
 0xccd   :  { %2494 = vadd.xlane.f32.xlu1 %v2493_v15  ;;  %v2457_v33 = vpop.f32.mrf.mxu1 }
 0xcce   :  { %8184 = vst [vmem:[#allocation2_spill] sm:$0xff] %v7357_v5  ;;  %v7362_v11 = vadd.f32 %v5081_v12, %v2471_v1  ;;  %v2470_v48 = vadd.f32 %v2457_v33, %v7253_v3  ;;  %v2490_v39 = vsel %vm287_vm0, %v7357_v5, 0.0 }
 0xccf   :  { %2491 = vadd.xlane.f32.xlu0 %v2490_v39 }
 0xcd0   :  { %8185 = vst [vmem:[#allocation3_spill] sm:$0xff] %v7362_v11  ;;  %v7367_v37 = vadd.f32 %v5081_v12, %v2470_v48  ;;  %v2499_v10 = vsel %vm287_vm0, %v7362_v11, 0.0  ;;  %v213_v12 = vld [vmem:[%s4950_s19 + $0x8] sm:$0xff]  ;;  %s4963_s19 = sld [smem:[%s8178_s0 + %s6553_s17]]  }
 0xcd1   :  { %2500 = vadd.xlane.f32.xlu1 %v2499_v10  ;;  %5844 = vmatprep.subr.mxu0 %v213_v12 }
 0xcd2   :  { %8186 = vst [vmem:[#allocation4_spill] sm:$0xff] %v7367_v37  ;;  %v2496_v31 = vsel %vm287_vm0, %v7367_v37, 0.0  ;;  %5845 = vmatpush3.msra.mxu0 %v213_v12 }
 0xcd3   :  { %2497 = vadd.xlane.f32.xlu0 %v2496_v31  ;;  %5846 = vmatprep.subr.mxu0 %v212_v8 }
 0xcd4   :  { %5847 = vmatpush3.msra.mxu0 %v212_v8 }
 0xcd5   :  { %5857 = vmatprep.subr.mxu0 %v220_v49 }
 0xd52   :  { %v2489_v18 = vpop.xlane.xlu1 %2488 }
 0xd53   :  { %v2503_v57 = vmul.f32 0.03125, %v2489_v18 }
 0xd54   :  { %v2486_v61 = vpop.xlane.xlu0 %2485 }
 0xd55   :  { %v7374_v51 = vsub.f32 %v7344_v46, %v2503_v57  ;;  %v2502_v3 = vmul.f32 0.03125, %v2486_v61 }
 0xd56   :  { %v2495_v9 = vpop.xlane.xlu1 %2494 }
 0xd57   :  { %v7377_v53 = vsub.f32 %v7347_v22, %v2502_v3  ;;  %v2505_v59 = vmul.f32 0.03125, %v2495_v9  ;;  %v2515_v13 = vmul.f32 %v7374_v51, %v7374_v51 }
 0xd58   :  { %v2492_v58 = vpop.xlane.xlu0 %2491 }
 0xd59   :  { %v7382_v29 = vsub.f32 %v7352_v14, %v2505_v59  ;;  %v2504_v6 = vmul.f32 0.03125, %v2492_v58  ;;  %v2523_v21 = vsel %vm287_vm0, %v2515_v13, 0.0  ;;  %v2514_v17 = vmul.f32 %v7377_v53, %v7377_v53  ;;  %v5082_v59 = vld [vmem:[%s4948_s30] ss:$0 sm:$0xff]  ;;  %s4967_s30 = sld [smem:[%s8178_s0 + %s6557_s27]]  }
 0xd5a   :  { %2524 = vadd.xlane.f32.xlu1 %v2523_v21  ;;  %v2501_v60 = vpop.xlane.xlu1 %2500 }
 0xd5b   :  { %v7388_v35 = vsub.f32 %v7357_v5, %v2504_v6  ;;  %v2507_v62 = vmul.f32 0.03125, %v2501_v60  ;;  %v2520_v0 = vsel %vm287_vm0, %v2514_v17, 0.0  ;;  %v2517_v52 = vmul.f32 %v7382_v29, %v7382_v29  ;;  %v5083_v60 = vld [vmem:[%s4949_s4] ss:$0 sm:$0xff]  ;;  %s8155_s4 = sld [smem:[%s8178_s0 + %s6558_s1]]  }
 0xd5c   :  { %2521 = vadd.xlane.f32.xlu0 %v2520_v0  ;;  %v2498_v20 = vpop.xlane.xlu0 %2497 }
 0xd5d   :  { %v7394_v63 = vsub.f32 %v7362_v11, %v2507_v62  ;;  %v2506_v19 = vmul.f32 0.03125, %v2498_v20  ;;  %v2529_v41 = vsel %vm287_vm0, %v2517_v52, 0.0  ;;  %v2516_v23 = vmul.f32 %v7388_v35, %v7388_v35 }
 0xd5e   :  { %2530 = vadd.xlane.f32.xlu1 %v2529_v41 }
 0xd5f   :  { %v7400_v34 = vsub.f32 %v7367_v37, %v2506_v19  ;;  %v2526_v47 = vsel %vm287_vm0, %v2516_v23, 0.0  ;;  %v2519_v54 = vmul.f32 %v7394_v63, %v7394_v63 }
 0xd60   :  { %2527 = vadd.xlane.f32.xlu0 %v2526_v47 }
 0xd61   :  { %v2535_v27 = vsel %vm287_vm0, %v2519_v54, 0.0  ;;  %v2518_v32 = vmul.f32 %v7400_v34, %v7400_v34 }
 0xd62   :  { %2536 = vadd.xlane.f32.xlu1 %v2535_v27 }
 0xd63   :  { %v2532_v16 = vsel %vm287_vm0, %v2518_v32, 0.0 }
 0xd64   :  { %2533 = vadd.xlane.f32.xlu0 %v2532_v16 }
 0xde3   :  { %v2525_v25 = vpop.xlane.xlu1 %2524 }
 0xde4   :  { %v2539_v50 = vmul.f32 0.03125, %v2525_v25 }
 0xde5   :  { %v2522_v56 = vpop.xlane.xlu0 %2521 }
 0xde6   :  { %v2545_v30 = vadd.f32 1e-05, %v2539_v50  ;;  %v2538_v26 = vmul.f32 0.03125, %v2522_v56 }
 0xde7   :  { %v2531_v2 = vpop.xlane.xlu1 %2530 }
 0xde8   :  { %6352 = vrsqrt.f32 %v2545_v30  ;;  %v2544_v28 = vadd.f32 1e-05, %v2538_v26  ;;  %v2541_v1 = vmul.f32 0.03125, %v2531_v2 }
 0xde9   :  { %v2528_v15 = vpop.xlane.xlu0 %2527 }
 0xdea   :  { %6354 = vrsqrt.f32 %v2544_v28  ;;  %v2547_v33 = vadd.f32 1e-05, %v2541_v1  ;;  %v2540_v48 = vmul.f32 0.03125, %v2528_v15 }
 0xdeb   :  { %v2537_v39 = vpop.xlane.xlu1 %2536 }
 0xdec   :  { %6356 = vrsqrt.f32 %v2547_v33  ;;  %v2546_v10 = vadd.f32 1e-05, %v2540_v48  ;;  %v2543_v31 = vmul.f32 0.03125, %v2537_v39  ;;  %v5091_v39 = vld [vmem:[%s4953_s14] ss:$0 sm:$0xff] }
 0xded   :  { %v2534_v18 = vpop.xlane.xlu0 %2533 }
 0xdee   :  { %6358 = vrsqrt.f32 %v2546_v10  ;;  %v2549_v57 = vadd.f32 1e-05, %v2543_v31  ;;  %v2542_v61 = vmul.f32 0.03125, %v2534_v18 }
 0xdf0   :  { %6360 = vrsqrt.f32 %v2549_v57  ;;  %v2548_v3 = vadd.f32 1e-05, %v2542_v61 }
 0xdf2   :  { %6362 = vrsqrt.f32 %v2548_v3 }
 0xdf5   :  { %v6353_v9 = vpop.eup %6352 }
 0xdf6   :  { %v2557_v13 = vmul.f32 %v6353_v9, %v7374_v51 }
 0xdf7   :  { %v6355_v58 = vpop.eup %6354 }
 0xdf8   :  { %v2556_v6 = vmul.f32 %v6355_v58, %v7377_v53  ;;  %v2569_v17 = vmul.f32 %v5082_v59, %v2557_v13  ;;  %v219_v53 = vld [vmem:[%s7418_s26 + $0x10] sm:$0xff]  ;;  %s4965_s26 = sld [smem:[%s8178_s0 + %s6556_s23]]  }
 0xdf9   :  { %v6357_v21 = vpop.eup %6356 }
 0xdfa   :  { %v2568_v62 = vmul.f32 %v5082_v59, %v2556_v6  ;;  %v2559_v0 = vmul.f32 %v6357_v21, %v7382_v29  ;;  %v2581_v23 = vadd.f32 %v5083_v60, %v2569_v17  ;;  %v5098_v17 = vld [vmem:[%s4955_s18] ss:$0 sm:$0xff] }
 0xdfb   :  { %v6359_v52 = vpop.eup %6358 }
 0xdfc   :  { %v2580_v20 = vadd.f32 %v5083_v60, %v2568_v62  ;;  %v2558_v19 = vmul.f32 %v6359_v52, %v7388_v35  ;;  %v2571_v47 = vmul.f32 %v5082_v59, %v2559_v0 }
 0xdfd   :  { %v6361_v41 = vpop.eup %6360 }
 0xdfe   :  { %5848 = vmatprep.mubr.msk.f32.mxu0 %vm287_vm0, %v2580_v20  ;;  %5882 = vmatprep.mubr.msk.f32.mxu1 %vm287_vm0, %v2580_v20  ;;  %v2570_v51 = vmul.f32 %v5082_v59, %v2558_v19  ;;  %v2561_v54 = vmul.f32 %v6361_v41, %v7394_v63  ;;  %v2583_v32 = vadd.f32 %v5083_v60, %v2571_v47 }
 0xdff   :  { %v6363_v27 = vpop.eup %6362  ;;  %5849 = vmatmul.mubr.msk.f32.vlgmr.msra.gmra.mxu0 %vm287_vm0, %v2581_v23  ;;  %5883 = vmatmul.mubr.msk.f32.vlgmr.msra.gmra.mxu1 %vm287_vm0, %v2581_v23 }
 0xe00   :  { %5858 = vmatpush3.msra.mxu0 %v220_v49  ;;  %v2582_v29 = vadd.f32 %v5083_v60, %v2570_v51  ;;  %v2560_v35 = vmul.f32 %v6363_v27, %v7400_v34  ;;  %v2573_v16 = vmul.f32 %v5082_v59, %v2561_v54 }
 0xe01   :  { %5859 = vmatprep.subr.mxu0 %v219_v53 }
 0xe02   :  { %5851 = vmatprep.mubr.msk.f32.mxu0 %vm287_vm0, %v2582_v29  ;;  %5885 = vmatprep.mubr.msk.f32.mxu1 %vm287_vm0, %v2582_v29  ;;  %v2572_v42 = vmul.f32 %v5082_v59, %v2560_v35  ;;  %v2585_v40 = vadd.f32 %v5083_v60, %v2573_v16 }
 0xe03   :  { %5852 = vmatmul.mubr.msk.f32.gmra.mxu0 %vm287_vm0, %v2583_v32  ;;  %5886 = vmatmul.mubr.msk.f32.gmra.mxu1 %vm287_vm0, %v2583_v32 }
 0xe04   :  { %5860 = vmatpush3.msra.mxu0 %v219_v53  ;;  %v2584_v63 = vadd.f32 %v5083_v60, %v2572_v42 }
 0xe05   :  { %5861 = vmatprep.subr.mxu0 %v218_v4 }
 0xe06   :  { %5854 = vmatprep.mubr.msk.f32.mxu0 %vm287_vm0, %v2584_v63  ;;  %5862 = vmatpush3.msra.mxu0 %v218_v4 }
 0xe07   :  { %5888 = vmatprep.mubr.msk.f32.mxu1 %vm287_vm0, %v2584_v63  ;;  %5855 = vmatmul.mubr.msk.f32.gmra.mxu0 %vm287_vm0, %v2585_v40 }
 0xe08   :  { %5889 = vmatmul.mubr.msk.f32.gmra.mxu1 %vm287_vm0, %v2585_v40  ;;  %5863 = vmatprep.subr.mxu0 %v217_v7 }
 0xe09   :  { %5865 = vmatprep.mubr.msk.f32.mxu0 %vm287_vm0, %v2580_v20  ;;  %5864 = vmatpush3.msra.mxu0 %v217_v7 }
 0xe0b   :  { %5866 = vmatmul.mubr.msk.f32.vlgmr.msra.gmra.mxu0 %vm287_vm0, %v2581_v23 }
 0xe0c   :  { %5868 = vmatprep.mubr.msk.f32.mxu0 %vm287_vm0, %v2582_v29 }
 0xe0f   :  { %5869 = vmatmul.mubr.msk.f32.gmra.mxu0 %vm287_vm0, %v2583_v32 }
 0xe10   :  { %5871 = vmatprep.mubr.msk.f32.mxu0 %vm287_vm0, %v2584_v63 }
 0xe13   :  { %5872 = vmatmul.mubr.msk.f32.gmra.mxu0 %vm287_vm0, %v2585_v40 }
 0xebf   :  { %v5850_v34 = vpop.f32.mrf.mxu0  ;;  %v7473_v48 = vpop.f32.mrf.mxu1 }
 0xec0   :  { %v7523_v21 = vadd.f32 %v5850_v34, %v7457_v36 }
 0xec1   :  { %v2676_v12 = vpop.f32.mrf.mxu0  ;;  %v7483_v61 = vpop.f32.mrf.mxu1 }
 0xec2   :  { %v7460_v8 = vadd.f32 %v7457_v36, %v2676_v12  ;;  %v2908_v52 = vmul.f32 %v7523_v21, %v6688_v44  ;;  %v3123_v20 = vmul.f32 %v7523_v21, %v6691_v45 }
 0xec3   :  { %v5853_v38 = vpop.f32.mrf.mxu0  ;;  %v5887_v9 = vpop.f32.mrf.mxu1 }
 0xec4   :  { %v2907_v25 = vmul.f32 %v7460_v8, %v6688_v44  ;;  %v3122_v50 = vmul.f32 %v7460_v8, %v6691_v45  ;;  %v7549_v41 = vadd.f32 %v5853_v38, %v7457_v36  ;;  %v2914_v29 = vmul.f32 0.35355338, %v2908_v52 }
 0xec5   :  { %v2686_v49 = vpop.f32.mrf.mxu0  ;;  %v2888_v13 = vpop.f32.mrf.mxu1  ;;  %v3129_v35 = vmul.f32 0.35355338, %v3123_v20  ;;  %v7572_v63 = vadd.f32 %v5887_v9, %v5098_v17  ;;  %v7636_v20 = vld [vmem:[%s6874_s12] sm:$0xff] }
 0xec6   :  { %v2913_v30 = vmul.f32 0.35355338, %v2907_v25  ;;  %v3128_v26 = vmul.f32 0.35355338, %v3122_v50  ;;  %v7530_v60 = vadd.f32 %v7457_v36, %v2686_v49  ;;  %v2910_v4 = vmul.f32 %v7549_v41, %v6688_v44 }
 0xec7   :  { %v7466_v56 = vpop.f32.mrf.mxu0  ;;  %v3125_v42 = vmul.f32 %v7549_v41, %v6691_v45  ;;  %v7590_v38 = vadd.f32 %v5098_v17, %v2888_v13  ;;  %v3316_v50 = vmul.f32 %v7572_v63, %v6691_v45 }
 0xec8   :  { %5903 = vmatprep.mubr.msk.f32.mxu0 %vm287_vm0, %v2913_v30  ;;  %5924 = vmatprep.mubr.msk.f32.mxu1 %vm287_vm0, %v3128_v26  ;;  %v5890_v6 = vpop.f32.mrf.mxu1  ;;  %v2909_v23 = vmul.f32 %v7530_v60, %v6688_v44  ;;  %v3124_v47 = vmul.f32 %v7530_v60, %v6691_v45  ;;  %v7576_v40 = vadd.f32 %v7466_v56, %v7457_v36  ;;  %v2916_v49 = vmul.f32 0.35355338, %v2910_v4 }
 0xec9   :  { %v2696_v2 = vpop.f32.mrf.mxu0  ;;  %v7532_v62 = vadd.f32 %v5890_v6, %v5098_v17  ;;  %v3131_v25 = vmul.f32 0.35355338, %v3125_v42  ;;  %v3119_v56 = vmul.f32 %v7572_v63, %v6688_v44 }
 0xeca   :  { %v2898_v19 = vpop.f32.mrf.mxu1  ;;  %v7556_v51 = vadd.f32 %v7457_v36, %v2696_v2  ;;  %v2915_v32 = vmul.f32 0.35355338, %v2909_v23  ;;  %v3130_v16 = vmul.f32 0.35355338, %v3124_v47  ;;  %v2912_v2 = vmul.f32 %v7576_v40, %v6688_v44 }
 0xecb   :  { %v5867_v28 = vpop.f32.mrf.mxu0  ;;  %v3318_v53 = vmul.f32 %v7532_v62, %v6691_v45  ;;  %v3121_v54 = vmul.f32 %v7532_v62, %v6688_v44  ;;  %v7562_v27 = vadd.f32 %v5098_v17, %v2898_v19  ;;  %v7626_v6 = vmul.f32 %v7532_v62, %v6862_v55 }
 0xecc   :  { %v7516_v58 = vadd.f32 %v5867_v28, %v5091_v39  ;;  %v2911_v7 = vmul.f32 %v7556_v51, %v6688_v44  ;;  %v3126_v36 = vmul.f32 %v7556_v51, %v6691_v45  ;;  %v3127_v28 = vmul.f32 %v7576_v40, %v6691_v45 }
 0xecd   :  { %v2777_v1 = vpop.f32.mrf.mxu0  ;;  %v3317_v34 = vmul.f32 %v7562_v27, %v6691_v45  ;;  %v3120_v12 = vmul.f32 %v7562_v27, %v6688_v44 }
 0xece   :  { %v7534_v0 = vadd.f32 %v5091_v39, %v2777_v1  ;;  %v2917_v30 = vmul.f32 0.35355338, %v2911_v7  ;;  %v3132_v26 = vmul.f32 0.35355338, %v3126_v36  ;;  %v7603_v1 = vadd.f32 %v7473_v48, %v5098_v17 }
 0xecf   :  { %v5870_v15 = vpop.f32.mrf.mxu0  ;;  %v2918_v48 = vmul.f32 0.35355338, %v2912_v2 }
 0xed0   :  { %v7493_v3 = vadd.f32 %v5870_v15, %v5091_v39  ;;  %v3315_v15 = vmul.f32 %v7590_v38, %v6691_v45  ;;  %v3117_v9 = vmul.f32 %v7603_v1, %v6688_v44 }
 0xed1   :  { %v2787_v33 = vpop.f32.mrf.mxu0 }
 0xed2   :  { %v7506_v59 = vadd.f32 %v5091_v39, %v2787_v33  ;;  %v3118_v33 = vmul.f32 %v7590_v38, %v6688_v44 }
 0xed3   :  { %v5873_v10 = vpop.f32.mrf.mxu0 }
 0xed4   :  { %v7475_v31 = vadd.f32 %v5873_v10, %v5091_v39  ;;  %v3133_v10 = vmul.f32 0.35355338, %v3127_v28 }
 0xed5   :  { %v2797_v18 = vpop.f32.mrf.mxu0 }
 0xed6   :  { %v7477_v57 = vadd.f32 %v5091_v39, %v2797_v18  ;;  %5891 = vmatprep.subr.msk.mxu0 %vm287_vm0, %v7475_v31  ;;  %5912 = vmatprep.subr.msk.mxu1 %vm287_vm0, %v7475_v31  ;;  %v7612_v39 = vadd.f32 %v5098_v17, %v7483_v61  ;;  %v3314_v18 = vmul.f32 %v7603_v1, %v6691_v45  ;;  %v7632_v17 = vld [vmem:[%s6874_s12 + $0x8] sm:$0xff] }
 0xed7   :  { %5892 = vmatpush3.xpose.msk.msra.mxu0 %vm287_vm0, %v7475_v31  ;;  %5913 = vmatpush3.xpose.msk.msra.mxu1 %vm287_vm0, %v7475_v31 }
 0xed8   :  { %5893 = vmatprep.subr.msk.mxu0 %vm287_vm0, %v7477_v57  ;;  %5914 = vmatprep.subr.msk.mxu1 %vm287_vm0, %v7477_v57  ;;  %v3313_v61 = vmul.f32 %v7612_v39, %v6691_v45  ;;  %v3116_v13 = vmul.f32 %v7612_v39, %v6688_v44 }
 0xedb   :  { %5894 = vmatpush3.xpose.msk.msra.mxu0 %vm287_vm0, %v7477_v57  ;;  %5915 = vmatpush3.xpose.msk.msra.mxu1 %vm287_vm0, %v7477_v57 }
 0xedc   :  { %5895 = vmatprep.subr.msk.mxu0 %vm287_vm0, %v7493_v3  ;;  %5916 = vmatprep.subr.msk.mxu1 %vm287_vm0, %v7493_v3 }
 0xedf   :  { %5896 = vmatpush3.xpose.msk.msra.mxu0 %vm287_vm0, %v7493_v3  ;;  %5917 = vmatpush3.xpose.msk.msra.mxu1 %vm287_vm0, %v7493_v3 }
 0xee0   :  { %5897 = vmatprep.subr.msk.mxu0 %vm287_vm0, %v7506_v59  ;;  %5918 = vmatprep.subr.msk.mxu1 %vm287_vm0, %v7506_v59 }
 0xee3   :  { %5898 = vmatpush3.xpose.msk.msra.mxu0 %vm287_vm0, %v7506_v59  ;;  %5919 = vmatpush3.xpose.msk.msra.mxu1 %vm287_vm0, %v7506_v59 }
 0xee4   :  { %5899 = vmatprep.subr.msk.mxu0 %vm287_vm0, %v7516_v58  ;;  %5920 = vmatprep.subr.msk.mxu1 %vm287_vm0, %v7516_v58 }
 0xee7   :  { %5900 = vmatpush3.xpose.msk.msra.mxu0 %vm287_vm0, %v7516_v58  ;;  %5921 = vmatpush3.xpose.msk.msra.mxu1 %vm287_vm0, %v7516_v58 }
 0xee8   :  { %5901 = vmatprep.subr.msk.mxu0 %vm287_vm0, %v7534_v0  ;;  %5922 = vmatprep.subr.msk.mxu1 %vm287_vm0, %v7534_v0 }
 0xeeb   :  { %5902 = vmatpush3.xpose.msk.msra.mxu0 %vm287_vm0, %v7534_v0  ;;  %5923 = vmatpush3.xpose.msk.msra.mxu1 %vm287_vm0, %v7534_v0 }
 0xeec   :  { %5933 = vmatprep.subr.mxu0 %v3318_v53  ;;  %5954 = vmatprep.subr.mxu1 %v3121_v54 }
 0xeee   :  { %5904 = vmatmul.mubr.msk.f32.vlgmr.msra.gmra.mxu0 %vm287_vm0, %v2914_v29  ;;  %5925 = vmatmul.mubr.msk.f32.vlgmr.msra.gmra.mxu1 %vm287_vm0, %v3129_v35 }
 0xeef   :  { %5906 = vmatprep.mubr.msk.f32.mxu0 %vm287_vm0, %v2915_v32  ;;  %5927 = vmatprep.mubr.msk.f32.mxu1 %vm287_vm0, %v3130_v16  ;;  %v7646_v32 = vld [vmem:[%s6874_s12 + $0x10] sm:$0xff] }
 0xef0   :  { %5934 = vmatpush3.msra.mxu0 %v3318_v53  ;;  %5955 = vmatpush3.msra.mxu1 %v3121_v54  ;;  %v7642_v54 = vld [vmem:[%s6874_s12 + $0x18] sm:$0xff] }
 0xef1   :  { %5935 = vmatprep.subr.mxu0 %v3317_v34  ;;  %5956 = vmatprep.subr.mxu1 %v3120_v12 }
 0xef2   :  { %5936 = vmatpush3.msra.mxu0 %v3317_v34  ;;  %5957 = vmatpush3.msra.mxu1 %v3120_v12  ;;  %v7652_v34 = vld [vmem:[%s6874_s12 + $0x28] sm:$0xff] }
 0xef3   :  { %5907 = vmatmul.mubr.msk.f32.gmra.mxu0 %vm287_vm0, %v2916_v49  ;;  %5928 = vmatmul.mubr.msk.f32.gmra.mxu1 %vm287_vm0, %v3131_v25  ;;  %v7656_v49 = vld [vmem:[%s6874_s12 + $0x20] sm:$0xff]  ;;  %s6546_s12 = smov 25  }
 0xef4   :  { %5937 = vmatprep.subr.mxu0 %v3316_v50  ;;  %5958 = vmatprep.subr.mxu1 %v3119_v56  ;;  %s7950_s5 = sld [smem:[%s8178_s0 + %s6546_s12]]  }
 0xef5   :  { %5909 = vmatprep.mubr.msk.f32.mxu0 %vm287_vm0, %v2917_v30  ;;  %5930 = vmatprep.mubr.msk.f32.mxu1 %vm287_vm0, %v3132_v26 }
 0xef6   :  { %5938 = vmatpush3.msra.mxu0 %v3316_v50  ;;  %5959 = vmatpush3.msra.mxu1 %v3119_v56 }
 0xef7   :  { %5939 = vmatprep.subr.mxu0 %v3315_v15  ;;  %5960 = vmatprep.subr.mxu1 %v3118_v33 }
 0xef8   :  { %5940 = vmatpush3.msra.mxu0 %v3315_v15  ;;  %5961 = vmatpush3.msra.mxu1 %v3118_v33 }
 0xef9   :  { %5910 = vmatmul.mubr.msk.f32.gmra.mxu0 %vm287_vm0, %v2918_v48  ;;  %5931 = vmatmul.mubr.msk.f32.gmra.mxu1 %vm287_vm0, %v3133_v10 }
 0xefa   :  { %5941 = vmatprep.subr.mxu0 %v3314_v18  ;;  %5962 = vmatprep.subr.mxu1 %v3117_v9 }
 0xefb   :  { %5942 = vmatpush3.msra.mxu0 %v3314_v18  ;;  %5963 = vmatpush3.msra.mxu1 %v3117_v9 }
 0xefc   :  { %5943 = vmatprep.subr.mxu0 %v3313_v61  ;;  %5964 = vmatprep.subr.mxu1 %v3116_v13 }
 0xefd   :  { %5944 = vmatpush3.msra.mxu0 %v3313_v61  ;;  %5965 = vmatpush3.msra.mxu1 %v3116_v13 }
 0xefe   :  { %5975 = vmatprep.subr.msk.mxu0 %vm287_vm0, %v7475_v31  ;;  %5996 = vmatprep.subr.mxu1 %v7626_v6 }
 0xfae   :  { %v5926_v45 = vpop.f32.mrf.mxu1 }
 0xfaf   :  { %v3224_v44 = vadd.f32 %v7632_v17, %v5926_v45 }
 0xfb0   :  { %v3218_v52 = vpop.f32.mrf.mxu1 }
 0xfb1   :  { %v3219_v19 = vadd.f32 %v7636_v20, %v3218_v52  ;;  %v3250_v23 = vsel %vm855_vm8, %v3224_v44, -inf }
 0xfb2   :  { %3251 = vmax.xlane.f32.xlu1 %v3250_v23 }
 0xfb3   :  { %v5929_v47 = vpop.f32.mrf.mxu1  ;;  %v3247_v53 = vsel %vm855_vm8, %v3219_v19, -inf }
 0xfb4   :  { %v3234_v29 = vadd.f32 %v7642_v54, %v5929_v47  ;;  %3248 = vmax.xlane.f32.xlu0 %v3247_v53 }
 0xfb5   :  { %v3228_v35 = vpop.f32.mrf.mxu1 }
 0xfb6   :  { %v3229_v16 = vadd.f32 %v7646_v32, %v3228_v35  ;;  %v3256_v4 = vsel %vm855_vm8, %v3234_v29, -inf  ;;  %v5905_v35 = vpop.f32.mrf.mxu0 }
 0xfb7   :  { %3257 = vmax.xlane.f32.xlu1 %v3256_v4 }
 0xfb8   :  { %v3253_v42 = vsel %vm855_vm8, %v3229_v16, -inf }
 0xfb9   :  { %v5932_v7 = vpop.f32.mrf.mxu1  ;;  %3254 = vmax.xlane.f32.xlu0 %v3253_v42  ;;  %v3021_v42 = vpop.f32.mrf.mxu0 }
 0xfba   :  { %v3244_v12 = vadd.f32 %v7652_v34, %v5932_v7 }
 0xfbb   :  { %v3238_v36 = vpop.f32.mrf.mxu1 }
 0xfbc   :  { %v3239_v25 = vadd.f32 %v7656_v49, %v3238_v36  ;;  %v3262_v50 = vsel %vm855_vm8, %v3244_v12, -inf }
 0xfbd   :  { %3263 = vmax.xlane.f32.xlu1 %v3262_v50  ;;  %v5908_v50 = vpop.f32.mrf.mxu0 }
 0xfbe   :  { %v3259_v56 = vsel %vm855_vm8, %v3239_v25, -inf }
 0xfbf   :  { %3260 = vmax.xlane.f32.xlu0 %v3259_v56 }
0x103b   :  { %v3252_v30 = vpop.xlane.xlu1 %3251 }
0x103c   :  { %v3266_v26 = vsub.f32 %v3224_v44, %v3252_v30  ;;  %v3031_v30 = vpop.f32.mrf.mxu0 }
0x103d   :  { %v3249_v2 = vpop.xlane.xlu0 %3248 }
0x103e   :  { %v3273_v28 = vmul.f32 1.442695, %v3266_v26  ;;  %v3265_v15 = vsub.f32 %v3219_v19, %v3249_v2  ;;  %v7666_v26 = vadd.f32 %v7632_v17, %v5905_v35 }
0x1040   :  { %6364 = vpow2.f32 %v3273_v28  ;;  %v3271_v33 = vmul.f32 1.442695, %v3265_v15  ;;  %v3258_v48 = vpop.xlane.xlu1 %3257  ;;  %v7670_v15 = vadd.f32 %v7636_v20, %v3021_v42 }
0x1041   :  { %v3268_v10 = vsub.f32 %v3234_v29, %v3258_v48  ;;  %v5911_v48 = vpop.f32.mrf.mxu0 }
0x1042   :  { %6366 = vpow2.f32 %v3271_v33  ;;  %v3255_v18 = vpop.xlane.xlu0 %3254 }
0x1043   :  { %v3277_v9 = vmul.f32 1.442695, %v3268_v10  ;;  %v3267_v61 = vsub.f32 %v3229_v16, %v3255_v18  ;;  %v7674_v10 = vadd.f32 %v7642_v54, %v5908_v50  ;;  %v3053_v18 = vsel %vm855_vm8, %v7666_v26, -inf }
0x1045   :  { %6368 = vpow2.f32 %v3277_v9  ;;  %v3275_v13 = vmul.f32 1.442695, %v3267_v61  ;;  %v7679_v9 = vadd.f32 %v7646_v32, %v3031_v30  ;;  %v3050_v61 = vsel %vm855_vm8, %v7670_v15, -inf }
0x1046   :  { %v3264_v45 = vpop.xlane.xlu1 %3263 }
0x1047   :  { %6370 = vpow2.f32 %v3275_v13  ;;  %v3270_v52 = vsub.f32 %v3244_v12, %v3264_v45  ;;  %v3041_v13 = vpop.f32.mrf.mxu0  ;;  %v7684_v45 = vadd.f32 %v7652_v34, %v5911_v48 }
0x1048   :  { %v3261_v23 = vpop.xlane.xlu0 %3260 }
0x1049   :  { %v3281_v47 = vmul.f32 1.442695, %v3270_v52  ;;  %v3269_v53 = vsub.f32 %v3239_v25, %v3261_v23  ;;  %v3059_v52 = vsel %vm855_vm8, %v7674_v10, -inf  ;;  %v7689_v23 = vadd.f32 %v7656_v49, %v3041_v13 }
0x104b   :  { %6372 = vpow2.f32 %v3281_v47  ;;  %v3279_v44 = vmul.f32 1.442695, %v3269_v53  ;;  %v3056_v47 = vsel %vm855_vm8, %v7679_v9, -inf  ;;  %v3065_v53 = vsel %vm855_vm8, %v7684_v45, -inf }
0x104d   :  { %v6365_v19 = vpop.eup %6364  ;;  %6374 = vpow2.f32 %v3279_v44  ;;  %v3062_v44 = vsel %vm855_vm8, %v7689_v23, -inf }
0x104e   :  { %v3286_v4 = vsel %vm855_vm8, %v6365_v19, 0.0 }
0x104f   :  { %v6367_v29 = vpop.eup %6366  ;;  %3287 = vadd.xlane.f32.xlu1 %v3286_v4 }
0x1050   :  { %v3283_v16 = vsel %vm855_vm8, %v6367_v29, 0.0 }
0x1051   :  { %3284 = vadd.xlane.f32.xlu0 %v3283_v16 }
0x1052   :  { %v6369_v7 = vpop.eup %6368 }
0x1053   :  { %v3292_v36 = vsel %vm855_vm8, %v6369_v7, 0.0 }
0x1054   :  { %v6371_v12 = vpop.eup %6370  ;;  %3293 = vadd.xlane.f32.xlu1 %v3292_v36 }
0x1055   :  { %v3289_v25 = vsel %vm855_vm8, %v6371_v12, 0.0 }
0x1056   :  { %3290 = vadd.xlane.f32.xlu0 %v3289_v25 }
0x1058   :  { %v6373_v56 = vpop.eup %6372 }
0x1059   :  { %v3298_v2 = vsel %vm855_vm8, %v6373_v56, 0.0 }
0x105a   :  { %v6375_v28 = vpop.eup %6374  ;;  %3299 = vadd.xlane.f32.xlu1 %v3298_v2 }
0x105b   :  { %v3295_v33 = vsel %vm855_vm8, %v6375_v28, 0.0 }
0x105c   :  { %3296 = vadd.xlane.f32.xlu0 %v3295_v33 }
0x105e   :  { %3054 = vmax.xlane.f32.xlu1 %v3053_v18 }
0x1060   :  { %3051 = vmax.xlane.f32.xlu0 %v3050_v61 }
0x1062   :  { %3060 = vmax.xlane.f32.xlu1 %v3059_v52 }
0x1064   :  { %3057 = vmax.xlane.f32.xlu0 %v3056_v47 }
0x1066   :  { %3066 = vmax.xlane.f32.xlu1 %v3065_v53 }
0x1068   :  { %3063 = vmax.xlane.f32.xlu0 %v3062_v44 }
0x10d8   :  { %v3288_v35 = vpop.xlane.xlu1 %3287 }
0x10d9   :  { %6376 = vrcp.f32 %v3288_v35  ;;  %v3548_v35 = vmul.f32 %v7549_v41, %v6862_v55 }
0x10da   :  { %v3285_v4 = vpop.xlane.xlu0 %3284 }
0x10db   :  { %6378 = vrcp.f32 %v3285_v4 }
0x10dd   :  { %v3294_v42 = vpop.xlane.xlu1 %3293 }
0x10de   :  { %6380 = vrcp.f32 %v3294_v42  ;;  %v3549_v42 = vmul.f32 %v7556_v51, %v6862_v55 }
0x10df   :  { %v3291_v16 = vpop.xlane.xlu0 %3290 }
0x10e0   :  { %6382 = vrcp.f32 %v3291_v16  ;;  %v4056_v16 = vmul.f32 %v7562_v27, %v6976_v24 }
0x10e3   :  { %v3300_v36 = vpop.xlane.xlu1 %3299 }
0x10e4   :  { %6384 = vrcp.f32 %v3300_v36  ;;  %v4055_v36 = vmul.f32 %v7572_v63, %v6976_v24 }
0x10e5   :  { %v3297_v50 = vpop.xlane.xlu0 %3296 }
0x10e6   :  { %6386 = vrcp.f32 %v3297_v50  ;;  %v6377_v25 = vpop.eup %6376  ;;  %v3550_v50 = vmul.f32 %v7576_v40, %v6862_v55 }
0x10e7   :  { %v3308_v33 = vmul.f32 %v6377_v25, %v6365_v19  ;;  %v3545_v19 = vmul.f32 %v7460_v8, %v6862_v55  ;;  %v3555_v25 = vmul.f32 0.35355338, %v3549_v42 }
0x10e8   :  { %v6379_v30 = vpop.eup %6378 }
0x10e9   :  { %v3307_v2 = vmul.f32 %v6379_v30, %v6367_v29  ;;  %v4054_v30 = vmul.f32 %v7590_v38, %v6976_v24 }
0x10eb   :  { %5945 = vmatprep.mubr.msk.f32.mxu0 %vm855_vm8, %v3307_v2  ;;  %v6381_v48 = vpop.eup %6380  ;;  %v3556_v2 = vmul.f32 0.35355338, %v3550_v50 }
0x10ec   :  { %5946 = vmatmul.mubr.msk.f32.vlgmr.msra.gmra.mxu0 %vm855_vm8, %v3308_v33  ;;  %v3310_v13 = vmul.f32 %v6381_v48, %v6369_v7  ;;  %v3551_v7 = vmul.f32 0.35355338, %v3545_v19  ;;  %v4053_v33 = vmul.f32 %v7603_v1, %v6976_v24  ;;  %v4052_v48 = vmul.f32 %v7612_v39, %v6976_v24 }
0x10ed   :  { %v6383_v18 = vpop.eup %6382  ;;  %5976 = vmatpush3.xpose.msk.msra.mxu0 %vm287_vm0, %v7475_v31 }
0x10ee   :  { %5977 = vmatprep.subr.msk.mxu0 %vm287_vm0, %v7477_v57  ;;  %v3309_v61 = vmul.f32 %v6383_v18, %v6371_v12  ;;  %v3546_v12 = vmul.f32 %v7523_v21, %v6862_v55 }
0x10f0   :  { %5948 = vmatprep.mubr.msk.f32.mxu0 %vm855_vm8, %v3309_v61  ;;  %v3552_v44 = vmul.f32 0.35355338, %v3546_v12 }
0x10f1   :  { %5949 = vmatmul.mubr.msk.f32.gmra.mxu0 %vm855_vm8, %v3310_v13  ;;  %v6385_v29 = vpop.eup %6384  ;;  %v3055_v13 = vpop.xlane.xlu1 %3054 }
0x10f2   :  { %5978 = vmatpush3.xpose.msk.msra.mxu0 %vm287_vm0, %v7477_v57  ;;  %v3312_v53 = vmul.f32 %v6385_v29, %v6373_v56  ;;  %v3547_v56 = vmul.f32 %v7530_v60, %v6862_v55  ;;  %v3052_v29 = vpop.xlane.xlu0 %3051 }
0x10f3   :  { %v6387_v52 = vpop.eup %6386  ;;  %5979 = vmatprep.subr.msk.mxu0 %vm287_vm0, %v7493_v3  ;;  %v3068_v12 = vsub.f32 %v7670_v15, %v3052_v29 }
0x10f4   :  { %v3311_v47 = vmul.f32 %v6387_v52, %v6375_v28  ;;  %v4057_v28 = vmul.f32 %v7532_v62, %v6976_v24  ;;  %v3553_v4 = vmul.f32 0.35355338, %v3547_v56  ;;  %v3554_v62 = vmul.f32 0.35355338, %v3548_v35 }
0x10f5   :  { %v3061_v52 = vpop.xlane.xlu1 %3060 }
0x10f6   :  { %5951 = vmatprep.mubr.msk.f32.mxu0 %vm855_vm8, %v3311_v47  ;;  %5980 = vmatpush3.xpose.msk.msra.mxu0 %vm287_vm0, %v7493_v3 }
0x10f7   :  { %5952 = vmatmul.mubr.msk.f32.gmra.mxu0 %vm855_vm8, %v3312_v53  ;;  %5981 = vmatprep.subr.msk.mxu0 %vm287_vm0, %v7506_v59  ;;  %v3069_v53 = vsub.f32 %v7666_v26, %v3055_v13 }
0x10f8   :  { %5987 = vmatprep.mubr.msk.f32.mxu0 %vm287_vm0, %v3551_v7  ;;  %v3058_v7 = vpop.xlane.xlu0 %3057 }
0x10f9   :  { %v3067_v35 = vpop.xlane.xlu1 %3066  ;;  %v3070_v42 = vsub.f32 %v7679_v9, %v3058_v7 }
0x10fa   :  { %5982 = vmatpush3.xpose.msk.msra.mxu0 %vm287_vm0, %v7506_v59  ;;  %v3073_v50 = vsub.f32 %v7684_v45, %v3067_v35 }
0x10fb   :  { %5983 = vmatprep.subr.msk.mxu0 %vm287_vm0, %v7516_v58 }
0x10fe   :  { %5984 = vmatpush3.xpose.msk.msra.mxu0 %vm287_vm0, %v7516_v58 }
0x10ff   :  { %5985 = vmatprep.subr.msk.mxu0 %vm287_vm0, %v7534_v0 }
0x1102   :  { %5986 = vmatpush3.xpose.msk.msra.mxu0 %vm287_vm0, %v7534_v0 }
0x1103   :  { %6038 = vmatprep.subr.mxu0 %v4057_v28 }
0x1105   :  { %5988 = vmatmul.mubr.msk.f32.vlgmr.msra.gmra.mxu0 %vm287_vm0, %v3552_v44  ;;  %v3071_v44 = vsub.f32 %v7674_v10, %v3061_v52  ;;  %v3084_v10 = vmul.f32 1.442695, %v3073_v50 }
0x1106   :  { %5990 = vmatprep.mubr.msk.f32.mxu0 %vm287_vm0, %v3553_v4  ;;  %6039 = vmatpush3.msra.mxu0 %v4057_v28  ;;  %v3076_v28 = vmul.f32 1.442695, %v3069_v53  ;;  %v3074_v4 = vmul.f32 1.442695, %v3068_v12 }
0x1107   :  { %6040 = vmatprep.subr.mxu0 %v4056_v16 }
0x1108   :  { %6041 = vmatpush3.msra.mxu0 %v4056_v16  ;;  %v3064_v16 = vpop.xlane.xlu0 %3063  ;;  %6388 = vpow2.f32 %v3076_v28 }
0x1109   :  { %5991 = vmatmul.mubr.msk.f32.gmra.mxu0 %vm287_vm0, %v3554_v62  ;;  %6042 = vmatprep.subr.mxu0 %v4055_v36  ;;  %6390 = vpow2.f32 %v3074_v4  ;;  %v3072_v15 = vsub.f32 %v7689_v23, %v3064_v16 }
0x110a   :  { %5993 = vmatprep.mubr.msk.f32.mxu0 %vm287_vm0, %v3555_v25  ;;  %6043 = vmatpush3.msra.mxu0 %v4055_v36  ;;  %v3080_v36 = vmul.f32 1.442695, %v3071_v44  ;;  %v3078_v25 = vmul.f32 1.442695, %v3070_v42 }
0x110b   :  { %6044 = vmatprep.subr.mxu0 %v4054_v30  ;;  %v3082_v13 = vmul.f32 1.442695, %v3072_v15 }
0x110c   :  { %6045 = vmatpush3.msra.mxu0 %v4054_v30  ;;  %6392 = vpow2.f32 %v3080_v36 }
0x110d   :  { %5994 = vmatmul.mubr.msk.f32.gmra.mxu0 %vm287_vm0, %v3556_v2  ;;  %6046 = vmatprep.subr.mxu0 %v4053_v33  ;;  %6394 = vpow2.f32 %v3078_v25 }
0x110e   :  { %6047 = vmatpush3.msra.mxu0 %v4053_v33  ;;  %6396 = vpow2.f32 %v3084_v10 }
0x110f   :  { %6048 = vmatprep.subr.mxu0 %v4052_v48  ;;  %6398 = vpow2.f32 %v3082_v13 }
0x1110   :  { %6049 = vmatpush3.msra.mxu0 %v4052_v48 }
0x1115   :  { %v7784_v42 = vpop.eup %6388 }
0x1116   :  { %v7787_v36 = vpop.eup %6390  ;;  %v3089_v50 = vsel %vm855_vm8, %v7784_v42, 0.0 }
0x1117   :  { %v3086_v25 = vsel %vm855_vm8, %v7787_v36, 0.0 }
0x11ac   :  { %v7755_v18 = vpop.f32.mrf.mxu0 }
0x11ae   :  { %v7757_v61 = vpop.f32.mrf.mxu0 }
0x11b1   :  { %v7759_v19 = vpop.f32.mrf.mxu0 }
0x11b3   :  { %v7761_v47 = vpop.f32.mrf.mxu0 }
0x11b7   :  { %v7765_v56 = vpop.f32.mrf.mxu0 }
0x11b9   :  { %v7769_v62 = vpop.f32.mrf.mxu0 }
0x11c5   :  { %v5989_v26 = vpop.f32.mrf.mxu0 }
0x11c6   :  { %v3647_v30 = vadd.f32 %v7632_v17, %v5989_v26  ;;  %v7791_v26 = vpop.eup %6392 }
0x11c7   :  { %v3641_v2 = vpop.f32.mrf.mxu0  ;;  %v7795_v15 = vpop.eup %6394 }
0x11c8   :  { %v3642_v33 = vadd.f32 %v7636_v20, %v3641_v2  ;;  %v3673_v9 = vsel %vm855_vm8, %v3647_v30, -inf  ;;  %v3095_v2 = vsel %vm855_vm8, %v7791_v26, 0.0  ;;  %v7799_v10 = vpop.eup %6396 }
0x11c9   :  { %3674 = vmax.xlane.f32.xlu1 %v3673_v9  ;;  %v5992_v48 = vpop.f32.mrf.mxu0  ;;  %v3092_v9 = vsel %vm855_vm8, %v7795_v15, 0.0  ;;  %v3101_v13 = vsel %vm855_vm8, %v7799_v10, 0.0 }
0x11ca   :  { %v3657_v45 = vadd.f32 %v7642_v54, %v5992_v48  ;;  %v3670_v29 = vsel %vm855_vm8, %v3642_v33, -inf  ;;  %v7803_v48 = vpop.eup %6398 }
0x11cb   :  { %v3651_v52 = vpop.f32.mrf.mxu0  ;;  %3671 = vmax.xlane.f32.xlu0 %v3670_v29  ;;  %v3098_v29 = vsel %vm855_vm8, %v7803_v48, 0.0 }
0x11cc   :  { %v3652_v23 = vadd.f32 %v7646_v32, %v3651_v52  ;;  %v3679_v53 = vsel %vm855_vm8, %v3657_v45, -inf }
0x11cd   :  { %3680 = vmax.xlane.f32.xlu1 %v3679_v53  ;;  %v5995_v7 = vpop.f32.mrf.mxu0 }
0x11ce   :  { %v3667_v12 = vadd.f32 %v7652_v34, %v5995_v7  ;;  %v3676_v28 = vsel %vm855_vm8, %v3652_v23, -inf }
0x11cf   :  { %v3661_v44 = vpop.f32.mrf.mxu0  ;;  %3677 = vmax.xlane.f32.xlu0 %v3676_v28 }
0x11d0   :  { %v3662_v35 = vadd.f32 %v7656_v49, %v3661_v44  ;;  %v3685_v4 = vsel %vm855_vm8, %v3667_v12, -inf }
0x11d1   :  { %3686 = vmax.xlane.f32.xlu1 %v3685_v4 }
0x11d2   :  { %v3682_v16 = vsel %vm855_vm8, %v3662_v35, -inf }
0x11d3   :  { %3683 = vmax.xlane.f32.xlu0 %v3682_v16 }
0x11d5   :  { %3090 = vadd.xlane.f32.xlu1 %v3089_v50 }
0x11d7   :  { %3087 = vadd.xlane.f32.xlu0 %v3086_v25 }
0x11d9   :  { %3096 = vadd.xlane.f32.xlu1 %v3095_v2 }
0x11db   :  { %3093 = vadd.xlane.f32.xlu0 %v3092_v9 }
0x11dd   :  { %3102 = vadd.xlane.f32.xlu1 %v3101_v13 }
0x11df   :  { %3099 = vadd.xlane.f32.xlu0 %v3098_v29 }
0x1252   :  { %v3675_v52 = vpop.xlane.xlu1 %3674 }
0x1253   :  { %v3689_v53 = vsub.f32 %v3647_v30, %v3675_v52 }
0x1254   :  { %v3672_v7 = vpop.xlane.xlu0 %3671 }
0x1255   :  { %v3696_v28 = vmul.f32 1.442695, %v3689_v53  ;;  %v3688_v44 = vsub.f32 %v3642_v33, %v3672_v7 }
0x1256   :  { %v3681_v4 = vpop.xlane.xlu1 %3680 }
0x1257   :  { %6400 = vpow2.f32 %v3696_v28  ;;  %v3694_v16 = vmul.f32 1.442695, %v3688_v44  ;;  %v3691_v50 = vsub.f32 %v3657_v45, %v3681_v4 }
0x1258   :  { %v3678_v25 = vpop.xlane.xlu0 %3677 }
0x1259   :  { %6402 = vpow2.f32 %v3694_v16  ;;  %v3700_v2 = vmul.f32 1.442695, %v3691_v50  ;;  %v3690_v9 = vsub.f32 %v3652_v23, %v3678_v25 }
0x125a   :  { %v3687_v43 = vpop.xlane.xlu1 %3686 }
0x125b   :  { %6404 = vpow2.f32 %v3700_v2  ;;  %v3698_v13 = vmul.f32 1.442695, %v3690_v9  ;;  %v3693_v37 = vsub.f32 %v3667_v12, %v3687_v43 }
0x125c   :  { %v3684_v11 = vpop.xlane.xlu0 %3683 }
0x125d   :  { %6406 = vpow2.f32 %v3698_v13  ;;  %v3704_v29 = vmul.f32 1.442695, %v3693_v37  ;;  %v3692_v5 = vsub.f32 %v3662_v35, %v3684_v11 }
0x125e   :  { %v3091_v30 = vpop.xlane.xlu1 %3090 }
0x125f   :  { %6408 = vpow2.f32 %v3704_v29  ;;  %v3702_v52 = vmul.f32 1.442695, %v3692_v5 }
0x1260   :  { %6410 = vrcp.f32 %v3091_v30  ;;  %v3088_v33 = vpop.xlane.xlu0 %3087 }
0x1261   :  { %6412 = vpow2.f32 %v3702_v52 }
0x1262   :  { %6414 = vrcp.f32 %v3088_v33  ;;  %v3097_v45 = vpop.xlane.xlu1 %3096  ;;  %v3740_v33 = vmul.f32 %v7562_v27, %v6862_v55  ;;  %v3738_v27 = vmul.f32 %v7590_v38, %v6862_v55 }
0x1263   :  { %6416 = vrcp.f32 %v3097_v45 }
0x1264   :  { %v7809_v53 = vpop.eup %6400  ;;  %v3094_v23 = vpop.xlane.xlu0 %3093 }
0x1265   :  { %6418 = vrcp.f32 %v3094_v23  ;;  %v3709_v43 = vsel %vm855_vm8, %v7809_v53, 0.0 }
0x1266   :  { %v7813_v12 = vpop.eup %6402  ;;  %3710 = vadd.xlane.f32.xlu1 %v3709_v43  ;;  %v3103_v11 = vpop.xlane.xlu1 %3102 }
0x1267   :  { %v3706_v5 = vsel %vm855_vm8, %v7813_v12, 0.0  ;;  %6420 = vrcp.f32 %v3103_v11 }
0x1268   :  { %v7817_v37 = vpop.eup %6404  ;;  %3707 = vadd.xlane.f32.xlu0 %v3706_v5  ;;  %v3100_v35 = vpop.xlane.xlu0 %3099 }
0x1269   :  { %6422 = vrcp.f32 %v3100_v35  ;;  %v3715_v7 = vsel %vm855_vm8, %v7817_v37, 0.0 }
0x126a   :  { %v7821_v28 = vpop.eup %6406  ;;  %3716 = vadd.xlane.f32.xlu1 %v3715_v7 }
0x126b   :  { %v3712_v44 = vsel %vm855_vm8, %v7821_v28, 0.0 }
0x126c   :  { %v7825_v4 = vpop.eup %6408  ;;  %3713 = vadd.xlane.f32.xlu0 %v3712_v44 }
0x126d   :  { %v6411_v16 = vpop.eup %6410  ;;  %v3721_v50 = vsel %vm855_vm8, %v7825_v4, 0.0 }
0x126e   :  { %v7829_v25 = vpop.eup %6412  ;;  %3722 = vadd.xlane.f32.xlu1 %v3721_v50  ;;  %v3111_v30 = vmul.f32 %v6411_v16, %v7784_v42 }
0x126f   :  { %v6415_v2 = vpop.eup %6414  ;;  %v3718_v9 = vsel %vm855_vm8, %v7829_v25, 0.0 }
0x1270   :  { %3719 = vadd.xlane.f32.xlu0 %v3718_v9  ;;  %v3110_v13 = vmul.f32 %v6415_v2, %v7787_v36  ;;  %v6417_v29 = vpop.eup %6416  ;;  %v3739_v36 = vmul.f32 %v7572_v63, %v6862_v55 }
0x1271   :  { %v3113_v42 = vmul.f32 %v6417_v29, %v7791_v26  ;;  %v3736_v26 = vmul.f32 %v7612_v39, %v6862_v55 }
0x1272   :  { %v6419_v52 = vpop.eup %6418  ;;  %5966 = vmatprep.mubr.msk.f32.mxu1 %vm855_vm8, %v3110_v13 }
0x1273   :  { %5967 = vmatmul.mubr.msk.f32.vlgmr.msra.gmra.mxu1 %vm855_vm8, %v3111_v30  ;;  %v3112_v45 = vmul.f32 %v6419_v52, %v7795_v15 }
0x1274   :  { %5997 = vmatpush3.msra.mxu1 %v7626_v6  ;;  %v6421_v23 = vpop.eup %6420  ;;  %v3737_v6 = vmul.f32 %v7603_v1, %v6862_v55 }
0x1275   :  { %5998 = vmatprep.subr.mxu1 %v3740_v33  ;;  %5969 = vmatprep.mubr.msk.f32.mxu1 %vm855_vm8, %v3112_v45  ;;  %v3115_v63 = vmul.f32 %v6421_v23, %v7799_v10 }
0x1276   :  { %v6423_v43 = vpop.eup %6422  ;;  %5999 = vmatpush3.msra.mxu1 %v3740_v33 }
0x1277   :  { %6000 = vmatprep.subr.mxu1 %v3739_v36  ;;  %5970 = vmatmul.mubr.msk.f32.gmra.mxu1 %vm855_vm8, %v3113_v42  ;;  %v3114_v15 = vmul.f32 %v6423_v43, %v7803_v48 }
0x1278   :  { %6001 = vmatpush3.msra.mxu1 %v3739_v36 }
0x1279   :  { %6002 = vmatprep.subr.mxu1 %v3738_v27  ;;  %5972 = vmatprep.mubr.msk.f32.mxu1 %vm855_vm8, %v3114_v15 }
0x127a   :  { %6003 = vmatpush3.msra.mxu1 %v3738_v27 }
0x127b   :  { %6004 = vmatprep.subr.mxu1 %v3737_v6  ;;  %5973 = vmatmul.mubr.msk.f32.gmra.mxu1 %vm855_vm8, %v3115_v63 }
0x127c   :  { %6005 = vmatpush3.msra.mxu1 %v3737_v6 }
0x127d   :  { %6006 = vmatprep.subr.mxu1 %v3736_v26 }
0x127e   :  { %6007 = vmatpush3.msra.mxu1 %v3736_v26 }
0x127f   :  { %6017 = vmatprep.subr.msk.mxu1 %vm287_vm0, %v7475_v31 }
0x12ef   :  { %v3711_v38 = vpop.xlane.xlu1 %3710 }
0x12f0   :  { %6424 = vrcp.f32 %v3711_v38 }
0x12f1   :  { %v3708_v48 = vpop.xlane.xlu0 %3707 }
0x12f2   :  { %6426 = vrcp.f32 %v3708_v48 }
0x12f3   :  { %v3717_v1 = vpop.xlane.xlu1 %3716 }
0x12f4   :  { %6428 = vrcp.f32 %v3717_v1 }
0x12f5   :  { %v3714_v10 = vpop.xlane.xlu0 %3713 }
0x12f6   :  { %6430 = vrcp.f32 %v3714_v10 }
0x12f7   :  { %v3723_v11 = vpop.xlane.xlu1 %3722 }
0x12f8   :  { %6432 = vrcp.f32 %v3723_v11 }
0x12f9   :  { %v3720_v5 = vpop.xlane.xlu0 %3719 }
0x12fa   :  { %6434 = vrcp.f32 %v3720_v5 }
0x12fd   :  { %v6425_v35 = vpop.eup %6424 }
0x12fe   :  { %v3731_v7 = vmul.f32 %v6425_v35, %v7809_v53  ;;  %v3861_v53 = vmul.f32 %v7460_v8, %v6976_v24  ;;  %v3862_v8 = vmul.f32 %v7523_v21, %v6976_v24 }
0x12ff   :  { %v6427_v55 = vpop.eup %6426 }
0x1300   :  { %v3730_v39 = vmul.f32 %v6427_v55, %v7813_v12 }
0x1301   :  { %v6429_v44 = vpop.eup %6428 }
0x1302   :  { %6008 = vmatprep.mubr.msk.f32.mxu1 %vm855_vm8, %v3730_v39  ;;  %v3733_v2 = vmul.f32 %v6429_v44, %v7817_v37  ;;  %v3867_v37 = vmul.f32 0.35355338, %v3861_v53 }
0x1303   :  { %v6431_v16 = vpop.eup %6430  ;;  %6009 = vmatmul.mubr.msk.f32.vlgmr.msra.gmra.mxu1 %vm855_vm8, %v3731_v7 }
0x1304   :  { %6018 = vmatpush3.xpose.msk.msra.mxu1 %vm287_vm0, %v7475_v31  ;;  %v3732_v50 = vmul.f32 %v6431_v16, %v7821_v28 }
0x1305   :  { %6019 = vmatprep.subr.msk.mxu1 %vm287_vm0, %v7477_v57  ;;  %v6433_v9 = vpop.eup %6432 }
0x1306   :  { %6011 = vmatprep.mubr.msk.f32.mxu1 %vm855_vm8, %v3732_v50  ;;  %v3735_v28 = vmul.f32 %v6433_v9, %v7825_v4 }
0x1307   :  { %v6435_v12 = vpop.eup %6434  ;;  %6012 = vmatmul.mubr.msk.f32.gmra.mxu1 %vm855_vm8, %v3733_v2 }
0x1308   :  { %6020 = vmatpush3.xpose.msk.msra.mxu1 %vm287_vm0, %v7477_v57  ;;  %v3734_v31 = vmul.f32 %v6435_v12, %v7829_v25  ;;  %v3863_v57 = vmul.f32 %v7530_v60, %v6976_v24  ;;  %v3866_v25 = vmul.f32 %v7576_v40, %v6976_v24 }
0x1309   :  { %6021 = vmatprep.subr.msk.mxu1 %vm287_vm0, %v7493_v3 }
0x130a   :  { %6014 = vmatprep.mubr.msk.f32.mxu1 %vm855_vm8, %v3734_v31  ;;  %v3869_v4 = vmul.f32 0.35355338, %v3863_v57 }
0x130b   :  { %6015 = vmatmul.mubr.msk.f32.gmra.mxu1 %vm855_vm8, %v3735_v28 }
0x130c   :  { %6022 = vmatpush3.xpose.msk.msra.mxu1 %vm287_vm0, %v7493_v3  ;;  %6029 = vmatprep.mubr.msk.f32.mxu1 %vm287_vm0, %v3867_v37  ;;  %v3868_v3 = vmul.f32 0.35355338, %v3862_v8 }
0x130d   :  { %6023 = vmatprep.subr.msk.mxu1 %vm287_vm0, %v7506_v59 }
0x1310   :  { %6024 = vmatpush3.xpose.msk.msra.mxu1 %vm287_vm0, %v7506_v59  ;;  %v3864_v59 = vmul.f32 %v7549_v41, %v6976_v24 }
0x1311   :  { %6025 = vmatprep.subr.msk.mxu1 %vm287_vm0, %v7516_v58 }
0x1312   :  { %v3870_v21 = vmul.f32 0.35355338, %v3864_v59 }
0x1314   :  { %6026 = vmatpush3.xpose.msk.msra.mxu1 %vm287_vm0, %v7516_v58  ;;  %v3865_v58 = vmul.f32 %v7556_v51, %v6976_v24 }
0x1315   :  { %6027 = vmatprep.subr.msk.mxu1 %vm287_vm0, %v7534_v0 }
0x1316   :  { %v3871_v60 = vmul.f32 0.35355338, %v3865_v58 }
0x1318   :  { %6028 = vmatpush3.xpose.msk.msra.mxu1 %vm287_vm0, %v7534_v0  ;;  %v3872_v0 = vmul.f32 0.35355338, %v3866_v25 }
0x131b   :  { %6030 = vmatmul.mubr.msk.f32.vlgmr.msra.gmra.mxu1 %vm287_vm0, %v3868_v3 }
0x131c   :  { %6032 = vmatprep.mubr.msk.f32.mxu1 %vm287_vm0, %v3869_v4 }
0x131f   :  { %6033 = vmatmul.mubr.msk.f32.gmra.mxu1 %vm287_vm0, %v3870_v21 }
0x1320   :  { %6035 = vmatprep.mubr.msk.f32.mxu1 %vm287_vm0, %v3871_v60 }
0x1323   :  { %6036 = vmatmul.mubr.msk.f32.gmra.mxu1 %vm287_vm0, %v3872_v0 }
0x1333   :  { %v5968_v41 = vpop.f32.mrf.mxu1 }
0x1334   :  { %v3522_v33 = vadd.f32 %v5968_v41, %v7755_v18 }
0x1335   :  { %v3516_v13 = vpop.f32.mrf.mxu1 }
0x1336   :  { %v3517_v24 = vadd.f32 %v3516_v13, %v7757_v61 }
0x1337   :  { %v5971_v29 = vpop.f32.mrf.mxu1 }
0x1338   :  { %v3532_v36 = vadd.f32 %v5971_v29, %v7759_v19 }
0x1339   :  { %v3526_v51 = vpop.f32.mrf.mxu1 }
0x133a   :  { %v3527_v27 = vadd.f32 %v3526_v51, %v7761_v47 }
0x133b   :  { %v5974_v30 = vpop.f32.mrf.mxu1 }
0x133c   :  { %v3542_v63 = vadd.f32 %v5974_v30, %v7765_v56 }
0x133d   :  { %v7910_v52 = vpop.f32.mrf.mxu1 }
0x13c3   :  { %v6010_v45 = vpop.f32.mrf.mxu1 }
0x13c4   :  { %v7914_v40 = vadd.f32 %v6010_v45, %v3522_v33 }
0x13c5   :  { %v3826_v23 = vpop.f32.mrf.mxu1 }
0x13c6   :  { %v7917_v42 = vadd.f32 %v3826_v23, %v3517_v24 }
0x13c7   :  { %v6013_v43 = vpop.f32.mrf.mxu1 }
0x13c8   :  { %v7920_v15 = vadd.f32 %v6013_v43, %v3532_v36  ;;  %v230_v43 = vld [vmem:[%s7950_s5 + $0x18] sm:$0xff] }
0x13c9   :  { %v3836_v6 = vpop.f32.mrf.mxu1  ;;  %6059 = vmatprep.subr.mxu0 %v230_v43 }
0x13ca   :  { %v7923_v26 = vadd.f32 %v3836_v6, %v3527_v27 }
0x13cb   :  { %v6016_v18 = vpop.f32.mrf.mxu1 }
0x13cc   :  { %v7925_v38 = vadd.f32 %v6016_v18, %v3542_v63 }
0x13cd   :  { %v7927_v61 = vpop.f32.mrf.mxu1 }
0x13db   :  { %v6031_v48 = vpop.f32.mrf.mxu1 }
0x13dc   :  { %v3963_v19 = vadd.f32 %v7632_v17, %v6031_v48 }
0x13dd   :  { %v3957_v1 = vpop.f32.mrf.mxu1 }
0x13de   :  { %v3958_v10 = vadd.f32 %v7636_v20, %v3957_v1  ;;  %v3989_v47 = vsel %vm855_vm8, %v3963_v19, -inf }
0x13df   :  { %3990 = vmax.xlane.f32.xlu1 %v3989_v47  ;;  %v6034_v11 = vpop.f32.mrf.mxu1 }
0x13e0   :  { %v3973_v5 = vadd.f32 %v7642_v54, %v6034_v11  ;;  %v3986_v56 = vsel %vm855_vm8, %v3958_v10, -inf }
0x13e1   :  { %v3967_v35 = vpop.f32.mrf.mxu1  ;;  %3987 = vmax.xlane.f32.xlu0 %v3986_v56  ;;  %v229_v56 = vld [vmem:[%s7950_s5 + $0x10] sm:$0xff] }
0x13e2   :  { %v3968_v55 = vadd.f32 %v7646_v32, %v3967_v35  ;;  %v3995_v39 = vsel %vm855_vm8, %v3973_v5, -inf }
0x13e3   :  { %3996 = vmax.xlane.f32.xlu1 %v3995_v39  ;;  %v6037_v7 = vpop.f32.mrf.mxu1 }
0x13e4   :  { %v3983_v17 = vadd.f32 %v7652_v34, %v6037_v7  ;;  %v3992_v20 = vsel %vm855_vm8, %v3968_v55, -inf }
0x13e5   :  { %v3977_v44 = vpop.f32.mrf.mxu1  ;;  %3993 = vmax.xlane.f32.xlu0 %v3992_v20 }
0x13e6   :  { %v3978_v16 = vadd.f32 %v7656_v49, %v3977_v44  ;;  %v4001_v54 = vsel %vm855_vm8, %v3983_v17, -inf }
0x13e7   :  { %4002 = vmax.xlane.f32.xlu1 %v4001_v54  ;;  %v227_v54 = vld [vmem:[%s7950_s5] sm:$0xff] }
0x13e8   :  { %v3998_v50 = vsel %vm855_vm8, %v3978_v16, -inf }
0x13e9   :  { %3999 = vmax.xlane.f32.xlu0 %v3998_v50 }
0x1468   :  { %v3991_v2 = vpop.xlane.xlu1 %3990 }
0x1469   :  { %v4005_v32 = vsub.f32 %v3963_v19, %v3991_v2 }
0x146a   :  { %v3988_v9 = vpop.xlane.xlu0 %3987 }
0x146b   :  { %v4012_v53 = vmul.f32 1.442695, %v4005_v32  ;;  %v4004_v12 = vsub.f32 %v3958_v10, %v3988_v9 }
0x146c   :  { %v3997_v31 = vpop.xlane.xlu1 %3996 }
0x146d   :  { %6436 = vpow2.f32 %v4012_v53  ;;  %v4010_v34 = vmul.f32 1.442695, %v4004_v12  ;;  %v4007_v28 = vsub.f32 %v3973_v5, %v3997_v31  ;;  %v3537_v31 = vadd.f32 %v7910_v52, %v7769_v62  ;;  %v5177_v62 = vld [vmem:[%s4957_s24] ss:$0 sm:$0xff] }
0x146e   :  { %v3994_v37 = vpop.xlane.xlu0 %3993 }
0x146f   :  { %6438 = vpow2.f32 %v4010_v34  ;;  %v4016_v8 = vmul.f32 1.442695, %v4007_v28  ;;  %v4006_v57 = vsub.f32 %v3968_v55, %v3994_v37 }
0x1470   :  { %v4003_v49 = vpop.xlane.xlu1 %4002 }
0x1471   :  { %6440 = vpow2.f32 %v4016_v8  ;;  %v4014_v3 = vmul.f32 1.442695, %v4006_v57  ;;  %v4009_v59 = vsub.f32 %v3983_v17, %v4003_v49  ;;  %v3859_v8 = vadd.f32 %v7927_v61, %v3537_v31 }
0x1472   :  { %v4000_v4 = vpop.xlane.xlu0 %3999 }
0x1473   :  { %6442 = vpow2.f32 %v4014_v3  ;;  %v4020_v58 = vmul.f32 1.442695, %v4009_v59  ;;  %v4008_v21 = vsub.f32 %v3978_v16, %v4000_v4  ;;  %v228_v16 = vld [vmem:[%s7950_s5 + $0x8] sm:$0xff] }
0x1475   :  { %6444 = vpow2.f32 %v4020_v58  ;;  %v4018_v25 = vmul.f32 1.442695, %v4008_v21 }
0x1477   :  { %6446 = vpow2.f32 %v4018_v25 }
0x147a   :  { %v6437_v60 = vpop.eup %6436 }
0x147b   :  { %v4025_v0 = vsel %vm855_vm8, %v6437_v60, 0.0 }
0x147c   :  { %v6439_v41 = vpop.eup %6438  ;;  %4026 = vadd.xlane.f32.xlu1 %v4025_v0  ;;  %v8187_v0 = vld [vmem:[#allocation2_spill] sm:$0xff] }
0x147d   :  { %v4022_v13 = vsel %vm855_vm8, %v6439_v41, 0.0 }
0x147e   :  { %v6441_v29 = vpop.eup %6440  ;;  %4023 = vadd.xlane.f32.xlu0 %v4022_v13 }
0x147f   :  { %v4031_v51 = vsel %vm855_vm8, %v6441_v29, 0.0 }
0x1480   :  { %v6443_v30 = vpop.eup %6442  ;;  %4032 = vadd.xlane.f32.xlu1 %v4031_v51  ;;  %v8188_v51 = vld [vmem:[#allocation3_spill] sm:$0xff] }
0x1481   :  { %v4028_v33 = vsel %vm855_vm8, %v6443_v30, 0.0 }
0x1482   :  { %v6445_v45 = vpop.eup %6444  ;;  %4029 = vadd.xlane.f32.xlu0 %v4028_v33 }
0x1483   :  { %v4037_v24 = vsel %vm855_vm8, %v6445_v45, 0.0 }
0x1484   :  { %v6447_v23 = vpop.eup %6446  ;;  %4038 = vadd.xlane.f32.xlu1 %v4037_v24 }
0x1485   :  { %v4034_v36 = vsel %vm855_vm8, %v6447_v23, 0.0 }
0x1486   :  { %4035 = vadd.xlane.f32.xlu0 %v4034_v36 }
0x1505   :  { %v4027_v27 = vpop.xlane.xlu1 %4026 }
0x1506   :  { %6448 = vrcp.f32 %v4027_v27 }
0x1507   :  { %v4024_v6 = vpop.xlane.xlu0 %4023 }
0x1508   :  { %6450 = vrcp.f32 %v4024_v6 }
0x1509   :  { %v4033_v63 = vpop.xlane.xlu1 %4032 }
0x150a   :  { %6452 = vrcp.f32 %v4033_v63 }
0x150b   :  { %v4030_v18 = vpop.xlane.xlu0 %4029 }
0x150c   :  { %6454 = vrcp.f32 %v4030_v18 }
0x150d   :  { %v4039_v48 = vpop.xlane.xlu1 %4038 }
0x150e   :  { %6456 = vrcp.f32 %v4039_v48 }
0x150f   :  { %v4036_v19 = vpop.xlane.xlu0 %4035 }
0x1510   :  { %6458 = vrcp.f32 %v4036_v19 }
0x1513   :  { %v6449_v1 = vpop.eup %6448 }
0x1514   :  { %v4047_v11 = vmul.f32 %v6449_v1, %v6437_v60 }
0x1515   :  { %v6451_v10 = vpop.eup %6450 }
0x1516   :  { %v4046_v47 = vmul.f32 %v6451_v10, %v6439_v41 }
0x1517   :  { %v6453_v5 = vpop.eup %6452 }
0x1518   :  { %6050 = vmatprep.mubr.msk.f32.mxu0 %vm855_vm8, %v4046_v47  ;;  %v4049_v39 = vmul.f32 %v6453_v5, %v6441_v29 }
0x1519   :  { %v6455_v35 = vpop.eup %6454  ;;  %6051 = vmatmul.mubr.msk.f32.vlgmr.msra.gmra.mxu0 %vm855_vm8, %v4047_v11 }
0x151a   :  { %v4048_v55 = vmul.f32 %v6455_v35, %v6443_v30  ;;  %6060 = vmatpush3.msra.mxu0 %v230_v43 }
0x151b   :  { %6061 = vmatprep.subr.mxu0 %v229_v56  ;;  %v6457_v7 = vpop.eup %6456 }
0x151c   :  { %6053 = vmatprep.mubr.msk.f32.mxu0 %vm855_vm8, %v4048_v55  ;;  %6062 = vmatpush3.msra.mxu0 %v229_v56  ;;  %v4051_v44 = vmul.f32 %v6457_v7, %v6445_v45  ;;  %v8189_v45 = vld [vmem:[#allocation4_spill] sm:$0xff] }
0x151d   :  { %v6459_v17 = vpop.eup %6458  ;;  %6054 = vmatmul.mubr.msk.f32.gmra.mxu0 %vm855_vm8, %v4049_v39  ;;  %6063 = vmatprep.subr.mxu0 %v228_v16 }
0x151e   :  { %v4050_v20 = vmul.f32 %v6459_v17, %v6447_v23  ;;  %6064 = vmatpush3.msra.mxu0 %v228_v16 }
0x151f   :  { %6065 = vmatprep.subr.mxu0 %v227_v54 }
0x1520   :  { %6056 = vmatprep.mubr.msk.f32.mxu0 %vm855_vm8, %v4050_v20  ;;  %6066 = vmatpush3.msra.mxu0 %v227_v54 }
0x1521   :  { %6057 = vmatmul.mubr.msk.f32.gmra.mxu0 %vm855_vm8, %v4051_v44 }
0x15d9   :  { %v6052_v50 = vpop.f32.mrf.mxu0 }
0x15da   :  { %v4172_v9 = vadd.f32 %v6052_v50, %v7914_v40 }
0x15db   :  { %v4142_v2 = vpop.f32.mrf.mxu0 }
0x15dc   :  { %v4171_v32 = vadd.f32 %v4142_v2, %v7917_v42 }
0x15dd   :  { %v6055_v53 = vpop.f32.mrf.mxu0 }
0x15de   :  { %6067 = vmatprep.mubr.msk.f32.mxu0 %vm287_vm0, %v4171_v32  ;;  %v4174_v28 = vadd.f32 %v6055_v53, %v7920_v15 }
0x15df   :  { %v4152_v12 = vpop.f32.mrf.mxu0  ;;  %6068 = vmatmul.mubr.msk.f32.vlgmr.msra.gmra.mxu0 %vm287_vm0, %v4172_v9 }
0x15e0   :  { %v4173_v34 = vadd.f32 %v4152_v12, %v7923_v26 }
0x15e1   :  { %v6058_v37 = vpop.f32.mrf.mxu0 }
0x15e2   :  { %6070 = vmatprep.mubr.msk.f32.mxu0 %vm287_vm0, %v4173_v34  ;;  %v4176_v57 = vadd.f32 %v6058_v37, %v7925_v38  ;;  %v236_v37 = vld [vmem:[%s4960_s28 + $0x10] sm:$0xff] }
0x15e3   :  { %v4162_v42 = vpop.f32.mrf.mxu0  ;;  %6071 = vmatmul.mubr.msk.f32.gmra.mxu0 %vm287_vm0, %v4174_v28  ;;  %v237_v28 = vld [vmem:[%s4960_s28 + $0x18] sm:$0xff] }
0x15e4   :  { %v4175_v40 = vadd.f32 %v4162_v42, %v3859_v8  ;;  %6076 = vmatprep.subr.mxu1 %v237_v28  ;;  %v235_v8 = vld [vmem:[%s4960_s28 + $0x8] sm:$0xff]  ;;  %v234_v42 = vld [vmem:[%s4960_s28] sm:$0xff] }
0x15e5   :  { %6077 = vmatpush3.msra.mxu1 %v237_v28  ;;  %v245_v28 = vld [vmem:[%s8070_s11 + $0x30] sm:$0xff] }
0x15e6   :  { %6073 = vmatprep.mubr.msk.f32.mxu0 %vm287_vm0, %v4175_v40  ;;  %6078 = vmatprep.subr.mxu1 %v236_v37  ;;  %v8190_v40 = vmov 0.0  }
0x15e7   :  { %6074 = vmatmul.mubr.msk.f32.gmra.mxu0 %vm287_vm0, %v4176_v57  ;;  %6079 = vmatpush3.msra.mxu1 %v236_v37  ;;  %v244_v37 = vld [vmem:[%s8070_s11 + $0x28] sm:$0xff] }
0x15e8   :  { %6080 = vmatprep.subr.mxu1 %v235_v8 }
0x15e9   :  { %6081 = vmatpush3.msra.mxu1 %v235_v8  ;;  %v243_v8 = vld [vmem:[%s8070_s11 + $0x20] sm:$0xff] }
0x15ea   :  { %6082 = vmatprep.subr.mxu1 %v234_v42 }
0x15eb   :  { %6083 = vmatpush3.msra.mxu1 %v234_v42  ;;  %v242_v42 = vld [vmem:[%s8070_s11 + $0x18] sm:$0xff] }
0x15ec   :  { %6134 = vmatprep.subr.mxu1 %v8190_v40 }
0x169f   :  { %v6069_v52 = vpop.f32.mrf.mxu0 }
0x16a0   :  { %v4273_v15 = vadd.f32 %v6069_v52, %v5177_v62 }
0x16a1   :  { %v4267_v26 = vpop.f32.mrf.mxu0 }
0x16a2   :  { %v7980_v61 = vadd.f32 %v4273_v15, %v7344_v46  ;;  %v4268_v49 = vadd.f32 %v5177_v62, %v4267_v26 }
0x16a3   :  { %v6072_v3 = vpop.f32.mrf.mxu0 }
0x16a4   :  { %v7983_v38 = vadd.f32 %v4268_v49, %v7347_v22  ;;  %v4283_v59 = vadd.f32 %v6072_v3, %v5177_v62  ;;  %v4305_v4 = vsel %vm287_vm0, %v7980_v61, 0.0 }
0x16a5   :  { %4306 = vadd.xlane.f32.xlu1 %v4305_v4  ;;  %v4277_v58 = vpop.f32.mrf.mxu0 }
0x16a6   :  { %v7988_v21 = vadd.f32 %v4283_v59, %v7352_v14  ;;  %v4278_v25 = vadd.f32 %v5177_v62, %v4277_v58  ;;  %v4302_v60 = vsel %vm287_vm0, %v7983_v38, 0.0 }
0x16a7   :  { %4303 = vadd.xlane.f32.xlu0 %v4302_v60  ;;  %v6075_v46 = vpop.f32.mrf.mxu0 }
0x16a8   :  { %v7993_v41 = vadd.f32 %v4278_v25, %v8187_v0  ;;  %v4293_v22 = vadd.f32 %v6075_v46, %v5177_v62  ;;  %v4311_v13 = vsel %vm287_vm0, %v7988_v21, 0.0 }
0x16a9   :  { %4312 = vadd.xlane.f32.xlu1 %v4311_v13  ;;  %v4287_v29 = vpop.f32.mrf.mxu0 }
0x16aa   :  { %v7998_v30 = vadd.f32 %v4293_v22, %v8188_v51  ;;  %v4288_v14 = vadd.f32 %v5177_v62, %v4287_v29  ;;  %v4308_v33 = vsel %vm287_vm0, %v7993_v41, 0.0 }
0x16ab   :  { %4309 = vadd.xlane.f32.xlu0 %v4308_v33  ;;  %v5184_v33 = vld [vmem:[%s4958_s2] ss:$0 sm:$0xff] }
0x16ac   :  { %v8003_v24 = vadd.f32 %v4288_v14, %v8189_v45  ;;  %v4317_v23 = vsel %vm287_vm0, %v7998_v30, 0.0 }
0x16ad   :  { %4318 = vadd.xlane.f32.xlu1 %v4317_v23 }
0x16ae   :  { %v4314_v36 = vsel %vm287_vm0, %v8003_v24, 0.0 }
0x16af   :  { %4315 = vadd.xlane.f32.xlu0 %v4314_v36 }
0x172e   :  { %v4307_v43 = vpop.xlane.xlu1 %4306 }
0x172f   :  { %v4321_v27 = vmul.f32 0.03125, %v4307_v43 }
0x1730   :  { %v4304_v6 = vpop.xlane.xlu0 %4303 }
0x1731   :  { %v8010_v63 = vsub.f32 %v7980_v61, %v4321_v27  ;;  %v4320_v18 = vmul.f32 0.03125, %v4304_v6  ;;  %v5185_v6 = vld [vmem:[%s4959_s7] ss:$0 sm:$0xff] }
0x1732   :  { %v4313_v48 = vpop.xlane.xlu1 %4312 }
0x1733   :  { %v8013_v19 = vsub.f32 %v7983_v38, %v4320_v18  ;;  %v4323_v1 = vmul.f32 0.03125, %v4313_v48  ;;  %v4333_v10 = vmul.f32 %v8010_v63, %v8010_v63 }
0x1734   :  { %v4310_v47 = vpop.xlane.xlu0 %4309 }
0x1735   :  { %v8018_v11 = vsub.f32 %v7988_v21, %v4323_v1  ;;  %v4322_v5 = vmul.f32 0.03125, %v4310_v47  ;;  %v4341_v56 = vsel %vm287_vm0, %v4333_v10, 0.0  ;;  %v4332_v35 = vmul.f32 %v8013_v19, %v8013_v19 }
0x1736   :  { %4342 = vadd.xlane.f32.xlu1 %v4341_v56  ;;  %v4319_v55 = vpop.xlane.xlu1 %4318 }
0x1737   :  { %v8024_v39 = vsub.f32 %v7993_v41, %v4322_v5  ;;  %v4325_v7 = vmul.f32 0.03125, %v4319_v55  ;;  %v4338_v17 = vsel %vm287_vm0, %v4332_v35, 0.0  ;;  %v4335_v20 = vmul.f32 %v8018_v11, %v8018_v11 }
0x1738   :  { %4339 = vadd.xlane.f32.xlu0 %v4338_v17  ;;  %v4316_v44 = vpop.xlane.xlu0 %4315 }
0x1739   :  { %v8030_v16 = vsub.f32 %v7998_v30, %v4325_v7  ;;  %v4324_v54 = vmul.f32 0.03125, %v4316_v44  ;;  %v4347_v50 = vsel %vm287_vm0, %v4335_v20, 0.0  ;;  %v4334_v2 = vmul.f32 %v8024_v39, %v8024_v39 }
0x173a   :  { %4348 = vadd.xlane.f32.xlu1 %v4347_v50  ;;  %v253_v50 = vld [vmem:[%s8070_s11 + $0x70] sm:$0xff] }
0x173b   :  { %v8036_v32 = vsub.f32 %v8003_v24, %v4324_v54  ;;  %v4344_v9 = vsel %vm287_vm0, %v4334_v2, 0.0  ;;  %v4337_v53 = vmul.f32 %v8030_v16, %v8030_v16  ;;  %v252_v2 = vld [vmem:[%s8070_s11 + $0x68] sm:$0xff] }
0x173c   :  { %4345 = vadd.xlane.f32.xlu0 %v4344_v9  ;;  %v250_v9 = vld [vmem:[%s8070_s11 + $0x58] sm:$0xff] }
0x173d   :  { %v4353_v12 = vsel %vm287_vm0, %v4337_v53, 0.0  ;;  %v4336_v31 = vmul.f32 %v8036_v32, %v8036_v32  ;;  %v249_v53 = vld [vmem:[%s8070_s11 + $0x50] sm:$0xff] }
0x173e   :  { %4354 = vadd.xlane.f32.xlu1 %v4353_v12  ;;  %v248_v12 = vld [vmem:[%s8070_s11 + $0x48] sm:$0xff] }
0x173f   :  { %v4350_v34 = vsel %vm287_vm0, %v4336_v31, 0.0  ;;  %v247_v31 = vld [vmem:[%s8070_s11 + $0x40] sm:$0xff] }
0x1740   :  { %4351 = vadd.xlane.f32.xlu0 %v4350_v34  ;;  %v246_v34 = vld [vmem:[%s8070_s11 + $0x38] sm:$0xff] }
0x17bf   :  { %v4343_v57 = vpop.xlane.xlu1 %4342 }
0x17c0   :  { %v4357_v62 = vmul.f32 0.03125, %v4343_v57  ;;  %v241_v57 = vld [vmem:[%s8070_s11 + $0x10] sm:$0xff] }
0x17c1   :  { %v4340_v52 = vpop.xlane.xlu0 %4339 }
0x17c2   :  { %v4363_v15 = vadd.f32 1e-05, %v4357_v62  ;;  %v4356_v26 = vmul.f32 0.03125, %v4340_v52  ;;  %v240_v62 = vld [vmem:[%s8070_s11 + $0x8] sm:$0xff]  ;;  %v239_v52 = vld [vmem:[%s8070_s11] sm:$0xff] }
0x17c3   :  { %v4349_v49 = vpop.xlane.xlu1 %4348 }
0x17c4   :  { %6460 = vrsqrt.f32 %v4363_v15  ;;  %v4362_v3 = vadd.f32 1e-05, %v4356_v26  ;;  %v4359_v59 = vmul.f32 0.03125, %v4349_v49  ;;  %v5186_v15 = vld [vmem:[%s4961_s16] ss:$0 sm:$0xff] }
0x17c5   :  { %v4346_v4 = vpop.xlane.xlu0 %4345 }
0x17c6   :  { %6462 = vrsqrt.f32 %v4362_v3  ;;  %v4365_v58 = vadd.f32 1e-05, %v4359_v59  ;;  %v4358_v25 = vmul.f32 0.03125, %v4346_v4 }
0x17c7   :  { %v4355_v60 = vpop.xlane.xlu1 %4354 }
0x17c8   :  { %6464 = vrsqrt.f32 %v4365_v58  ;;  %v4364_v46 = vadd.f32 1e-05, %v4358_v25  ;;  %v4361_v0 = vmul.f32 0.03125, %v4355_v60 }
0x17c9   :  { %v4352_v22 = vpop.xlane.xlu0 %4351 }
0x17ca   :  { %6466 = vrsqrt.f32 %v4364_v46  ;;  %v4367_v13 = vadd.f32 1e-05, %v4361_v0  ;;  %v4360_v29 = vmul.f32 0.03125, %v4352_v22 }
0x17cc   :  { %6468 = vrsqrt.f32 %v4367_v13  ;;  %v4366_v51 = vadd.f32 1e-05, %v4360_v29 }
0x17ce   :  { %6470 = vrsqrt.f32 %v4366_v51 }
0x17d1   :  { %v6461_v14 = vpop.eup %6460 }
0x17d2   :  { %v4375_v45 = vmul.f32 %v6461_v14, %v8010_v63 }
0x17d3   :  { %v6463_v23 = vpop.eup %6462 }
0x17d4   :  { %v4374_v36 = vmul.f32 %v6463_v23, %v8013_v19  ;;  %v4387_v27 = vmul.f32 %v5184_v33, %v4375_v45 }
0x17d5   :  { %v6465_v43 = vpop.eup %6464 }
0x17d6   :  { %v4386_v18 = vmul.f32 %v5184_v33, %v4374_v36  ;;  %v4377_v48 = vmul.f32 %v6465_v43, %v8018_v11  ;;  %v4399_v56 = vadd.f32 %v5185_v6, %v4387_v27 }
0x17d7   :  { %v6467_v1 = vpop.eup %6466 }
0x17d8   :  { %v4398_v10 = vadd.f32 %v5185_v6, %v4386_v18  ;;  %v4376_v47 = vmul.f32 %v6467_v1, %v8024_v39  ;;  %v4389_v35 = vmul.f32 %v5184_v33, %v4377_v48 }
0x17d9   :  { %v6469_v5 = vpop.eup %6468 }
0x17da   :  { %6084 = vmatprep.mubr.msk.f32.mxu1 %vm287_vm0, %v4398_v10  ;;  %v4388_v55 = vmul.f32 %v5184_v33, %v4376_v47  ;;  %v4379_v63 = vmul.f32 %v6469_v5, %v8030_v16  ;;  %v4401_v20 = vadd.f32 %v5185_v6, %v4389_v35  ;;  %v254_v16 = vld [vmem:[%s8070_s11 + $0x78] sm:$0xff] }
0x17db   :  { %v6471_v7 = vpop.eup %6470  ;;  %6085 = vmatmul.mubr.msk.f32.vlgmr.msra.gmra.mxu1 %vm287_vm0, %v4399_v56  ;;  %6093 = vmatprep.subr.mxu0 %v254_v16 }
0x17dc   :  { %v4400_v19 = vadd.f32 %v5185_v6, %v4388_v55  ;;  %v4378_v17 = vmul.f32 %v6471_v7, %v8036_v32  ;;  %v4391_v11 = vmul.f32 %v5184_v33, %v4379_v63  ;;  %6094 = vmatpush3.msra.mxu0 %v254_v16  ;;  %v251_v32 = vld [vmem:[%s8070_s11 + $0x60] sm:$0xff] }
0x17dd   :  { %6095 = vmatprep.subr.mxu0 %v253_v50 }
0x17de   :  { %6087 = vmatprep.mubr.msk.f32.mxu1 %vm287_vm0, %v4400_v19  ;;  %v4390_v44 = vmul.f32 %v5184_v33, %v4378_v17  ;;  %v4403_v54 = vadd.f32 %v5185_v6, %v4391_v11  ;;  %6096 = vmatpush3.msra.mxu0 %v253_v50 }
0x17df   :  { %6088 = vmatmul.mubr.msk.f32.gmra.mxu1 %vm287_vm0, %v4401_v20  ;;  %6097 = vmatprep.subr.mxu0 %v252_v2 }
0x17e0   :  { %v4402_v39 = vadd.f32 %v5185_v6, %v4390_v44  ;;  %6098 = vmatpush3.msra.mxu0 %v252_v2 }
0x17e1   :  { %6099 = vmatprep.subr.mxu0 %v251_v32 }
0x17e2   :  { %6090 = vmatprep.mubr.msk.f32.mxu1 %vm287_vm0, %v4402_v39  ;;  %6100 = vmatpush3.msra.mxu0 %v251_v32 }
0x17e3   :  { %6091 = vmatmul.mubr.msk.f32.gmra.mxu1 %vm287_vm0, %v4403_v54  ;;  %6101 = vmatprep.subr.mxu0 %v250_v9 }
0x17e4   :  { %6102 = vmatpush3.msra.mxu0 %v250_v9  ;;  %6146 = vmatprep.mubr.msk.f32.mxu1 %vm6554_vm12, %v8190_v40 }
0x17e5   :  { %6103 = vmatprep.subr.mxu0 %v249_v53 }
0x17e6   :  { %6104 = vmatpush3.msra.mxu0 %v249_v53 }
0x17e7   :  { %6105 = vmatprep.subr.mxu0 %v248_v12 }
0x17e8   :  { %6106 = vmatpush3.msra.mxu0 %v248_v12 }
0x17e9   :  { %6107 = vmatprep.subr.mxu0 %v247_v31 }
0x17ea   :  { %6108 = vmatpush3.msra.mxu0 %v247_v31 }
0x17eb   :  { %6109 = vmatprep.subr.mxu0 %v246_v34 }
0x17ec   :  { %6110 = vmatpush3.msra.mxu0 %v246_v34 }
0x17ed   :  { %6111 = vmatprep.subr.mxu0 %v245_v28 }
0x17ee   :  { %6112 = vmatpush3.msra.mxu0 %v245_v28 }
0x17ef   :  { %6113 = vmatprep.subr.mxu0 %v244_v37 }
0x17f0   :  { %6114 = vmatpush3.msra.mxu0 %v244_v37 }
0x17f1   :  { %6115 = vmatprep.subr.mxu0 %v243_v8 }
0x17f2   :  { %6116 = vmatpush3.msra.mxu0 %v243_v8 }
0x17f3   :  { %6117 = vmatprep.subr.mxu0 %v242_v42 }
0x17f4   :  { %6118 = vmatpush3.msra.mxu0 %v242_v42 }
0x17f5   :  { %6119 = vmatprep.subr.mxu0 %v241_v57 }
0x17f6   :  { %6120 = vmatpush3.msra.mxu0 %v241_v57 }
0x17f7   :  { %6121 = vmatprep.subr.mxu0 %v240_v62 }
0x17f8   :  { %6122 = vmatpush3.msra.mxu0 %v240_v62 }
0x17f9   :  { %6123 = vmatprep.subr.mxu0 %v239_v52 }
0x17fa   :  { %6124 = vmatpush3.msra.mxu0 %v239_v52  ;;  %v5193_v52 = vld [vmem:[%s4963_s19] ss:$0 sm:$0xff] }
0x189b   :  { %v6086_v26 = vpop.f32.mrf.mxu1 }
0x189c   :  { %v4500_v49 = vadd.f32 %v6086_v26, %v5186_v15 }
0x189d   :  { %v4494_v3 = vpop.f32.mrf.mxu1 }
0x189e   :  { %v4524_v59 = vmul.f32 -1.702, %v4500_v49  ;;  %v4495_v4 = vadd.f32 %v5186_v15, %v4494_v3 }
0x189f   :  { %v6089_v58 = vpop.f32.mrf.mxu1 }
0x18a0   :  { %v4531_v25 = vmul.f32 1.442695, %v4524_v59  ;;  %v4523_v60 = vmul.f32 -1.702, %v4495_v4  ;;  %v4510_v46 = vadd.f32 %v6089_v58, %v5186_v15 }
0x18a1   :  { %v4504_v0 = vpop.f32.mrf.mxu1 }
0x18a2   :  { %6472 = vpow2.f32 %v4531_v25  ;;  %v4529_v22 = vmul.f32 1.442695, %v4523_v60  ;;  %v4526_v13 = vmul.f32 -1.702, %v4510_v46  ;;  %v4505_v29 = vadd.f32 %v5186_v15, %v4504_v0 }
0x18a3   :  { %v6092_v51 = vpop.f32.mrf.mxu1 }
0x18a4   :  { %6474 = vpow2.f32 %v4529_v22  ;;  %v4535_v14 = vmul.f32 1.442695, %v4526_v13  ;;  %v4525_v33 = vmul.f32 -1.702, %v4505_v29  ;;  %v4520_v45 = vadd.f32 %v6092_v51, %v5186_v15 }
0x18a5   :  { %v4514_v23 = vpop.f32.mrf.mxu1 }
0x18a6   :  { %6476 = vpow2.f32 %v4535_v14  ;;  %v4533_v36 = vmul.f32 1.442695, %v4525_v33  ;;  %v4528_v43 = vmul.f32 -1.702, %v4520_v45  ;;  %v4515_v27 = vadd.f32 %v5186_v15, %v4514_v23 }
0x18a8   :  { %6478 = vpow2.f32 %v4533_v36  ;;  %v4539_v6 = vmul.f32 1.442695, %v4528_v43  ;;  %v4527_v18 = vmul.f32 -1.702, %v4515_v27 }
0x18aa   :  { %6480 = vpow2.f32 %v4539_v6  ;;  %v4537_v48 = vmul.f32 1.442695, %v4527_v18 }
0x18ac   :  { %6482 = vpow2.f32 %v4537_v48 }
0x18af   :  { %v6473_v1 = vpop.eup %6472 }
0x18b0   :  { %v4542_v10 = vadd.f32 1.0, %v6473_v1 }
0x18b1   :  { %v6475_v47 = vpop.eup %6474 }
0x18b2   :  { %v4541_v5 = vadd.f32 1.0, %v6475_v47  ;;  %6484 = vrcp.f32 %v4542_v10 }
0x18b3   :  { %v6477_v56 = vpop.eup %6476 }
0x18b4   :  { %6486 = vrcp.f32 %v4541_v5  ;;  %v4544_v35 = vadd.f32 1.0, %v6477_v56 }
0x18b5   :  { %v6479_v55 = vpop.eup %6478 }
0x18b6   :  { %v4543_v63 = vadd.f32 1.0, %v6479_v55  ;;  %6488 = vrcp.f32 %v4544_v35 }
0x18b7   :  { %v6481_v7 = vpop.eup %6480 }
0x18b8   :  { %6490 = vrcp.f32 %v4543_v63  ;;  %v4546_v19 = vadd.f32 1.0, %v6481_v7 }
0x18b9   :  { %v6483_v17 = vpop.eup %6482 }
0x18ba   :  { %v4545_v20 = vadd.f32 1.0, %v6483_v17  ;;  %6492 = vrcp.f32 %v4546_v19 }
0x18bc   :  { %6494 = vrcp.f32 %v4545_v20 }
0x18bf   :  { %v6485_v11 = vpop.eup %6484 }
0x18c0   :  { %v4560_v54 = vmul.f32 %v6485_v11, %v4500_v49 }
0x18c1   :  { %v6487_v44 = vpop.eup %6486 }
0x18c2   :  { %v4559_v39 = vmul.f32 %v6487_v44, %v4495_v4 }
0x18c3   :  { %v6489_v16 = vpop.eup %6488 }
0x18c4   :  { %6125 = vmatprep.mubr.f32.mxu0 %v4559_v39  ;;  %v4562_v32 = vmul.f32 %v6489_v16, %v4510_v46 }
0x18c5   :  { %v6491_v50 = vpop.eup %6490  ;;  %6126 = vmatmul.mubr.f32.vlgmr.msra.gmra.mxu0 %v4560_v54 }
0x18c6   :  { %v4561_v2 = vmul.f32 %v6491_v50, %v4505_v29 }
0x18c7   :  { %v6493_v9 = vpop.eup %6492 }
0x18c8   :  { %6128 = vmatprep.mubr.f32.mxu0 %v4561_v2  ;;  %v4564_v31 = vmul.f32 %v6493_v9, %v4520_v45 }
0x18c9   :  { %v6495_v53 = vpop.eup %6494  ;;  %6129 = vmatmul.mubr.f32.gmra.mxu0 %v4562_v32 }
0x18ca   :  { %v4563_v12 = vmul.f32 %v6495_v53, %v4515_v27 }
0x18cc   :  { %6131 = vmatprep.mubr.f32.mxu0 %v4563_v12 }
0x18cd   :  { %6132 = vmatmul.mubr.f32.gmra.mxu0 %v4564_v31 }
0x1985   :  { %v6127_v34 = vpop.f32.mrf.mxu0 }
0x1986   :  { %v4661_v59 = vadd.f32 %v6127_v34, %v7980_v61 }
0x1987   :  { %v4631_v28 = vpop.f32.mrf.mxu0 }
0x1988   :  { %v4660_v60 = vadd.f32 %v4631_v28, %v7983_v38 }
0x1989   :  { %v6130_v37 = vpop.f32.mrf.mxu0 }
0x198a   :  { %v4663_v57 = vadd.f32 %v6130_v37, %v7988_v21 }
0x198b   :  { %v4641_v8 = vpop.f32.mrf.mxu0 }
0x198c   :  { %v4662_v26 = vadd.f32 %v4641_v8, %v7993_v41  ;;  %v4675_v4 = vadd.f32 %v5193_v52, %v4663_v57  ;;  %v4672_v41 = vadd.f32 %v5193_v52, %v4660_v60 }
0x198d   :  { %v6133_v42 = vpop.f32.mrf.mxu0 }
0x198e   :  { %v4665_v62 = vadd.f32 %v6133_v42, %v7998_v30  ;;  %v4674_v46 = vadd.f32 %v5193_v52, %v4662_v26  ;;  %v4673_v30 = vadd.f32 %v5193_v52, %v4661_v59  ;;  %v4687_v0 = vsel %vm287_vm0, %v4675_v4, 0.0 }
0x198f   :  { %v4651_v15 = vpop.f32.mrf.mxu0  ;;  %v4678_v22 = vsel %vm287_vm0, %v4672_v41, 0.0 }
0x1990   :  { %v4677_v49 = vadd.f32 %v5193_v52, %v4665_v62  ;;  %v4664_v3 = vadd.f32 %v4651_v15, %v8003_v24  ;;  %v4684_v24 = vsel %vm287_vm0, %v4674_v46, 0.0  ;;  %v4681_v61 = vsel %vm287_vm0, %v4673_v30, 0.0 }
0x1992   :  { %v4676_v58 = vadd.f32 %v5193_v52, %v4664_v3  ;;  %v4693_v25 = vsel %vm287_vm0, %v4677_v49, 0.0  ;;  %v5194_v3 = vld [vmem:[%s4964_s22] ss:$0 sm:$0xff] }
0x1993   :  { %4694 = vadd.xlane.f32.xlu0 %v4693_v25 }
0x1994   :  { %v4690_v21 = vsel %vm287_vm0, %v4676_v58, 0.0 }
0x1995   :  { %4691 = vadd.xlane.f32.xlu1 %v4690_v21 }
0x1997   :  { %4688 = vadd.xlane.f32.xlu0 %v4687_v0 }
0x1999   :  { %4685 = vadd.xlane.f32.xlu1 %v4684_v24 }
0x199b   :  { %4682 = vadd.xlane.f32.xlu0 %v4681_v61 }
0x199d   :  { %4679 = vadd.xlane.f32.xlu1 %v4678_v22 }
0x1a1c   :  { %v4695_v13 = vpop.xlane.xlu0 %4694 }
0x1a1d   :  { %v4701_v38 = vmul.f32 0.03125, %v4695_v13 }
0x1a1e   :  { %v4692_v29 = vpop.xlane.xlu1 %4691 }
0x1a1f   :  { %v8106_v51 = vsub.f32 %v4677_v49, %v4701_v38  ;;  %v4700_v14 = vmul.f32 0.03125, %v4692_v29 }
0x1a20   :  { %v4689_v33 = vpop.xlane.xlu0 %4688 }
0x1a21   :  { %v8108_v45 = vsub.f32 %v4676_v58, %v4700_v14  ;;  %v4699_v23 = vmul.f32 0.03125, %v4689_v33  ;;  %v4713_v36 = vmul.f32 %v8106_v51, %v8106_v51  ;;  %v5195_v58 = vld [vmem:[%s4965_s26] ss:$0 sm:$0xff] }
0x1a22   :  { %v4686_v43 = vpop.xlane.xlu1 %4685 }
0x1a23   :  { %v8112_v27 = vsub.f32 %v4675_v4, %v4699_v23  ;;  %v4698_v6 = vmul.f32 0.03125, %v4686_v43  ;;  %v4729_v18 = vsel %vm287_vm0, %v4713_v36, 0.0  ;;  %v4712_v48 = vmul.f32 %v8108_v45, %v8108_v45 }
0x1a24   :  { %4730 = vadd.xlane.f32.xlu0 %v4729_v18  ;;  %v4683_v1 = vpop.xlane.xlu0 %4682  ;;  %v261_v18 = vld [vmem:[%s8155_s4 + $0x18] sm:$0xff] }
0x1a25   :  { %v8117_v10 = vsub.f32 %v4674_v46, %v4698_v6  ;;  %v4697_v47 = vmul.f32 0.03125, %v4683_v1  ;;  %v4726_v5 = vsel %vm287_vm0, %v4712_v48, 0.0  ;;  %v4711_v56 = vmul.f32 %v8112_v27, %v8112_v27  ;;  %v262_v6 = vld [vmem:[%s4967_s30] sm:$0x7]  ;;  %v260_v48 = vld [vmem:[%s8155_s4 + $0x10] sm:$0xff]  ;;  %v259_v1 = vld [vmem:[%s8155_s4 + $0x8] sm:$0xff] }
0x1a26   :  { %4727 = vadd.xlane.f32.xlu1 %v4726_v5  ;;  %v4680_v35 = vpop.xlane.xlu1 %4679 }
0x1a27   :  { %v8122_v55 = vsub.f32 %v4673_v30, %v4697_v47  ;;  %v4696_v63 = vmul.f32 0.03125, %v4680_v35  ;;  %v4723_v7 = vsel %vm287_vm0, %v4711_v56, 0.0  ;;  %v4710_v19 = vmul.f32 %v8117_v10, %v8117_v10 }
0x1a28   :  { %4724 = vadd.xlane.f32.xlu0 %v4723_v7 }
0x1a29   :  { %v8127_v17 = vsub.f32 %v4672_v41, %v4696_v63  ;;  %v4720_v20 = vsel %vm287_vm0, %v4710_v19, 0.0  ;;  %v4709_v11 = vmul.f32 %v8122_v55, %v8122_v55 }
0x1a2a   :  { %4721 = vadd.xlane.f32.xlu1 %v4720_v20 }
0x1a2b   :  { %v4717_v44 = vsel %vm287_vm0, %v4709_v11, 0.0  ;;  %v4708_v39 = vmul.f32 %v8127_v17, %v8127_v17 }
0x1a2c   :  { %4718 = vadd.xlane.f32.xlu0 %v4717_v44 }
0x1a2d   :  { %v4714_v54 = vsel %vm287_vm0, %v4708_v39, 0.0 }
0x1a2e   :  { %4715 = vadd.xlane.f32.xlu1 %v4714_v54 }
0x1aad   :  { %v4731_v16 = vpop.xlane.xlu0 %4730 }
0x1aae   :  { %v4737_v50 = vmul.f32 0.03125, %v4731_v16 }
0x1aaf   :  { %v4728_v2 = vpop.xlane.xlu1 %4727 }
0x1ab0   :  { %v4743_v32 = vadd.f32 1e-05, %v4737_v50  ;;  %v4736_v9 = vmul.f32 0.03125, %v4728_v2 }
0x1ab1   :  { %v4725_v53 = vpop.xlane.xlu0 %4724 }
0x1ab2   :  { %6496 = vrsqrt.f32 %v4743_v32  ;;  %v4742_v12 = vadd.f32 1e-05, %v4736_v9  ;;  %v4735_v31 = vmul.f32 0.03125, %v4725_v53 }
0x1ab3   :  { %v4722_v34 = vpop.xlane.xlu1 %4721 }
0x1ab4   :  { %6498 = vrsqrt.f32 %v4742_v12  ;;  %v4741_v28 = vadd.f32 1e-05, %v4735_v31  ;;  %v4734_v37 = vmul.f32 0.03125, %v4722_v34 }
0x1ab5   :  { %v4719_v8 = vpop.xlane.xlu0 %4718 }
0x1ab6   :  { %6500 = vrsqrt.f32 %v4741_v28  ;;  %v4740_v42 = vadd.f32 1e-05, %v4734_v37  ;;  %v4733_v57 = vmul.f32 0.03125, %v4719_v8 }
0x1ab7   :  { %v4716_v62 = vpop.xlane.xlu1 %4715 }
0x1ab8   :  { %6502 = vrsqrt.f32 %v4740_v42  ;;  %v4739_v52 = vadd.f32 1e-05, %v4733_v57  ;;  %v4732_v15 = vmul.f32 0.03125, %v4716_v62 }
0x1aba   :  { %6504 = vrsqrt.f32 %v4739_v52  ;;  %v4738_v26 = vadd.f32 1e-05, %v4732_v15 }
0x1abc   :  { %6506 = vrsqrt.f32 %v4738_v26 }
0x1abf   :  { %v6497_v49 = vpop.eup %6496 }
0x1ac0   :  { %v4755_v59 = vmul.f32 %v6497_v49, %v8106_v51 }
0x1ac1   :  { %v6499_v4 = vpop.eup %6498 }
0x1ac2   :  { %v4767_v25 = vmul.f32 %v5194_v3, %v4755_v59  ;;  %v4754_v60 = vmul.f32 %v6499_v4, %v8108_v45 }
0x1ac3   :  { %v6501_v46 = vpop.eup %6500 }
0x1ac4   :  { %v4779_v21 = vadd.f32 %v5195_v58, %v4767_v25  ;;  %v4766_v30 = vmul.f32 %v5194_v3, %v4754_v60  ;;  %v4753_v0 = vmul.f32 %v6501_v46, %v8112_v27 }
0x1ac5   :  { %v6503_v41 = vpop.eup %6502 }
0x1ac6   :  { %6135 = vmatpush3.msra.mxu1 %v4779_v21  ;;  %v4778_v24 = vadd.f32 %v5195_v58, %v4766_v30  ;;  %v4765_v61 = vmul.f32 %v5194_v3, %v4753_v0  ;;  %v4752_v22 = vmul.f32 %v6503_v41, %v8117_v10  ;;  %v258_v10 = vld [vmem:[%s8155_s4] sm:$0xff] }
0x1ac7   :  { %v6505_v13 = vpop.eup %6504  ;;  %6136 = vmatprep.subr.mxu1 %v8190_v40 }
0x1ac8   :  { %6137 = vmatpush3.msra.mxu1 %v4778_v24  ;;  %v4777_v38 = vadd.f32 %v5195_v58, %v4765_v61  ;;  %v4764_v29 = vmul.f32 %v5194_v3, %v4752_v22  ;;  %v4751_v51 = vmul.f32 %v6505_v13, %v8122_v55 }
0x1ac9   :  { %v6507_v14 = vpop.eup %6506  ;;  %6138 = vmatprep.subr.mxu1 %v8190_v40 }
0x1aca   :  { %6139 = vmatpush3.msra.mxu1 %v4777_v38  ;;  %v4776_v33 = vadd.f32 %v5195_v58, %v4764_v29  ;;  %v4763_v45 = vmul.f32 %v5194_v3, %v4751_v51  ;;  %v4750_v23 = vmul.f32 %v6507_v14, %v8127_v17 }
0x1acb   :  { %6140 = vmatprep.subr.mxu1 %v8190_v40 }
0x1acc   :  { %6141 = vmatpush3.msra.mxu1 %v4776_v33  ;;  %v4775_v36 = vadd.f32 %v5195_v58, %v4763_v45  ;;  %v4762_v43 = vmul.f32 %v5194_v3, %v4750_v23 }
0x1acd   :  { %6142 = vmatprep.subr.mxu1 %v8190_v40 }
0x1ace   :  { %6143 = vmatpush3.msra.mxu1 %v4775_v36  ;;  %v4774_v27 = vadd.f32 %v5195_v58, %v4762_v43 }
0x1acf   :  { %6144 = vmatprep.subr.mxu1 %v8190_v40 }
0x1ad0   :  { %6145 = vmatpush3.msra.mxu1 %v4774_v27 }
0x1ad1   :  { %6147 = vmatmul.mubr.msk.f32.vlgmr.msra.gmra.mxu1 %vm855_vm8, %v262_v6  ;;  %6149 = vmatprep.subr.mxu1 %v8190_v40 }
0x1ad2   :  { %6150 = vmatpush3.msra.mxu1 %v261_v18  ;;  %6157 = vmatprep.mubr.msk.f32.mxu1 %vm6554_vm12, %v8190_v40 }
0x1ad3   :  { %6151 = vmatprep.subr.mxu1 %v8190_v40 }
0x1ad4   :  { %6152 = vmatpush3.msra.mxu1 %v260_v48 }
0x1ad5   :  { %6153 = vmatprep.subr.mxu1 %v8190_v40 }
0x1ad6   :  { %6154 = vmatpush3.msra.mxu1 %v259_v1 }
0x1ad7   :  { %6155 = vmatprep.subr.mxu1 %v8190_v40 }
0x1ad8   :  { %6156 = vmatpush3.msra.mxu1 %v258_v10 }
0x1b91   :  { %v4849_v47 = vpop.f32.mrf.mxu1 }
0x1b92   :  { %6158 = vmatmul.mubr.msk.f32.vlgmr.msra.gmra.mxu1 %vm287_vm0, %v4849_v47 }
0x1b93   :  { %v6148_v5 = vpop.f32.mrf.mxu1 }
0x1c52   :  { %v4922_v56 = vpop.f32.mrf.mxu1 }
0x1c53   :  { %4927 = vst.msk [vmem:[%s4969_s9] sm:$0x7] %vm4926_vm13, %v4922_v56 }
0x1c54   :  { %v6159_v35 = vpop.f32.mrf.mxu1 }

</bundles_post_ra>
